<compile_context>
chip_gen: v5e
topology: v5e:2x2
jax: 0.10.0
libtpu: 0.0.40
codegen_flags: <defaults>
</compile_context>

<pallas_src>
import functools

import jax
import jax.numpy as jnp
from jax.experimental import pallas as pl
from jax.experimental.pallas import tpu as pltpu


_LANE = 128
_VMEM_LIMIT = 48 * 1024 * 1024   # generous scoped-VMEM headroom, still < v7x physical


# ----------------------------------------------------------------------------
# Small helpers
# ----------------------------------------------------------------------------
def _round_up(x, m):
    return ((x + m - 1) // m) * m


def _pad_last(x, target):
    pad = target - x.shape[-1]
    if pad == 0:
        return x
    widths = [(0, 0)] * (x.ndim - 1) + [(0, pad)]
    return jnp.pad(x, widths)


def _const_spec(shape):
    """Full-array block whose index_map is constant (weights / biases: resident, no re-DMA)."""
    zeros = (0,) * len(shape)
    # TODO(synk): on v7x, pipeline_mode=pl.Buffered(1) here would skip double-buffering
    # these constant operands; omitted to keep the kernel maximally portable.
    return pl.BlockSpec(shape, lambda *_, z=zeros: z)


def _pick_row_tile(S, K, c_max, budget_bytes=4 << 20):
    """Largest row tile TS (divisor of S, (8,128)-legal) whose largest f32 intermediate
    [TS*K, c_max] stays within ~4 MiB, so VMEM stays bounded at production sizes."""
    valid = [ts for ts in range(1, S + 1)
             if S % ts == 0 and (ts == S or (ts % 8 == 0 and (ts * K) % 8 == 0))]
    fitting = [ts for ts in valid if ts * K * c_max * 4 <= budget_bytes]
    return max(fitting) if fitting else min(valid)


# ----------------------------------------------------------------------------
# Pallas kernels
# ----------------------------------------------------------------------------
def _sa_mlp_pallas(x_grouped, mlp_params):
    """x_grouped: [B, S, K, Cin] f32 -> [B, S, C3] f32.
    3-layer pointwise MLP (conv+BN folded, ReLU) followed by max over the K neighbors."""
    B, S, K, Cin = x_grouped.shape
    (w1, b1), (w2, b2), (w3, b3) = mlp_params          # weights bf16 (BN-scale folded), biases f32
    Cin_p = w1.shape[0]                                # first-layer contraction dim, padded to 128
    C1, C2, C3 = w1.shape[1], w2.shape[1], w3.shape[1]

    # Channel-padded, bf16 activations: clean lane-dense DMA + half the HBM bytes.
    x2 = _pad_last(x_grouped, Cin_p).reshape(B, S * K, Cin_p).astype(jnp.bfloat16)

    TS = _pick_row_tile(S, K, max(C1, C2, C3))
    n_tiles = S // TS

    def kernel(x_ref, w1r, b1r, w2r, b2r, w3r, b3r, o_ref):
        h = x_ref[0]                                                          # [TS*K, Cin_p] bf16
        h = jnp.maximum(
            jnp.dot(h, w1r[...], preferred_element_type=jnp.float32) + b1r[...], 0.0)
        h = jnp.maximum(
            jnp.dot(h.astype(jnp.bfloat16), w2r[...],
                    preferred_element_type=jnp.float32) + b2r[...], 0.0)
        h = jnp.maximum(
            jnp.dot(h.astype(jnp.bfloat16), w3r[...],
                    preferred_element_type=jnp.float32) + b3r[...], 0.0)
        o_ref[0] = jnp.max(h.reshape(TS, K, C3), axis=1)                      # max over neighborhood K

    in_specs = [pl.BlockSpec((1, TS * K, Cin_p), lambda b, t: (b, t, 0))]
    param_flat = (w1, b1, w2, b2, w3, b3)
    for p in param_flat:
        in_specs.append(_const_spec(p.shape))

    flops = 2 * B * S * K * (Cin_p * C1 + C1 * C2 + C2 * C3)
    bytes_accessed = (x2.size * 2
                      + sum(int(p.size) * p.dtype.itemsize for p in param_flat)
                      + B * S * C3 * 4)

    return pl.pallas_call(
        kernel,
        grid=(B, n_tiles),
        out_shape=jax.ShapeDtypeStruct((B, S, C3), jnp.float32),
        in_specs=in_specs,
        out_specs=pl.BlockSpec((1, TS, C3), lambda b, t: (b, t, 0)),
        compiler_params=pltpu.CompilerParams(
            dimension_semantics=("parallel", "parallel"),
            vmem_limit_bytes=_VMEM_LIMIT),
        cost_estimate=pl.CostEstimate(flops=int(flops), transcendentals=0,
                                      bytes_accessed=int(bytes_accessed)),
    )(x2, *param_flat)


def _sa4_head_pallas(x_grouped, sa4_params, head_params):
    """Fused sa4 (group_all MLP + max pool) and FC head.
    x_grouped: [B, 1, S3, Cin] -> [B, 1, NC_PAD] (lane-dense padded logits)."""
    B, _, S3, Cin = x_grouped.shape
    (w1, b1), (w2, b2), (w3, b3) = sa4_params
    (fw1, fb1), (fw2, fb2), (fw3, fb3) = head_params
    Cin_p = w1.shape[0]
    C1, C2, C3 = w1.shape[1], w2.shape[1], w3.shape[1]
    F1, F2, NC_PAD = fw1.shape[1], fw2.shape[1], fw3.shape[1]

    x2 = _pad_last(x_grouped.reshape(B, S3, Cin), Cin_p).astype(jnp.bfloat16)

    def kernel(x_ref, w1r, b1r, w2r, b2r, w3r, b3r,
               fw1r, fb1r, fw2r, fb2r, fw3r, fb3r, o_ref):
        def mm(a, w, b):
            return jnp.dot(a.astype(jnp.bfloat16), w[...],
                           preferred_element_type=jnp.float32) + b[...]

        h = jnp.maximum(mm(x_ref[0], w1r, b1r), 0.0)          # [S3, 512]
        h = jnp.maximum(mm(h, w2r, b2r), 0.0)                 # [S3, 512]
        h = jnp.maximum(mm(h, w3r, b3r), 0.0)                 # [S3, 1024]
        g = jnp.max(h, axis=0, keepdims=True)                 # group_all max pool -> [1, 1024]
        g = jnp.maximum(mm(g, fw1r, fb1r), 0.0)               # fc1+bn1+relu (drop1 = id in eval)
        g = jnp.maximum(mm(g, fw2r, fb2r), 0.0)               # fc2+bn2+relu (drop2 = id in eval)
        o_ref[0] = mm(g, fw3r, fb3r)                          # fc3, lane-dense padded output

    in_specs = [pl.BlockSpec((1, S3, Cin_p), lambda b: (b, 0, 0))]
    param_flat = (w1, b1, w2, b2, w3, b3, fw1, fb1, fw2, fb2, fw3, fb3)
    for p in param_flat:
        in_specs.append(_const_spec(p.shape))

    flops = (2 * B * S3 * (Cin_p * C1 + C1 * C2 + C2 * C3)
             + 2 * B * (C3 * F1 + F1 * F2 + F2 * NC_PAD))
    bytes_accessed = (x2.size * 2
                      + sum(int(p.size) * p.dtype.itemsize for p in param_flat)
                      + B * NC_PAD * 4)

    return pl.pallas_call(
        kernel,
        grid=(B,),
        out_shape=jax.ShapeDtypeStruct((B, 1, NC_PAD), jnp.float32),
        in_specs=in_specs,
        out_specs=pl.BlockSpec((1, 1, NC_PAD), lambda b: (b, 0, 0)),
        compiler_params=pltpu.CompilerParams(
            dimension_semantics=("parallel",),
            vmem_limit_bytes=_VMEM_LIMIT),
        cost_estimate=pl.CostEstimate(flops=int(flops), transcendentals=0,
                                      bytes_accessed=int(bytes_accessed)),
    )(x2, *param_flat)


# ----------------------------------------------------------------------------
# Plain-JAX glue: FPS, ball query, grouping (data-dependent index ops)
# ----------------------------------------------------------------------------
def _index_points(points, idx):
    B = points.shape[0]
    C = points.shape[-1]
    flat = idx.reshape(B, -1)
    out = jnp.take_along_axis(points, flat[..., None], axis=1)
    return out.reshape(idx.shape + (C,))


def _farthest_point_sample(xyz, npoint):
    B, N, _ = xyz.shape

    def body(i, state):
        centroids, distance, farthest = state
        centroids = centroids.at[:, i].set(farthest)
        idx = jnp.broadcast_to(farthest[:, None, None], (B, 1, 3))
        centroid = jnp.take_along_axis(xyz, idx, axis=1)              # [B, 1, 3]
        dist = jnp.sum((xyz - centroid) ** 2, axis=-1)                # [B, N]
        distance = jnp.minimum(distance, dist)
        farthest = jnp.argmax(distance, axis=-1).astype(jnp.int32)
        return centroids, distance, farthest

    centroids = jnp.zeros((B, npoint), jnp.int32)
    distance = jnp.full((B, N), 1e10, jnp.float32)
    # TODO(synk): reference torch code seeds FPS with a random start index; we use index 0.
    farthest = jnp.zeros((B,), jnp.int32)
    centroids, _, _ = jax.lax.fori_loop(0, npoint, body, (centroids, distance, farthest))
    return centroids


def _query_ball_point(radius, nsample, xyz, new_xyz):
    B, N, _ = xyz.shape
    S = new_xyz.shape[1]
    sqrdists = jnp.sum((new_xyz[:, :, None, :] - xyz[:, None, :, :]) ** 2, axis=-1)
    group_idx = jnp.broadcast_to(jnp.arange(N, dtype=jnp.int32), (B, S, N))
    group_idx = jnp.where(sqrdists > radius ** 2, jnp.int32(N), group_idx)
    group_idx = jnp.sort(group_idx, axis=-1)[:, :, :nsample]
    group_first = group_idx[:, :, :1]
    group_idx = jnp.where(group_idx == N, group_first, group_idx)
    return group_idx


def _sample_and_group(npoint, radius, nsample, xyz, points):
    fps_idx = _farthest_point_sample(xyz, npoint)             # [B, S]
    new_xyz = _index_points(xyz, fps_idx)                     # [B, S, 3]
    idx = _query_ball_point(radius, nsample, xyz, new_xyz)    # [B, S, K]
    grouped_xyz = _index_points(xyz, idx)                     # [B, S, K, 3]
    grouped_xyz_norm = grouped_xyz - new_xyz[:, :, None, :]
    grouped_points = _index_points(points, idx)               # [B, S, K, D]
    new_points = jnp.concatenate([grouped_xyz_norm, grouped_points], axis=-1)
    return new_xyz, new_points


# ----------------------------------------------------------------------------
# Full forward pass (== get_model.forward, eval mode)
# ----------------------------------------------------------------------------
def pointnet2_forward(xyzr, params, cfg):
    B = xyzr.shape[0]
    xyz = jnp.transpose(xyzr[:, :3, :], (0, 2, 1))      # [B, N, 3]
    feats = jnp.transpose(xyzr[:, 3:4, :], (0, 2, 1))   # [B, N, 1]

    def sa(xyz_in, pts_in, npoint, radius, nsample, mlp_params):
        new_xyz, new_pts = _sample_and_group(npoint, radius, nsample, xyz_in, pts_in)
        return new_xyz, _sa_mlp_pallas(new_pts, mlp_params)

    npb, rb, nsb = cfg["npoint_base"], cfg["radius_base"], cfg["nsample_base"]
    l1_xyz, l1_pts = sa(xyz, feats, npb, rb, nsb, params["sa1"])
    l2_xyz, l2_pts = sa(l1_xyz, l1_pts, npb // 2, rb * 2, nsb * 2, params["sa2"])
    l3_xyz, l3_pts = sa(l2_xyz, l2_pts, npb // 4, rb * 4, nsb * 4, params["sa3"])

    # sa4: group_all (coordinates are NOT re-centered in the reference), fused with the FC head.
    new_pts4 = jnp.concatenate([l3_xyz[:, None, :, :], l3_pts[:, None, :, :]], axis=-1)
    logits_padded = _sa4_head_pallas(new_pts4, params["sa4"], params["head"])   # [B, 1, 128]
    return logits_padded.reshape(B, -1)[:, :cfg["num_class"]]


# ----------------------------------------------------------------------------
# Deterministic parameter initialization (fresh module; eval-mode BN folded into weights)
# ----------------------------------------------------------------------------
def init_params(key, num_class):
    eps = 1e-5

    def folded_layer(k, cin, cout, pad_in=None):
        """Conv1x1/Linear + BatchNorm(eval) folded to y = x @ w + b (w bf16, b f32)."""
        k1, k2 = jax.random.split(k)
        w = jax.random.normal(k1, (cin, cout), jnp.float32) * jnp.sqrt(2.0 / cin)
        b_lin = jax.random.normal(k2, (cout,), jnp.float32) * 0.01
        gamma = jnp.ones((cout,), jnp.float32)
        beta = jnp.zeros((cout,), jnp.float32)
        rmean = jnp.zeros((cout,), jnp.float32)
        rvar = jnp.ones((cout,), jnp.float32)
        scale = gamma / jnp.sqrt(rvar + eps)
        w_f = w * scale[None, :]                           # BN scale folded into weights
        b_f = (b_lin - rmean) * scale + beta               # BN shift stays as f32 bias
        if pad_in is not None and pad_in > cin:
            w_f = jnp.pad(w_f, ((0, pad_in - cin), (0, 0)))  # zero rows match padded input channels
        return w_f.astype(jnp.bfloat16), b_f.reshape(1, cout).astype(jnp.float32)

    def mlp_stack(k, cin, chans):
        ks = jax.random.split(k, len(chans))
        layers, last = [], cin
        for i, (kk, c) in enumerate(zip(ks, chans)):
            pad_in = _round_up(last, _LANE) if i == 0 else None
            layers.append(folded_layer(kk, last, c, pad_in=pad_in))
            last = c
        return tuple(layers)

    keys = jax.random.split(key, 7)
    params = {
        "sa1": mlp_stack(keys[0], 4, [64, 64, 128]),
        "sa2": mlp_stack(keys[1], 128 + 3, [128, 128, 256]),
        "sa3": mlp_stack(keys[2], 256 + 3, [256, 256, 512]),
        "sa4": mlp_stack(keys[3], 512 + 3, [512, 512, 1024]),
    }
    fc1 = folded_layer(keys[4], 1024, 512)
    fc2 = folded_layer(keys[5], 512, 256)
    k1, k2 = jax.random.split(keys[6])
    nc_pad = _round_up(max(num_class, 1), _LANE)           # lane-dense padded head output
    w3 = jax.random.normal(k1, (256, num_class), jnp.float32) * jnp.sqrt(1.0 / 256)
    b3 = jax.random.normal(k2, (num_class,), jnp.float32) * 0.01
    w3p = jnp.pad(w3, ((0, 0), (0, nc_pad - num_class))).astype(jnp.bfloat16)
    b3p = jnp.pad(b3, (0, nc_pad - num_class)).reshape(1, nc_pad).astype(jnp.float32)
    params["head"] = (fc1, fc2, (w3p, b3p))
    return params


if __name__ == "__main__":
    NUM_CLASS = 3
    NPOINT_BASE = 16
    RADIUS_BASE = 0.4   # points live in the unit cube (reference default 40 assumes mm coords)
    NSAMPLE_BASE = 8
    B, N = 2, 64

    key = jax.random.PRNGKey(0)
    kx, kp = jax.random.split(key)
    xyzr = jax.random.uniform(kx, (B, 4, N), jnp.float32)   # [B, 4(xyz+r), N]

    params = init_params(kp, NUM_CLASS)
    cfg = {"npoint_base": NPOINT_BASE, "radius_base": RADIUS_BASE,
           "nsample_base": NSAMPLE_BASE, "num_class": NUM_CLASS}

    fwd = jax.jit(functools.partial(pointnet2_forward, cfg=cfg))
    out = fwd(xyzr, params)
    jax.block_until_ready(out)
    assert out.shape == (B, NUM_CLASS) and out.dtype == jnp.float32
    print("KERNEL_OK")
</pallas_src>

<mosaic_0001>
module attributes {stable_mosaic.version = 11 : i64} {
  func.func @kernel(%arg0: i32, %arg1: i32, %arg2: memref<1x128x128xbf16, #tpu.memory_space<vmem>>, %arg3: memref<128x64xbf16, #tpu.memory_space<vmem>>, %arg4: memref<1x64xf32, #tpu.memory_space<vmem>>, %arg5: memref<64x64xbf16, #tpu.memory_space<vmem>>, %arg6: memref<1x64xf32, #tpu.memory_space<vmem>>, %arg7: memref<64x128xbf16, #tpu.memory_space<vmem>>, %arg8: memref<1x128xf32, #tpu.memory_space<vmem>>, %arg9: memref<1x16x128xf32, #tpu.memory_space<vmem>>) attributes {dimension_semantics = [#tpu.dimension_semantics<parallel>, #tpu.dimension_semantics<parallel>], iteration_bounds = array<i64: 2, 1>, scalar_prefetch = 0 : i64, scratch_operands = 0 : i64, tpu.core_type = #tpu.core_type<tc>, window_params = [{transform_indices = @transform_0, window_bounds = array<i64: 1, 128, 128>}, {pipeline_mode = #tpu.pipeline_mode<synchronous>, transform_indices = @transform_1, window_bounds = array<i64: 128, 64>}, {pipeline_mode = #tpu.pipeline_mode<synchronous>, transform_indices = @transform_2, window_bounds = array<i64: 1, 64>}, {pipeline_mode = #tpu.pipeline_mode<synchronous>, transform_indices = @transform_3, window_bounds = array<i64: 64, 64>}, {pipeline_mode = #tpu.pipeline_mode<synchronous>, transform_indices = @transform_4, window_bounds = array<i64: 1, 64>}, {pipeline_mode = #tpu.pipeline_mode<synchronous>, transform_indices = @transform_5, window_bounds = array<i64: 64, 128>}, {pipeline_mode = #tpu.pipeline_mode<synchronous>, transform_indices = @transform_6, window_bounds = array<i64: 1, 128>}, {transform_indices = @transform_7, window_bounds = array<i64: 1, 16, 128>}]} {
    %c0 = arith.constant 0 : index
    %c0_0 = arith.constant 0 : index
    %c0_1 = arith.constant 0 : index
    %0 = vector.load %arg2[%c0, %c0_0, %c0_1] : memref<1x128x128xbf16, #tpu.memory_space<vmem>>, vector<1x128x128xbf16>
    %1 = vector.shape_cast %0 : vector<1x128x128xbf16> to vector<128x128xbf16>
    %c0_2 = arith.constant 0 : index
    %c0_3 = arith.constant 0 : index
    %2 = vector.load %arg3[%c0_2, %c0_3] : memref<128x64xbf16, #tpu.memory_space<vmem>>, vector<128x64xbf16>
    %cst = arith.constant dense<0.000000e+00> : vector<128x64xf32>
    %3 = tpu.matmul %1, %2, %cst {dimension_numbers = #tpu.dot_dimension_numbers<[1], [0], [0], [1], [0, 0, 1, 1], [], []>} : vector<128x128xbf16>, vector<128x64xbf16>, vector<128x64xf32> -> vector<128x64xf32>
    %c0_4 = arith.constant 0 : index
    %c0_5 = arith.constant 0 : index
    %4 = vector.load %arg4[%c0_4, %c0_5] : memref<1x64xf32, #tpu.memory_space<vmem>>, vector<1x64xf32>
    %5 = vector.broadcast %4 : vector<1x64xf32> to vector<128x64xf32>
    %6 = arith.addf %3, %5 : vector<128x64xf32>
    %cst_6 = arith.constant 0.000000e+00 : f32
    %7 = vector.broadcast %cst_6 : f32 to vector<128x64xf32>
    %8 = arith.maximumf %6, %7 : vector<128x64xf32>
    %9 = arith.truncf %8 : vector<128x64xf32> to vector<128x64xbf16>
    %c0_7 = arith.constant 0 : index
    %c0_8 = arith.constant 0 : index
    %10 = vector.load %arg5[%c0_7, %c0_8] : memref<64x64xbf16, #tpu.memory_space<vmem>>, vector<64x64xbf16>
    %cst_9 = arith.constant dense<0.000000e+00> : vector<128x64xf32>
    %11 = tpu.matmul %9, %10, %cst_9 {dimension_numbers = #tpu.dot_dimension_numbers<[1], [0], [0], [1], [0, 0, 1, 1], [], []>} : vector<128x64xbf16>, vector<64x64xbf16>, vector<128x64xf32> -> vector<128x64xf32>
    %c0_10 = arith.constant 0 : index
    %c0_11 = arith.constant 0 : index
    %12 = vector.load %arg6[%c0_10, %c0_11] : memref<1x64xf32, #tpu.memory_space<vmem>>, vector<1x64xf32>
    %13 = vector.broadcast %12 : vector<1x64xf32> to vector<128x64xf32>
    %14 = arith.addf %11, %13 : vector<128x64xf32>
    %cst_12 = arith.constant 0.000000e+00 : f32
    %15 = vector.broadcast %cst_12 : f32 to vector<128x64xf32>
    %16 = arith.maximumf %14, %15 : vector<128x64xf32>
    %17 = arith.truncf %16 : vector<128x64xf32> to vector<128x64xbf16>
    %c0_13 = arith.constant 0 : index
    %c0_14 = arith.constant 0 : index
    %18 = vector.load %arg7[%c0_13, %c0_14] : memref<64x128xbf16, #tpu.memory_space<vmem>>, vector<64x128xbf16>
    %cst_15 = arith.constant dense<0.000000e+00> : vector<128x128xf32>
    %19 = tpu.matmul %17, %18, %cst_15 {dimension_numbers = #tpu.dot_dimension_numbers<[1], [0], [0], [1], [0, 0, 1, 1], [], []>} : vector<128x64xbf16>, vector<64x128xbf16>, vector<128x128xf32> -> vector<128x128xf32>
    %c0_16 = arith.constant 0 : index
    %c0_17 = arith.constant 0 : index
    %20 = vector.load %arg8[%c0_16, %c0_17] : memref<1x128xf32, #tpu.memory_space<vmem>>, vector<1x128xf32>
    %21 = vector.broadcast %20 : vector<1x128xf32> to vector<128x128xf32>
    %22 = arith.addf %19, %21 : vector<128x128xf32>
    %cst_18 = arith.constant 0.000000e+00 : f32
    %23 = vector.broadcast %cst_18 : f32 to vector<128x128xf32>
    %24 = arith.maximumf %22, %23 : vector<128x128xf32>
    %25 = vector.shape_cast %24 : vector<128x128xf32> to vector<16x8x128xf32>
    %cst_19 = arith.constant dense<0xFF800000> : vector<16x128xf32>
    %26 = vector.multi_reduction <maximumf>, %25, %cst_19 [1] : vector<16x8x128xf32> to vector<16x128xf32>
    %c0_20 = arith.constant 0 : index
    %c0_21 = arith.constant 0 : index
    %c0_22 = arith.constant 0 : index
    %27 = vector.load %arg9[%c0_20, %c0_21, %c0_22] : memref<1x16x128xf32, #tpu.memory_space<vmem>>, vector<1x16x128xf32>
    %28 = vector.shape_cast %27 : vector<1x16x128xf32> to vector<16x128xf32>
    %29 = vector.shape_cast %26 : vector<16x128xf32> to vector<1x16x128xf32>
    tpu.vector_store %arg9[%c0_20, %c0_21, %c0_22], %29 {strides = array<i32>} : memref<1x16x128xf32, #tpu.memory_space<vmem>>, vector<1x16x128xf32>,
    return
  }
  func.func @transform_0(%arg0: i32, %arg1: i32) -> (i32, i32, i32) {
    %c0_i32 = arith.constant 0 : i32
    %c0_i32_0 = arith.constant 0 : i32
    return %arg0, %arg1, %c0_i32 : i32, i32, i32
  }
  func.func @transform_1(%arg0: i32, %arg1: i32) -> (i32, i32) {
    %c0_i32 = arith.constant 0 : i32
    %c0_i32_0 = arith.constant 0 : i32
    %c0_i32_1 = arith.constant 0 : i32
    return %c0_i32, %c0_i32_0 : i32, i32
  }
  func.func @transform_2(%arg0: i32, %arg1: i32) -> (i32, i32) {
    %c0_i32 = arith.constant 0 : i32
    %c0_i32_0 = arith.constant 0 : i32
    %c0_i32_1 = arith.constant 0 : i32
    return %c0_i32, %c0_i32_0 : i32, i32
  }
  func.func @transform_3(%arg0: i32, %arg1: i32) -> (i32, i32) {
    %c0_i32 = arith.constant 0 : i32
    %c0_i32_0 = arith.constant 0 : i32
    %c0_i32_1 = arith.constant 0 : i32
    return %c0_i32, %c0_i32_0 : i32, i32
  }
  func.func @transform_4(%arg0: i32, %arg1: i32) -> (i32, i32) {
    %c0_i32 = arith.constant 0 : i32
    %c0_i32_0 = arith.constant 0 : i32
    %c0_i32_1 = arith.constant 0 : i32
    return %c0_i32, %c0_i32_0 : i32, i32
  }
  func.func @transform_5(%arg0: i32, %arg1: i32) -> (i32, i32) {
    %c0_i32 = arith.constant 0 : i32
    %c0_i32_0 = arith.constant 0 : i32
    %c0_i32_1 = arith.constant 0 : i32
    return %c0_i32, %c0_i32_0 : i32, i32
  }
  func.func @transform_6(%arg0: i32, %arg1: i32) -> (i32, i32) {
    %c0_i32 = arith.constant 0 : i32
    %c0_i32_0 = arith.constant 0 : i32
    %c0_i32_1 = arith.constant 0 : i32
    return %c0_i32, %c0_i32_0 : i32, i32
  }
  func.func @transform_7(%arg0: i32, %arg1: i32) -> (i32, i32, i32) {
    %c0_i32 = arith.constant 0 : i32
    %c0_i32_0 = arith.constant 0 : i32
    return %arg0, %arg1, %c0_i32 : i32, i32, i32
  }
}

module attributes {stable_mosaic.version = 11 : i64} {
  func.func @kernel(%arg0: i32, %arg1: i32, %arg2: memref<1x128x256xbf16, #tpu.memory_space<vmem>>, %arg3: memref<256x128xbf16, #tpu.memory_space<vmem>>, %arg4: memref<1x128xf32, #tpu.memory_space<vmem>>, %arg5: memref<128x128xbf16, #tpu.memory_space<vmem>>, %arg6: memref<1x128xf32, #tpu.memory_space<vmem>>, %arg7: memref<128x256xbf16, #tpu.memory_space<vmem>>, %arg8: memref<1x256xf32, #tpu.memory_space<vmem>>, %arg9: memref<1x8x256xf32, #tpu.memory_space<vmem>>) attributes {dimension_semantics = [#tpu.dimension_semantics<parallel>, #tpu.dimension_semantics<parallel>], iteration_bounds = array<i64: 2, 1>, scalar_prefetch = 0 : i64, scratch_operands = 0 : i64, tpu.core_type = #tpu.core_type<tc>, window_params = [{transform_indices = @transform_0, window_bounds = array<i64: 1, 128, 256>}, {pipeline_mode = #tpu.pipeline_mode<synchronous>, transform_indices = @transform_1, window_bounds = array<i64: 256, 128>}, {pipeline_mode = #tpu.pipeline_mode<synchronous>, transform_indices = @transform_2, window_bounds = array<i64: 1, 128>}, {pipeline_mode = #tpu.pipeline_mode<synchronous>, transform_indices = @transform_3, window_bounds = array<i64: 128, 128>}, {pipeline_mode = #tpu.pipeline_mode<synchronous>, transform_indices = @transform_4, window_bounds = array<i64: 1, 128>}, {pipeline_mode = #tpu.pipeline_mode<synchronous>, transform_indices = @transform_5, window_bounds = array<i64: 128, 256>}, {pipeline_mode = #tpu.pipeline_mode<synchronous>, transform_indices = @transform_6, window_bounds = array<i64: 1, 256>}, {transform_indices = @transform_7, window_bounds = array<i64: 1, 8, 256>}]} {
    %c0 = arith.constant 0 : index
    %c0_0 = arith.constant 0 : index
    %c0_1 = arith.constant 0 : index
    %0 = vector.load %arg2[%c0, %c0_0, %c0_1] : memref<1x128x256xbf16, #tpu.memory_space<vmem>>, vector<1x128x256xbf16>
    %1 = vector.shape_cast %0 : vector<1x128x256xbf16> to vector<128x256xbf16>
    %c0_2 = arith.constant 0 : index
    %c0_3 = arith.constant 0 : index
    %2 = vector.load %arg3[%c0_2, %c0_3] : memref<256x128xbf16, #tpu.memory_space<vmem>>, vector<256x128xbf16>
    %cst = arith.constant dense<0.000000e+00> : vector<128x128xf32>
    %3 = tpu.matmul %1, %2, %cst {dimension_numbers = #tpu.dot_dimension_numbers<[1], [0], [0], [1], [0, 0, 1, 1], [], []>} : vector<128x256xbf16>, vector<256x128xbf16>, vector<128x128xf32> -> vector<128x128xf32>
    %c0_4 = arith.constant 0 : index
    %c0_5 = arith.constant 0 : index
    %4 = vector.load %arg4[%c0_4, %c0_5] : memref<1x128xf32, #tpu.memory_space<vmem>>, vector<1x128xf32>
    %5 = vector.broadcast %4 : vector<1x128xf32> to vector<128x128xf32>
    %6 = arith.addf %3, %5 : vector<128x128xf32>
    %cst_6 = arith.constant 0.000000e+00 : f32
    %7 = vector.broadcast %cst_6 : f32 to vector<128x128xf32>
    %8 = arith.maximumf %6, %7 : vector<128x128xf32>
    %9 = arith.truncf %8 : vector<128x128xf32> to vector<128x128xbf16>
    %c0_7 = arith.constant 0 : index
    %c0_8 = arith.constant 0 : index
    %10 = vector.load %arg5[%c0_7, %c0_8] : memref<128x128xbf16, #tpu.memory_space<vmem>>, vector<128x128xbf16>
    %cst_9 = arith.constant dense<0.000000e+00> : vector<128x128xf32>
    %11 = tpu.matmul %9, %10, %cst_9 {dimension_numbers = #tpu.dot_dimension_numbers<[1], [0], [0], [1], [0, 0, 1, 1], [], []>} : vector<128x128xbf16>, vector<128x128xbf16>, vector<128x128xf32> -> vector<128x128xf32>
    %c0_10 = arith.constant 0 : index
    %c0_11 = arith.constant 0 : index
    %12 = vector.load %arg6[%c0_10, %c0_11] : memref<1x128xf32, #tpu.memory_space<vmem>>, vector<1x128xf32>
    %13 = vector.broadcast %12 : vector<1x128xf32> to vector<128x128xf32>
    %14 = arith.addf %11, %13 : vector<128x128xf32>
    %cst_12 = arith.constant 0.000000e+00 : f32
    %15 = vector.broadcast %cst_12 : f32 to vector<128x128xf32>
    %16 = arith.maximumf %14, %15 : vector<128x128xf32>
    %17 = arith.truncf %16 : vector<128x128xf32> to vector<128x128xbf16>
    %c0_13 = arith.constant 0 : index
    %c0_14 = arith.constant 0 : index
    %18 = vector.load %arg7[%c0_13, %c0_14] : memref<128x256xbf16, #tpu.memory_space<vmem>>, vector<128x256xbf16>
    %cst_15 = arith.constant dense<0.000000e+00> : vector<128x256xf32>
    %19 = tpu.matmul %17, %18, %cst_15 {dimension_numbers = #tpu.dot_dimension_numbers<[1], [0], [0], [1], [0, 0, 1, 1], [], []>} : vector<128x128xbf16>, vector<128x256xbf16>, vector<128x256xf32> -> vector<128x256xf32>
    %c0_16 = arith.constant 0 : index
    %c0_17 = arith.constant 0 : index
    %20 = vector.load %arg8[%c0_16, %c0_17] : memref<1x256xf32, #tpu.memory_space<vmem>>, vector<1x256xf32>
    %21 = vector.broadcast %20 : vector<1x256xf32> to vector<128x256xf32>
    %22 = arith.addf %19, %21 : vector<128x256xf32>
    %cst_18 = arith.constant 0.000000e+00 : f32
    %23 = vector.broadcast %cst_18 : f32 to vector<128x256xf32>
    %24 = arith.maximumf %22, %23 : vector<128x256xf32>
    %25 = vector.shape_cast %24 : vector<128x256xf32> to vector<8x16x256xf32>
    %cst_19 = arith.constant dense<0xFF800000> : vector<8x256xf32>
    %26 = vector.multi_reduction <maximumf>, %25, %cst_19 [1] : vector<8x16x256xf32> to vector<8x256xf32>
    %c0_20 = arith.constant 0 : index
    %c0_21 = arith.constant 0 : index
    %c0_22 = arith.constant 0 : index
    %27 = vector.load %arg9[%c0_20, %c0_21, %c0_22] : memref<1x8x256xf32, #tpu.memory_space<vmem>>, vector<1x8x256xf32>
    %28 = vector.shape_cast %27 : vector<1x8x256xf32> to vector<8x256xf32>
    %29 = vector.shape_cast %26 : vector<8x256xf32> to vector<1x8x256xf32>
    tpu.vector_store %arg9[%c0_20, %c0_21, %c0_22], %29 {strides = array<i32>} : memref<1x8x256xf32, #tpu.memory_space<vmem>>, vector<1x8x256xf32>,
    return
  }
  func.func @transform_0(%arg0: i32, %arg1: i32) -> (i32, i32, i32) {
    %c0_i32 = arith.constant 0 : i32
    %c0_i32_0 = arith.constant 0 : i32
    return %arg0, %arg1, %c0_i32 : i32, i32, i32
  }
  func.func @transform_1(%arg0: i32, %arg1: i32) -> (i32, i32) {
    %c0_i32 = arith.constant 0 : i32
    %c0_i32_0 = arith.constant 0 : i32
    %c0_i32_1 = arith.constant 0 : i32
    return %c0_i32, %c0_i32_0 : i32, i32
  }
  func.func @transform_2(%arg0: i32, %arg1: i32) -> (i32, i32) {
    %c0_i32 = arith.constant 0 : i32
    %c0_i32_0 = arith.constant 0 : i32
    %c0_i32_1 = arith.constant 0 : i32
    return %c0_i32, %c0_i32_0 : i32, i32
  }
  func.func @transform_3(%arg0: i32, %arg1: i32) -> (i32, i32) {
    %c0_i32 = arith.constant 0 : i32
    %c0_i32_0 = arith.constant 0 : i32
    %c0_i32_1 = arith.constant 0 : i32
    return %c0_i32, %c0_i32_0 : i32, i32
  }
  func.func @transform_4(%arg0: i32, %arg1: i32) -> (i32, i32) {
    %c0_i32 = arith.constant 0 : i32
    %c0_i32_0 = arith.constant 0 : i32
    %c0_i32_1 = arith.constant 0 : i32
    return %c0_i32, %c0_i32_0 : i32, i32
  }
  func.func @transform_5(%arg0: i32, %arg1: i32) -> (i32, i32) {
    %c0_i32 = arith.constant 0 : i32
    %c0_i32_0 = arith.constant 0 : i32
    %c0_i32_1 = arith.constant 0 : i32
    return %c0_i32, %c0_i32_0 : i32, i32
  }
  func.func @transform_6(%arg0: i32, %arg1: i32) -> (i32, i32) {
    %c0_i32 = arith.constant 0 : i32
    %c0_i32_0 = arith.constant 0 : i32
    %c0_i32_1 = arith.constant 0 : i32
    return %c0_i32, %c0_i32_0 : i32, i32
  }
  func.func @transform_7(%arg0: i32, %arg1: i32) -> (i32, i32, i32) {
    %c0_i32 = arith.constant 0 : i32
    %c0_i32_0 = arith.constant 0 : i32
    return %arg0, %arg1, %c0_i32 : i32, i32, i32
  }
}

module attributes {stable_mosaic.version = 11 : i64} {
  func.func @kernel(%arg0: i32, %arg1: i32, %arg2: memref<1x32x384xbf16, #tpu.memory_space<vmem>>, %arg3: memref<384x256xbf16, #tpu.memory_space<vmem>>, %arg4: memref<1x256xf32, #tpu.memory_space<vmem>>, %arg5: memref<256x256xbf16, #tpu.memory_space<vmem>>, %arg6: memref<1x256xf32, #tpu.memory_space<vmem>>, %arg7: memref<256x512xbf16, #tpu.memory_space<vmem>>, %arg8: memref<1x512xf32, #tpu.memory_space<vmem>>, %arg9: memref<1x4x512xf32, #tpu.memory_space<vmem>>) attributes {dimension_semantics = [#tpu.dimension_semantics<parallel>, #tpu.dimension_semantics<parallel>], iteration_bounds = array<i64: 2, 1>, scalar_prefetch = 0 : i64, scratch_operands = 0 : i64, tpu.core_type = #tpu.core_type<tc>, window_params = [{transform_indices = @transform_0, window_bounds = array<i64: 1, 32, 384>}, {pipeline_mode = #tpu.pipeline_mode<synchronous>, transform_indices = @transform_1, window_bounds = array<i64: 384, 256>}, {pipeline_mode = #tpu.pipeline_mode<synchronous>, transform_indices = @transform_2, window_bounds = array<i64: 1, 256>}, {pipeline_mode = #tpu.pipeline_mode<synchronous>, transform_indices = @transform_3, window_bounds = array<i64: 256, 256>}, {pipeline_mode = #tpu.pipeline_mode<synchronous>, transform_indices = @transform_4, window_bounds = array<i64: 1, 256>}, {pipeline_mode = #tpu.pipeline_mode<synchronous>, transform_indices = @transform_5, window_bounds = array<i64: 256, 512>}, {pipeline_mode = #tpu.pipeline_mode<synchronous>, transform_indices = @transform_6, window_bounds = array<i64: 1, 512>}, {transform_indices = @transform_7, window_bounds = array<i64: 1, 4, 512>}]} {
    %c0 = arith.constant 0 : index
    %c0_0 = arith.constant 0 : index
    %c0_1 = arith.constant 0 : index
    %0 = vector.load %arg2[%c0, %c0_0, %c0_1] : memref<1x32x384xbf16, #tpu.memory_space<vmem>>, vector<1x32x384xbf16>
    %1 = vector.shape_cast %0 : vector<1x32x384xbf16> to vector<32x384xbf16>
    %c0_2 = arith.constant 0 : index
    %c0_3 = arith.constant 0 : index
    %2 = vector.load %arg3[%c0_2, %c0_3] : memref<384x256xbf16, #tpu.memory_space<vmem>>, vector<384x256xbf16>
    %cst = arith.constant dense<0.000000e+00> : vector<32x256xf32>
    %3 = tpu.matmul %1, %2, %cst {dimension_numbers = #tpu.dot_dimension_numbers<[1], [0], [0], [1], [0, 0, 1, 1], [], []>} : vector<32x384xbf16>, vector<384x256xbf16>, vector<32x256xf32> -> vector<32x256xf32>
    %c0_4 = arith.constant 0 : index
    %c0_5 = arith.constant 0 : index
    %4 = vector.load %arg4[%c0_4, %c0_5] : memref<1x256xf32, #tpu.memory_space<vmem>>, vector<1x256xf32>
    %5 = vector.broadcast %4 : vector<1x256xf32> to vector<32x256xf32>
    %6 = arith.addf %3, %5 : vector<32x256xf32>
    %cst_6 = arith.constant 0.000000e+00 : f32
    %7 = vector.broadcast %cst_6 : f32 to vector<32x256xf32>
    %8 = arith.maximumf %6, %7 : vector<32x256xf32>
    %9 = arith.truncf %8 : vector<32x256xf32> to vector<32x256xbf16>
    %c0_7 = arith.constant 0 : index
    %c0_8 = arith.constant 0 : index
    %10 = vector.load %arg5[%c0_7, %c0_8] : memref<256x256xbf16, #tpu.memory_space<vmem>>, vector<256x256xbf16>
    %cst_9 = arith.constant dense<0.000000e+00> : vector<32x256xf32>
    %11 = tpu.matmul %9, %10, %cst_9 {dimension_numbers = #tpu.dot_dimension_numbers<[1], [0], [0], [1], [0, 0, 1, 1], [], []>} : vector<32x256xbf16>, vector<256x256xbf16>, vector<32x256xf32> -> vector<32x256xf32>
    %c0_10 = arith.constant 0 : index
    %c0_11 = arith.constant 0 : index
    %12 = vector.load %arg6[%c0_10, %c0_11] : memref<1x256xf32, #tpu.memory_space<vmem>>, vector<1x256xf32>
    %13 = vector.broadcast %12 : vector<1x256xf32> to vector<32x256xf32>
    %14 = arith.addf %11, %13 : vector<32x256xf32>
    %cst_12 = arith.constant 0.000000e+00 : f32
    %15 = vector.broadcast %cst_12 : f32 to vector<32x256xf32>
    %16 = arith.maximumf %14, %15 : vector<32x256xf32>
    %17 = arith.truncf %16 : vector<32x256xf32> to vector<32x256xbf16>
    %c0_13 = arith.constant 0 : index
    %c0_14 = arith.constant 0 : index
    %18 = vector.load %arg7[%c0_13, %c0_14] : memref<256x512xbf16, #tpu.memory_space<vmem>>, vector<256x512xbf16>
    %cst_15 = arith.constant dense<0.000000e+00> : vector<32x512xf32>
    %19 = tpu.matmul %17, %18, %cst_15 {dimension_numbers = #tpu.dot_dimension_numbers<[1], [0], [0], [1], [0, 0, 1, 1], [], []>} : vector<32x256xbf16>, vector<256x512xbf16>, vector<32x512xf32> -> vector<32x512xf32>
    %c0_16 = arith.constant 0 : index
    %c0_17 = arith.constant 0 : index
    %20 = vector.load %arg8[%c0_16, %c0_17] : memref<1x512xf32, #tpu.memory_space<vmem>>, vector<1x512xf32>
    %21 = vector.broadcast %20 : vector<1x512xf32> to vector<32x512xf32>
    %22 = arith.addf %19, %21 : vector<32x512xf32>
    %cst_18 = arith.constant 0.000000e+00 : f32
    %23 = vector.broadcast %cst_18 : f32 to vector<32x512xf32>
    %24 = arith.maximumf %22, %23 : vector<32x512xf32>
    %25 = vector.shape_cast %24 : vector<32x512xf32> to vector<4x8x512xf32>
    %cst_19 = arith.constant dense<0xFF800000> : vector<4x512xf32>
    %26 = vector.multi_reduction <maximumf>, %25, %cst_19 [1] : vector<4x8x512xf32> to vector<4x512xf32>
    %c0_20 = arith.constant 0 : index
    %c0_21 = arith.constant 0 : index
    %c0_22 = arith.constant 0 : index
    %27 = vector.load %arg9[%c0_20, %c0_21, %c0_22] : memref<1x4x512xf32, #tpu.memory_space<vmem>>, vector<1x4x512xf32>
    %28 = vector.shape_cast %27 : vector<1x4x512xf32> to vector<4x512xf32>
    %29 = vector.shape_cast %26 : vector<4x512xf32> to vector<1x4x512xf32>
    tpu.vector_store %arg9[%c0_20, %c0_21, %c0_22], %29 {strides = array<i32>} : memref<1x4x512xf32, #tpu.memory_space<vmem>>, vector<1x4x512xf32>,
    return
  }
  func.func @transform_0(%arg0: i32, %arg1: i32) -> (i32, i32, i32) {
    %c0_i32 = arith.constant 0 : i32
    %c0_i32_0 = arith.constant 0 : i32
    return %arg0, %arg1, %c0_i32 : i32, i32, i32
  }
  func.func @transform_1(%arg0: i32, %arg1: i32) -> (i32, i32) {
    %c0_i32 = arith.constant 0 : i32
    %c0_i32_0 = arith.constant 0 : i32
    %c0_i32_1 = arith.constant 0 : i32
    return %c0_i32, %c0_i32_0 : i32, i32
  }
  func.func @transform_2(%arg0: i32, %arg1: i32) -> (i32, i32) {
    %c0_i32 = arith.constant 0 : i32
    %c0_i32_0 = arith.constant 0 : i32
    %c0_i32_1 = arith.constant 0 : i32
    return %c0_i32, %c0_i32_0 : i32, i32
  }
  func.func @transform_3(%arg0: i32, %arg1: i32) -> (i32, i32) {
    %c0_i32 = arith.constant 0 : i32
    %c0_i32_0 = arith.constant 0 : i32
    %c0_i32_1 = arith.constant 0 : i32
    return %c0_i32, %c0_i32_0 : i32, i32
  }
  func.func @transform_4(%arg0: i32, %arg1: i32) -> (i32, i32) {
    %c0_i32 = arith.constant 0 : i32
    %c0_i32_0 = arith.constant 0 : i32
    %c0_i32_1 = arith.constant 0 : i32
    return %c0_i32, %c0_i32_0 : i32, i32
  }
  func.func @transform_5(%arg0: i32, %arg1: i32) -> (i32, i32) {
    %c0_i32 = arith.constant 0 : i32
    %c0_i32_0 = arith.constant 0 : i32
    %c0_i32_1 = arith.constant 0 : i32
    return %c0_i32, %c0_i32_0 : i32, i32
  }
  func.func @transform_6(%arg0: i32, %arg1: i32) -> (i32, i32) {
    %c0_i32 = arith.constant 0 : i32
    %c0_i32_0 = arith.constant 0 : i32
    %c0_i32_1 = arith.constant 0 : i32
    return %c0_i32, %c0_i32_0 : i32, i32
  }
  func.func @transform_7(%arg0: i32, %arg1: i32) -> (i32, i32, i32) {
    %c0_i32 = arith.constant 0 : i32
    %c0_i32_0 = arith.constant 0 : i32
    return %arg0, %arg1, %c0_i32 : i32, i32, i32
  }
}

module attributes {stable_mosaic.version = 11 : i64} {
  func.func @kernel(%arg0: i32, %arg1: memref<1x4x640xbf16, #tpu.memory_space<vmem>>, %arg2: memref<640x512xbf16, #tpu.memory_space<vmem>>, %arg3: memref<1x512xf32, #tpu.memory_space<vmem>>, %arg4: memref<512x512xbf16, #tpu.memory_space<vmem>>, %arg5: memref<1x512xf32, #tpu.memory_space<vmem>>, %arg6: memref<512x1024xbf16, #tpu.memory_space<vmem>>, %arg7: memref<1x1024xf32, #tpu.memory_space<vmem>>, %arg8: memref<1024x512xbf16, #tpu.memory_space<vmem>>, %arg9: memref<1x512xf32, #tpu.memory_space<vmem>>, %arg10: memref<512x256xbf16, #tpu.memory_space<vmem>>, %arg11: memref<1x256xf32, #tpu.memory_space<vmem>>, %arg12: memref<256x128xbf16, #tpu.memory_space<vmem>>, %arg13: memref<1x128xf32, #tpu.memory_space<vmem>>, %arg14: memref<1x1x128xf32, #tpu.memory_space<vmem>>) attributes {dimension_semantics = [#tpu.dimension_semantics<parallel>], iteration_bounds = array<i64: 2>, scalar_prefetch = 0 : i64, scratch_operands = 0 : i64, tpu.core_type = #tpu.core_type<tc>, window_params = [{transform_indices = @transform_0, window_bounds = array<i64: 1, 4, 640>}, {pipeline_mode = #tpu.pipeline_mode<synchronous>, transform_indices = @transform_1, window_bounds = array<i64: 640, 512>}, {pipeline_mode = #tpu.pipeline_mode<synchronous>, transform_indices = @transform_2, window_bounds = array<i64: 1, 512>}, {pipeline_mode = #tpu.pipeline_mode<synchronous>, transform_indices = @transform_3, window_bounds = array<i64: 512, 512>}, {pipeline_mode = #tpu.pipeline_mode<synchronous>, transform_indices = @transform_4, window_bounds = array<i64: 1, 512>}, {pipeline_mode = #tpu.pipeline_mode<synchronous>, transform_indices = @transform_5, window_bounds = array<i64: 512, 1024>}, {pipeline_mode = #tpu.pipeline_mode<synchronous>, transform_indices = @transform_6, window_bounds = array<i64: 1, 1024>}, {pipeline_mode = #tpu.pipeline_mode<synchronous>, transform_indices = @transform_7, window_bounds = array<i64: 1024, 512>}, {pipeline_mode = #tpu.pipeline_mode<synchronous>, transform_indices = @transform_8, window_bounds = array<i64: 1, 512>}, {pipeline_mode = #tpu.pipeline_mode<synchronous>, transform_indices = @transform_9, window_bounds = array<i64: 512, 256>}, {pipeline_mode = #tpu.pipeline_mode<synchronous>, transform_indices = @transform_10, window_bounds = array<i64: 1, 256>}, {pipeline_mode = #tpu.pipeline_mode<synchronous>, transform_indices = @transform_11, window_bounds = array<i64: 256, 128>}, {pipeline_mode = #tpu.pipeline_mode<synchronous>, transform_indices = @transform_12, window_bounds = array<i64: 1, 128>}, {transform_indices = @transform_13, window_bounds = array<i64: 1, 1, 128>}]} {
    %c0 = arith.constant 0 : index
    %c0_0 = arith.constant 0 : index
    %c0_1 = arith.constant 0 : index
    %0 = vector.load %arg1[%c0, %c0_0, %c0_1] : memref<1x4x640xbf16, #tpu.memory_space<vmem>>, vector<1x4x640xbf16>
    %1 = vector.shape_cast %0 : vector<1x4x640xbf16> to vector<4x640xbf16>
    %c0_2 = arith.constant 0 : index
    %c0_3 = arith.constant 0 : index
    %2 = vector.load %arg2[%c0_2, %c0_3] : memref<640x512xbf16, #tpu.memory_space<vmem>>, vector<640x512xbf16>
    %cst = arith.constant dense<0.000000e+00> : vector<4x512xf32>
    %3 = tpu.matmul %1, %2, %cst {dimension_numbers = #tpu.dot_dimension_numbers<[1], [0], [0], [1], [0, 0, 1, 1], [], []>} : vector<4x640xbf16>, vector<640x512xbf16>, vector<4x512xf32> -> vector<4x512xf32>
    %c0_4 = arith.constant 0 : index
    %c0_5 = arith.constant 0 : index
    %4 = vector.load %arg3[%c0_4, %c0_5] : memref<1x512xf32, #tpu.memory_space<vmem>>, vector<1x512xf32>
    %5 = vector.broadcast %4 : vector<1x512xf32> to vector<4x512xf32>
    %6 = arith.addf %3, %5 : vector<4x512xf32>
    %cst_6 = arith.constant 0.000000e+00 : f32
    %7 = vector.broadcast %cst_6 : f32 to vector<4x512xf32>
    %8 = arith.maximumf %6, %7 : vector<4x512xf32>
    %9 = arith.truncf %8 : vector<4x512xf32> to vector<4x512xbf16>
    %c0_7 = arith.constant 0 : index
    %c0_8 = arith.constant 0 : index
    %10 = vector.load %arg4[%c0_7, %c0_8] : memref<512x512xbf16, #tpu.memory_space<vmem>>, vector<512x512xbf16>
    %cst_9 = arith.constant dense<0.000000e+00> : vector<4x512xf32>
    %11 = tpu.matmul %9, %10, %cst_9 {dimension_numbers = #tpu.dot_dimension_numbers<[1], [0], [0], [1], [0, 0, 1, 1], [], []>} : vector<4x512xbf16>, vector<512x512xbf16>, vector<4x512xf32> -> vector<4x512xf32>
    %c0_10 = arith.constant 0 : index
    %c0_11 = arith.constant 0 : index
    %12 = vector.load %arg5[%c0_10, %c0_11] : memref<1x512xf32, #tpu.memory_space<vmem>>, vector<1x512xf32>
    %13 = vector.broadcast %12 : vector<1x512xf32> to vector<4x512xf32>
    %14 = arith.addf %11, %13 : vector<4x512xf32>
    %cst_12 = arith.constant 0.000000e+00 : f32
    %15 = vector.broadcast %cst_12 : f32 to vector<4x512xf32>
    %16 = arith.maximumf %14, %15 : vector<4x512xf32>
    %17 = arith.truncf %16 : vector<4x512xf32> to vector<4x512xbf16>
    %c0_13 = arith.constant 0 : index
    %c0_14 = arith.constant 0 : index
    %18 = vector.load %arg6[%c0_13, %c0_14] : memref<512x1024xbf16, #tpu.memory_space<vmem>>, vector<512x1024xbf16>
    %cst_15 = arith.constant dense<0.000000e+00> : vector<4x1024xf32>
    %19 = tpu.matmul %17, %18, %cst_15 {dimension_numbers = #tpu.dot_dimension_numbers<[1], [0], [0], [1], [0, 0, 1, 1], [], []>} : vector<4x512xbf16>, vector<512x1024xbf16>, vector<4x1024xf32> -> vector<4x1024xf32>
    %c0_16 = arith.constant 0 : index
    %c0_17 = arith.constant 0 : index
    %20 = vector.load %arg7[%c0_16, %c0_17] : memref<1x1024xf32, #tpu.memory_space<vmem>>, vector<1x1024xf32>
    %21 = vector.broadcast %20 : vector<1x1024xf32> to vector<4x1024xf32>
    %22 = arith.addf %19, %21 : vector<4x1024xf32>
    %cst_18 = arith.constant 0.000000e+00 : f32
    %23 = vector.broadcast %cst_18 : f32 to vector<4x1024xf32>
    %24 = arith.maximumf %22, %23 : vector<4x1024xf32>
    %cst_19 = arith.constant dense<0xFF800000> : vector<1024xf32>
    %25 = vector.multi_reduction <maximumf>, %24, %cst_19 [0] : vector<4x1024xf32> to vector<1024xf32>
    %26 = vector.shape_cast %25 : vector<1024xf32> to vector<1x1024xf32>
    %27 = arith.truncf %26 : vector<1x1024xf32> to vector<1x1024xbf16>
    %c0_20 = arith.constant 0 : index
    %c0_21 = arith.constant 0 : index
    %28 = vector.load %arg8[%c0_20, %c0_21] : memref<1024x512xbf16, #tpu.memory_space<vmem>>, vector<1024x512xbf16>
    %cst_22 = arith.constant dense<0.000000e+00> : vector<1x512xf32>
    %29 = tpu.matmul %27, %28, %cst_22 {dimension_numbers = #tpu.dot_dimension_numbers<[1], [0], [0], [1], [0, 0, 1, 1], [], []>} : vector<1x1024xbf16>, vector<1024x512xbf16>, vector<1x512xf32> -> vector<1x512xf32>
    %c0_23 = arith.constant 0 : index
    %c0_24 = arith.constant 0 : index
    %30 = vector.load %arg9[%c0_23, %c0_24] : memref<1x512xf32, #tpu.memory_space<vmem>>, vector<1x512xf32>
    %31 = arith.addf %29, %30 : vector<1x512xf32>
    %cst_25 = arith.constant 0.000000e+00 : f32
    %32 = vector.broadcast %cst_25 : f32 to vector<1x512xf32>
    %33 = arith.maximumf %31, %32 : vector<1x512xf32>
    %34 = arith.truncf %33 : vector<1x512xf32> to vector<1x512xbf16>
    %c0_26 = arith.constant 0 : index
    %c0_27 = arith.constant 0 : index
    %35 = vector.load %arg10[%c0_26, %c0_27] : memref<512x256xbf16, #tpu.memory_space<vmem>>, vector<512x256xbf16>
    %cst_28 = arith.constant dense<0.000000e+00> : vector<1x256xf32>
    %36 = tpu.matmul %34, %35, %cst_28 {dimension_numbers = #tpu.dot_dimension_numbers<[1], [0], [0], [1], [0, 0, 1, 1], [], []>} : vector<1x512xbf16>, vector<512x256xbf16>, vector<1x256xf32> -> vector<1x256xf32>
    %c0_29 = arith.constant 0 : index
    %c0_30 = arith.constant 0 : index
    %37 = vector.load %arg11[%c0_29, %c0_30] : memref<1x256xf32, #tpu.memory_space<vmem>>, vector<1x256xf32>
    %38 = arith.addf %36, %37 : vector<1x256xf32>
    %cst_31 = arith.constant 0.000000e+00 : f32
    %39 = vector.broadcast %cst_31 : f32 to vector<1x256xf32>
    %40 = arith.maximumf %38, %39 : vector<1x256xf32>
    %41 = arith.truncf %40 : vector<1x256xf32> to vector<1x256xbf16>
    %c0_32 = arith.constant 0 : index
    %c0_33 = arith.constant 0 : index
    %42 = vector.load %arg12[%c0_32, %c0_33] : memref<256x128xbf16, #tpu.memory_space<vmem>>, vector<256x128xbf16>
    %cst_34 = arith.constant dense<0.000000e+00> : vector<1x128xf32>
    %43 = tpu.matmul %41, %42, %cst_34 {dimension_numbers = #tpu.dot_dimension_numbers<[1], [0], [0], [1], [0, 0, 1, 1], [], []>} : vector<1x256xbf16>, vector<256x128xbf16>, vector<1x128xf32> -> vector<1x128xf32>
    %c0_35 = arith.constant 0 : index
    %c0_36 = arith.constant 0 : index
    %44 = vector.load %arg13[%c0_35, %c0_36] : memref<1x128xf32, #tpu.memory_space<vmem>>, vector<1x128xf32>
    %45 = arith.addf %43, %44 : vector<1x128xf32>
    %c0_37 = arith.constant 0 : index
    %c0_38 = arith.constant 0 : index
    %c0_39 = arith.constant 0 : index
    %46 = vector.load %arg14[%c0_37, %c0_38, %c0_39] : memref<1x1x128xf32, #tpu.memory_space<vmem>>, vector<1x1x128xf32>
    %47 = vector.shape_cast %46 : vector<1x1x128xf32> to vector<1x128xf32>
    %48 = vector.shape_cast %45 : vector<1x128xf32> to vector<1x1x128xf32>
    tpu.vector_store %arg14[%c0_37, %c0_38, %c0_39], %48 {strides = array<i32>} : memref<1x1x128xf32, #tpu.memory_space<vmem>>, vector<1x1x128xf32>,
    return
  }
  func.func @transform_0(%arg0: i32) -> (i32, i32, i32) {
    %c0_i32 = arith.constant 0 : i32
    %c0_i32_0 = arith.constant 0 : i32
    %c0_i32_1 = arith.constant 0 : i32
    return %arg0, %c0_i32, %c0_i32_0 : i32, i32, i32
  }
  func.func @transform_1(%arg0: i32) -> (i32, i32) {
    %c0_i32 = arith.constant 0 : i32
    %c0_i32_0 = arith.constant 0 : i32
    %c0_i32_1 = arith.constant 0 : i32
    return %c0_i32, %c0_i32_0 : i32, i32
  }
  func.func @transform_2(%arg0: i32) -> (i32, i32) {
    %c0_i32 = arith.constant 0 : i32
    %c0_i32_0 = arith.constant 0 : i32
    %c0_i32_1 = arith.constant 0 : i32
    return %c0_i32, %c0_i32_0 : i32, i32
  }
  func.func @transform_3(%arg0: i32) -> (i32, i32) {
    %c0_i32 = arith.constant 0 : i32
    %c0_i32_0 = arith.constant 0 : i32
    %c0_i32_1 = arith.constant 0 : i32
    return %c0_i32, %c0_i32_0 : i32, i32
  }
  func.func @transform_4(%arg0: i32) -> (i32, i32) {
    %c0_i32 = arith.constant 0 : i32
    %c0_i32_0 = arith.constant 0 : i32
    %c0_i32_1 = arith.constant 0 : i32
    return %c0_i32, %c0_i32_0 : i32, i32
  }
  func.func @transform_5(%arg0: i32) -> (i32, i32) {
    %c0_i32 = arith.constant 0 : i32
    %c0_i32_0 = arith.constant 0 : i32
    %c0_i32_1 = arith.constant 0 : i32
    return %c0_i32, %c0_i32_0 : i32, i32
  }
  func.func @transform_6(%arg0: i32) -> (i32, i32) {
    %c0_i32 = arith.constant 0 : i32
    %c0_i32_0 = arith.constant 0 : i32
    %c0_i32_1 = arith.constant 0 : i32
    return %c0_i32, %c0_i32_0 : i32, i32
  }
  func.func @transform_7(%arg0: i32) -> (i32, i32) {
    %c0_i32 = arith.constant 0 : i32
    %c0_i32_0 = arith.constant 0 : i32
    %c0_i32_1 = arith.constant 0 : i32
    return %c0_i32, %c0_i32_0 : i32, i32
  }
  func.func @transform_8(%arg0: i32) -> (i32, i32) {
    %c0_i32 = arith.constant 0 : i32
    %c0_i32_0 = arith.constant 0 : i32
    %c0_i32_1 = arith.constant 0 : i32
    return %c0_i32, %c0_i32_0 : i32, i32
  }
  func.func @transform_9(%arg0: i32) -> (i32, i32) {
    %c0_i32 = arith.constant 0 : i32
    %c0_i32_0 = arith.constant 0 : i32
    %c0_i32_1 = arith.constant 0 : i32
    return %c0_i32, %c0_i32_0 : i32, i32
  }
  func.func @transform_10(%arg0: i32) -> (i32, i32) {
    %c0_i32 = arith.constant 0 : i32
    %c0_i32_0 = arith.constant 0 : i32
    %c0_i32_1 = arith.constant 0 : i32
    return %c0_i32, %c0_i32_0 : i32, i32
  }
  func.func @transform_11(%arg0: i32) -> (i32, i32) {
    %c0_i32 = arith.constant 0 : i32
    %c0_i32_0 = arith.constant 0 : i32
    %c0_i32_1 = arith.constant 0 : i32
    return %c0_i32, %c0_i32_0 : i32, i32
  }
  func.func @transform_12(%arg0: i32) -> (i32, i32) {
    %c0_i32 = arith.constant 0 : i32
    %c0_i32_0 = arith.constant 0 : i32
    %c0_i32_1 = arith.constant 0 : i32
    return %c0_i32, %c0_i32_0 : i32, i32
  }
  func.func @transform_13(%arg0: i32) -> (i32, i32, i32) {
    %c0_i32 = arith.constant 0 : i32
    %c0_i32_0 = arith.constant 0 : i32
    %c0_i32_1 = arith.constant 0 : i32
    return %arg0, %c0_i32, %c0_i32_0 : i32, i32, i32
  }
}

</mosaic_0001>

<bundles_post_ra>
// kernel: custom-call.24
= control target key start
LH: loop header
LB: loop body
LE: loop exit
PB: predicated region body
PF: predicated region fallthrough
CT: control target
= control target key end

     0   :  { %s6_s0 = inlined_call_operand.vmem [shape: f32[2,64], index: 0, kind: output, shape index: {}]  }

// kernel: custom-call.25
= control target key start
LH: loop header
LB: loop body
LE: loop exit
PB: predicated region body
PF: predicated region fallthrough
CT: control target
= control target key end

     0   :  { %s6_s0 = inlined_call_operand.vmem [shape: f32[2,16], index: 0, kind: output, shape index: {}]  }

// kernel: pointnet2_forward.4
= control target key start
LH: loop header
LB: loop body
LE: loop exit
PB: predicated region body
PF: predicated region fallthrough
CT: control target
= control target key end

     0   :  { %s1263_s24 = smov 0   ;;  %s1265_s25 = smov 0   ;;  %s1409_s0 = inlined_call_operand.vmem [shape: bf16[2,128,128], index: 0, kind: input, shape index: {}]   ;;  %s1410_s1 = inlined_call_operand.vmem [shape: bf16[128,64], index: 1, kind: input, shape index: {}]   ;;  %s1411_s2 = inlined_call_operand.vmem [shape: f32[1,64], index: 2, kind: input, shape index: {}]   ;;  %s1412_s3 = inlined_call_operand.vmem [shape: bf16[64,64], index: 3, kind: input, shape index: {}]   ;;  %s1413_s4 = inlined_call_operand.vmem [shape: f32[1,64], index: 4, kind: input, shape index: {}]   ;;  %s1414_s5 = inlined_call_operand.vmem [shape: bf16[64,128], index: 5, kind: input, shape index: {}]   ;;  %s1415_s6 = inlined_call_operand.vmem [shape: f32[1,128], index: 6, kind: input, shape index: {}]   ;;  %s1416_s7 = inlined_call_operand.vmem [shape: f32[2,16,128], index: 7, kind: output, shape index: {}]  }
   0x1   :  { %s1267_s26 = smov 0  }
   0x2 LB: > { %s29_s27 = sadd.s32 1, %s1217_s25  ;;  %p1011_p0 = scmp.ge.s32.totalorder %s1221_s26, 1  ;;  %s1221_s26 = sphi %s1267_s26, %s17_s26   ;;  %s1217_s25 = sphi %s1265_s25, %s1418_s25   ;;  %s1213_s24 = sphi %s1263_s24, %s1417_s24  }
   0x3   : > { %p31_p1 = scmp.ge.s32.totalorder %s29_s27, 2  ;;  %p258_p2 = scmp.lt.s32.totalorder %s1221_s26, 3 }
   0x5   : > { %s1420_s27 = smov (%p31_p1, %s29_s27), 0  ;;  %p259_p3 = pnand %p1011_p0, %p258_p2 }
   0x6   : > { %p299_p4 = scmp.lt.s32.totalorder (!%p259_p3), %s1213_s24, 1 }
   0x7   : > { %262 = sbr.rel (%p259_p3) target bundleno = 580 (0x244), region = 48 }
   0xc   : > { %v1147_v0 = vld [vmem:[%s1410_s1 + $0x38] sm:$0xff]  ;;  %v1146_v1 = vld [vmem:[%s1410_s1 + $0x30] sm:$0xff]  ;;  %v1145_v2 = vld [vmem:[%s1410_s1 + $0x28] sm:$0xff]  ;;  %s1422_s24 = smov (!%p299_p4, %s1213_s24), 1  ;;  %vm560_vm0 = vcmask 523264   ;;  %vm895_vm1 = vcmask 1041409  }
   0xd   : > { %451 = vmatpush.bf16.msra.mxu0 %v1147_v0  ;;  %1156 = vmatpush.bf16.msra.mxu3 %v1147_v0  ;;  %v1144_v3 = vld [vmem:[%s1410_s1 + $0x20] sm:$0xff]  ;;  %v1143_v4 = vld [vmem:[%s1410_s1 + $0x18] sm:$0xff]  ;;  %v1142_v5 = vld [vmem:[%s1410_s1 + $0x10] sm:$0xff]  ;;  %s1130_s19 = sshll.u32 %s1422_s24, 6  ;;  %vm897_vm2 = vcmask 1042434   ;;  %vm899_vm3 = vcmask 1043459  }
   0xe   : > { %v1141_v6 = vld [vmem:[%s1410_s1 + $0x8] sm:$0xff]  ;;  %v1140_v7 = vld [vmem:[%s1410_s1] sm:$0xff]  ;;  %s306_s28 = scalar_lea.vmem %s1409_s0, %s1130_s19  ;;  %v1151_v16 = vld [vmem:[%s1412_s3 + $0x18] sm:$0xff]  ;;  %vm901_vm4 = vcmask 1044484   ;;  %vm903_vm5 = vcmask 1045509   ;;  %s1131_s9 = sshll.u32 %s1422_s24, 4 }
   0xf   : > { %v1132_v8 = vld [vmem:[%s306_s28] sm:$0xff]  ;;  %v1138_v9 = vld [vmem:[%s306_s28 + $0x30] sm:$0xff]  ;;  %v1133_v10 = vld [vmem:[%s306_s28 + $0x8] sm:$0xff]  ;;  %589 = vmatpush.bf16.msra.mxu1 %v1151_v16  ;;  %vm905_vm6 = vcmask 1046534   ;;  %vm907_vm7 = vcmask 1047559   ;;  %s1379_s12 = scalar_lea.vmem %s1416_s7, %s1131_s9 }
  0x10   : > { %v1139_v11 = vld [vmem:[%s306_s28 + $0x38] sm:$0xff]  ;;  %v1134_v12 = vld [vmem:[%s306_s28 + $0x10] sm:$0xff]  ;;  %v1136_v14 = vld [vmem:[%s306_s28 + $0x20] sm:$0xff] }
  0x11   : > { %452 = vmatpush.bf16.msra.mxu0 %v1146_v1  ;;  %1157 = vmatpush.bf16.msra.mxu3 %v1146_v1  ;;  %v1135_v13 = vld [vmem:[%s306_s28 + $0x18] sm:$0xff]  ;;  %v1137_v15 = vld [vmem:[%s306_s28 + $0x28] sm:$0xff]  ;;  %v1150_v17 = vld [vmem:[%s1412_s3 + $0x10] sm:$0xff] }
  0x12   : > { %v1149_v18 = vld [vmem:[%s1412_s3 + $0x8] sm:$0xff]  ;;  %v1148_v19 = vld [vmem:[%s1412_s3] sm:$0xff] }
  0x13   : > { %590 = vmatpush.bf16.msra.mxu1 %v1150_v17  ;;  %v1196_v21 = vld [vmem:[%s1411_s2] ss:$0 sm:$0xff] }
  0x15   : > { %453 = vmatpush.bf16.msra.mxu0 %v1145_v2  ;;  %1158 = vmatpush.bf16.msra.mxu3 %v1145_v2 }
  0x17   : > { %591 = vmatpush.bf16.msra.mxu1 %v1149_v18 }
  0x19   : > { %454 = vmatpush.bf16.msra.mxu0 %v1144_v3  ;;  %1159 = vmatpush.bf16.msra.mxu3 %v1144_v3 }
  0x1b   : > { %592 = vmatpush.bf16.msra.mxu1 %v1148_v19 }
  0x1d   : > { %455 = vmatpush.bf16.msra.mxu0 %v1143_v4  ;;  %1160 = vmatpush.bf16.msra.mxu3 %v1143_v4 }
  0x21   : > { %456 = vmatpush.bf16.msra.mxu0 %v1142_v5  ;;  %1161 = vmatpush.bf16.msra.mxu3 %v1142_v5 }
  0x25   : > { %457 = vmatpush.bf16.msra.mxu0 %v1141_v6  ;;  %1162 = vmatpush.bf16.msra.mxu3 %v1141_v6 }
  0x29   : > { %458 = vmatpush.bf16.msra.mxu0 %v1140_v7  ;;  %1163 = vmatpush.bf16.msra.mxu3 %v1140_v7 }
  0x2c   : > { %459 = vmatmul.bf16.vlgmr.msra.gmra.mxu0 %v1132_v8  ;;  %489 = vmatmul.bf16.vlgmr.msra.gmra.mxu3 %v1138_v9 }
  0x2d   : > { %1164 = vmatpush.bf16.msrb.mxu3 %v1151_v16  ;;  %v1152_v16 = vld [vmem:[%s1414_s5] sm:$0xff] }
  0x31   : > { %1165 = vmatpush.bf16.msrb.mxu3 %v1150_v17 }
  0x35   : > { %1166 = vmatpush.bf16.msrb.mxu3 %v1149_v18  ;;  %v1197_v18 = vld [vmem:[%s1413_s4] ss:$0 sm:$0xff] }
  0x39   : > { %1167 = vmatpush.bf16.msrb.mxu3 %v1148_v19 }
  0x3c   : > { %464 = vmatmul.bf16.gmra.mxu0 %v1133_v10  ;;  %494 = vmatmul.bf16.gmra.mxu3 %v1139_v11 }
  0x4c   : > { %469 = vmatmul.bf16.gmra.mxu0 %v1134_v12 }
  0x5c   : > { %474 = vmatmul.bf16.gmra.mxu0 %v1135_v13  ;;  %v1155_v13 = vld [vmem:[%s1414_s5 + $0x18] sm:$0xff] }
  0x5d   : > { %722 = vmatpush.bf16.msra.mxu2 %v1155_v13  ;;  %1168 = vmatpush.bf16.msra.mxu3 %v1155_v13 }
  0x6c   : > { %479 = vmatmul.bf16.gmra.mxu0 %v1136_v14  ;;  %v1154_v14 = vld [vmem:[%s1414_s5 + $0x10] sm:$0xff] }
  0x6d   : > { %723 = vmatpush.bf16.msra.mxu2 %v1154_v14  ;;  %1169 = vmatpush.bf16.msra.mxu3 %v1154_v14 }
  0x7c   : > { %484 = vmatmul.bf16.gmra.mxu0 %v1137_v15  ;;  %v1153_v15 = vld [vmem:[%s1414_s5 + $0x8] sm:$0xff] }
  0x7d   : > { %724 = vmatpush.bf16.msra.mxu2 %v1153_v15  ;;  %1170 = vmatpush.bf16.msra.mxu3 %v1153_v15  ;;  %v1360_v15 = vld [vmem:[%s1415_s6] ss:$0 sm:$0xff] }
  0x81   : > { %725 = vmatpush.bf16.msra.mxu2 %v1152_v16  ;;  %1171 = vmatpush.bf16.msra.mxu3 %v1152_v16 }
  0xa9   : > { %v460_v20 = vpop.f32.mrf.mxu0 }
  0xaa   : > { %v461_v22 = vadd.f32 %v1196_v21, %v460_v20 }
  0xac   : > { %v500_v25 = vmax.f32 %v461_v22, 0.0 }
  0xaf   : > { %v490_v28 = vpop.f32.mrf.mxu3 }
  0xb0   : > { %v491_v30 = vadd.f32 %v1196_v21, %v490_v28 }
  0xb1   : > { %v462_v23 = vpop.f32.mrf.mxu0 }
  0xb2   : > { %v463_v24 = vadd.f32 %v1196_v21, %v462_v23  ;;  %v512_v32 = vmax.f32 %v491_v30, 0.0 }
  0xb4   : > { %v501_v26 = vmax.f32 %v463_v24, 0.0 }
  0xb6   : > { %v516_v27 = vpack.c.bf16 %v501_v26, %v500_v25 }
  0xb7   : > { %v492_v31 = vpop.f32.mrf.mxu3 }
  0xb8   : > { %1096 = vmatmul.msk.bf16.vlgmr.msra.gmra.mxu1 %vm560_vm0, %v516_v27  ;;  %v493_v33 = vadd.f32 %v1196_v21, %v492_v31 }
  0xb9   : > { %v465_v29 = vpop.f32.mrf.mxu0 }
  0xba   : > { %v466_v34 = vadd.f32 %v1196_v21, %v465_v29  ;;  %v513_v36 = vmax.f32 %v493_v33, 0.0 }
  0xbc   : > { %v522_v38 = vpack.c.bf16 %v513_v36, %v512_v32  ;;  %v502_v39 = vmax.f32 %v466_v34, 0.0 }
  0xbf   : > { %v495_v42 = vpop.f32.mrf.mxu3 }
  0xc0   : > { %v496_v44 = vadd.f32 %v1196_v21, %v495_v42 }
  0xc1   : > { %v467_v35 = vpop.f32.mrf.mxu0 }
  0xc2   : > { %v468_v37 = vadd.f32 %v1196_v21, %v467_v35  ;;  %v514_v46 = vmax.f32 %v496_v44, 0.0 }
  0xc4   : > { %v503_v40 = vmax.f32 %v468_v37, 0.0 }
  0xc6   : > { %v517_v41 = vpack.c.bf16 %v503_v40, %v502_v39 }
  0xc7   : > { %v497_v45 = vpop.f32.mrf.mxu3 }
  0xc8   : > { %1097 = vmatmul.msk.bf16.gmra.mxu1 %vm560_vm0, %v517_v41  ;;  %v498_v47 = vadd.f32 %v1196_v21, %v497_v45 }
  0xc9   : > { %v470_v43 = vpop.f32.mrf.mxu0 }
  0xca   : > { %v471_v48 = vadd.f32 %v1196_v21, %v470_v43  ;;  %v515_v50 = vmax.f32 %v498_v47, 0.0 }
  0xcc   : > { %v523_v52 = vpack.c.bf16 %v515_v50, %v514_v46  ;;  %v504_v53 = vmax.f32 %v471_v48, 0.0 }
  0xce   : > { %1103 = vmatmul.msk.bf16.vlgmr.msrb.gmra.mxu3 %vm560_vm0, %v523_v52 }
  0xd1   : > { %v472_v49 = vpop.f32.mrf.mxu0 }
  0xd2   : > { %v473_v51 = vadd.f32 %v1196_v21, %v472_v49 }
  0xd4   : > { %v505_v54 = vmax.f32 %v473_v51, 0.0 }
  0xd6   : > { %v518_v55 = vpack.c.bf16 %v505_v54, %v504_v53 }
  0xd8   : > { %1098 = vmatmul.msk.bf16.gmra.mxu1 %vm560_vm0, %v518_v55 }
  0xd9   : > { %v475_v56 = vpop.f32.mrf.mxu0 }
  0xda   : > { %v476_v57 = vadd.f32 %v1196_v21, %v475_v56 }
  0xdc   : > { %v506_v60 = vmax.f32 %v476_v57, 0.0 }
  0xe1   : > { %v477_v58 = vpop.f32.mrf.mxu0 }
  0xe2   : > { %v478_v59 = vadd.f32 %v1196_v21, %v477_v58 }
  0xe4   : > { %v507_v61 = vmax.f32 %v478_v59, 0.0 }
  0xe6   : > { %v519_v62 = vpack.c.bf16 %v507_v61, %v506_v60 }
  0xe8   : > { %1099 = vmatmul.msk.bf16.gmra.mxu1 %vm560_vm0, %v519_v62 }
  0xe9   : > { %v480_v63 = vpop.f32.mrf.mxu0 }
  0xea   : > { %v481_v0 = vadd.f32 %v1196_v21, %v480_v63 }
  0xec   : > { %v508_v3 = vmax.f32 %v481_v0, 0.0 }
  0xf1   : > { %v482_v1 = vpop.f32.mrf.mxu0 }
  0xf2   : > { %v483_v2 = vadd.f32 %v1196_v21, %v482_v1 }
  0xf4   : > { %v509_v4 = vmax.f32 %v483_v2, 0.0 }
  0xf6   : > { %v520_v5 = vpack.c.bf16 %v509_v4, %v508_v3 }
  0xf8   : > { %1100 = vmatmul.msk.bf16.gmra.mxu1 %vm560_vm0, %v520_v5 }
  0xf9   : > { %v485_v6 = vpop.f32.mrf.mxu0 }
  0xfa   : > { %v486_v7 = vadd.f32 %v1196_v21, %v485_v6 }
  0xfc   : > { %v510_v10 = vmax.f32 %v486_v7, 0.0 }
 0x101   : > { %v487_v8 = vpop.f32.mrf.mxu0 }
 0x102   : > { %v488_v9 = vadd.f32 %v1196_v21, %v487_v8 }
 0x104   : > { %v511_v11 = vmax.f32 %v488_v9, 0.0 }
 0x106   : > { %v521_v12 = vpack.c.bf16 %v511_v11, %v510_v10 }
 0x108   : > { %1101 = vmatmul.msk.bf16.gmra.mxu1 %vm560_vm0, %v521_v12 }
 0x118   : > { %1102 = vmatmul.msk.bf16.gmra.mxu1 %vm560_vm0, %v522_v38 }
 0x135   : > { %v594_v17 = vpop.f32.mrf.mxu1 }
 0x136   : > { %v595_v19 = vadd.f32 %v1197_v18, %v594_v17 }
 0x138   : > { %v634_v22 = vmax.f32 %v595_v19, 0.0 }
 0x13d   : > { %v596_v20 = vpop.f32.mrf.mxu1 }
 0x13e   : > { %v597_v21 = vadd.f32 %v1197_v18, %v596_v20 }
 0x140   : > { %v635_v23 = vmax.f32 %v597_v21, 0.0 }
 0x142   : > { %v650_v24 = vpack.c.bf16 %v635_v23, %v634_v22 }
 0x144   : > { %1120 = vmatmul.msk.bf16.vlgmr.msra.gmra.mxu2 %vm560_vm0, %v650_v24 }
 0x145   : > { %v599_v25 = vpop.f32.mrf.mxu1 }
 0x146   : > { %v600_v26 = vadd.f32 %v1197_v18, %v599_v25 }
 0x148   : > { %v636_v29 = vmax.f32 %v600_v26, 0.0 }
 0x14d   : > { %v601_v27 = vpop.f32.mrf.mxu1 }
 0x14e   : > { %v602_v28 = vadd.f32 %v1197_v18, %v601_v27 }
 0x150   : > { %v637_v30 = vmax.f32 %v602_v28, 0.0 }
 0x151   : > { %v629_v33 = vpop.f32.mrf.mxu3 }
 0x152   : > { %v651_v31 = vpack.c.bf16 %v637_v30, %v636_v29  ;;  %v630_v37 = vadd.f32 %v1197_v18, %v629_v33 }
 0x154   : > { %1121 = vmatmul.msk.bf16.gmra.mxu2 %vm560_vm0, %v651_v31  ;;  %v648_v42 = vmax.f32 %v630_v37, 0.0 }
 0x155   : > { %v604_v32 = vpop.f32.mrf.mxu1 }
 0x156   : > { %v605_v34 = vadd.f32 %v1197_v18, %v604_v32 }
 0x158   : > { %v638_v38 = vmax.f32 %v605_v34, 0.0 }
 0x159   : > { %v631_v40 = vpop.f32.mrf.mxu3 }
 0x15a   : > { %v632_v43 = vadd.f32 %v1197_v18, %v631_v40 }
 0x15c   : > { %v649_v44 = vmax.f32 %v632_v43, 0.0 }
 0x15d   : > { %v606_v35 = vpop.f32.mrf.mxu1 }
 0x15e   : > { %v607_v36 = vadd.f32 %v1197_v18, %v606_v35  ;;  %v657_v46 = vpack.c.bf16 %v649_v44, %v648_v42 }
 0x160   : > { %v639_v39 = vmax.f32 %v607_v36, 0.0  ;;  %1127 = vmatmul.msk.bf16.vlgmr.msra.gmra.mxu3 %vm560_vm0, %v657_v46 }
 0x162   : > { %v652_v41 = vpack.c.bf16 %v639_v39, %v638_v38 }
 0x164   : > { %1122 = vmatmul.msk.bf16.gmra.mxu2 %vm560_vm0, %v652_v41 }
 0x165   : > { %v609_v45 = vpop.f32.mrf.mxu1 }
 0x166   : > { %v610_v47 = vadd.f32 %v1197_v18, %v609_v45 }
 0x168   : > { %v640_v50 = vmax.f32 %v610_v47, 0.0 }
 0x16d   : > { %v611_v48 = vpop.f32.mrf.mxu1 }
 0x16e   : > { %v612_v49 = vadd.f32 %v1197_v18, %v611_v48 }
 0x170   : > { %v641_v51 = vmax.f32 %v612_v49, 0.0 }
 0x172   : > { %v653_v52 = vpack.c.bf16 %v641_v51, %v640_v50 }
 0x174   : > { %1123 = vmatmul.msk.bf16.gmra.mxu2 %vm560_vm0, %v653_v52 }
 0x175   : > { %v614_v53 = vpop.f32.mrf.mxu1 }
 0x176   : > { %v615_v54 = vadd.f32 %v1197_v18, %v614_v53 }
 0x178   : > { %v642_v57 = vmax.f32 %v615_v54, 0.0 }
 0x17d   : > { %v616_v55 = vpop.f32.mrf.mxu1 }
 0x17e   : > { %v617_v56 = vadd.f32 %v1197_v18, %v616_v55 }
 0x180   : > { %v643_v58 = vmax.f32 %v617_v56, 0.0 }
 0x182   : > { %v654_v59 = vpack.c.bf16 %v643_v58, %v642_v57 }
 0x184   : > { %1124 = vmatmul.msk.bf16.gmra.mxu2 %vm560_vm0, %v654_v59 }
 0x185   : > { %v619_v60 = vpop.f32.mrf.mxu1 }
 0x186   : > { %v620_v61 = vadd.f32 %v1197_v18, %v619_v60 }
 0x188   : > { %v644_v0 = vmax.f32 %v620_v61, 0.0 }
 0x18d   : > { %v621_v62 = vpop.f32.mrf.mxu1 }
 0x18e   : > { %v622_v63 = vadd.f32 %v1197_v18, %v621_v62 }
 0x190   : > { %v645_v1 = vmax.f32 %v622_v63, 0.0 }
 0x192   : > { %v655_v2 = vpack.c.bf16 %v645_v1, %v644_v0 }
 0x194   : > { %1125 = vmatmul.msk.bf16.gmra.mxu2 %vm560_vm0, %v655_v2 }
 0x195   : > { %v624_v3 = vpop.f32.mrf.mxu1 }
 0x196   : > { %v625_v4 = vadd.f32 %v1197_v18, %v624_v3 }
 0x198   : > { %v646_v7 = vmax.f32 %v625_v4, 0.0 }
 0x19d   : > { %v626_v5 = vpop.f32.mrf.mxu1 }
 0x19e   : > { %v627_v6 = vadd.f32 %v1197_v18, %v626_v5 }
 0x1a0   : > { %v647_v8 = vmax.f32 %v627_v6, 0.0 }
 0x1a2   : > { %v656_v9 = vpack.c.bf16 %v647_v8, %v646_v7 }
 0x1a4   : > { %1126 = vmatmul.msk.bf16.gmra.mxu2 %vm560_vm0, %v656_v9 }
 0x1c7   : > { %v727_v10 = vpop.f32.mrf.mxu2 }
 0x1c8   : > { %v728_v18 = vadd.f32 %v1360_v15, %v727_v10 }
 0x1ca   : > { %v767_v24 = vmax.f32 %v728_v18, 0.0 }
 0x1cc   : > { %v783_v31 = vrot.slane %v767_v24, 4 }
 0x1ce   : > { %v784_v38 = vmax.f32 %v767_v24, %v783_v31 }
 0x1cf   : > { %v729_v11 = vpop.f32.mrf.mxu2 }
 0x1d0   : > { %v730_v16 = vadd.f32 %v1360_v15, %v729_v11  ;;  %v785_v46 = vrot.slane %v784_v38, 2 }
 0x1d2   : > { %v768_v21 = vmax.f32 %v730_v16, 0.0  ;;  %v786_v55 = vmax.f32 %v784_v38, %v785_v46 }
 0x1d4   : > { %v789_v28 = vrot.slane %v768_v21, 4  ;;  %v787_v1 = vrot.slane %v786_v55, 1 }
 0x1d6   : > { %v790_v34 = vmax.f32 %v768_v21, %v789_v28  ;;  %v788_v11 = vmax.f32 %v786_v55, %v787_v1 }
 0x1d7   : > { %v732_v12 = vpop.f32.mrf.mxu2 }
 0x1d8   : > { %v733_v17 = vadd.f32 %v1360_v15, %v732_v12  ;;  %v791_v42 = vrot.slane %v790_v34, 2 }
 0x1da   : > { %v769_v22 = vmax.f32 %v733_v17, 0.0  ;;  %v792_v50 = vmax.f32 %v790_v34, %v791_v42 }
 0x1dc   : > { %v795_v30 = vrot.slane %v769_v22, 4  ;;  %v793_v60 = vrot.slane %v792_v50, 1 }
 0x1de   : > { %v796_v36 = vmax.f32 %v769_v22, %v795_v30  ;;  %v794_v5 = vmax.f32 %v792_v50, %v793_v60 }
 0x1df   : > { %v734_v13 = vpop.f32.mrf.mxu2 }
 0x1e0   : > { %v735_v19 = vadd.f32 %v1360_v15, %v734_v13  ;;  %v797_v45 = vrot.slane %v796_v36, 2  ;;  %v896_v16 = vsel %vm895_vm1, %v794_v5, %v788_v11 }
 0x1e2   : > { %v770_v25 = vmax.f32 %v735_v19, 0.0  ;;  %v798_v53 = vmax.f32 %v796_v36, %v797_v45 }
 0x1e4   : > { %v801_v32 = vrot.slane %v770_v25, 4  ;;  %v799_v63 = vrot.slane %v798_v53, 1 }
 0x1e6   : > { %v802_v39 = vmax.f32 %v770_v25, %v801_v32  ;;  %v800_v8 = vmax.f32 %v798_v53, %v799_v63 }
 0x1e7   : > { %v737_v14 = vpop.f32.mrf.mxu2 }
 0x1e8   : > { %v738_v20 = vadd.f32 %v1360_v15, %v737_v14  ;;  %v803_v47 = vrot.slane %v802_v39, 2  ;;  %v898_v19 = vsel %vm897_vm2, %v800_v8, %v896_v16 }
 0x1ea   : > { %v771_v27 = vmax.f32 %v738_v20, 0.0  ;;  %v804_v56 = vmax.f32 %v802_v39, %v803_v47 }
 0x1ec   : > { %v807_v33 = vrot.slane %v771_v27, 4  ;;  %v805_v2 = vrot.slane %v804_v56, 1 }
 0x1ee   : > { %v808_v41 = vmax.f32 %v771_v27, %v807_v33  ;;  %v806_v12 = vmax.f32 %v804_v56, %v805_v2 }
 0x1ef   : > { %v739_v23 = vpop.f32.mrf.mxu2 }
 0x1f0   : > { %v740_v26 = vadd.f32 %v1360_v15, %v739_v23  ;;  %v809_v49 = vrot.slane %v808_v41, 2  ;;  %v900_v21 = vsel %vm899_vm3, %v806_v12, %v898_v19 }
 0x1f2   : > { %v772_v29 = vmax.f32 %v740_v26, 0.0  ;;  %v810_v59 = vmax.f32 %v808_v41, %v809_v49 }
 0x1f4   : > { %v813_v35 = vrot.slane %v772_v29, 4  ;;  %v811_v4 = vrot.slane %v810_v59, 1 }
 0x1f6   : > { %v814_v43 = vmax.f32 %v772_v29, %v813_v35  ;;  %v812_v14 = vmax.f32 %v810_v59, %v811_v4  ;;  %v762_v29 = vpop.f32.mrf.mxu3 }
 0x1f7   : > { %v742_v37 = vpop.f32.mrf.mxu2  ;;  %v763_v41 = vadd.f32 %v1360_v15, %v762_v29 }
 0x1f8   : > { %v743_v40 = vadd.f32 %v1360_v15, %v742_v37  ;;  %v815_v51 = vrot.slane %v814_v43, 2  ;;  %v902_v23 = vsel %vm901_vm4, %v812_v14, %v900_v21 }
 0x1f9   : > { %v781_v47 = vmax.f32 %v763_v41, 0.0 }
 0x1fa   : > { %v773_v44 = vmax.f32 %v743_v40, 0.0  ;;  %v816_v61 = vmax.f32 %v814_v43, %v815_v51 }
 0x1fb   : > { %v867_v56 = vrot.slane %v781_v47, 4 }
 0x1fc   : > { %v819_v48 = vrot.slane %v773_v44, 4  ;;  %v817_v6 = vrot.slane %v816_v61, 1 }
 0x1fe   : > { %v820_v52 = vmax.f32 %v773_v44, %v819_v48  ;;  %v818_v17 = vmax.f32 %v816_v61, %v817_v6  ;;  %v764_v37 = vpop.f32.mrf.mxu3 }
 0x1ff   : > { %v744_v54 = vpop.f32.mrf.mxu2  ;;  %v765_v43 = vadd.f32 %v1360_v15, %v764_v37 }
 0x200   : > { %v821_v57 = vrot.slane %v820_v52, 2  ;;  %v745_v58 = vadd.f32 %v1360_v15, %v744_v54  ;;  %v904_v24 = vsel %vm903_vm5, %v818_v17, %v902_v23 }
 0x201   : > { %v782_v50 = vmax.f32 %v765_v43, 0.0 }
 0x202   : > { %v774_v62 = vmax.f32 %v745_v58, 0.0  ;;  %v822_v0 = vmax.f32 %v820_v52, %v821_v57 }
 0x203   : > { %v873_v58 = vrot.slane %v782_v50, 4 }
 0x204   : > { %v825_v3 = vrot.slane %v774_v62, 4  ;;  %v823_v9 = vrot.slane %v822_v0, 1 }
 0x206   : > { %v826_v7 = vmax.f32 %v774_v62, %v825_v3  ;;  %v824_v20 = vmax.f32 %v822_v0, %v823_v9  ;;  %v868_v0 = vmax.f32 %v781_v47, %v867_v56  ;;  %v874_v3 = vmax.f32 %v782_v50, %v873_v58 }
 0x207   : > { %v747_v10 = vpop.f32.mrf.mxu2 }
 0x208   : > { %v827_v13 = vrot.slane %v826_v7, 2  ;;  %v906_v26 = vsel %vm905_vm6, %v824_v20, %v904_v24  ;;  %v748_v33 = vadd.f32 %v1360_v15, %v747_v10  ;;  %v869_v10 = vrot.slane %v868_v0, 2 }
 0x20a   : > { %v828_v18 = vmax.f32 %v826_v7, %v827_v13  ;;  %v775_v39 = vmax.f32 %v748_v33, 0.0  ;;  %v875_v13 = vrot.slane %v874_v3, 2  ;;  %v870_v20 = vmax.f32 %v868_v0, %v869_v10 }
 0x20c   : > { %v829_v22 = vrot.slane %v828_v18, 1  ;;  %v831_v45 = vrot.slane %v775_v39, 4  ;;  %v876_v23 = vmax.f32 %v874_v3, %v875_v13 }
 0x20e   : > { %v830_v25 = vmax.f32 %v828_v18, %v829_v22  ;;  %v832_v53 = vmax.f32 %v775_v39, %v831_v45 }
 0x20f   : > { %v749_v27 = vpop.f32.mrf.mxu2 }
 0x210   : > { %v908_v28 = vsel %vm907_vm7, %v830_v25, %v906_v26  ;;  %v750_v31 = vadd.f32 %v1360_v15, %v749_v27  ;;  %v833_v61 = vrot.slane %v832_v53, 2 }
 0x211   : > { %918 = vst [vmem:[%s1379_s12] sm:$0xff] %v908_v28  ;;  %v871_v28 = vrot.slane %v870_v20, 1 }
 0x212   : > { %v776_v35 = vmax.f32 %v750_v31, 0.0  ;;  %v834_v7 = vmax.f32 %v832_v53, %v833_v61  ;;  %v877_v31 = vrot.slane %v876_v23, 1 }
 0x214   : > { %v837_v42 = vrot.slane %v776_v35, 4  ;;  %v835_v17 = vrot.slane %v834_v7, 1 }
 0x216   : > { %v838_v49 = vmax.f32 %v776_v35, %v837_v42 }
 0x217   : > { %v752_v30 = vpop.f32.mrf.mxu2 }
 0x218   : > { %v753_v32 = vadd.f32 %v1360_v15, %v752_v30  ;;  %v839_v57 = vrot.slane %v838_v49, 2 }
 0x21a   : > { %v777_v38 = vmax.f32 %v753_v32, 0.0  ;;  %v840_v2 = vmax.f32 %v838_v49, %v839_v57 }
 0x21c   : > { %v843_v44 = vrot.slane %v777_v38, 4  ;;  %v841_v12 = vrot.slane %v840_v2, 1 }
 0x21e   : > { %v844_v52 = vmax.f32 %v777_v38, %v843_v44  ;;  %v842_v22 = vmax.f32 %v840_v2, %v841_v12  ;;  %v878_v38 = vmax.f32 %v876_v23, %v877_v31 }
 0x21f   : > { %v754_v34 = vpop.f32.mrf.mxu2 }
 0x220   : > { %v755_v36 = vadd.f32 %v1360_v15, %v754_v34  ;;  %v845_v60 = vrot.slane %v844_v52, 2 }
 0x222   : > { %v778_v40 = vmax.f32 %v755_v36, 0.0  ;;  %v846_v6 = vmax.f32 %v844_v52, %v845_v60  ;;  %v872_v36 = vmax.f32 %v870_v20, %v871_v28 }
 0x224   : > { %v849_v46 = vrot.slane %v778_v40, 4  ;;  %v847_v16 = vrot.slane %v846_v6, 1 }
 0x226   : > { %v850_v54 = vmax.f32 %v778_v40, %v849_v46  ;;  %v848_v25 = vmax.f32 %v846_v6, %v847_v16 }
 0x227   : > { %v757_v48 = vpop.f32.mrf.mxu2 }
 0x228   : > { %v758_v51 = vadd.f32 %v1360_v15, %v757_v48  ;;  %v851_v62 = vrot.slane %v850_v54, 2 }
 0x22a   : > { %v779_v55 = vmax.f32 %v758_v51, 0.0  ;;  %v852_v8 = vmax.f32 %v850_v54, %v851_v62 }
 0x22c   : > { %v855_v59 = vrot.slane %v779_v55, 4  ;;  %v853_v18 = vrot.slane %v852_v8, 1 }
 0x22e   : > { %v856_v63 = vmax.f32 %v779_v55, %v855_v59  ;;  %v854_v26 = vmax.f32 %v852_v8, %v853_v18 }
 0x22f   : > { %v759_v1 = vpop.f32.mrf.mxu2 }
 0x230   : > { %v857_v4 = vrot.slane %v856_v63, 2  ;;  %v760_v5 = vadd.f32 %v1360_v15, %v759_v1  ;;  %v836_v15 = vmax.f32 %v834_v7, %v835_v17 }
 0x232   : > { %v780_v9 = vmax.f32 %v760_v5, 0.0  ;;  %v858_v11 = vmax.f32 %v856_v63, %v857_v4  ;;  %v909_v30 = vsel %vm895_vm1, %v842_v22, %v836_v15 }
 0x233   : > { %v910_v33 = vsel %vm897_vm2, %v848_v25, %v909_v30 }
 0x234   : > { %v861_v14 = vrot.slane %v780_v9, 4  ;;  %v859_v21 = vrot.slane %v858_v11, 1  ;;  %v911_v34 = vsel %vm899_vm3, %v854_v26, %v910_v33 }
 0x236   : > { %v862_v19 = vmax.f32 %v780_v9, %v861_v14  ;;  %v860_v29 = vmax.f32 %v858_v11, %v859_v21 }
 0x238   : > { %v863_v24 = vrot.slane %v862_v19, 2  ;;  %v912_v37 = vsel %vm901_vm4, %v860_v29, %v911_v34 }
 0x23a   : > { %v864_v27 = vmax.f32 %v862_v19, %v863_v24 }
 0x23c   : > { %v865_v32 = vrot.slane %v864_v27, 1 }
 0x23e   : > { %v866_v35 = vmax.f32 %v864_v27, %v865_v32 }
 0x240   : > { %v913_v39 = vsel %vm903_vm5, %v866_v35, %v912_v37 }
 0x241   : > { %v914_v40 = vsel %vm905_vm6, %v872_v36, %v913_v39 }
 0x242   : > { %v915_v41 = vsel %vm907_vm7, %v878_v38, %v914_v40 }
 0x243   : > { %919 = vst [vmem:[%s1379_s12 + $0x8] sm:$0xff] %v915_v41 }
 0x244 PF: > { %s17_s26 = sadd.s32 1, %s1221_s26   ;;  %s1417_s24 = smov %s1217_s25 }
 0x245   : > { %p14_p5 = scmp.ge.s32.totalorder %s17_s26, 4   ;;  %s1418_s25 = smov %s1420_s27 }
 0x247   :  { %16 = sbr.rel (!%p14_p5) target bundleno = 2 (0x2), region = 78 }

// kernel: custom-call.26
= control target key start
LH: loop header
LB: loop body
LE: loop exit
PB: predicated region body
PF: predicated region fallthrough
CT: control target
= control target key end

     0   :  { %s6_s0 = inlined_call_operand.vmem [shape: f32[2,8], index: 0, kind: output, shape index: {}]  }

// kernel: pointnet2_forward.5
= control target key start
LH: loop header
LB: loop body
LE: loop exit
PB: predicated region body
PF: predicated region fallthrough
CT: control target
= control target key end

     0   :  { %s1695_s24 = smov 0   ;;  %s1697_s25 = smov 0   ;;  %s2037_s0 = inlined_call_operand.vmem [shape: bf16[2,128,256], index: 0, kind: input, shape index: {}]   ;;  %s2038_s1 = inlined_call_operand.vmem [shape: bf16[256,128], index: 1, kind: input, shape index: {}]   ;;  %s2039_s2 = inlined_call_operand.vmem [shape: f32[1,128], index: 2, kind: input, shape index: {}]   ;;  %s2040_s3 = inlined_call_operand.vmem [shape: bf16[128,128], index: 3, kind: input, shape index: {}]   ;;  %s2041_s4 = inlined_call_operand.vmem [shape: f32[1,128], index: 4, kind: input, shape index: {}]   ;;  %s2042_s5 = inlined_call_operand.vmem [shape: bf16[128,256], index: 5, kind: input, shape index: {}]   ;;  %s2043_s6 = inlined_call_operand.vmem [shape: f32[1,256], index: 6, kind: input, shape index: {}]   ;;  %s2044_s7 = inlined_call_operand.vmem [shape: f32[2,8,256], index: 7, kind: output, shape index: {}]  }
   0x1   :  { %s1699_s26 = smov 0  }
   0x2 LB: > { %s29_s27 = sadd.s32 1, %s1649_s25  ;;  %p1292_p0 = scmp.ge.s32.totalorder %s1653_s26, 1  ;;  %s1653_s26 = sphi %s1699_s26, %s17_s26   ;;  %s1649_s25 = sphi %s1697_s25, %s2046_s25   ;;  %s1645_s24 = sphi %s1695_s24, %s2045_s24  }
   0x3   : > { %p31_p1 = scmp.ge.s32.totalorder %s29_s27, 2  ;;  %p259_p2 = scmp.lt.s32.totalorder %s1653_s26, 3 }
   0x5   : > { %s2048_s27 = smov (%p31_p1, %s29_s27), 0  ;;  %p260_p3 = pnand %p1292_p0, %p259_p2 }
   0x6   : > { %p301_p4 = scmp.lt.s32.totalorder (!%p260_p3), %s1645_s24, 1 }
   0x7   : > { %263 = sbr.rel (%p260_p3) target bundleno = 634 (0x27a), region = 48 }
   0xc   : > { %v1548_v0 = vld [vmem:[%s2038_s1 + $0x38] sm:$0xff]  ;;  %v1547_v1 = vld [vmem:[%s2038_s1 + $0x30] sm:$0xff]  ;;  %v1546_v2 = vld [vmem:[%s2038_s1 + $0x28] sm:$0xff]  ;;  %s2050_s24 = smov (!%p301_p4, %s1645_s24), 1  ;;  %vm1171_vm0 = vcmask 1041409   ;;  %vm1173_vm1 = vcmask 1042434  }
   0xd   : > { %1581 = vmatpush.bf16.msra.mxu1 %v1548_v0  ;;  %548 = vmatpush.bf16.msra.mxu0 %v1548_v0  ;;  %v1545_v3 = vld [vmem:[%s2038_s1 + $0x20] sm:$0xff]  ;;  %v1544_v4 = vld [vmem:[%s2038_s1 + $0x18] sm:$0xff]  ;;  %v1543_v5 = vld [vmem:[%s2038_s1 + $0x10] sm:$0xff]  ;;  %s1523_s17 = sshll.u32 %s2050_s24, 7  ;;  %vm1175_vm2 = vcmask 1043459   ;;  %vm1177_vm3 = vcmask 1044484  }
   0xe   : > { %1582 = vmatpush.bf16.msra.mxu2 %v1548_v0  ;;  %1583 = vmatpush.bf16.msra.mxu3 %v1548_v0  ;;  %v1542_v6 = vld [vmem:[%s2038_s1 + $0x8] sm:$0xff]  ;;  %s1744_s22 = scalar_lea.vmem %s2037_s0, %s1523_s17  ;;  %v1541_v7 = vld [vmem:[%s2038_s1] sm:$0xff]  ;;  %v1556_v12 = vld [vmem:[%s2038_s1 + $0x78] sm:$0xff]  ;;  %vm1179_vm4 = vcmask 1045509   ;;  %s1524_s14 = sshll.u32 %s2050_s24, 4  ;;  %vm1181_vm5 = vcmask 1046534  }
   0xf   : > { %v1315_v8 = vld [vmem:[%s1744_s22 + $0x20] sm:$0xf]  ;;  %v1530_v9 = vld [vmem:[%s1744_s22 + $0x24] sm:$0xf0]  ;;  %v1555_v15 = vld [vmem:[%s2038_s1 + $0x70] sm:$0xff]  ;;  %vm1183_vm6 = vcmask 1047559   ;;  %s319_s17 = scalar_lea.vmem %s2044_s7, %s1524_s14 }
  0x10   : > { %v1299_v10 = vld [vmem:[%s1744_s22] sm:$0xf]  ;;  %v1526_v11 = vld [vmem:[%s1744_s22 + $0x4] sm:$0xf0]  ;;  %v1316_v13 = vor.u32 %v1530_v9, %v1315_v8  ;;  %v1323_v18 = vld [vmem:[%s1744_s22 + $0x30] sm:$0xf] }
  0x11   : > { %1584 = vmatpush.bf16.msra.mxu1 %v1547_v1  ;;  %549 = vmatpush.bf16.msra.mxu0 %v1547_v1  ;;  %v1300_v14 = vor.u32 %v1526_v11, %v1299_v10  ;;  %v1554_v16 = vld [vmem:[%s2038_s1 + $0x68] sm:$0xff]  ;;  %v1553_v17 = vld [vmem:[%s2038_s1 + $0x60] sm:$0xff]  ;;  %v1532_v19 = vld [vmem:[%s1744_s22 + $0x34] sm:$0xf0] }
  0x12   : > { %1585 = vmatpush.bf16.msra.mxu2 %v1547_v1  ;;  %1586 = vmatpush.bf16.msra.mxu3 %v1547_v1  ;;  %v1307_v20 = vld [vmem:[%s1744_s22 + $0x10] sm:$0xf]  ;;  %v1528_v21 = vld [vmem:[%s1744_s22 + $0x14] sm:$0xf0]  ;;  %v1324_v23 = vor.u32 %v1532_v19, %v1323_v18  ;;  %v1550_v26 = vld [vmem:[%s2038_s1 + $0x48] sm:$0xff] }
  0x13   : > { %v1552_v22 = vld [vmem:[%s2038_s1 + $0x58] sm:$0xff]  ;;  %v1308_v24 = vor.u32 %v1528_v21, %v1307_v20  ;;  %v1551_v25 = vld [vmem:[%s2038_s1 + $0x50] sm:$0xff]  ;;  %v1549_v27 = vld [vmem:[%s2038_s1 + $0x40] sm:$0xff] }
  0x14   : > { %v1525_v28 = vld [vmem:[%s1744_s22 + $0x4] sm:$0xf]  ;;  %v1301_v29 = vld [vmem:[%s1744_s22 + $0x8] sm:$0xf0]  ;;  %v1331_v31 = vld [vmem:[%s1744_s22 + $0x40] sm:$0xf] }
  0x15   : > { %1587 = vmatpush.bf16.msra.mxu1 %v1546_v2  ;;  %550 = vmatpush.bf16.msra.mxu0 %v1546_v2  ;;  %v1304_v30 = vor.u32 %v1525_v28, %v1301_v29  ;;  %v1534_v32 = vld [vmem:[%s1744_s22 + $0x44] sm:$0xf0]  ;;  %v1527_v34 = vld [vmem:[%s1744_s22 + $0x14] sm:$0xf]  ;;  %v1309_v35 = vld [vmem:[%s1744_s22 + $0x18] sm:$0xf0] }
  0x16   : > { %1588 = vmatpush.bf16.msra.mxu2 %v1546_v2  ;;  %1589 = vmatpush.bf16.msra.mxu3 %v1546_v2  ;;  %v1332_v33 = vor.u32 %v1534_v32, %v1331_v31  ;;  %v1312_v36 = vor.u32 %v1527_v34, %v1309_v35  ;;  %v1339_v37 = vld [vmem:[%s1744_s22 + $0x50] sm:$0xf]  ;;  %v1536_v38 = vld [vmem:[%s1744_s22 + $0x54] sm:$0xf0]  ;;  %v1529_v40 = vld [vmem:[%s1744_s22 + $0x24] sm:$0xf] }
  0x17   : > { %v1340_v39 = vor.u32 %v1536_v38, %v1339_v37  ;;  %v1317_v41 = vld [vmem:[%s1744_s22 + $0x28] sm:$0xf0]  ;;  %v1347_v43 = vld [vmem:[%s1744_s22 + $0x60] sm:$0xf]  ;;  %v1538_v44 = vld [vmem:[%s1744_s22 + $0x64] sm:$0xf0] }
  0x18   : > { %v1320_v42 = vor.u32 %v1529_v40, %v1317_v41  ;;  %v1348_v45 = vor.u32 %v1538_v44, %v1347_v43  ;;  %v1531_v46 = vld [vmem:[%s1744_s22 + $0x34] sm:$0xf]  ;;  %v1325_v47 = vld [vmem:[%s1744_s22 + $0x38] sm:$0xf0]  ;;  %v1533_v49 = vld [vmem:[%s1744_s22 + $0x44] sm:$0xf] }
  0x19   : > { %1590 = vmatpush.bf16.msra.mxu1 %v1545_v3  ;;  %551 = vmatpush.bf16.msra.mxu0 %v1545_v3  ;;  %v1328_v48 = vor.u32 %v1531_v46, %v1325_v47  ;;  %v1333_v50 = vld [vmem:[%s1744_s22 + $0x48] sm:$0xf0]  ;;  %v1355_v52 = vld [vmem:[%s1744_s22 + $0x70] sm:$0xf]  ;;  %v1540_v53 = vld [vmem:[%s1744_s22 + $0x74] sm:$0xf0] }
  0x1a   : > { %1591 = vmatpush.bf16.msra.mxu2 %v1545_v3  ;;  %1592 = vmatpush.bf16.msra.mxu3 %v1545_v3  ;;  %v1336_v51 = vor.u32 %v1533_v49, %v1333_v50  ;;  %v1356_v54 = vor.u32 %v1540_v53, %v1355_v52  ;;  %v1564_v55 = vld [vmem:[%s2040_s3 + $0x38] sm:$0xff]  ;;  %v1535_v56 = vld [vmem:[%s1744_s22 + $0x54] sm:$0xf]  ;;  %v1562_v60 = vld [vmem:[%s2040_s3 + $0x28] sm:$0xff] }
  0x1b   : > { %v1341_v57 = vld [vmem:[%s1744_s22 + $0x58] sm:$0xf0]  ;;  %v1563_v59 = vld [vmem:[%s2040_s3 + $0x30] sm:$0xff]  ;;  %v1561_v61 = vld [vmem:[%s2040_s3 + $0x20] sm:$0xff] }
  0x1c   : > { %v1344_v58 = vor.u32 %v1535_v56, %v1341_v57  ;;  %v1537_v62 = vld [vmem:[%s1744_s22 + $0x64] sm:$0xf]  ;;  %v1349_v63 = vld [vmem:[%s1744_s22 + $0x68] sm:$0xf0]  ;;  %v1560_v0 = vld [vmem:[%s2040_s3 + $0x18] sm:$0xff] }
  0x1d   : > { %1593 = vmatpush.bf16.msra.mxu1 %v1544_v4  ;;  %552 = vmatpush.bf16.msra.mxu0 %v1544_v4  ;;  %v1352_v1 = vor.u32 %v1537_v62, %v1349_v63  ;;  %v1559_v3 = vld [vmem:[%s2040_s3 + $0x10] sm:$0xff]  ;;  %v1357_v8 = vld [vmem:[%s1744_s22 + $0x78] sm:$0xf0] }
  0x1e   : > { %1594 = vmatpush.bf16.msra.mxu2 %v1544_v4  ;;  %1595 = vmatpush.bf16.msra.mxu3 %v1544_v4  ;;  %v1558_v4 = vld [vmem:[%s2040_s3 + $0x8] sm:$0xff] }
  0x21   : > { %1596 = vmatpush.bf16.msra.mxu1 %v1543_v5  ;;  %553 = vmatpush.bf16.msra.mxu0 %v1543_v5 }
  0x22   : > { %1597 = vmatpush.bf16.msra.mxu2 %v1543_v5  ;;  %1598 = vmatpush.bf16.msra.mxu3 %v1543_v5 }
  0x25   : > { %1599 = vmatpush.bf16.msra.mxu1 %v1542_v6  ;;  %554 = vmatpush.bf16.msra.mxu0 %v1542_v6 }
  0x26   : > { %1600 = vmatpush.bf16.msra.mxu2 %v1542_v6  ;;  %1601 = vmatpush.bf16.msra.mxu3 %v1542_v6  ;;  %v1557_v6 = vld [vmem:[%s2040_s3] sm:$0xff] }
  0x29   : > { %1602 = vmatpush.bf16.msra.mxu1 %v1541_v7  ;;  %555 = vmatpush.bf16.msra.mxu0 %v1541_v7 }
  0x2a   : > { %1603 = vmatpush.bf16.msra.mxu2 %v1541_v7  ;;  %1604 = vmatpush.bf16.msra.mxu3 %v1541_v7  ;;  %v1539_v7 = vld [vmem:[%s1744_s22 + $0x74] sm:$0xf] }
  0x2b   : > { %v1360_v9 = vor.u32 %v1539_v7, %v1357_v8 }
  0x2c   : > { %566 = vmatmul.bf16.vlgmr.msra.gmra.mxu1 %v1316_v13  ;;  %556 = vmatmul.bf16.vlgmr.msra.gmra.mxu0 %v1300_v14 }
  0x2d   : > { %597 = vmatpush.bf16.msrb.mxu1 %v1556_v12  ;;  %576 = vmatmul.bf16.vlgmr.msra.gmra.mxu2 %v1332_v33 }
  0x2e   : > { %586 = vmatmul.bf16.vlgmr.msra.gmra.mxu3 %v1348_v45  ;;  %738 = vmatpush.bf16.msrb.mxu2 %v1564_v55 }
  0x31   : > { %598 = vmatpush.bf16.msrb.mxu1 %v1555_v15  ;;  %v1832_v15 = vld [vmem:[%s2039_s2] ss:$0 sm:$0xff] }
  0x32   : > { %739 = vmatpush.bf16.msrb.mxu2 %v1563_v59 }
  0x35   : > { %599 = vmatpush.bf16.msrb.mxu1 %v1554_v16 }
  0x36   : > { %740 = vmatpush.bf16.msrb.mxu2 %v1562_v60 }
  0x39   : > { %600 = vmatpush.bf16.msrb.mxu1 %v1553_v17 }
  0x3a   : > { %741 = vmatpush.bf16.msrb.mxu2 %v1561_v61 }
  0x3c   : > { %571 = vmatmul.bf16.gmra.mxu1 %v1324_v23  ;;  %561 = vmatmul.bf16.gmra.mxu0 %v1308_v24 }
  0x3d   : > { %601 = vmatpush.bf16.msrb.mxu1 %v1552_v22  ;;  %581 = vmatmul.bf16.gmra.mxu2 %v1340_v39 }
  0x3e   : > { %591 = vmatmul.bf16.gmra.mxu3 %v1356_v54  ;;  %742 = vmatpush.bf16.msrb.mxu2 %v1560_v0 }
  0x41   : > { %602 = vmatpush.bf16.msrb.mxu1 %v1551_v25 }
  0x42   : > { %743 = vmatpush.bf16.msrb.mxu2 %v1559_v3 }
  0x45   : > { %603 = vmatpush.bf16.msrb.mxu1 %v1550_v26 }
  0x46   : > { %744 = vmatpush.bf16.msrb.mxu2 %v1558_v4 }
  0x49   : > { %604 = vmatpush.bf16.msrb.mxu1 %v1549_v27 }
  0x4a   : > { %745 = vmatpush.bf16.msrb.mxu2 %v1557_v6 }
  0x4c   : > { %605 = vmatmul.bf16.vlgmr.msrb.gmra.mxu1 %v1304_v30 }
  0x5c   : > { %610 = vmatmul.bf16.gmra.mxu1 %v1312_v36 }
  0x6c   : > { %615 = vmatmul.bf16.gmra.mxu1 %v1320_v42 }
  0x7c   : > { %620 = vmatmul.bf16.gmra.mxu1 %v1328_v48 }
  0x8c   : > { %625 = vmatmul.bf16.gmra.mxu1 %v1336_v51 }
  0x9c   : > { %630 = vmatmul.bf16.gmra.mxu1 %v1344_v58 }
  0xa9   : > { %v567_v2 = vpop.f32.mrf.mxu1  ;;  %v557_v11 = vpop.f32.mrf.mxu0 }
  0xaa   : > { %v558_v16 = vadd.f32 %v1832_v15, %v557_v11  ;;  %v568_v36 = vadd.f32 %v1832_v15, %v567_v2 }
  0xac   : > { %635 = vmatmul.bf16.gmra.mxu1 %v1352_v1 }
  0xb0   : > { %v577_v46 = vpop.f32.mrf.mxu2 }
  0xb1   : > { %v569_v5 = vpop.f32.mrf.mxu1  ;;  %v559_v13 = vpop.f32.mrf.mxu0  ;;  %v578_v56 = vadd.f32 %v1832_v15, %v577_v46 }
  0xb2   : > { %v560_v17 = vadd.f32 %v1832_v15, %v559_v13  ;;  %v570_v37 = vadd.f32 %v1832_v15, %v569_v5  ;;  %v587_v4 = vpop.f32.mrf.mxu3  ;;  %v1580_v13 = vld [vmem:[%s2042_s5 + $0x74] sm:$0xf0] }
  0xb8   : > { %v579_v54 = vpop.f32.mrf.mxu2 }
  0xb9   : > { %v572_v10 = vpop.f32.mrf.mxu1  ;;  %v562_v21 = vpop.f32.mrf.mxu0  ;;  %v580_v57 = vadd.f32 %v1832_v15, %v579_v54 }
  0xba   : > { %v563_v26 = vadd.f32 %v1832_v15, %v562_v21  ;;  %v573_v45 = vadd.f32 %v1832_v15, %v572_v10  ;;  %v1578_v21 = vld [vmem:[%s2042_s5 + $0x64] sm:$0xf0] }
  0xbc   : > { %640 = vmatmul.bf16.gmra.mxu1 %v1360_v9 }
  0xc0   : > { %v582_v61 = vpop.f32.mrf.mxu2 }
  0xc1   : > { %v574_v12 = vpop.f32.mrf.mxu1  ;;  %v564_v27 = vpop.f32.mrf.mxu0  ;;  %v583_v2 = vadd.f32 %v1832_v15, %v582_v61  ;;  %v1477_v61 = vld [vmem:[%s2042_s5 + $0x28] sm:$0xf0] }
  0xc2   : > { %v565_v28 = vadd.f32 %v1832_v15, %v564_v27  ;;  %v575_v47 = vadd.f32 %v1832_v15, %v574_v12  ;;  %v1515_v12 = vld [vmem:[%s2042_s5 + $0x70] sm:$0xf] }
  0xc8   : > { %v584_v3 = vpop.f32.mrf.mxu2 }
  0xc9   : > { %v606_v14 = vpop.f32.mrf.mxu1  ;;  %v585_v5 = vadd.f32 %v1832_v15, %v584_v3 }
  0xca   : > { %v607_v18 = vadd.f32 %v606_v14, %v558_v16  ;;  %v1579_v14 = vld [vmem:[%s2042_s5 + $0x74] sm:$0xf]  ;;  %v589_v16 = vpop.f32.mrf.mxu3 }
  0xcc   : > { %v646_v22 = vmax.f32 %v607_v18, 0.0  ;;  %v1516_v18 = vor.u32 %v1580_v13, %v1515_v12  ;;  %v1565_v13 = vld [vmem:[%s2042_s5 + $0x4] sm:$0xf] }
  0xce   : > { %913 = vmatpush.bf16.msrb.mxu3 %v1516_v18 }
  0xd1   : > { %v608_v19 = vpop.f32.mrf.mxu1 }
  0xd2   : > { %v609_v20 = vadd.f32 %v608_v19, %v560_v17  ;;  %v1517_v19 = vld [vmem:[%s2042_s5 + $0x78] sm:$0xf0] }
  0xd4   : > { %v647_v23 = vmax.f32 %v609_v20, 0.0  ;;  %v1507_v20 = vld [vmem:[%s2042_s5 + $0x60] sm:$0xf] }
  0xd6   : > { %v662_v24 = vpack.c.bf16 %v647_v23, %v646_v22  ;;  %v1520_v22 = vor.u32 %v1579_v14, %v1517_v19  ;;  %v1577_v23 = vld [vmem:[%s2042_s5 + $0x64] sm:$0xf]  ;;  %v1461_v14 = vld [vmem:[%s2042_s5 + $0x8] sm:$0xf0]  ;;  %v1949_v19 = vld [vmem:[%s2041_s4] ss:$0 sm:$0xff] }
  0xd8   : > { %746 = vmatmul.bf16.vlgmr.msrb.gmra.mxu2 %v662_v24  ;;  %v1509_v24 = vld [vmem:[%s2042_s5 + $0x68] sm:$0xf0]  ;;  %962 = vmatpush.bf16.msrb.mxu0 %v1520_v22 }
  0xd9   : > { %v611_v25 = vpop.f32.mrf.mxu1  ;;  %v1512_v27 = vor.u32 %v1577_v23, %v1509_v24 }
  0xda   : > { %v612_v29 = vadd.f32 %v611_v25, %v563_v26  ;;  %v1508_v25 = vor.u32 %v1578_v21, %v1507_v20  ;;  %v588_v26 = vadd.f32 %v1832_v15, %v587_v4  ;;  %v1567_v4 = vld [vmem:[%s2042_s5 + $0x14] sm:$0xf] }
  0xdc   : > { %v648_v32 = vmax.f32 %v612_v29, 0.0  ;;  %v1576_v29 = vld [vmem:[%s2042_s5 + $0x54] sm:$0xf0]  ;;  %914 = vmatpush.bf16.msrb.mxu3 %v1508_v25  ;;  %963 = vmatpush.bf16.msrb.mxu0 %v1512_v27 }
  0xe1   : > { %v613_v30 = vpop.f32.mrf.mxu1 }
  0xe2   : > { %v614_v31 = vadd.f32 %v613_v30, %v565_v28  ;;  %v1499_v28 = vld [vmem:[%s2042_s5 + $0x50] sm:$0xf]  ;;  %v1575_v30 = vld [vmem:[%s2042_s5 + $0x54] sm:$0xf] }
  0xe4   : > { %v649_v33 = vmax.f32 %v614_v31, 0.0  ;;  %v1501_v31 = vld [vmem:[%s2042_s5 + $0x58] sm:$0xf0] }
  0xe6   : > { %v663_v34 = vpack.c.bf16 %v649_v33, %v648_v32  ;;  %v1500_v32 = vor.u32 %v1576_v29, %v1499_v28  ;;  %v590_v33 = vadd.f32 %v1832_v15, %v589_v16 }
  0xe8   : > { %751 = vmatmul.bf16.gmra.mxu2 %v663_v34  ;;  %915 = vmatpush.bf16.msrb.mxu3 %v1500_v32 }
  0xe9   : > { %v616_v35 = vpop.f32.mrf.mxu1 }
  0xea   : > { %v617_v38 = vadd.f32 %v616_v35, %v568_v36  ;;  %v1504_v35 = vor.u32 %v1575_v30, %v1501_v31  ;;  %v1491_v36 = vld [vmem:[%s2042_s5 + $0x40] sm:$0xf] }
  0xec   : > { %v650_v41 = vmax.f32 %v617_v38, 0.0  ;;  %964 = vmatpush.bf16.msrb.mxu0 %v1504_v35 }
  0xf1   : > { %v618_v39 = vpop.f32.mrf.mxu1 }
  0xf2   : > { %v619_v40 = vadd.f32 %v618_v39, %v570_v37  ;;  %v1574_v37 = vld [vmem:[%s2042_s5 + $0x44] sm:$0xf0]  ;;  %v1573_v39 = vld [vmem:[%s2042_s5 + $0x44] sm:$0xf] }
  0xf4   : > { %v651_v42 = vmax.f32 %v619_v40, 0.0  ;;  %v1493_v40 = vld [vmem:[%s2042_s5 + $0x48] sm:$0xf0] }
  0xf5   : > { %v1496_v46 = vor.u32 %v1573_v39, %v1493_v40 }
  0xf6   : > { %v664_v43 = vpack.c.bf16 %v651_v42, %v650_v41  ;;  %v592_v42 = vpop.f32.mrf.mxu3 }
  0xf7   : > { %965 = vmatpush.bf16.msrb.mxu0 %v1496_v46 }
  0xf8   : > { %756 = vmatmul.bf16.gmra.mxu2 %v664_v43  ;;  %v1492_v43 = vor.u32 %v1574_v37, %v1491_v36 }
  0xf9   : > { %v621_v44 = vpop.f32.mrf.mxu1 }
  0xfa   : > { %v622_v48 = vadd.f32 %v621_v44, %v573_v45  ;;  %916 = vmatpush.bf16.msrb.mxu3 %v1492_v43 }
  0xfc   : > { %v652_v51 = vmax.f32 %v622_v48, 0.0  ;;  %v1572_v48 = vld [vmem:[%s2042_s5 + $0x34] sm:$0xf0] }
 0x101   : > { %v623_v49 = vpop.f32.mrf.mxu1 }
 0x102   : > { %v624_v50 = vadd.f32 %v623_v49, %v575_v47  ;;  %v1483_v47 = vld [vmem:[%s2042_s5 + $0x30] sm:$0xf] }
 0x104   : > { %v653_v52 = vmax.f32 %v624_v50, 0.0  ;;  %v1484_v50 = vor.u32 %v1572_v48, %v1483_v47 }
 0x106   : > { %v665_v53 = vpack.c.bf16 %v653_v52, %v652_v51  ;;  %v1571_v51 = vld [vmem:[%s2042_s5 + $0x34] sm:$0xf]  ;;  %v1485_v52 = vld [vmem:[%s2042_s5 + $0x38] sm:$0xf0]  ;;  %917 = vmatpush.bf16.msrb.mxu3 %v1484_v50 }
 0x107   : > { %v1488_v54 = vor.u32 %v1571_v51, %v1485_v52 }
 0x108   : > { %761 = vmatmul.bf16.gmra.mxu2 %v665_v53 }
 0x109   : > { %v626_v55 = vpop.f32.mrf.mxu1  ;;  %966 = vmatpush.bf16.msrb.mxu0 %v1488_v54 }
 0x10a   : > { %v627_v58 = vadd.f32 %v626_v55, %v578_v56  ;;  %v593_v55 = vadd.f32 %v1832_v15, %v592_v42  ;;  %v1475_v56 = vld [vmem:[%s2042_s5 + $0x20] sm:$0xf] }
 0x10c   : > { %v654_v62 = vmax.f32 %v627_v58, 0.0  ;;  %v594_v58 = vpop.f32.mrf.mxu3 }
 0x111   : > { %v628_v59 = vpop.f32.mrf.mxu1 }
 0x112   : > { %v629_v60 = vadd.f32 %v628_v59, %v580_v57  ;;  %v1570_v57 = vld [vmem:[%s2042_s5 + $0x24] sm:$0xf0] }
 0x113   : > { %v1476_v59 = vor.u32 %v1570_v57, %v1475_v56 }
 0x114   : > { %v655_v63 = vmax.f32 %v629_v60, 0.0  ;;  %v1569_v60 = vld [vmem:[%s2042_s5 + $0x24] sm:$0xf] }
 0x115   : > { %918 = vmatpush.bf16.msrb.mxu3 %v1476_v59 }
 0x116   : > { %v666_v0 = vpack.c.bf16 %v655_v63, %v654_v62  ;;  %v1480_v62 = vor.u32 %v1569_v60, %v1477_v61  ;;  %v1467_v63 = vld [vmem:[%s2042_s5 + $0x10] sm:$0xf] }
 0x118   : > { %766 = vmatmul.bf16.gmra.mxu2 %v666_v0  ;;  %v1568_v0 = vld [vmem:[%s2042_s5 + $0x14] sm:$0xf0]  ;;  %967 = vmatpush.bf16.msrb.mxu0 %v1480_v62 }
 0x119   : > { %v631_v1 = vpop.f32.mrf.mxu1 }
 0x11a   : > { %v632_v6 = vadd.f32 %v631_v1, %v583_v2  ;;  %v1468_v1 = vor.u32 %v1568_v0, %v1467_v63  ;;  %v595_v2 = vadd.f32 %v1832_v15, %v594_v58  ;;  %v1459_v15 = vld [vmem:[%s2042_s5] sm:$0xf] }
 0x11c   : > { %v656_v9 = vmax.f32 %v632_v6, 0.0  ;;  %919 = vmatpush.bf16.msrb.mxu3 %v1468_v1 }
 0x121   : > { %v633_v7 = vpop.f32.mrf.mxu1 }
 0x122   : > { %v634_v8 = vadd.f32 %v633_v7, %v585_v5  ;;  %v1469_v5 = vld [vmem:[%s2042_s5 + $0x18] sm:$0xf0] }
 0x123   : > { %v1472_v7 = vor.u32 %v1567_v4, %v1469_v5 }
 0x124   : > { %v657_v10 = vmax.f32 %v634_v8, 0.0 }
 0x125   : > { %968 = vmatpush.bf16.msrb.mxu0 %v1472_v7 }
 0x126   : > { %v667_v11 = vpack.c.bf16 %v657_v10, %v656_v9 }
 0x128   : > { %771 = vmatmul.bf16.gmra.mxu2 %v667_v11  ;;  %v1566_v11 = vld [vmem:[%s2042_s5 + $0x4] sm:$0xf0] }
 0x129   : > { %v636_v17 = vpop.f32.mrf.mxu1  ;;  %v1460_v12 = vor.u32 %v1566_v11, %v1459_v15  ;;  %v827_v15 = vld [vmem:[%s2043_s6] sm:$0x3] }
 0x12a   : > { %v637_v34 = vadd.f32 %v636_v17, %v588_v26  ;;  %v1464_v17 = vor.u32 %v1565_v13, %v1461_v14 }
 0x12b   : > { %920 = vmatpush.bf16.msrb.mxu3 %v1460_v12  ;;  %v1970_v12 = vperm.slane %v827_v15, 1 }
 0x12c   : > { %v658_v44 = vmax.f32 %v637_v34, 0.0  ;;  %969 = vmatpush.bf16.msrb.mxu0 %v1464_v17  ;;  %v1973_v17 = vperm.slane %v827_v15, 0 }
 0x131   : > { %v638_v38 = vpop.f32.mrf.mxu1 }
 0x132   : > { %v639_v41 = vadd.f32 %v638_v38, %v590_v33 }
 0x134   : > { %v659_v45 = vmax.f32 %v639_v41, 0.0 }
 0x136   : > { %v668_v49 = vpack.c.bf16 %v659_v45, %v658_v44 }
 0x138   : > { %776 = vmatmul.bf16.gmra.mxu2 %v668_v49 }
 0x139   : > { %v641_v53 = vpop.f32.mrf.mxu1 }
 0x13a   : > { %v642_v3 = vadd.f32 %v641_v53, %v593_v55 }
 0x13c   : > { %v660_v9 = vmax.f32 %v642_v3, 0.0 }
 0x141   : > { %v643_v6 = vpop.f32.mrf.mxu1 }
 0x142   : > { %v644_v8 = vadd.f32 %v643_v6, %v595_v2 }
 0x144   : > { %v661_v10 = vmax.f32 %v644_v8, 0.0 }
 0x146   : > { %v669_v16 = vpack.c.bf16 %v661_v10, %v660_v9 }
 0x148   : > { %781 = vmatmul.bf16.gmra.mxu2 %v669_v16 }
 0x15b   : > { %v747_v18 = vpop.f32.mrf.mxu2 }
 0x15c   : > { %v748_v20 = vadd.f32 %v1949_v19, %v747_v18 }
 0x15e   : > { %v787_v23 = vmax.f32 %v748_v20, 0.0 }
 0x163   : > { %v749_v21 = vpop.f32.mrf.mxu2 }
 0x164   : > { %v750_v22 = vadd.f32 %v1949_v19, %v749_v21 }
 0x166   : > { %v788_v24 = vmax.f32 %v750_v22, 0.0 }
 0x168   : > { %v803_v25 = vpack.c.bf16 %v788_v24, %v787_v23 }
 0x16a   : > { %921 = vmatmul.bf16.vlgmr.msrb.gmra.mxu3 %v803_v25  ;;  %970 = vmatmul.bf16.vlgmr.msrb.gmra.mxu0 %v803_v25 }
 0x16b   : > { %v752_v26 = vpop.f32.mrf.mxu2 }
 0x16c   : > { %v753_v27 = vadd.f32 %v1949_v19, %v752_v26 }
 0x16e   : > { %v789_v30 = vmax.f32 %v753_v27, 0.0 }
 0x173   : > { %v754_v28 = vpop.f32.mrf.mxu2 }
 0x174   : > { %v755_v29 = vadd.f32 %v1949_v19, %v754_v28 }
 0x176   : > { %v790_v31 = vmax.f32 %v755_v29, 0.0 }
 0x178   : > { %v804_v32 = vpack.c.bf16 %v790_v31, %v789_v30 }
 0x17a   : > { %926 = vmatmul.bf16.gmra.mxu3 %v804_v32  ;;  %975 = vmatmul.bf16.gmra.mxu0 %v804_v32 }
 0x17b   : > { %v757_v33 = vpop.f32.mrf.mxu2 }
 0x17c   : > { %v758_v34 = vadd.f32 %v1949_v19, %v757_v33 }
 0x17e   : > { %v791_v37 = vmax.f32 %v758_v34, 0.0 }
 0x183   : > { %v759_v35 = vpop.f32.mrf.mxu2 }
 0x184   : > { %v760_v36 = vadd.f32 %v1949_v19, %v759_v35 }
 0x186   : > { %v792_v38 = vmax.f32 %v760_v36, 0.0 }
 0x188   : > { %v805_v39 = vpack.c.bf16 %v792_v38, %v791_v37 }
 0x18a   : > { %931 = vmatmul.bf16.gmra.mxu3 %v805_v39  ;;  %980 = vmatmul.bf16.gmra.mxu0 %v805_v39 }
 0x18b   : > { %v762_v40 = vpop.f32.mrf.mxu2 }
 0x18c   : > { %v763_v41 = vadd.f32 %v1949_v19, %v762_v40 }
 0x18e   : > { %v793_v44 = vmax.f32 %v763_v41, 0.0 }
 0x193   : > { %v764_v42 = vpop.f32.mrf.mxu2 }
 0x194   : > { %v765_v43 = vadd.f32 %v1949_v19, %v764_v42 }
 0x196   : > { %v794_v45 = vmax.f32 %v765_v43, 0.0 }
 0x198   : > { %v806_v46 = vpack.c.bf16 %v794_v45, %v793_v44 }
 0x19a   : > { %936 = vmatmul.bf16.gmra.mxu3 %v806_v46  ;;  %985 = vmatmul.bf16.gmra.mxu0 %v806_v46 }
 0x19b   : > { %v767_v47 = vpop.f32.mrf.mxu2 }
 0x19c   : > { %v768_v48 = vadd.f32 %v1949_v19, %v767_v47 }
 0x19e   : > { %v795_v51 = vmax.f32 %v768_v48, 0.0 }
 0x1a3   : > { %v769_v49 = vpop.f32.mrf.mxu2 }
 0x1a4   : > { %v770_v50 = vadd.f32 %v1949_v19, %v769_v49 }
 0x1a6   : > { %v796_v52 = vmax.f32 %v770_v50, 0.0 }
 0x1a8   : > { %v807_v53 = vpack.c.bf16 %v796_v52, %v795_v51 }
 0x1aa   : > { %941 = vmatmul.bf16.gmra.mxu3 %v807_v53  ;;  %990 = vmatmul.bf16.gmra.mxu0 %v807_v53 }
 0x1ab   : > { %v772_v54 = vpop.f32.mrf.mxu2 }
 0x1ac   : > { %v773_v55 = vadd.f32 %v1949_v19, %v772_v54 }
 0x1ae   : > { %v797_v58 = vmax.f32 %v773_v55, 0.0 }
 0x1b3   : > { %v774_v56 = vpop.f32.mrf.mxu2 }
 0x1b4   : > { %v775_v57 = vadd.f32 %v1949_v19, %v774_v56 }
 0x1b6   : > { %v798_v59 = vmax.f32 %v775_v57, 0.0 }
 0x1b8   : > { %v808_v60 = vpack.c.bf16 %v798_v59, %v797_v58 }
 0x1ba   : > { %946 = vmatmul.bf16.gmra.mxu3 %v808_v60  ;;  %995 = vmatmul.bf16.gmra.mxu0 %v808_v60 }
 0x1bb   : > { %v777_v61 = vpop.f32.mrf.mxu2 }
 0x1bc   : > { %v778_v62 = vadd.f32 %v1949_v19, %v777_v61 }
 0x1be   : > { %v799_v1 = vmax.f32 %v778_v62, 0.0 }
 0x1c3   : > { %v779_v63 = vpop.f32.mrf.mxu2 }
 0x1c4   : > { %v780_v0 = vadd.f32 %v1949_v19, %v779_v63 }
 0x1c6   : > { %v800_v2 = vmax.f32 %v780_v0, 0.0 }
 0x1c8   : > { %v809_v3 = vpack.c.bf16 %v800_v2, %v799_v1 }
 0x1ca   : > { %951 = vmatmul.bf16.gmra.mxu3 %v809_v3  ;;  %1000 = vmatmul.bf16.gmra.mxu0 %v809_v3 }
 0x1cb   : > { %v782_v4 = vpop.f32.mrf.mxu2 }
 0x1cc   : > { %v783_v5 = vadd.f32 %v1949_v19, %v782_v4 }
 0x1ce   : > { %v801_v8 = vmax.f32 %v783_v5, 0.0 }
 0x1d3   : > { %v784_v6 = vpop.f32.mrf.mxu2 }
 0x1d4   : > { %v785_v7 = vadd.f32 %v1949_v19, %v784_v6 }
 0x1d6   : > { %v802_v9 = vmax.f32 %v785_v7, 0.0 }
 0x1d8   : > { %v810_v10 = vpack.c.bf16 %v802_v9, %v801_v8 }
 0x1da   : > { %956 = vmatmul.bf16.gmra.mxu3 %v810_v10  ;;  %1005 = vmatmul.bf16.gmra.mxu0 %v810_v10 }
 0x1e7   : > { %v971_v11 = vpop.f32.mrf.mxu0 }
 0x1e8   : > { %v972_v14 = vadd.f32 %v971_v11, %v1970_v12 }
 0x1ea   : > { %v1012_v19 = vmax.f32 %v972_v14, 0.0 }
 0x1ed   : > { %v922_v13 = vpop.f32.mrf.mxu3 }
 0x1ee   : > { %v923_v21 = vadd.f32 %v922_v13, %v1973_v17 }
 0x1ef   : > { %v973_v16 = vpop.f32.mrf.mxu0 }
 0x1f0   : > { %v974_v18 = vadd.f32 %v973_v16, %v1970_v12  ;;  %v1011_v26 = vmax.f32 %v923_v21, 0.0 }
 0x1f2   : > { %v1014_v20 = vmax.f32 %v974_v18, 0.0 }
 0x1f4   : > { %v1050_v22 = vmax.f32 %v1012_v19, %v1014_v20 }
 0x1f5   : > { %v924_v23 = vpop.f32.mrf.mxu3 }
 0x1f6   : > { %v925_v24 = vadd.f32 %v924_v23, %v1973_v17  ;;  %v1051_v29 = vrot.slane %v1050_v22, 4 }
 0x1f7   : > { %v976_v25 = vpop.f32.mrf.mxu0 }
 0x1f8   : > { %v1013_v27 = vmax.f32 %v925_v24, 0.0  ;;  %v977_v31 = vadd.f32 %v976_v25, %v1970_v12  ;;  %v1052_v33 = vmax.f32 %v1050_v22, %v1051_v29 }
 0x1fa   : > { %v1043_v28 = vmax.f32 %v1011_v26, %v1013_v27  ;;  %v1016_v36 = vmax.f32 %v977_v31, 0.0  ;;  %v1053_v38 = vrot.slane %v1052_v33, 2 }
 0x1fc   : > { %v1044_v35 = vrot.slane %v1043_v28, 4  ;;  %v1054_v46 = vmax.f32 %v1052_v33, %v1053_v38 }
 0x1fd   : > { %v927_v30 = vpop.f32.mrf.mxu3 }
 0x1fe   : > { %v928_v39 = vadd.f32 %v927_v30, %v1973_v17  ;;  %v1045_v41 = vmax.f32 %v1043_v28, %v1044_v35  ;;  %v1055_v53 = vrot.slane %v1054_v46, 1 }
 0x1ff   : > { %v978_v32 = vpop.f32.mrf.mxu0 }
 0x200   : > { %v979_v34 = vadd.f32 %v978_v32, %v1970_v12  ;;  %v1015_v47 = vmax.f32 %v928_v39, 0.0  ;;  %v1046_v50 = vrot.slane %v1045_v41, 2  ;;  %v1056_v62 = vmax.f32 %v1054_v46, %v1055_v53 }
 0x202   : > { %v1018_v37 = vmax.f32 %v979_v34, 0.0  ;;  %v1047_v56 = vmax.f32 %v1045_v41, %v1046_v50 }
 0x204   : > { %v1064_v40 = vmax.f32 %v1016_v36, %v1018_v37  ;;  %v1048_v2 = vrot.slane %v1047_v56, 1 }
 0x205   : > { %v929_v42 = vpop.f32.mrf.mxu3 }
 0x206   : > { %v1065_v43 = vrot.slane %v1064_v40, 4  ;;  %v930_v44 = vadd.f32 %v929_v42, %v1973_v17  ;;  %v1049_v15 = vmax.f32 %v1047_v56, %v1048_v2 }
 0x207   : > { %v981_v45 = vpop.f32.mrf.mxu0 }
 0x208   : > { %v1066_v48 = vmax.f32 %v1064_v40, %v1065_v43  ;;  %v1017_v49 = vmax.f32 %v930_v44, 0.0  ;;  %v982_v60 = vadd.f32 %v981_v45, %v1970_v12 }
 0x20a   : > { %v1067_v51 = vrot.slane %v1066_v48, 2  ;;  %v1057_v52 = vmax.f32 %v1015_v47, %v1017_v49  ;;  %v1020_v5 = vmax.f32 %v982_v60, 0.0 }
 0x20c   : > { %v1068_v54 = vmax.f32 %v1066_v48, %v1067_v51  ;;  %v1058_v55 = vrot.slane %v1057_v52, 4 }
 0x20d   : > { %v932_v57 = vpop.f32.mrf.mxu3 }
 0x20e   : > { %v1069_v58 = vrot.slane %v1068_v54, 1  ;;  %v1059_v59 = vmax.f32 %v1057_v52, %v1058_v55  ;;  %v933_v8 = vadd.f32 %v932_v57, %v1973_v17 }
 0x20f   : > { %v983_v61 = vpop.f32.mrf.mxu0 }
 0x210   : > { %v1070_v63 = vmax.f32 %v1068_v54, %v1069_v58  ;;  %v1060_v0 = vrot.slane %v1059_v59, 2  ;;  %v984_v1 = vadd.f32 %v983_v61, %v1970_v12  ;;  %v1019_v19 = vmax.f32 %v933_v8, 0.0 }
 0x212   : > { %v1185_v3 = vsel %vm1171_vm0, %v1070_v63, %v1056_v62  ;;  %v1061_v4 = vmax.f32 %v1059_v59, %v1060_v0  ;;  %v1022_v6 = vmax.f32 %v984_v1, 0.0 }
 0x214   : > { %v1062_v7 = vrot.slane %v1061_v4, 1  ;;  %v1078_v9 = vmax.f32 %v1020_v5, %v1022_v6 }
 0x215   : > { %v934_v10 = vpop.f32.mrf.mxu3 }
 0x216   : > { %v1063_v11 = vmax.f32 %v1061_v4, %v1062_v7  ;;  %v1079_v13 = vrot.slane %v1078_v9, 4  ;;  %v935_v14 = vadd.f32 %v934_v10, %v1973_v17 }
 0x217   : > { %v986_v16 = vpop.f32.mrf.mxu0 }
 0x218   : > { %v1172_v18 = vsel %vm1171_vm0, %v1063_v11, %v1049_v15  ;;  %v1080_v20 = vmax.f32 %v1078_v9, %v1079_v13  ;;  %v1021_v21 = vmax.f32 %v935_v14, 0.0  ;;  %v987_v29 = vadd.f32 %v986_v16, %v1970_v12 }
 0x21a   : > { %v1081_v22 = vrot.slane %v1080_v20, 2  ;;  %v1071_v23 = vmax.f32 %v1019_v19, %v1021_v21  ;;  %v1024_v36 = vmax.f32 %v987_v29, 0.0 }
 0x21c   : > { %v1082_v24 = vmax.f32 %v1080_v20, %v1081_v22  ;;  %v1072_v25 = vrot.slane %v1071_v23, 4 }
 0x21d   : > { %v937_v26 = vpop.f32.mrf.mxu3 }
 0x21e   : > { %v1083_v27 = vrot.slane %v1082_v24, 1  ;;  %v1073_v28 = vmax.f32 %v1071_v23, %v1072_v25  ;;  %v938_v39 = vadd.f32 %v937_v26, %v1973_v17 }
 0x21f   : > { %v988_v30 = vpop.f32.mrf.mxu0 }
 0x220   : > { %v1084_v31 = vmax.f32 %v1082_v24, %v1083_v27  ;;  %v1074_v32 = vrot.slane %v1073_v28, 2  ;;  %v989_v33 = vadd.f32 %v988_v30, %v1970_v12  ;;  %v1023_v47 = vmax.f32 %v938_v39, 0.0 }
 0x222   : > { %v1186_v34 = vsel %vm1173_vm1, %v1084_v31, %v1185_v3  ;;  %v1075_v35 = vmax.f32 %v1073_v28, %v1074_v32  ;;  %v1026_v37 = vmax.f32 %v989_v33, 0.0 }
 0x224   : > { %v1076_v38 = vrot.slane %v1075_v35, 1  ;;  %v1092_v40 = vmax.f32 %v1024_v36, %v1026_v37 }
 0x225   : > { %v939_v41 = vpop.f32.mrf.mxu3 }
 0x226   : > { %v1077_v42 = vmax.f32 %v1075_v35, %v1076_v38  ;;  %v1093_v43 = vrot.slane %v1092_v40, 4  ;;  %v940_v44 = vadd.f32 %v939_v41, %v1973_v17 }
 0x227   : > { %v991_v45 = vpop.f32.mrf.mxu0 }
 0x228   : > { %v1174_v46 = vsel %vm1173_vm1, %v1077_v42, %v1172_v18  ;;  %v1094_v48 = vmax.f32 %v1092_v40, %v1093_v43  ;;  %v1025_v49 = vmax.f32 %v940_v44, 0.0  ;;  %v992_v9 = vadd.f32 %v991_v45, %v1970_v12 }
 0x22a   : > { %v1095_v50 = vrot.slane %v1094_v48, 2  ;;  %v1085_v51 = vmax.f32 %v1023_v47, %v1025_v49  ;;  %v1028_v19 = vmax.f32 %v992_v9, 0.0 }
 0x22c   : > { %v1096_v52 = vmax.f32 %v1094_v48, %v1095_v50  ;;  %v1086_v53 = vrot.slane %v1085_v51, 4 }
 0x22d   : > { %v942_v54 = vpop.f32.mrf.mxu3 }
 0x22e   : > { %v1097_v55 = vrot.slane %v1096_v52, 1  ;;  %v1087_v56 = vmax.f32 %v1085_v51, %v1086_v53  ;;  %v943_v24 = vadd.f32 %v942_v54, %v1973_v17 }
 0x22f   : > { %v993_v57 = vpop.f32.mrf.mxu0 }
 0x230   : > { %v1098_v58 = vmax.f32 %v1096_v52, %v1097_v55  ;;  %v1088_v59 = vrot.slane %v1087_v56, 2  ;;  %v994_v7 = vadd.f32 %v993_v57, %v1970_v12  ;;  %v1027_v35 = vmax.f32 %v943_v24, 0.0 }
 0x232   : > { %v1994_v60 = vsel %vm1175_vm2, %v1098_v58, %v1186_v34  ;;  %v1089_v61 = vmax.f32 %v1087_v56, %v1088_v59  ;;  %v1030_v11 = vmax.f32 %v994_v7, 0.0 }
 0x234   : > { %v1090_v62 = vrot.slane %v1089_v61, 1  ;;  %v1106_v25 = vmax.f32 %v1028_v19, %v1030_v11 }
 0x235   : > { %v944_v63 = vpop.f32.mrf.mxu3 }
 0x236   : > { %v1091_v0 = vmax.f32 %v1089_v61, %v1090_v62  ;;  %v945_v20 = vadd.f32 %v944_v63, %v1973_v17  ;;  %v1107_v36 = vrot.slane %v1106_v25, 4 }
 0x237   : > { %v996_v1 = vpop.f32.mrf.mxu0 }
 0x238   : > { %v1996_v2 = vsel %vm1175_vm2, %v1091_v0, %v1174_v46  ;;  %v997_v15 = vadd.f32 %v996_v1, %v1970_v12  ;;  %v1029_v29 = vmax.f32 %v945_v20, 0.0  ;;  %v1108_v45 = vmax.f32 %v1106_v25, %v1107_v36 }
 0x23a   : > { %v1032_v21 = vmax.f32 %v997_v15, 0.0  ;;  %v1099_v41 = vmax.f32 %v1027_v35, %v1029_v29  ;;  %v1109_v53 = vrot.slane %v1108_v45, 2 }
 0x23c   : > { %v1100_v48 = vrot.slane %v1099_v41, 4  ;;  %v1110_v0 = vmax.f32 %v1108_v45, %v1109_v53 }
 0x23d   : > { %v947_v3 = vpop.f32.mrf.mxu3 }
 0x23e   : > { %v948_v27 = vadd.f32 %v947_v3, %v1973_v17  ;;  %v1101_v58 = vmax.f32 %v1099_v41, %v1100_v48  ;;  %v1111_v11 = vrot.slane %v1110_v0, 1 }
 0x23f   : > { %v998_v4 = vpop.f32.mrf.mxu0 }
 0x240   : > { %v999_v8 = vadd.f32 %v998_v4, %v1970_v12  ;;  %v1031_v38 = vmax.f32 %v948_v27, 0.0  ;;  %v1112_v24 = vmax.f32 %v1110_v0, %v1111_v11 }
 0x242   : > { %v1034_v16 = vmax.f32 %v999_v8, 0.0 }
 0x244   : > { %v1120_v28 = vmax.f32 %v1032_v21, %v1034_v16 }
 0x245   : > { %v949_v5 = vpop.f32.mrf.mxu3 }
 0x246   : > { %v950_v22 = vadd.f32 %v949_v5, %v1973_v17  ;;  %v1121_v39 = vrot.slane %v1120_v28, 4 }
 0x247   : > { %v1001_v6 = vpop.f32.mrf.mxu0 }
 0x248   : > { %v1002_v13 = vadd.f32 %v1001_v6, %v1970_v12  ;;  %v1033_v33 = vmax.f32 %v950_v22, 0.0  ;;  %v1122_v47 = vmax.f32 %v1120_v28, %v1121_v39  ;;  %v1102_v6 = vrot.slane %v1101_v58, 2 }
 0x24a   : > { %v1036_v26 = vmax.f32 %v1002_v13, 0.0  ;;  %v1113_v44 = vmax.f32 %v1031_v38, %v1033_v33  ;;  %v1123_v56 = vrot.slane %v1122_v47, 2  ;;  %v1103_v19 = vmax.f32 %v1101_v58, %v1102_v6 }
 0x24b   : > { %v1188_v33 = vsel %vm1177_vm3, %v1112_v24, %v1994_v60 }
 0x24c   : > { %v1114_v51 = vrot.slane %v1113_v44, 4  ;;  %v1124_v3 = vmax.f32 %v1122_v47, %v1123_v56  ;;  %v1104_v29 = vrot.slane %v1103_v19, 1 }
 0x24d   : > { %v952_v10 = vpop.f32.mrf.mxu3 }
 0x24e   : > { %v953_v30 = vadd.f32 %v952_v10, %v1973_v17  ;;  %v1115_v61 = vmax.f32 %v1113_v44, %v1114_v51  ;;  %v1125_v13 = vrot.slane %v1124_v3, 1  ;;  %v1105_v38 = vmax.f32 %v1103_v19, %v1104_v29 }
 0x24f   : > { %v1003_v14 = vpop.f32.mrf.mxu0 }
 0x250   : > { %v1004_v18 = vadd.f32 %v1003_v14, %v1970_v12  ;;  %v1035_v42 = vmax.f32 %v953_v30, 0.0  ;;  %v1116_v9 = vrot.slane %v1115_v61, 2  ;;  %v1178_v44 = vsel %vm1177_vm3, %v1105_v38, %v1996_v2 }
 0x252   : > { %v1038_v23 = vmax.f32 %v1004_v18, 0.0  ;;  %v1117_v21 = vmax.f32 %v1115_v61, %v1116_v9 }
 0x254   : > { %v1134_v31 = vmax.f32 %v1036_v26, %v1038_v23  ;;  %v1126_v26 = vmax.f32 %v1124_v3, %v1125_v13  ;;  %v1118_v30 = vrot.slane %v1117_v21, 1 }
 0x255   : > { %v954_v32 = vpop.f32.mrf.mxu3 }
 0x256   : > { %v955_v34 = vadd.f32 %v954_v32, %v1973_v17  ;;  %v1135_v43 = vrot.slane %v1134_v31, 4  ;;  %v1189_v35 = vsel %vm1179_vm4, %v1126_v26, %v1188_v33 }
 0x257   : > { %v1006_v37 = vpop.f32.mrf.mxu0 }
 0x258   : > { %v1037_v40 = vmax.f32 %v955_v34, 0.0  ;;  %v1136_v49 = vmax.f32 %v1134_v31, %v1135_v43  ;;  %v1007_v52 = vadd.f32 %v1006_v37, %v1970_v12 }
 0x25a   : > { %v1127_v46 = vmax.f32 %v1035_v42, %v1037_v40  ;;  %v1137_v59 = vrot.slane %v1136_v49, 2  ;;  %v1040_v62 = vmax.f32 %v1007_v52, 0.0  ;;  %v1119_v40 = vmax.f32 %v1117_v21, %v1118_v30 }
 0x25c   : > { %v1128_v54 = vrot.slane %v1127_v46, 4  ;;  %v1138_v7 = vmax.f32 %v1136_v49, %v1137_v59  ;;  %v1180_v45 = vsel %vm1179_vm4, %v1119_v40, %v1178_v44 }
 0x25d   : > { %v957_v50 = vpop.f32.mrf.mxu3 }
 0x25e   : > { %v1129_v1 = vmax.f32 %v1127_v46, %v1128_v54  ;;  %v958_v4 = vadd.f32 %v957_v50, %v1973_v17  ;;  %v1139_v20 = vrot.slane %v1138_v7, 1 }
 0x25f   : > { %v1008_v55 = vpop.f32.mrf.mxu0 }
 0x260   : > { %v1009_v57 = vadd.f32 %v1008_v55, %v1970_v12  ;;  %v1130_v12 = vrot.slane %v1129_v1, 2  ;;  %v1039_v14 = vmax.f32 %v958_v4, 0.0 }
 0x262   : > { %v1042_v63 = vmax.f32 %v1009_v57, 0.0  ;;  %v1131_v25 = vmax.f32 %v1129_v1, %v1130_v12 }
 0x264   : > { %v1148_v5 = vmax.f32 %v1040_v62, %v1042_v63  ;;  %v1132_v34 = vrot.slane %v1131_v25, 1 }
 0x265   : > { %v959_v8 = vpop.f32.mrf.mxu3 }
 0x266   : > { %v1149_v10 = vrot.slane %v1148_v5, 4  ;;  %v960_v15 = vadd.f32 %v959_v8, %v1973_v17  ;;  %v1140_v17 = vmax.f32 %v1138_v7, %v1139_v20  ;;  %v1133_v43 = vmax.f32 %v1131_v25, %v1132_v34 }
 0x268   : > { %v1150_v16 = vmax.f32 %v1148_v5, %v1149_v10  ;;  %v1041_v18 = vmax.f32 %v960_v15, 0.0  ;;  %v1190_v39 = vsel %vm1181_vm5, %v1140_v17, %v1189_v35  ;;  %v1182_v47 = vsel %vm1181_vm5, %v1133_v43, %v1180_v45 }
 0x26a   : > { %v1151_v22 = vrot.slane %v1150_v16, 2  ;;  %v1141_v23 = vmax.f32 %v1039_v14, %v1041_v18 }
 0x26c   : > { %v1152_v27 = vmax.f32 %v1150_v16, %v1151_v22  ;;  %v1142_v28 = vrot.slane %v1141_v23, 4 }
 0x26e   : > { %v1153_v31 = vrot.slane %v1152_v27, 1  ;;  %v1143_v32 = vmax.f32 %v1141_v23, %v1142_v28 }
 0x270   : > { %v1154_v36 = vmax.f32 %v1152_v27, %v1153_v31  ;;  %v1144_v37 = vrot.slane %v1143_v32, 2 }
 0x272   : > { %v1191_v41 = vsel %vm1183_vm6, %v1154_v36, %v1190_v39  ;;  %v1145_v42 = vmax.f32 %v1143_v32, %v1144_v37 }
 0x273   : > { %1195 = vst [vmem:[%s319_s17 + $0x8] sm:$0xff] %v1191_v41 }
 0x274   : > { %v1146_v60 = vrot.slane %v1145_v42, 1 }
 0x276   : > { %v1147_v46 = vmax.f32 %v1145_v42, %v1146_v60 }
 0x278   : > { %v1184_v48 = vsel %vm1183_vm6, %v1147_v46, %v1182_v47 }
 0x279   : > { %1194 = vst [vmem:[%s319_s17] sm:$0xff] %v1184_v48 }
 0x27a PF: > { %s17_s26 = sadd.s32 1, %s1653_s26   ;;  %s2045_s24 = smov %s1649_s25 }
 0x27b   : > { %p14_p5 = scmp.ge.s32.totalorder %s17_s26, 4   ;;  %s2046_s25 = smov %s2048_s27 }
 0x27d   :  { %16 = sbr.rel (!%p14_p5) target bundleno = 2 (0x2), region = 78 }

// kernel: pointnet2_forward.6
= control target key start
LH: loop header
LB: loop body
LE: loop exit
PB: predicated region body
PF: predicated region fallthrough
CT: control target
= control target key end

     0   :  { %s2743_s24 = smov 0   ;;  %s2745_s25 = smov 0   ;;  %s3796_s0 = inlined_call_operand.vmem [shape: bf16[2,32,384], index: 0, kind: input, shape index: {}]   ;;  %s3797_s1 = inlined_call_operand.vmem [shape: bf16[384,256], index: 1, kind: input, shape index: {}]   ;;  %s3798_s2 = inlined_call_operand.vmem [shape: f32[1,256], index: 2, kind: input, shape index: {}]   ;;  %s3799_s3 = inlined_call_operand.vmem [shape: bf16[256,256], index: 3, kind: input, shape index: {}]   ;;  %s3800_s4 = inlined_call_operand.vmem [shape: f32[1,256], index: 4, kind: input, shape index: {}]   ;;  %s3801_s5 = inlined_call_operand.vmem [shape: bf16[256,512], index: 5, kind: input, shape index: {}]   ;;  %s3802_s6 = inlined_call_operand.vmem [shape: f32[1,512], index: 6, kind: input, shape index: {}]   ;;  %s3803_s7 = inlined_call_operand.vmem [shape: f32[2,4,512], index: 7, kind: output, shape index: {}]  }
   0x1   :  { %s2747_s26 = smov 0  }
   0x2 LB: > { %s29_s27 = sadd.s32 1, %s2697_s25  ;;  %p1881_p0 = scmp.ge.s32.totalorder %s2701_s26, 1  ;;  %s2701_s26 = sphi %s2747_s26, %s17_s26   ;;  %s2697_s25 = sphi %s2745_s25, %s3805_s25   ;;  %s2693_s24 = sphi %s2743_s24, %s3804_s24  }
   0x3   : > { %p31_p1 = scmp.ge.s32.totalorder %s29_s27, 2  ;;  %p259_p2 = scmp.lt.s32.totalorder %s2701_s26, 3 }
   0x5   : > { %s3807_s27 = smov (%p31_p1, %s29_s27), 0  ;;  %p260_p3 = pnand %p1881_p0, %p259_p2 }
   0x6   : > { %p301_p4 = scmp.lt.s32.totalorder (!%p260_p3), %s2693_s24, 1 }
   0x7   : > { %263 = sbr.rel (%p260_p3) target bundleno = 596 (0x254), region = 48 }
   0xc   : > { %v1967_v0 = vld [vmem:[%s3797_s1 + $0x70] sm:$0xf]  ;;  %v2509_v1 = vld [vmem:[%s3797_s1 + $0x74] sm:$0xf0]  ;;  %v1959_v9 = vld [vmem:[%s3797_s1 + $0x60] sm:$0xf] }
   0xd   : > { %v2031_v2 = vld [vmem:[%s3797_s1 + $0xf0] sm:$0xf]  ;;  %v1968_v3 = vor.u32 %v2509_v1, %v1967_v0  ;;  %v2525_v4 = vld [vmem:[%s3797_s1 + $0xf4] sm:$0xf0]  ;;  %v2507_v10 = vld [vmem:[%s3797_s1 + $0x64] sm:$0xf0] }
   0xe   : > { %v2095_v5 = vld [vmem:[%s3797_s1 + $0x170] sm:$0xf]  ;;  %v2541_v6 = vld [vmem:[%s3797_s1 + $0x174] sm:$0xf0]  ;;  %v2032_v7 = vor.u32 %v2525_v4, %v2031_v2  ;;  %v2023_v11 = vld [vmem:[%s3797_s1 + $0xe0] sm:$0xf]  ;;  %v1960_v12 = vor.u32 %v2507_v10, %v1959_v9 }
   0xf   : > { %v2096_v8 = vor.u32 %v2541_v6, %v2095_v5  ;;  %654 = vmatpush.bf16.msra.mxu0 %v1968_v3  ;;  %v2523_v13 = vld [vmem:[%s3797_s1 + $0xe4] sm:$0xf0]  ;;  %v2087_v14 = vld [vmem:[%s3797_s1 + $0x160] sm:$0xf]  ;;  %v1951_v18 = vld [vmem:[%s3797_s1 + $0x50] sm:$0xf] }
  0x10   : > { %v2539_v15 = vld [vmem:[%s3797_s1 + $0x164] sm:$0xf0]  ;;  %673 = vmatpush.bf16.msra.mxu1 %v2032_v7  ;;  %v2024_v16 = vor.u32 %v2523_v13, %v2023_v11  ;;  %v2505_v19 = vld [vmem:[%s3797_s1 + $0x54] sm:$0xf0]  ;;  %v2015_v20 = vld [vmem:[%s3797_s1 + $0xd0] sm:$0xf] }
  0x11   : > { %692 = vmatpush.bf16.msra.mxu2 %v2096_v8  ;;  %v2088_v17 = vor.u32 %v2539_v15, %v2087_v14  ;;  %v2521_v21 = vld [vmem:[%s3797_s1 + $0xd4] sm:$0xf0]  ;;  %v2079_v22 = vld [vmem:[%s3797_s1 + $0x150] sm:$0xf]  ;;  %v1952_v24 = vor.u32 %v2505_v19, %v1951_v18  ;;  %v1943_v27 = vld [vmem:[%s3797_s1 + $0x40] sm:$0xf] }
  0x12   : > { %v2537_v23 = vld [vmem:[%s3797_s1 + $0x154] sm:$0xf0]  ;;  %v2016_v25 = vor.u32 %v2521_v21, %v2015_v20  ;;  %v2503_v28 = vld [vmem:[%s3797_s1 + $0x44] sm:$0xf0]  ;;  %v2007_v29 = vld [vmem:[%s3797_s1 + $0xc0] sm:$0xf] }
  0x13   : > { %655 = vmatpush.bf16.msra.mxu0 %v1960_v12  ;;  %v2080_v26 = vor.u32 %v2537_v23, %v2079_v22  ;;  %v2519_v30 = vld [vmem:[%s3797_s1 + $0xc4] sm:$0xf0]  ;;  %v2071_v31 = vld [vmem:[%s3797_s1 + $0x140] sm:$0xf]  ;;  %v2508_v33 = vld [vmem:[%s3797_s1 + $0x74] sm:$0xf]  ;;  %v1944_v35 = vor.u32 %v2503_v28, %v1943_v27 }
  0x14   : > { %674 = vmatpush.bf16.msra.mxu1 %v2024_v16  ;;  %v2535_v32 = vld [vmem:[%s3797_s1 + $0x144] sm:$0xf0]  ;;  %v1969_v34 = vld [vmem:[%s3797_s1 + $0x78] sm:$0xf0]  ;;  %v1935_v36 = vld [vmem:[%s3797_s1 + $0x30] sm:$0xf]  ;;  %v2008_v39 = vor.u32 %v2519_v30, %v2007_v29 }
  0x15   : > { %693 = vmatpush.bf16.msra.mxu2 %v2088_v17  ;;  %v2501_v37 = vld [vmem:[%s3797_s1 + $0x34] sm:$0xf0]  ;;  %v1972_v38 = vor.u32 %v2508_v33, %v1969_v34  ;;  %v2072_v40 = vor.u32 %v2535_v32, %v2071_v31  ;;  %v1999_v41 = vld [vmem:[%s3797_s1 + $0xb0] sm:$0xf]  ;;  %v2506_v43 = vld [vmem:[%s3797_s1 + $0x64] sm:$0xf] }
  0x16   : > { %v2517_v42 = vld [vmem:[%s3797_s1 + $0xb4] sm:$0xf0]  ;;  %v2063_v44 = vld [vmem:[%s3797_s1 + $0x130] sm:$0xf]  ;;  %v1961_v46 = vld [vmem:[%s3797_s1 + $0x68] sm:$0xf0]  ;;  %v1936_v48 = vor.u32 %v2501_v37, %v1935_v36 }
  0x17   : > { %656 = vmatpush.bf16.msra.mxu0 %v1952_v24  ;;  %v2533_v45 = vld [vmem:[%s3797_s1 + $0x134] sm:$0xf0]  ;;  %711 = vmatpush.bf16.msra.mxu3 %v1972_v38  ;;  %v1964_v47 = vor.u32 %v2506_v43, %v1961_v46  ;;  %v2504_v49 = vld [vmem:[%s3797_s1 + $0x54] sm:$0xf]  ;;  %v1953_v50 = vld [vmem:[%s3797_s1 + $0x58] sm:$0xf0]  ;;  %v2000_v51 = vor.u32 %v2517_v42, %v1999_v41 }
  0x18   : > { %675 = vmatpush.bf16.msra.mxu1 %v2016_v25  ;;  %v2064_v52 = vor.u32 %v2533_v45, %v2063_v44  ;;  %v1927_v53 = vld [vmem:[%s3797_s1 + $0x20] sm:$0xf]  ;;  %v2499_v54 = vld [vmem:[%s3797_s1 + $0x24] sm:$0xf0]  ;;  %v1956_v59 = vor.u32 %v2504_v49, %v1953_v50  ;;  %v2502_v60 = vld [vmem:[%s3797_s1 + $0x44] sm:$0xf] }
  0x19   : > { %694 = vmatpush.bf16.msra.mxu2 %v2080_v26  ;;  %v1991_v55 = vld [vmem:[%s3797_s1 + $0xa0] sm:$0xf]  ;;  %v2515_v56 = vld [vmem:[%s3797_s1 + $0xa4] sm:$0xf0]  ;;  %v1945_v61 = vld [vmem:[%s3797_s1 + $0x48] sm:$0xf0]  ;;  %v1928_v62 = vor.u32 %v2499_v54, %v1927_v53 }
  0x1a   : > { %v2055_v57 = vld [vmem:[%s3797_s1 + $0x120] sm:$0xf]  ;;  %v2531_v58 = vld [vmem:[%s3797_s1 + $0x124] sm:$0xf0]  ;;  %v1919_v63 = vld [vmem:[%s3797_s1 + $0x10] sm:$0xf]  ;;  %v1992_v0 = vor.u32 %v2515_v56, %v1991_v55  ;;  %v1948_v7 = vor.u32 %v2502_v60, %v1945_v61 }
  0x1b   : > { %657 = vmatpush.bf16.msra.mxu0 %v1944_v35  ;;  %712 = vmatpush.bf16.msra.mxu3 %v1964_v47  ;;  %v2056_v1 = vor.u32 %v2531_v58, %v2055_v57  ;;  %v2497_v2 = vld [vmem:[%s3797_s1 + $0x14] sm:$0xf0]  ;;  %v1983_v3 = vld [vmem:[%s3797_s1 + $0x90] sm:$0xf]  ;;  %s3809_s24 = smov (!%p301_p4, %s2693_s24), 1  ;;  %vm1748_vm0 = vcmask 1043456  }
  0x1c   : > { %676 = vmatpush.bf16.msra.mxu1 %v2008_v39  ;;  %v2513_v4 = vld [vmem:[%s3797_s1 + $0x94] sm:$0xf0]  ;;  %v2047_v5 = vld [vmem:[%s3797_s1 + $0x110] sm:$0xf]  ;;  %s2654_s10 = smul.u32 48, %s3809_s24  ;;  %v1920_v10 = vor.u32 %v2497_v2, %v1919_v63  ;;  %vm1758_vm1 = vcmask 1041409  }
  0x1d   : > { %695 = vmatpush.bf16.msra.mxu2 %v2072_v40  ;;  %v2529_v6 = vld [vmem:[%s3797_s1 + $0x114] sm:$0xf0]  ;;  %v2500_v8 = vld [vmem:[%s3797_s1 + $0x34] sm:$0xf]  ;;  %v1937_v9 = vld [vmem:[%s3797_s1 + $0x38] sm:$0xf0]  ;;  %v1984_v14 = vor.u32 %v2513_v4, %v1983_v3 }
  0x1e   : > { %v1911_v11 = vld [vmem:[%s3797_s1] sm:$0xf]  ;;  %v2495_v12 = vld [vmem:[%s3797_s1 + $0x4] sm:$0xf0]  ;;  %v2048_v15 = vor.u32 %v2529_v6, %v2047_v5  ;;  %s2945_s11 = scalar_lea.vmem %s3796_s0, %s2654_s10  ;;  %v2524_v19 = vld [vmem:[%s3797_s1 + $0xf4] sm:$0xf]  ;;  %v1940_v21 = vor.u32 %v2500_v8, %v1937_v9 }
  0x1f   : > { %658 = vmatpush.bf16.msra.mxu0 %v1936_v48  ;;  %713 = vmatpush.bf16.msra.mxu3 %v1956_v59  ;;  %v1975_v13 = vld [vmem:[%s3797_s1 + $0x80] sm:$0xf]  ;;  %v2511_v16 = vld [vmem:[%s3797_s1 + $0x84] sm:$0xf0]  ;;  %v2033_v20 = vld [vmem:[%s3797_s1 + $0xf8] sm:$0xf0]  ;;  %v1912_v26 = vor.u32 %v2495_v12, %v1911_v11 }
  0x20   : > { %677 = vmatpush.bf16.msra.mxu1 %v2000_v51  ;;  %v2039_v17 = vld [vmem:[%s3797_s1 + $0x100] sm:$0xf]  ;;  %v2527_v18 = vld [vmem:[%s3797_s1 + $0x104] sm:$0xf0]  ;;  %v2540_v22 = vld [vmem:[%s3797_s1 + $0x174] sm:$0xf]  ;;  %v1976_v30 = vor.u32 %v2511_v16, %v1975_v13  ;;  %v2036_v35 = vor.u32 %v2524_v19, %v2033_v20 }
  0x21   : > { %696 = vmatpush.bf16.msra.mxu2 %v2064_v52  ;;  %v2097_v23 = vld [vmem:[%s3797_s1 + $0x178] sm:$0xf0]  ;;  %v2498_v24 = vld [vmem:[%s3797_s1 + $0x24] sm:$0xf]  ;;  %v1929_v25 = vld [vmem:[%s3797_s1 + $0x28] sm:$0xf0]  ;;  %v2040_v31 = vor.u32 %v2527_v18, %v2039_v17 }
  0x22   : > { %v1887_v27 = vld [vmem:[%s2945_s11] sm:$0xf]  ;;  %v2489_v28 = vld [vmem:[%s2945_s11 + $0x8] sm:$0xf0]  ;;  %v2488_v29 = vld [vmem:[%s2945_s11 + $0x4] sm:$0xf]  ;;  %v2100_v36 = vor.u32 %v2540_v22, %v2097_v23  ;;  %v1932_v40 = vor.u32 %v2498_v24, %v1929_v25 }
  0x23   : > { %659 = vmatpush.bf16.msra.mxu0 %v1928_v62  ;;  %714 = vmatpush.bf16.msra.mxu3 %v1948_v7  ;;  %v1889_v32 = vld [vmem:[%s2945_s11 + $0xc] sm:$0xf0]  ;;  %v1895_v33 = vld [vmem:[%s2945_s11 + $0x8] sm:$0xf]  ;;  %v2490_v34 = vld [vmem:[%s2945_s11 + $0x10] sm:$0xf0]  ;;  %v1888_v38 = vor.u32 %v2489_v28, %v1887_v27 }
  0x24   : > { %678 = vmatpush.bf16.msra.mxu1 %v1992_v0  ;;  %v2522_v37 = vld [vmem:[%s3797_s1 + $0xe4] sm:$0xf]  ;;  %v2025_v39 = vld [vmem:[%s3797_s1 + $0xe8] sm:$0xf0]  ;;  %v2983_v43 = vor.u32 %v2488_v29, %v1889_v32  ;;  %v2985_v44 = vor.u32 %v2490_v34, %v1895_v33  ;;  %v2496_v45 = vld [vmem:[%s3797_s1 + $0x14] sm:$0xf] }
  0x25   : > { %697 = vmatpush.bf16.msra.mxu2 %v2056_v1  ;;  %v2538_v41 = vld [vmem:[%s3797_s1 + $0x164] sm:$0xf]  ;;  %v2089_v42 = vld [vmem:[%s3797_s1 + $0x168] sm:$0xf0]  ;;  %v1921_v46 = vld [vmem:[%s3797_s1 + $0x18] sm:$0xf0]  ;;  %v2028_v47 = vor.u32 %v2522_v37, %v2025_v39 }
  0x26   : > { %v2092_v48 = vor.u32 %v2538_v41, %v2089_v42  ;;  %v2520_v49 = vld [vmem:[%s3797_s1 + $0xd4] sm:$0xf]  ;;  %v2017_v50 = vld [vmem:[%s3797_s1 + $0xd8] sm:$0xf0]  ;;  %v1924_v51 = vor.u32 %v2496_v45, %v1921_v46  ;;  %v2494_v54 = vld [vmem:[%s3797_s1 + $0x4] sm:$0xf] }
  0x27   : > { %660 = vmatpush.bf16.msra.mxu0 %v1920_v10  ;;  %715 = vmatpush.bf16.msra.mxu3 %v1940_v21  ;;  %v2536_v52 = vld [vmem:[%s3797_s1 + $0x154] sm:$0xf]  ;;  %v2081_v53 = vld [vmem:[%s3797_s1 + $0x158] sm:$0xf0]  ;;  %v1913_v55 = vld [vmem:[%s3797_s1 + $0x8] sm:$0xf0]  ;;  %v2020_v56 = vor.u32 %v2520_v49, %v2017_v50 }
  0x28   : > { %679 = vmatpush.bf16.msra.mxu1 %v1984_v14  ;;  %v2084_v57 = vor.u32 %v2536_v52, %v2081_v53  ;;  %v2518_v58 = vld [vmem:[%s3797_s1 + $0xc4] sm:$0xf]  ;;  %v2009_v59 = vld [vmem:[%s3797_s1 + $0xc8] sm:$0xf0]  ;;  %v1916_v60 = vor.u32 %v2494_v54, %v1913_v55  ;;  %v2516_v1 = vld [vmem:[%s3797_s1 + $0xb4] sm:$0xf] }
  0x29   : > { %698 = vmatpush.bf16.msra.mxu2 %v2048_v15  ;;  %v2534_v61 = vld [vmem:[%s3797_s1 + $0x144] sm:$0xf]  ;;  %v2073_v62 = vld [vmem:[%s3797_s1 + $0x148] sm:$0xf0]  ;;  %v2012_v63 = vor.u32 %v2518_v58, %v2009_v59  ;;  %v2001_v2 = vld [vmem:[%s3797_s1 + $0xb8] sm:$0xf0] }
  0x2a   : > { %v2076_v0 = vor.u32 %v2534_v61, %v2073_v62  ;;  %v2532_v3 = vld [vmem:[%s3797_s1 + $0x134] sm:$0xf]  ;;  %v2065_v4 = vld [vmem:[%s3797_s1 + $0x138] sm:$0xf0]  ;;  %v1899_v5 = vld [vmem:[%s2945_s11 + $0x18] sm:$0xf]  ;;  %v2004_v11 = vor.u32 %v2516_v1, %v2001_v2 }
  0x2b   : > { %661 = vmatpush.bf16.msra.mxu0 %v1912_v26  ;;  %716 = vmatpush.bf16.msra.mxu3 %v1932_v40  ;;  %v2492_v6 = vld [vmem:[%s2945_s11 + $0x20] sm:$0xf0]  ;;  %v2491_v7 = vld [vmem:[%s2945_s11 + $0x1c] sm:$0xf]  ;;  %v1901_v8 = vld [vmem:[%s2945_s11 + $0x24] sm:$0xf0]  ;;  %v2068_v12 = vor.u32 %v2532_v3, %v2065_v4 }
  0x2c   : > { %680 = vmatpush.bf16.msra.mxu1 %v1976_v30  ;;  %v1907_v9 = vld [vmem:[%s2945_s11 + $0x20] sm:$0xf]  ;;  %v2493_v10 = vld [vmem:[%s2945_s11 + $0x28] sm:$0xf0]  ;;  %v2514_v13 = vld [vmem:[%s3797_s1 + $0xa4] sm:$0xf]  ;;  %v1900_v14 = vor.u32 %v2492_v6, %v1899_v5  ;;  %v1904_v18 = vor.u32 %v2491_v7, %v1901_v8 }
  0x2d   : > { %699 = vmatpush.bf16.msra.mxu2 %v2040_v31  ;;  %v1993_v15 = vld [vmem:[%s3797_s1 + $0xa8] sm:$0xf0]  ;;  %v2530_v16 = vld [vmem:[%s3797_s1 + $0x124] sm:$0xf]  ;;  %v1908_v19 = vor.u32 %v2493_v10, %v1907_v9  ;;  %v2512_v22 = vld [vmem:[%s3797_s1 + $0x94] sm:$0xf] }
  0x2e   : > { %662 = vmatmul.bf16.vlgmr.msra.gmra.mxu0 %v1888_v38  ;;  %v2057_v17 = vld [vmem:[%s3797_s1 + $0x128] sm:$0xf0]  ;;  %v1996_v20 = vor.u32 %v2514_v13, %v1993_v15  ;;  %v1985_v23 = vld [vmem:[%s3797_s1 + $0x98] sm:$0xf0]  ;;  %v2528_v24 = vld [vmem:[%s3797_s1 + $0x114] sm:$0xf] }
  0x2f   : > { %730 = vmatpush.bf16.msrb.mxu0 %v2036_v35  ;;  %681 = vmatmul.bf16.vlgmr.msra.gmra.mxu1 %v2983_v43  ;;  %v2060_v21 = vor.u32 %v2530_v16, %v2057_v17  ;;  %v2049_v25 = vld [vmem:[%s3797_s1 + $0x118] sm:$0xf0]  ;;  %v2159_v26 = vld [vmem:[%s3799_s3 + $0x70] sm:$0xf]  ;;  %v2557_v27 = vld [vmem:[%s3799_s3 + $0x74] sm:$0xf0]  ;;  %v1988_v31 = vor.u32 %v2512_v22, %v1985_v23 }
  0x30   : > { %749 = vmatpush.bf16.msrb.mxu1 %v2100_v36  ;;  %700 = vmatmul.bf16.vlgmr.msra.gmra.mxu2 %v2985_v44  ;;  %v2160_v28 = vor.u32 %v2557_v27, %v2159_v26  ;;  %v2151_v29 = vld [vmem:[%s3799_s3 + $0x60] sm:$0xf]  ;;  %v2555_v30 = vld [vmem:[%s3799_s3 + $0x64] sm:$0xf0]  ;;  %v2052_v32 = vor.u32 %v2528_v24, %v2049_v25  ;;  %v2510_v33 = vld [vmem:[%s3797_s1 + $0x84] sm:$0xf] }
  0x31   : > { %717 = vmatpush.bf16.msra.mxu3 %v1924_v51  ;;  %v1977_v34 = vld [vmem:[%s3797_s1 + $0x88] sm:$0xf0]  ;;  %v2526_v35 = vld [vmem:[%s3797_s1 + $0x104] sm:$0xf]  ;;  %v2152_v37 = vor.u32 %v2555_v30, %v2151_v29  ;;  %v2161_v39 = vld [vmem:[%s3799_s3 + $0x78] sm:$0xf0] }
  0x32   : > { %v2041_v36 = vld [vmem:[%s3797_s1 + $0x108] sm:$0xf0]  ;;  %978 = vmatpush.bf16.msrb.mxu2 %v2160_v28  ;;  %v2143_v40 = vld [vmem:[%s3799_s3 + $0x50] sm:$0xf]  ;;  %v2553_v41 = vld [vmem:[%s3799_s3 + $0x54] sm:$0xf0]  ;;  %v1980_v42 = vor.u32 %v2510_v33, %v1977_v34 }
  0x33   : > { %731 = vmatpush.bf16.msrb.mxu0 %v2028_v47  ;;  %v2044_v45 = vor.u32 %v2526_v35, %v2041_v36  ;;  %v2144_v47 = vor.u32 %v2553_v41, %v2143_v40  ;;  %v2153_v49 = vld [vmem:[%s3799_s3 + $0x68] sm:$0xf0]  ;;  %v2552_v51 = vld [vmem:[%s3799_s3 + $0x54] sm:$0xf]  ;;  %v2145_v52 = vld [vmem:[%s3799_s3 + $0x58] sm:$0xf0] }
  0x34   : > { %750 = vmatpush.bf16.msrb.mxu1 %v2092_v48  ;;  %v2554_v48 = vld [vmem:[%s3799_s3 + $0x64] sm:$0xf]  ;;  %v2148_v53 = vor.u32 %v2552_v51, %v2145_v52  ;;  %v2135_v54 = vld [vmem:[%s3799_s3 + $0x40] sm:$0xf]  ;;  %v2551_v55 = vld [vmem:[%s3799_s3 + $0x44] sm:$0xf0] }
  0x35   : > { %718 = vmatpush.bf16.msra.mxu3 %v1916_v60  ;;  %v2156_v50 = vor.u32 %v2554_v48, %v2153_v49  ;;  %v2127_v58 = vld [vmem:[%s3799_s3 + $0x30] sm:$0xf]  ;;  %v2549_v59 = vld [vmem:[%s3799_s3 + $0x34] sm:$0xf0]  ;;  %v2548_v60 = vld [vmem:[%s3799_s3 + $0x34] sm:$0xf] }
  0x36   : > { %979 = vmatpush.bf16.msrb.mxu2 %v2152_v37  ;;  %v2128_v61 = vor.u32 %v2549_v59, %v2127_v58  ;;  %v2129_v62 = vld [vmem:[%s3799_s3 + $0x38] sm:$0xf0]  ;;  %v2547_v1 = vld [vmem:[%s3799_s3 + $0x24] sm:$0xf0]  ;;  %v2546_v2 = vld [vmem:[%s3799_s3 + $0x24] sm:$0xf] }
  0x37   : > { %732 = vmatpush.bf16.msrb.mxu0 %v2020_v56  ;;  %v2550_v56 = vld [vmem:[%s3799_s3 + $0x44] sm:$0xf]  ;;  %v2121_v4 = vld [vmem:[%s3799_s3 + $0x28] sm:$0xf0]  ;;  %v2111_v6 = vld [vmem:[%s3799_s3 + $0x10] sm:$0xf] }
  0x38   : > { %751 = vmatpush.bf16.msrb.mxu1 %v2084_v57  ;;  %719 = vmatmul.bf16.vlgmr.msra.gmra.mxu3 %v1888_v38  ;;  %v2556_v38 = vld [vmem:[%s3799_s3 + $0x74] sm:$0xf]  ;;  %v2124_v5 = vor.u32 %v2546_v2, %v2121_v4  ;;  %v2545_v7 = vld [vmem:[%s3799_s3 + $0x14] sm:$0xf0]  ;;  %v2113_v10 = vld [vmem:[%s3799_s3 + $0x18] sm:$0xf0] }
  0x39   : > { %v2164_v46 = vor.u32 %v2556_v38, %v2161_v39  ;;  %v2544_v8 = vld [vmem:[%s3799_s3 + $0x14] sm:$0xf]  ;;  %v2112_v9 = vor.u32 %v2545_v7, %v2111_v6  ;;  %v2573_v13 = vld [vmem:[%s3799_s3 + $0xf4] sm:$0xf0]  ;;  %v2543_v16 = vld [vmem:[%s3799_s3 + $0x4] sm:$0xf0] }
  0x3a   : > { %980 = vmatpush.bf16.msrb.mxu2 %v2144_v47  ;;  %v2542_v17 = vld [vmem:[%s3799_s3 + $0x4] sm:$0xf]  ;;  %v2225_v22 = vld [vmem:[%s3799_s3 + $0xf8] sm:$0xf0]  ;;  %v2215_v24 = vld [vmem:[%s3799_s3 + $0xe0] sm:$0xf] }
  0x3b   : > { %733 = vmatpush.bf16.msrb.mxu0 %v2012_v63  ;;  %v2132_v63 = vor.u32 %v2548_v60, %v2129_v62  ;;  %v2571_v25 = vld [vmem:[%s3799_s3 + $0xe4] sm:$0xf0]  ;;  %v2570_v26 = vld [vmem:[%s3799_s3 + $0xe4] sm:$0xf]  ;;  %v2217_v28 = vld [vmem:[%s3799_s3 + $0xe8] sm:$0xf0] }
  0x3c   : > { %752 = vmatpush.bf16.msrb.mxu1 %v2076_v0  ;;  %v2119_v0 = vld [vmem:[%s3799_s3 + $0x20] sm:$0xf]  ;;  %v2216_v27 = vor.u32 %v2571_v25, %v2215_v24  ;;  %v2220_v29 = vor.u32 %v2570_v26, %v2217_v28  ;;  %v2207_v30 = vld [vmem:[%s3799_s3 + $0xd0] sm:$0xf]  ;;  %v2209_v34 = vld [vmem:[%s3799_s3 + $0xd8] sm:$0xf0] }
  0x3d   : > { %v2120_v3 = vor.u32 %v2547_v1, %v2119_v0  ;;  %v2199_v36 = vld [vmem:[%s3799_s3 + $0xc0] sm:$0xf]  ;;  %v2567_v37 = vld [vmem:[%s3799_s3 + $0xc4] sm:$0xf0]  ;;  %v2566_v39 = vld [vmem:[%s3799_s3 + $0xc4] sm:$0xf] }
  0x3e   : > { %667 = vmatmul.bf16.gmra.mxu0 %v1900_v14  ;;  %v2200_v38 = vor.u32 %v2567_v37, %v2199_v36  ;;  %v2201_v40 = vld [vmem:[%s3799_s3 + $0xc8] sm:$0xf0]  ;;  %v2565_v47 = vld [vmem:[%s3799_s3 + $0xb4] sm:$0xf0]  ;;  %v2564_v48 = vld [vmem:[%s3799_s3 + $0xb4] sm:$0xf] }
  0x3f   : > { %734 = vmatpush.bf16.msrb.mxu0 %v2004_v11  ;;  %686 = vmatmul.bf16.gmra.mxu1 %v1904_v18  ;;  %v2116_v11 = vor.u32 %v2544_v8, %v2113_v10  ;;  %v2204_v41 = vor.u32 %v2566_v39, %v2201_v40  ;;  %v2193_v51 = vld [vmem:[%s3799_s3 + $0xb8] sm:$0xf0]  ;;  %v2561_v62 = vld [vmem:[%s3799_s3 + $0x94] sm:$0xf0]  ;;  %v2167_v6 = vld [vmem:[%s3799_s3 + $0x80] sm:$0xf] }
  0x40   : > { %753 = vmatpush.bf16.msrb.mxu1 %v2068_v12  ;;  %705 = vmatmul.bf16.gmra.mxu2 %v1908_v19  ;;  %v2223_v12 = vld [vmem:[%s3799_s3 + $0xf0] sm:$0xf]  ;;  %v2196_v52 = vor.u32 %v2564_v48, %v2193_v51  ;;  %v2177_v2 = vld [vmem:[%s3799_s3 + $0x98] sm:$0xf0]  ;;  %v2559_v7 = vld [vmem:[%s3799_s3 + $0x84] sm:$0xf0] }
  0x41   : > { %v2224_v15 = vor.u32 %v2573_v13, %v2223_v12  ;;  %v2558_v8 = vld [vmem:[%s3799_s3 + $0x84] sm:$0xf]  ;;  %v2169_v10 = vld [vmem:[%s3799_s3 + $0x88] sm:$0xf0]  ;;  %vm1760_vm2 = vcmask 1045509   ;;  %vm1763_vm3 = vcmask 1042434  }
  0x42   : > { %v2172_v13 = vor.u32 %v2558_v8, %v2169_v10  ;;  %v2632_v8 = vld [vmem:[%s3801_s5 + $0x1cc] sm:$0xf0]  ;;  %vm1765_vm4 = vcmask 1046534   ;;  %s2487_s23 = sshll.u32 %s3809_s24, 4  ;;  %vm1768_vm5 = vcmask 1043459   ;;  %vm1770_vm6 = vcmask 1047559  }
  0x43   : > { %735 = vmatpush.bf16.msrb.mxu0 %v1996_v20  ;;  %997 = vmatpush.bf16.msrb.mxu3 %v2224_v15  ;;  %s3767_s30 = scalar_lea.vmem %s3803_s7, %s2487_s23 }
  0x44   : > { %754 = vmatpush.bf16.msrb.mxu1 %v2060_v21  ;;  %v2572_v21 = vld [vmem:[%s3799_s3 + $0xf4] sm:$0xf] }
  0x45   : > { %v2228_v23 = vor.u32 %v2572_v21, %v2225_v22 }
  0x47   : > { %736 = vmatpush.bf16.msrb.mxu0 %v1988_v31  ;;  %998 = vmatpush.bf16.msrb.mxu3 %v2216_v27  ;;  %v2569_v31 = vld [vmem:[%s3799_s3 + $0xd4] sm:$0xf0] }
  0x48   : > { %755 = vmatpush.bf16.msrb.mxu1 %v2052_v32  ;;  %724 = vmatmul.bf16.gmra.mxu3 %v1900_v14  ;;  %v2103_v14 = vld [vmem:[%s3799_s3] sm:$0xf]  ;;  %v2568_v32 = vld [vmem:[%s3799_s3 + $0xd4] sm:$0xf]  ;;  %v2208_v33 = vor.u32 %v2569_v31, %v2207_v30 }
  0x49   : > { %v2212_v35 = vor.u32 %v2568_v32, %v2209_v34 }
  0x4b   : > { %737 = vmatpush.bf16.msrb.mxu0 %v1980_v42  ;;  %999 = vmatpush.bf16.msrb.mxu3 %v2208_v33  ;;  %v376_v42 = vld [vmem:[%s3798_s2] sm:$0x3] }
  0x4c   : > { %756 = vmatpush.bf16.msrb.mxu1 %v2044_v45  ;;  %v379_v28 = vperm.slane %v376_v42, 1 }
  0x4e   : > { %738 = vmatmul.bf16.vlgmr.msrb.gmra.mxu0 %v2983_v43  ;;  %v2136_v43 = vor.u32 %v2551_v55, %v2135_v54  ;;  %v2183_v54 = vld [vmem:[%s3799_s3 + $0xa0] sm:$0xf]  ;;  %v2563_v55 = vld [vmem:[%s3799_s3 + $0xa4] sm:$0xf0] }
  0x4f   : > { %1016 = vmatpush.bf16.msra.mxu0 %v2164_v46  ;;  %757 = vmatmul.bf16.vlgmr.msrb.gmra.mxu1 %v2985_v44  ;;  %v2137_v44 = vld [vmem:[%s3799_s3 + $0x48] sm:$0xf0]  ;;  %v2191_v46 = vld [vmem:[%s3799_s3 + $0xb0] sm:$0xf] }
  0x50   : > { %v2140_v57 = vor.u32 %v2550_v56, %v2137_v44  ;;  %981 = vmatpush.bf16.msrb.mxu2 %v2136_v43  ;;  %1035 = vmatpush.bf16.msra.mxu1 %v2228_v23  ;;  %v2562_v56 = vld [vmem:[%s3799_s3 + $0xa4] sm:$0xf]  ;;  %v2184_v43 = vor.u32 %v2563_v55, %v2183_v54  ;;  %v2185_v44 = vld [vmem:[%s3799_s3 + $0xa8] sm:$0xf0] }
  0x51   : > { %1000 = vmatpush.bf16.msrb.mxu3 %v2200_v38 }
  0x53   : > { %1017 = vmatpush.bf16.msra.mxu0 %v2156_v50  ;;  %v2192_v50 = vor.u32 %v2565_v47, %v2191_v46 }
  0x54   : > { %982 = vmatpush.bf16.msrb.mxu2 %v2128_v61  ;;  %1036 = vmatpush.bf16.msra.mxu1 %v2220_v29  ;;  %v2175_v61 = vld [vmem:[%s3799_s3 + $0x90] sm:$0xf] }
  0x55   : > { %1001 = vmatpush.bf16.msrb.mxu3 %v2192_v50  ;;  %v2176_v1 = vor.u32 %v2561_v62, %v2175_v61 }
  0x57   : > { %1018 = vmatpush.bf16.msra.mxu0 %v2148_v53  ;;  %v378_v53 = vperm.slane %v376_v42, 0 }
  0x58   : > { %983 = vmatpush.bf16.msrb.mxu2 %v2120_v3  ;;  %1037 = vmatpush.bf16.msra.mxu1 %v2212_v35 }
  0x59   : > { %1002 = vmatpush.bf16.msrb.mxu3 %v2184_v43 }
  0x5b   : > { %1019 = vmatpush.bf16.msra.mxu0 %v2140_v57  ;;  %v2188_v57 = vor.u32 %v2562_v56, %v2185_v44 }
  0x5c   : > { %984 = vmatpush.bf16.msrb.mxu2 %v2112_v9  ;;  %1038 = vmatpush.bf16.msra.mxu1 %v2204_v41  ;;  %v2168_v9 = vor.u32 %v2559_v7, %v2167_v6  ;;  %v2455_v7 = vld [vmem:[%s3801_s5 + $0x1c0] sm:$0xf] }
  0x5d   : > { %1003 = vmatpush.bf16.msrb.mxu3 %v2176_v1  ;;  %v2471_v1 = vld [vmem:[%s3801_s5 + $0x1e0] sm:$0xf]  ;;  %v2456_v10 = vor.u32 %v2632_v8, %v2455_v7  ;;  %v2377_v7 = vld [vmem:[%s3801_s5 + $0x130] sm:$0xf0] }
  0x5e   : > { %743 = vmatmul.bf16.gmra.mxu0 %v1904_v18  ;;  %v2105_v18 = vld [vmem:[%s3799_s3 + $0x8] sm:$0xf0] }
  0x5f   : > { %762 = vmatmul.bf16.gmra.mxu1 %v1908_v19  ;;  %1020 = vmatpush.bf16.msra.mxu0 %v2132_v63  ;;  %v2104_v19 = vor.u32 %v2543_v16, %v2103_v14  ;;  %v2108_v20 = vor.u32 %v2542_v17, %v2105_v18  ;;  %v2560_v63 = vld [vmem:[%s3799_s3 + $0x94] sm:$0xf] }
  0x60   : > { %1039 = vmatpush.bf16.msra.mxu1 %v2196_v52  ;;  %v2180_v4 = vor.u32 %v2560_v63, %v2177_v2  ;;  %v2636_v2 = vld [vmem:[%s3801_s5 + $0x1ec] sm:$0xf0] }
  0x61   : > { %985 = vmatpush.bf16.msrb.mxu2 %v2104_v19  ;;  %1004 = vmatpush.bf16.msrb.mxu3 %v2168_v9  ;;  %v2630_v9 = vld [vmem:[%s3801_s5 + $0x1c4] sm:$0xf] }
  0x63   : > { %1021 = vmatpush.bf16.msra.mxu0 %v2124_v5 }
  0x64   : > { %1040 = vmatpush.bf16.msra.mxu1 %v2188_v57 }
  0x67   : > { %1022 = vmatpush.bf16.msra.mxu0 %v2116_v11 }
  0x68   : > { %1041 = vmatpush.bf16.msra.mxu1 %v2180_v4  ;;  %v2472_v4 = vor.u32 %v2636_v2, %v2471_v1  ;;  %v2281_v1 = vld [vmem:[%s3801_s5 + $0x70] sm:$0xf0] }
  0x6a   : > { %1479 = vmatpush.bf16.msra.mxu3 %v2472_v4  ;;  %v2612_v4 = vld [vmem:[%s3801_s5 + $0x12c] sm:$0xf0] }
  0x6b   : > { %1023 = vmatpush.bf16.msra.mxu0 %v2108_v20 }
  0x6c   : > { %1042 = vmatpush.bf16.msra.mxu1 %v2172_v13  ;;  %v2343_v13 = vld [vmem:[%s3801_s5 + $0xe0] sm:$0xf] }
  0x6e   : > { %1480 = vmatpush.bf16.msra.mxu3 %v2456_v10  ;;  %v2584_v10 = vld [vmem:[%s3801_s5 + $0x4c] sm:$0xf0] }
  0xab   : > { %v663_v45 = vpop.f32.mrf.mxu0 }
  0xac   : > { %v682_v49 = vpop.f32.mrf.mxu1  ;;  %v664_v59 = vadd.f32 %v663_v45, %v378_v53 }
  0xae   : > { %v683_v5 = vadd.f32 %v682_v49, %v664_v59 }
  0xb3   : > { %v701_v58 = vpop.f32.mrf.mxu2  ;;  %v665_v60 = vpop.f32.mrf.mxu0 }
  0xb4   : > { %v684_v0 = vpop.f32.mrf.mxu1  ;;  %v666_v3 = vadd.f32 %v665_v60, %v378_v53  ;;  %v702_v11 = vadd.f32 %v701_v58, %v683_v5  ;;  %v2473_v5 = vld [vmem:[%s3801_s5 + $0x1f0] sm:$0xf0] }
  0xb6   : > { %v685_v12 = vadd.f32 %v684_v0, %v666_v3  ;;  %v768_v18 = vmax.f32 %v702_v11, 0.0  ;;  %v2634_v3 = vld [vmem:[%s3801_s5 + $0x1e4] sm:$0xf]  ;;  %v2457_v11 = vld [vmem:[%s3801_s5 + $0x1d0] sm:$0xf0] }
  0xb7   : > { %v2476_v6 = vor.u32 %v2634_v3, %v2473_v5  ;;  %v2375_v3 = vld [vmem:[%s3801_s5 + $0x120] sm:$0xf]  ;;  %v2610_v5 = vld [vmem:[%s3801_s5 + $0x124] sm:$0xf] }
  0xb8   : > { %v2380_v8 = vor.u32 %v2610_v5, %v2377_v7  ;;  %v2319_v7 = vld [vmem:[%s3801_s5 + $0xa8] sm:$0xf] }
  0xb9   : > { %1517 = vmatpush.bf16.msrb.mxu1 %v2476_v6  ;;  %v2376_v6 = vor.u32 %v2612_v4, %v2375_v3  ;;  %v2433_v4 = vld [vmem:[%s3801_s5 + $0x198] sm:$0xf0] }
  0xbb   : > { %v703_v14 = vpop.f32.mrf.mxu2  ;;  %v668_v16 = vpop.f32.mrf.mxu0 }
  0xbc   : > { %v704_v15 = vadd.f32 %v703_v14, %v685_v12  ;;  %v687_v17 = vpop.f32.mrf.mxu1  ;;  %v720_v21 = vpop.f32.mrf.mxu3  ;;  %v669_v23 = vadd.f32 %v668_v16, %v378_v53  ;;  %v2460_v12 = vor.u32 %v2630_v9, %v2457_v11  ;;  %v2604_v14 = vld [vmem:[%s3801_s5 + $0xec] sm:$0xf0]  ;;  %v2263_v9 = vld [vmem:[%s3801_s5 + $0x40] sm:$0xf]  ;;  %v2582_v11 = vld [vmem:[%s3801_s5 + $0x44] sm:$0xf] }
  0xbd   : > { %v721_v35 = vadd.f32 %v720_v21, %v379_v28  ;;  %v2344_v16 = vor.u32 %v2604_v14, %v2343_v13  ;;  %v2626_v21 = vld [vmem:[%s3801_s5 + $0x1a4] sm:$0xf]  ;;  %v2265_v13 = vld [vmem:[%s3801_s5 + $0x50] sm:$0xf0] }
  0xbe   : > { %v770_v19 = vmax.f32 %v704_v15, 0.0  ;;  %v688_v27 = vadd.f32 %v687_v17, %v669_v23  ;;  %v2602_v15 = vld [vmem:[%s3801_s5 + $0xe4] sm:$0xf]  ;;  %v2345_v17 = vld [vmem:[%s3801_s5 + $0xf0] sm:$0xf0]  ;;  %1518 = vmatpush.bf16.msrb.mxu1 %v2460_v12  ;;  %v2264_v12 = vor.u32 %v2584_v10, %v2263_v9  ;;  %v2268_v14 = vor.u32 %v2582_v11, %v2265_v13 }
  0xbf   : > { %1460 = vmatpush.bf16.msra.mxu2 %v2344_v16  ;;  %v2441_v23 = vld [vmem:[%s3801_s5 + $0x1b0] sm:$0xf0]  ;;  %v2608_v16 = vld [vmem:[%s3801_s5 + $0x10c] sm:$0xf0]  ;;  %v2595_v9 = vld [vmem:[%s3801_s5 + $0xac] sm:$0xf] }
  0xc0   : > { %v776_v20 = vpack.c.bf16 %v770_v19, %v768_v18  ;;  %v2348_v18 = vor.u32 %v2602_v15, %v2345_v17  ;;  %v2439_v19 = vld [vmem:[%s3801_s5 + $0x1a0] sm:$0xf]  ;;  %v2606_v17 = vld [vmem:[%s3801_s5 + $0x104] sm:$0xf] }
  0xc1   : > { %v2359_v15 = vld [vmem:[%s3801_s5 + $0x100] sm:$0xf] }
  0xc2   : > { %986 = vmatmul.bf16.vlgmr.msrb.gmra.mxu2 %v776_v20  ;;  %1024 = vmatmul.bf16.vlgmr.msra.gmra.mxu0 %v776_v20  ;;  %v2628_v20 = vld [vmem:[%s3801_s5 + $0x1ac] sm:$0xf0]  ;;  %v812_v10 = vld [vmem:[%s3800_s4] sm:$0x3] }
  0xc3   : > { %v706_v22 = vpop.f32.mrf.mxu2  ;;  %v670_v24 = vpop.f32.mrf.mxu0  ;;  %1498 = vmatpush.bf16.msrb.mxu0 %v2348_v18  ;;  %v2360_v18 = vor.u32 %v2608_v16, %v2359_v15  ;;  %v2621_v15 = vld [vmem:[%s3801_s5 + $0x174] sm:$0xf0]  ;;  %v2619_v16 = vld [vmem:[%s3801_s5 + $0x16c] sm:$0xf] }
  0xc4   : > { %v689_v25 = vpop.f32.mrf.mxu1  ;;  %v671_v26 = vadd.f32 %v670_v24, %v378_v53  ;;  %v707_v29 = vadd.f32 %v706_v22, %v688_v27  ;;  %v722_v33 = vpop.f32.mrf.mxu3  ;;  %v2440_v22 = vor.u32 %v2628_v20, %v2439_v19  ;;  %v2327_v24 = vld [vmem:[%s3801_s5 + $0xc0] sm:$0xf]  ;;  %v2361_v19 = vld [vmem:[%s3801_s5 + $0x110] sm:$0xf0] }
  0xc5   : > { %v723_v41 = vadd.f32 %v722_v33, %v379_v28  ;;  %v2622_v33 = vld [vmem:[%s3801_s5 + $0x184] sm:$0xf]  ;;  %v2364_v20 = vor.u32 %v2606_v17, %v2361_v19 }
  0xc6   : > { %v690_v30 = vadd.f32 %v689_v25, %v671_v26  ;;  %v772_v37 = vmax.f32 %v707_v29, 0.0  ;;  %v2600_v25 = vld [vmem:[%s3801_s5 + $0xcc] sm:$0xf0]  ;;  %v2444_v26 = vor.u32 %v2626_v21, %v2441_v23  ;;  %v2329_v29 = vld [vmem:[%s3801_s5 + $0xd0] sm:$0xf0]  ;;  %1481 = vmatpush.bf16.msra.mxu3 %v2440_v22 }
  0xc7   : > { %v2328_v27 = vor.u32 %v2600_v25, %v2327_v24  ;;  %v2247_v21 = vld [vmem:[%s3801_s5 + $0x20] sm:$0xf]  ;;  %v2580_v22 = vld [vmem:[%s3801_s5 + $0x2c] sm:$0xf0]  ;;  %v2578_v23 = vld [vmem:[%s3801_s5 + $0x24] sm:$0xf] }
  0xc8   : > { %1519 = vmatpush.bf16.msrb.mxu1 %v2444_v26  ;;  %v2248_v24 = vor.u32 %v2580_v22, %v2247_v21  ;;  %v2249_v25 = vld [vmem:[%s3801_s5 + $0x30] sm:$0xf0]  ;;  %v2303_v22 = vld [vmem:[%s3801_s5 + $0x88] sm:$0xf] }
  0xc9   : > { %1461 = vmatpush.bf16.msra.mxu2 %v2328_v27  ;;  %v2252_v26 = vor.u32 %v2578_v23, %v2249_v25  ;;  %v2479_v27 = vld [vmem:[%s3801_s5 + $0x1e8] sm:$0xf]  ;;  %v2593_v23 = vld [vmem:[%s3801_s5 + $0x94] sm:$0xf0]  ;;  %v3603_v25 = vperm.slane %v812_v10, 1 }
  0xcb   : > { %v708_v31 = vpop.f32.mrf.mxu2  ;;  %v739_v34 = vpop.f32.mrf.mxu0 }
  0xcc   : > { %v709_v32 = vadd.f32 %v708_v31, %v690_v30  ;;  %v758_v36 = vpop.f32.mrf.mxu1  ;;  %v740_v40 = vadd.f32 %v739_v34, %v721_v35  ;;  %v725_v42 = vpop.f32.mrf.mxu3  ;;  %v2423_v31 = vld [vmem:[%s3801_s5 + $0x180] sm:$0xf]  ;;  %v2425_v35 = vld [vmem:[%s3801_s5 + $0x190] sm:$0xf0] }
  0xcd   : > { %v726_v54 = vadd.f32 %v725_v42, %v379_v28 }
  0xce   : > { %v774_v38 = vmax.f32 %v709_v32, 0.0  ;;  %v759_v46 = vadd.f32 %v758_v36, %v740_v40  ;;  %v2624_v32 = vld [vmem:[%s3801_s5 + $0x18c] sm:$0xf0]  ;;  %v2428_v36 = vor.u32 %v2622_v33, %v2425_v35  ;;  %v2231_v33 = vld [vmem:[%s3801_s5] sm:$0xf] }
  0xcf   : > { %v2424_v34 = vor.u32 %v2624_v32, %v2423_v31  ;;  %v2481_v31 = vld [vmem:[%s3801_s5 + $0x1f8] sm:$0xf0]  ;;  %v2574_v35 = vld [vmem:[%s3801_s5 + $0x4] sm:$0xf] }
  0xd0   : > { %v778_v39 = vpack.c.bf16 %v774_v38, %v772_v37  ;;  %v769_v50 = vmax.f32 %v759_v46, 0.0  ;;  %v2311_v37 = vld [vmem:[%s3801_s5 + $0xa0] sm:$0xf]  ;;  %v2596_v38 = vld [vmem:[%s3801_s5 + $0xac] sm:$0xf0]  ;;  %1520 = vmatpush.bf16.msrb.mxu1 %v2428_v36 }
  0xd1   : > { %1482 = vmatpush.bf16.msra.mxu3 %v2424_v34  ;;  %v2312_v40 = vor.u32 %v2596_v38, %v2311_v37  ;;  %v2407_v46 = vld [vmem:[%s3801_s5 + $0x160] sm:$0xf]  ;;  %v2576_v34 = vld [vmem:[%s3801_s5 + $0xc] sm:$0xf0]  ;;  %v2233_v37 = vld [vmem:[%s3801_s5 + $0x10] sm:$0xf0] }
  0xd2   : > { %991 = vmatmul.bf16.gmra.mxu2 %v778_v39  ;;  %1029 = vmatmul.bf16.gmra.mxu0 %v778_v39  ;;  %v2594_v39 = vld [vmem:[%s3801_s5 + $0xa4] sm:$0xf]  ;;  %v2232_v36 = vor.u32 %v2576_v34, %v2231_v33  ;;  %v2236_v38 = vor.u32 %v2574_v35, %v2233_v37  ;;  %v3620_v33 = vperm.slane %v812_v10, 0  ;;  %v2401_v35 = vld [vmem:[%s3801_s5 + $0x158] sm:$0xf0] }
  0xd3   : > { %v741_v45 = vpop.f32.mrf.mxu0  ;;  %1462 = vmatpush.bf16.msra.mxu2 %v2312_v40  ;;  %v2633_v40 = vld [vmem:[%s3801_s5 + $0x1d4] sm:$0xf0]  ;;  %v2287_v37 = vld [vmem:[%s3801_s5 + $0x68] sm:$0xf] }
  0xd4   : > { %v742_v47 = vadd.f32 %v741_v45, %v723_v41  ;;  %v760_v48 = vpop.f32.mrf.mxu1  ;;  %v727_v56 = vpop.f32.mrf.mxu3  ;;  %v2313_v41 = vld [vmem:[%s3801_s5 + $0xb0] sm:$0xf0] }
  0xd5   : > { %v728_v44 = vadd.f32 %v727_v56, %v379_v28  ;;  %v2598_v28 = vld [vmem:[%s3801_s5 + $0xc4] sm:$0xf]  ;;  %v2316_v45 = vor.u32 %v2594_v39, %v2313_v41  ;;  %v2463_v39 = vld [vmem:[%s3801_s5 + $0x1c8] sm:$0xf]  ;;  %v2631_v41 = vld [vmem:[%s3801_s5 + $0x1cc] sm:$0xf] }
  0xd6   : > { %v761_v49 = vadd.f32 %v760_v48, %v742_v47  ;;  %v2332_v30 = vor.u32 %v2598_v28, %v2329_v29  ;;  %v2620_v47 = vld [vmem:[%s3801_s5 + $0x16c] sm:$0xf0]  ;;  %v2618_v48 = vld [vmem:[%s3801_s5 + $0x164] sm:$0xf]  ;;  %v2637_v28 = vld [vmem:[%s3801_s5 + $0x1f4] sm:$0xf0] }
  0xd7   : > { %v2408_v42 = vor.u32 %v2620_v47, %v2407_v46  ;;  %v2635_v29 = vld [vmem:[%s3801_s5 + $0x1ec] sm:$0xf]  ;;  %v2465_v46 = vld [vmem:[%s3801_s5 + $0x1d8] sm:$0xf0] }
  0xd8   : > { %v771_v51 = vmax.f32 %v761_v49, 0.0  ;;  %1499 = vmatpush.bf16.msrb.mxu0 %v2332_v30  ;;  %v2409_v49 = vld [vmem:[%s3801_s5 + $0x170] sm:$0xf0]  ;;  %v2480_v30 = vor.u32 %v2637_v28, %v2479_v27  ;;  %v3468_v32 = vor.u32 %v2635_v29, %v2481_v31  ;;  %v3495_v47 = vor.u32 %v2631_v41, %v2465_v46  ;;  %v2305_v27 = vld [vmem:[%s3801_s5 + $0x98] sm:$0xf0] }
  0xd9   : > { %1483 = vmatpush.bf16.msra.mxu3 %v2408_v42  ;;  %v2605_v42 = vld [vmem:[%s3801_s5 + $0xf4] sm:$0xf0]  ;;  %v2399_v29 = vld [vmem:[%s3801_s5 + $0x148] sm:$0xf]  ;;  %v2615_v31 = vld [vmem:[%s3801_s5 + $0x14c] sm:$0xf] }
  0xda   : > { %v777_v52 = vpack.c.bf16 %v771_v51, %v769_v50  ;;  %v2412_v50 = vor.u32 %v2618_v48, %v2409_v49  ;;  %v2295_v51 = vld [vmem:[%s3801_s5 + $0x80] sm:$0xf]  ;;  %v2351_v48 = vld [vmem:[%s3801_s5 + $0xe8] sm:$0xf]  ;;  %v2603_v49 = vld [vmem:[%s3801_s5 + $0xec] sm:$0xf] }
  0xdb   : > { %v744_v53 = vpop.f32.mrf.mxu0  ;;  %v2383_v46 = vld [vmem:[%s3801_s5 + $0x128] sm:$0xf] }
  0xdc   : > { %v763_v55 = vpop.f32.mrf.mxu1  ;;  %1005 = vmatmul.bf16.vlgmr.msrb.gmra.mxu3 %v777_v52  ;;  %1043 = vmatmul.bf16.vlgmr.msra.gmra.mxu1 %v777_v52  ;;  %v745_v43 = vadd.f32 %v744_v53, %v726_v54  ;;  %v2592_v52 = vld [vmem:[%s3801_s5 + $0x8c] sm:$0xf0]  ;;  %v2590_v53 = vld [vmem:[%s3801_s5 + $0x84] sm:$0xf] }
  0xdd   : > { %1500 = vmatpush.bf16.msrb.mxu0 %v2316_v45  ;;  %v2296_v54 = vor.u32 %v2592_v52, %v2295_v51  ;;  %1521 = vmatpush.bf16.msrb.mxu1 %v2412_v50  ;;  %v2464_v45 = vor.u32 %v2633_v40, %v2463_v39  ;;  %v2352_v50 = vor.u32 %v2605_v42, %v2351_v48  ;;  %v2353_v51 = vld [vmem:[%s3801_s5 + $0xf8] sm:$0xf0]  ;;  %v2587_v39 = vld [vmem:[%s3801_s5 + $0x6c] sm:$0xf]  ;;  %v2613_v48 = vld [vmem:[%s3801_s5 + $0x134] sm:$0xf0] }
  0xde   : > { %v764_v58 = vadd.f32 %v763_v55, %v745_v43  ;;  %v2297_v55 = vld [vmem:[%s3801_s5 + $0x90] sm:$0xf0]  ;;  %v2391_v43 = vld [vmem:[%s3801_s5 + $0x140] sm:$0xf] }
  0xdf   : > { %v2300_v56 = vor.u32 %v2590_v53, %v2297_v55  ;;  %1463 = vmatpush.bf16.msra.mxu2 %v2296_v54  ;;  %v3512_v53 = vor.u32 %v2603_v49, %v2353_v51  ;;  %v2447_v54 = vld [vmem:[%s3801_s5 + $0x1a8] sm:$0xf]  ;;  %v2629_v55 = vld [vmem:[%s3801_s5 + $0x1b4] sm:$0xf0]  ;;  %v2384_v51 = vor.u32 %v2613_v48, %v2383_v46 }
  0xe0   : > { %v773_v62 = vmax.f32 %v764_v58, 0.0 }
  0xe1   : > { %1501 = vmatpush.bf16.msrb.mxu0 %v2300_v56  ;;  %v2627_v56 = vld [vmem:[%s3801_s5 + $0x1ac] sm:$0xf] }
  0xe3   : > { %v746_v57 = vpop.f32.mrf.mxu0 }
  0xe4   : > { %v747_v59 = vadd.f32 %v746_v57, %v728_v44  ;;  %v765_v60 = vpop.f32.mrf.mxu1  ;;  %v2616_v44 = vld [vmem:[%s3801_s5 + $0x14c] sm:$0xf0]  ;;  %v2614_v57 = vld [vmem:[%s3801_s5 + $0x144] sm:$0xf] }
  0xe5   : > { %v2392_v58 = vor.u32 %v2616_v44, %v2391_v43  ;;  %v2448_v43 = vor.u32 %v2629_v55, %v2447_v54  ;;  %v2449_v44 = vld [vmem:[%s3801_s5 + $0x1b8] sm:$0xf0]  ;;  %v2271_v55 = vld [vmem:[%s3801_s5 + $0x48] sm:$0xf] }
  0xe6   : > { %v766_v61 = vadd.f32 %v765_v60, %v747_v59  ;;  %v2393_v59 = vld [vmem:[%s3801_s5 + $0x150] sm:$0xf0]  ;;  %v2385_v54 = vld [vmem:[%s3801_s5 + $0x138] sm:$0xf0] }
  0xe7   : > { %v2396_v60 = vor.u32 %v2614_v57, %v2393_v59  ;;  %1484 = vmatpush.bf16.msra.mxu3 %v2392_v58  ;;  %v3527_v57 = vor.u32 %v2627_v56, %v2449_v44  ;;  %v2335_v58 = vld [vmem:[%s3801_s5 + $0xc8] sm:$0xf]  ;;  %v2601_v59 = vld [vmem:[%s3801_s5 + $0xd4] sm:$0xf0] }
  0xe8   : > { %v775_v63 = vmax.f32 %v766_v61, 0.0  ;;  %v2279_v61 = vld [vmem:[%s3801_s5 + $0x60] sm:$0xf] }
  0xe9   : > { %1522 = vmatpush.bf16.msrb.mxu1 %v2396_v60  ;;  %v2599_v60 = vld [vmem:[%s3801_s5 + $0xcc] sm:$0xf] }
  0xea   : > { %v779_v0 = vpack.c.bf16 %v775_v63, %v773_v62  ;;  %v2588_v62 = vld [vmem:[%s3801_s5 + $0x6c] sm:$0xf0]  ;;  %v2586_v63 = vld [vmem:[%s3801_s5 + $0x64] sm:$0xf] }
  0xeb   : > { %v2284_v2 = vor.u32 %v2586_v63, %v2281_v1  ;;  %1485 = vmatpush.bf16.msra.mxu3 %v2376_v6  ;;  %v2625_v1 = vld [vmem:[%s3801_s5 + $0x194] sm:$0xf0] }
  0xec   : > { %1010 = vmatmul.bf16.gmra.mxu3 %v779_v0  ;;  %1048 = vmatmul.bf16.gmra.mxu1 %v779_v0  ;;  %v2280_v0 = vor.u32 %v2588_v62, %v2279_v61  ;;  %v2336_v61 = vor.u32 %v2601_v59, %v2335_v58  ;;  %v2337_v62 = vld [vmem:[%s3801_s5 + $0xd8] sm:$0xf0]  ;;  %v2585_v58 = vld [vmem:[%s3801_s5 + $0x54] sm:$0xf0]  ;;  %v2583_v59 = vld [vmem:[%s3801_s5 + $0x4c] sm:$0xf] }
  0xed   : > { %1502 = vmatpush.bf16.msrb.mxu0 %v2284_v2  ;;  %1523 = vmatpush.bf16.msrb.mxu1 %v2380_v8  ;;  %v3542_v63 = vor.u32 %v2599_v60, %v2337_v62  ;;  %v2623_v2 = vld [vmem:[%s3801_s5 + $0x18c] sm:$0xf]  ;;  %v2597_v8 = vld [vmem:[%s3801_s5 + $0xb4] sm:$0xf0]  ;;  %v2273_v60 = vld [vmem:[%s3801_s5 + $0x58] sm:$0xf0]  ;;  %v2272_v62 = vor.u32 %v2585_v58, %v2271_v55 }
  0xee   : > { %1464 = vmatpush.bf16.msra.mxu2 %v2280_v0  ;;  %v2431_v0 = vld [vmem:[%s3801_s5 + $0x188] sm:$0xf]  ;;  %v3559_v6 = vor.u32 %v2623_v2, %v2433_v4  ;;  %v2320_v11 = vor.u32 %v2597_v8, %v2319_v7  ;;  %v2609_v2 = vld [vmem:[%s3801_s5 + $0x114] sm:$0xf0]  ;;  %v2369_v8 = vld [vmem:[%s3801_s5 + $0x118] sm:$0xf0] }
  0xef   : > { %1486 = vmatpush.bf16.msra.mxu3 %v2360_v18  ;;  %v2432_v3 = vor.u32 %v2625_v1, %v2431_v0  ;;  %v2417_v18 = vld [vmem:[%s3801_s5 + $0x178] sm:$0xf0]  ;;  %v3673_v0 = vor.u32 %v2583_v59, %v2273_v60  ;;  %v2367_v1 = vld [vmem:[%s3801_s5 + $0x108] sm:$0xf] }
  0xf0   : > { %v3592_v21 = vor.u32 %v2619_v16, %v2417_v18  ;;  %v2368_v7 = vor.u32 %v2609_v2, %v2367_v1 }
  0xf1   : > { %1503 = vmatpush.bf16.msrb.mxu0 %v2268_v14  ;;  %1524 = vmatpush.bf16.msrb.mxu1 %v2364_v20  ;;  %v2415_v14 = vld [vmem:[%s3801_s5 + $0x168] sm:$0xf] }
  0xf2   : > { %1465 = vmatpush.bf16.msra.mxu2 %v2264_v12  ;;  %v2321_v12 = vld [vmem:[%s3801_s5 + $0xb8] sm:$0xf0]  ;;  %v2416_v17 = vor.u32 %v2621_v15, %v2415_v14  ;;  %v2579_v14 = vld [vmem:[%s3801_s5 + $0x2c] sm:$0xf] }
  0xf3   : > { %1555 = vmatpush.bf16.msrb.mxu3 %v2480_v30  ;;  %v3577_v13 = vor.u32 %v2595_v9, %v2321_v12  ;;  %v2617_v30 = vld [vmem:[%s3801_s5 + $0x154] sm:$0xf0]  ;;  %v2255_v9 = vld [vmem:[%s3801_s5 + $0x28] sm:$0xf]  ;;  %v2257_v15 = vld [vmem:[%s3801_s5 + $0x38] sm:$0xf0] }
  0xf4   : > { %v2400_v34 = vor.u32 %v2617_v30, %v2399_v29  ;;  %v2581_v12 = vld [vmem:[%s3801_s5 + $0x34] sm:$0xf0]  ;;  %v2575_v30 = vld [vmem:[%s3801_s5 + $0xc] sm:$0xf] }
  0xf5   : > { %1504 = vmatpush.bf16.msrb.mxu0 %v2252_v26  ;;  %1593 = vmatpush.bf16.msra.mxu1 %v3468_v32  ;;  %v2304_v26 = vor.u32 %v2593_v23, %v2303_v22  ;;  %v2577_v29 = vld [vmem:[%s3801_s5 + $0x14] sm:$0xf0] }
  0xf6   : > { %1466 = vmatpush.bf16.msra.mxu2 %v2248_v24  ;;  %v2591_v24 = vld [vmem:[%s3801_s5 + $0x8c] sm:$0xf] }
  0xf7   : > { %1556 = vmatpush.bf16.msrb.mxu3 %v2464_v45  ;;  %v3609_v28 = vor.u32 %v2591_v24, %v2305_v27  ;;  %v2289_v45 = vld [vmem:[%s3801_s5 + $0x78] sm:$0xf0] }
  0xf9   : > { %1505 = vmatpush.bf16.msrb.mxu0 %v2236_v38  ;;  %1594 = vmatpush.bf16.msra.mxu1 %v3495_v47  ;;  %v2589_v38 = vld [vmem:[%s3801_s5 + $0x74] sm:$0xf0] }
  0xfa   : > { %1467 = vmatpush.bf16.msra.mxu2 %v2232_v36  ;;  %v3626_v36 = vor.u32 %v2615_v31, %v2401_v35  ;;  %v2288_v41 = vor.u32 %v2589_v38, %v2287_v37  ;;  %v2241_v37 = vld [vmem:[%s3801_s5 + $0x18] sm:$0xf0] }
  0xfb   : > { %1557 = vmatpush.bf16.msrb.mxu3 %v2448_v43 }
  0xfd   : > { %1574 = vmatpush.bf16.msra.mxu0 %v3512_v53  ;;  %1595 = vmatpush.bf16.msra.mxu1 %v3527_v57 }
  0xfe   : > { %1536 = vmatpush.bf16.msrb.mxu2 %v2352_v50  ;;  %v3649_v50 = vor.u32 %v2587_v39, %v2289_v45 }
  0xff   : > { %1558 = vmatpush.bf16.msrb.mxu3 %v2432_v3  ;;  %v2607_v3 = vld [vmem:[%s3801_s5 + $0x10c] sm:$0xf] }
 0x101   : > { %1575 = vmatpush.bf16.msra.mxu0 %v3542_v63  ;;  %1596 = vmatpush.bf16.msra.mxu1 %v3559_v6 }
 0x102   : > { %1537 = vmatpush.bf16.msrb.mxu2 %v2336_v61 }
 0x103   : > { %1559 = vmatpush.bf16.msrb.mxu3 %v2416_v17 }
 0x105   : > { %1576 = vmatpush.bf16.msra.mxu0 %v3577_v13  ;;  %1597 = vmatpush.bf16.msra.mxu1 %v3592_v21 }
 0x106   : > { %1538 = vmatpush.bf16.msrb.mxu2 %v2320_v11  ;;  %v3691_v11 = vor.u32 %v2607_v3, %v2369_v8 }
 0x107   : > { %1560 = vmatpush.bf16.msrb.mxu3 %v2400_v34 }
 0x109   : > { %1577 = vmatpush.bf16.msra.mxu0 %v3609_v28  ;;  %1598 = vmatpush.bf16.msra.mxu1 %v3626_v36 }
 0x10a   : > { %1539 = vmatpush.bf16.msrb.mxu2 %v2304_v26 }
 0x10b   : > { %1561 = vmatpush.bf16.msrb.mxu3 %v2384_v51 }
 0x10d   : > { %1578 = vmatpush.bf16.msra.mxu0 %v3649_v50 }
 0x10e   : > { %1540 = vmatpush.bf16.msrb.mxu2 %v2288_v41 }
 0x10f   : > { %1562 = vmatpush.bf16.msrb.mxu3 %v2368_v7 }
 0x111   : > { %1579 = vmatpush.bf16.msra.mxu0 %v3673_v0 }
 0x112   : > { %1541 = vmatpush.bf16.msrb.mxu2 %v2272_v62 }
 0x13f   : > { %v3509_v52 = vpop.f32.mrf.mxu0 }
 0x140   : > { %v1026_v40 = vadd.f32 %v3509_v52, %v3603_v25  ;;  %v2611_v52 = vld [vmem:[%s3801_s5 + $0x12c] sm:$0xf] }
 0x141   : > { %v3661_v44 = vor.u32 %v2611_v52, %v2385_v54 }
 0x143   : > { %1599 = vmatpush.bf16.msra.mxu1 %v3661_v44 }
 0x145   : > { %v3556_v5 = vpop.f32.mrf.mxu2 }
 0x146   : > { %v988_v16 = vadd.f32 %v3556_v5, %v3620_v33  ;;  %v2239_v5 = vld [vmem:[%s3801_s5 + $0x8] sm:$0xf] }
 0x147   : > { %v1027_v19 = vpop.f32.mrf.mxu0  ;;  %1600 = vmatpush.bf16.msra.mxu1 %v3691_v11  ;;  %v2240_v35 = vor.u32 %v2577_v29, %v2239_v5 }
 0x148   : > { %v1028_v56 = vadd.f32 %v1027_v19, %v3603_v25  ;;  %v2256_v19 = vor.u32 %v2581_v12, %v2255_v9 }
 0x14a   : > { %1542 = vmatpush.bf16.msrb.mxu2 %v2256_v19 }
 0x14d   : > { %v989_v42 = vpop.f32.mrf.mxu2 }
 0x14e   : > { %v990_v22 = vadd.f32 %v989_v42, %v3620_v33  ;;  %1543 = vmatpush.bf16.msrb.mxu2 %v2240_v35 }
 0x14f   : > { %v1030_v10 = vpop.f32.mrf.mxu0 }
 0x150   : > { %v1031_v46 = vadd.f32 %v1030_v10, %v3603_v25 }
 0x155   : > { %v992_v31 = vpop.f32.mrf.mxu2 }
 0x156   : > { %v993_v54 = vadd.f32 %v992_v31, %v3620_v33 }
 0x157   : > { %v1032_v45 = vpop.f32.mrf.mxu0 }
 0x158   : > { %v1033_v42 = vadd.f32 %v1032_v45, %v3603_v25 }
 0x159   : > { %v1044_v20 = vpop.f32.mrf.mxu1 }
 0x15a   : > { %v1045_v43 = vadd.f32 %v1044_v20, %v1026_v40  ;;  %v3705_v20 = vor.u32 %v2579_v14, %v2257_v15  ;;  %v2244_v40 = vor.u32 %v2575_v30, %v2241_v37 }
 0x15c   : > { %v1055_v17 = vmax.f32 %v1045_v43, 0.0  ;;  %1580 = vmatpush.bf16.msra.mxu0 %v3705_v20 }
 0x15f   : > { %v1006_v49 = vpop.f32.mrf.mxu3 }
 0x160   : > { %v1007_v23 = vadd.f32 %v1006_v49, %v988_v16  ;;  %1581 = vmatpush.bf16.msra.mxu0 %v2244_v40 }
 0x161   : > { %v1046_v61 = vpop.f32.mrf.mxu1 }
 0x162   : > { %v1047_v4 = vadd.f32 %v1046_v61, %v1028_v56  ;;  %v1054_v38 = vmax.f32 %v1007_v23, 0.0 }
 0x164   : > { %v1057_v18 = vmax.f32 %v1047_v4, 0.0 }
 0x166   : > { %v1063_v24 = vpack.c.bf16 %v1057_v18, %v1055_v17 }
 0x167   : > { %v1008_v26 = vpop.f32.mrf.mxu3 }
 0x168   : > { %v1009_v27 = vadd.f32 %v1008_v26, %v990_v22  ;;  %1487 = vmatmul.bf16.vlgmr.msra.gmra.mxu3 %v1063_v24  ;;  %1525 = vmatmul.bf16.vlgmr.msrb.gmra.mxu1 %v1063_v24 }
 0x169   : > { %v1049_v34 = vpop.f32.mrf.mxu1  ;;  %2646 = vmatpush.bf16.msra.mxu3 %v3468_v32  ;;  %v994_v32 = vpop.f32.mrf.mxu2 }
 0x16a   : > { %v1056_v39 = vmax.f32 %v1009_v27, 0.0  ;;  %v1050_v49 = vadd.f32 %v1049_v34, %v1031_v46  ;;  %v995_v43 = vadd.f32 %v994_v32, %v3620_v33 }
 0x16c   : > { %v1062_v41 = vpack.c.bf16 %v1056_v39, %v1054_v38  ;;  %v1059_v55 = vmax.f32 %v1050_v49, 0.0 }
 0x16d   : > { %2647 = vmatpush.bf16.msra.mxu3 %v3495_v47 }
 0x16e   : > { %1468 = vmatmul.bf16.vlgmr.msra.gmra.mxu2 %v1062_v41  ;;  %1506 = vmatmul.bf16.vlgmr.msrb.gmra.mxu0 %v1062_v41 }
 0x16f   : > { %v1011_v48 = vpop.f32.mrf.mxu3  ;;  %2638 = vmatpush.bf16.msra.mxu2 %v3512_v53 }
 0x170   : > { %v1012_v58 = vadd.f32 %v1011_v48, %v993_v54 }
 0x171   : > { %v1051_v51 = vpop.f32.mrf.mxu1  ;;  %2648 = vmatpush.bf16.msra.mxu3 %v3527_v57 }
 0x172   : > { %v1052_v52 = vadd.f32 %v1051_v51, %v1033_v42  ;;  %v1058_v25 = vmax.f32 %v1012_v58, 0.0 }
 0x173   : > { %2639 = vmatpush.bf16.msra.mxu2 %v3542_v63 }
 0x174   : > { %v1061_v56 = vmax.f32 %v1052_v52, 0.0 }
 0x175   : > { %2649 = vmatpush.bf16.msra.mxu3 %v3559_v6 }
 0x176   : > { %v1065_v47 = vpack.c.bf16 %v1061_v56, %v1059_v55 }
 0x177   : > { %v1013_v59 = vpop.f32.mrf.mxu3  ;;  %2640 = vmatpush.bf16.msra.mxu2 %v3577_v13  ;;  %v3744_v13 = vld [vmem:[%s3802_s6] sm:$0xf] }
 0x178   : > { %v1014_v53 = vadd.f32 %v1013_v59, %v995_v43  ;;  %1492 = vmatmul.bf16.gmra.mxu3 %v1065_v47  ;;  %1530 = vmatmul.bf16.gmra.mxu1 %v1065_v47  ;;  %v1133_v33 = vperm.slane %v3744_v13, 1 }
 0x179   : > { %2650 = vmatpush.bf16.msra.mxu3 %v3592_v21 }
 0x17a   : > { %v1060_v57 = vmax.f32 %v1014_v53, 0.0 }
 0x17b   : > { %2641 = vmatpush.bf16.msra.mxu2 %v3609_v28 }
 0x17c   : > { %v1064_v63 = vpack.c.bf16 %v1060_v57, %v1058_v25 }
 0x17d   : > { %2651 = vmatpush.bf16.msra.mxu3 %v3626_v36  ;;  %v1132_v36 = vperm.slane %v3744_v13, 0 }
 0x17e   : > { %1473 = vmatmul.bf16.gmra.mxu2 %v1064_v63  ;;  %1511 = vmatmul.bf16.gmra.mxu0 %v1064_v63 }
 0x17f   : > { %2642 = vmatpush.bf16.msra.mxu2 %v3649_v50 }
 0x181   : > { %2652 = vmatpush.bf16.msra.mxu3 %v3661_v44 }
 0x183   : > { %2643 = vmatpush.bf16.msra.mxu2 %v3673_v0 }
 0x185   : > { %2653 = vmatpush.bf16.msra.mxu3 %v3691_v11 }
 0x187   : > { %2644 = vmatpush.bf16.msra.mxu2 %v3705_v20 }
 0x188   : > { %1563 = vmatmul.bf16.vlgmr.msrb.gmra.mxu3 %v1063_v24  ;;  %1601 = vmatmul.bf16.vlgmr.msra.gmra.mxu1 %v1063_v24 }
 0x18b   : > { %2645 = vmatpush.bf16.msra.mxu2 %v2244_v40 }
 0x18e   : > { %1544 = vmatmul.bf16.vlgmr.msrb.gmra.mxu2 %v1062_v41  ;;  %1582 = vmatmul.bf16.vlgmr.msra.gmra.mxu0 %v1062_v41 }
 0x198   : > { %1568 = vmatmul.bf16.gmra.mxu3 %v1065_v47 }
 0x19e   : > { %1549 = vmatmul.bf16.gmra.mxu2 %v1064_v63 }
 0x1a8   : > { %1606 = vmatmul.bf16.vlgmr.msra.gmra.mxu3 %v1065_v47 }
 0x1ae   : > { %1587 = vmatmul.bf16.vlgmr.msra.gmra.mxu2 %v1064_v63 }
 0x1e5   : > { %v1526_v6 = vpop.f32.mrf.mxu1 }
 0x1eb   : > { %v1488_v21 = vpop.f32.mrf.mxu3  ;;  %v1507_v28 = vpop.f32.mrf.mxu0 }
 0x1ec   : > { %v1508_v50 = vadd.f32 %v1507_v28, %v1133_v33 }
 0x1ed   : > { %v1528_v60 = vpop.f32.mrf.mxu1 }
 0x1ee   : > { %v1527_v1 = vadd.f32 %v1526_v6, %v1508_v50 }
 0x1f0   : > { %v1613_v7 = vmax.f32 %v1527_v1, 0.0 }
 0x1f1   : > { %v1469_v44 = vpop.f32.mrf.mxu2 }
 0x1f2   : > { %v1470_v61 = vadd.f32 %v1469_v44, %v1132_v36  ;;  %v1634_v16 = vrot.slane %v1613_v7, 4 }
 0x1f3   : > { %v1490_v62 = vpop.f32.mrf.mxu3  ;;  %v1509_v0 = vpop.f32.mrf.mxu0 }
 0x1f4   : > { %v1510_v2 = vadd.f32 %v1509_v0, %v1133_v33  ;;  %v1489_v3 = vadd.f32 %v1488_v21, %v1470_v61  ;;  %v1635_v27 = vmax.f32 %v1613_v7, %v1634_v16 }
 0x1f5   : > { %v1531_v18 = vpop.f32.mrf.mxu1 }
 0x1f6   : > { %v1529_v4 = vadd.f32 %v1528_v60, %v1510_v2  ;;  %v1612_v9 = vmax.f32 %v1489_v3, 0.0  ;;  %v1636_v41 = vrot.slane %v1635_v27, 2 }
 0x1f8   : > { %v1617_v8 = vmax.f32 %v1529_v4, 0.0  ;;  %v1628_v20 = vrot.slane %v1612_v9, 4  ;;  %v1637_v43 = vmax.f32 %v1635_v27, %v1636_v41 }
 0x1f9   : > { %v1471_v10 = vpop.f32.mrf.mxu2 }
 0x1fa   : > { %v1658_v11 = vrot.slane %v1617_v8, 4  ;;  %v1472_v12 = vadd.f32 %v1471_v10, %v1132_v36  ;;  %v1629_v29 = vmax.f32 %v1612_v9, %v1628_v20 }
 0x1fb   : > { %v1493_v14 = vpop.f32.mrf.mxu3  ;;  %v1512_v15 = vpop.f32.mrf.mxu0 }
 0x1fc   : > { %v1659_v17 = vmax.f32 %v1617_v8, %v1658_v11  ;;  %v1491_v19 = vadd.f32 %v1490_v62, %v1472_v12  ;;  %v1513_v22 = vadd.f32 %v1512_v15, %v1133_v33  ;;  %v1630_v48 = vrot.slane %v1629_v29, 2 }
 0x1fd   : > { %v1533_v32 = vpop.f32.mrf.mxu1 }
 0x1fe   : > { %v1660_v23 = vrot.slane %v1659_v17, 2  ;;  %v1616_v24 = vmax.f32 %v1491_v19, 0.0  ;;  %v1532_v26 = vadd.f32 %v1531_v18, %v1513_v22  ;;  %v1631_v59 = vmax.f32 %v1629_v29, %v1630_v48 }
 0x200   : > { %v1652_v5 = vrot.slane %v1616_v24, 4  ;;  %v1621_v30 = vmax.f32 %v1532_v26, 0.0  ;;  %v1661_v34 = vmax.f32 %v1659_v17, %v1660_v23  ;;  %v1632_v0 = vrot.slane %v1631_v59, 1 }
 0x201   : > { %v1474_v31 = vpop.f32.mrf.mxu2 }
 0x202   : > { %v1653_v35 = vmax.f32 %v1616_v24, %v1652_v5  ;;  %v1475_v37 = vadd.f32 %v1474_v31, %v1132_v36  ;;  %v1682_v38 = vrot.slane %v1621_v30, 4  ;;  %v1662_v51 = vrot.slane %v1661_v34, 1 }
 0x203   : > { %v1495_v39 = vpop.f32.mrf.mxu3  ;;  %v1514_v40 = vpop.f32.mrf.mxu0  ;;  %v1633_v16 = vmax.f32 %v1631_v59, %v1632_v0 }
 0x204   : > { %v1654_v45 = vrot.slane %v1653_v35, 2  ;;  %v1494_v46 = vadd.f32 %v1493_v14, %v1475_v37  ;;  %v1683_v42 = vmax.f32 %v1621_v30, %v1682_v38  ;;  %v1515_v49 = vadd.f32 %v1514_v40, %v1133_v33 }
 0x205   : > { %v1663_v63 = vmax.f32 %v1661_v34, %v1662_v51  ;;  %v1638_v33 = vrot.slane %v1637_v43, 1  ;;  %v1602_v27 = vpop.f32.mrf.mxu1  ;;  %v1134_v51 = vperm.slane %v3744_v13, 2 }
 0x206   : > { %v1655_v52 = vmax.f32 %v1653_v35, %v1654_v45  ;;  %v1620_v54 = vmax.f32 %v1494_v46, 0.0  ;;  %v1684_v55 = vrot.slane %v1683_v42, 2  ;;  %v1534_v56 = vadd.f32 %v1533_v32, %v1515_v49 }
 0x207   : > { %v1742_v2 = vrot.slane %v1663_v63, 4  ;;  %v1639_v10 = vmax.f32 %v1637_v43, %v1638_v33 }
 0x208   : > { %v1656_v58 = vrot.slane %v1655_v52, 1  ;;  %v1676_v47 = vrot.slane %v1620_v54, 4  ;;  %v1685_v53 = vmax.f32 %v1683_v42, %v1684_v55  ;;  %v1625_v25 = vmax.f32 %v1534_v56, 0.0 }
 0x209   : > { %v1476_v57 = vpop.f32.mrf.mxu2  ;;  %v1740_v24 = vrot.slane %v1639_v10, 4 }
 0x20a   : > { %v1677_v6 = vmax.f32 %v1620_v54, %v1676_v47  ;;  %v1477_v21 = vadd.f32 %v1476_v57, %v1132_v36  ;;  %v1686_v28 = vrot.slane %v1685_v53, 1  ;;  %v1706_v50 = vrot.slane %v1625_v25, 4 }
 0x20b   : > { %v3748_v44 = vpop.f32.mrf.mxu3  ;;  %v1657_v60 = vmax.f32 %v1655_v52, %v1656_v58  ;;  %v1583_v8 = vpop.f32.mrf.mxu0  ;;  %v1749_v29 = vsel %vm1748_vm0, %v1633_v16, %v1740_v24 }
 0x20c   : > { %v1678_v61 = vrot.slane %v1677_v6, 2  ;;  %v1496_v62 = vadd.f32 %v1495_v39, %v1477_v21  ;;  %v1707_v1 = vmax.f32 %v1625_v25, %v1706_v50  ;;  %v1687_v3 = vmax.f32 %v1685_v53, %v1686_v28 }
 0x20d   : > { %v1751_v36 = vsel %vm1748_vm0, %v1657_v60, %v1742_v2  ;;  %v3755_v39 = vperm.slane %v3744_v13, 3  ;;  %v1604_v55 = vpop.f32.mrf.mxu1 }
 0x20e   : > { %v1679_v4 = vmax.f32 %v1677_v6, %v1678_v61  ;;  %v1624_v7 = vmax.f32 %v1496_v62, 0.0  ;;  %v1708_v9 = vrot.slane %v1707_v1, 2  ;;  %v1744_v17 = vrot.slane %v1687_v3, 4 }
 0x20f   : > { %v1757_v20 = vrot.slane %v1751_v36, 7  ;;  %v1584_v59 = vadd.f32 %v1583_v8, %v3755_v39 }
 0x210   : > { %v1680_v11 = vrot.slane %v1679_v4, 1  ;;  %v1700_v12 = vrot.slane %v1624_v7, 4  ;;  %v1709_v14 = vmax.f32 %v1707_v1, %v1708_v9 }
 0x211   : > { %v1545_v15 = vpop.f32.mrf.mxu2  ;;  %v1759_v34 = vsel %vm1758_vm1, %v1757_v20, %v1749_v29  ;;  %v1603_v6 = vadd.f32 %v1602_v27, %v1584_v59 }
 0x212   : > { %v1681_v18 = vmax.f32 %v1679_v4, %v1680_v11  ;;  %v1701_v19 = vmax.f32 %v1624_v7, %v1700_v12  ;;  %v1710_v22 = vrot.slane %v1709_v14, 1  ;;  %v1761_v41 = vsel %vm1760_vm2, %v1757_v20, %v1759_v34 }
 0x213   : > { %v1566_v23 = vpop.f32.mrf.mxu3  ;;  %v1585_v38 = vpop.f32.mrf.mxu0  ;;  %v1546_v25 = vadd.f32 %v1545_v15, %v1134_v51  ;;  %v1615_v62 = vmax.f32 %v1603_v6, 0.0 }
 0x214   : > { %v1753_v26 = vsel %vm1748_vm0, %v1681_v18, %v1744_v17  ;;  %v1702_v5 = vrot.slane %v1701_v19, 2  ;;  %v1711_v30 = vmax.f32 %v1709_v14, %v1710_v22  ;;  %v1586_v42 = vadd.f32 %v1585_v38, %v3755_v39 }
 0x215   : > { %v1762_v35 = vrot.slane %v1753_v26, 6  ;;  %v1565_v28 = vadd.f32 %v3748_v44, %v1546_v25  ;;  %v1646_v7 = vrot.slane %v1615_v62, 4 }
 0x216   : > { %v1703_v31 = vmax.f32 %v1701_v19, %v1702_v5  ;;  %v1746_v45 = vrot.slane %v1711_v30, 4  ;;  %v1605_v58 = vadd.f32 %v1604_v55, %v1586_v42 }
 0x217   : > { %v1764_v48 = vsel %vm1763_vm3, %v1762_v35, %v1761_v41  ;;  %v1614_v1 = vmax.f32 %v1565_v28, 0.0  ;;  %v1647_v15 = vmax.f32 %v1615_v62, %v1646_v7 }
 0x218   : > { %v1704_v37 = vrot.slane %v1703_v31, 1  ;;  %v1766_v54 = vsel %vm1765_vm4, %v1762_v35, %v1764_v48  ;;  %v1619_v57 = vmax.f32 %v1605_v58, 0.0 }
 0x219   : > { %v1547_v40 = vpop.f32.mrf.mxu2  ;;  %v1640_v9 = vrot.slane %v1614_v1, 4 }
 0x21a   : > { %v1705_v46 = vmax.f32 %v1703_v31, %v1704_v37  ;;  %v1548_v56 = vadd.f32 %v1547_v40, %v1134_v51  ;;  %v1670_v50 = vrot.slane %v1619_v57, 4 }
 0x21b   : > { %v1569_v32 = vpop.f32.mrf.mxu3  ;;  %v1641_v17 = vmax.f32 %v1614_v1, %v1640_v9 }
 0x21c   : > { %v1755_v49 = vsel %vm1748_vm0, %v1705_v46, %v1746_v45  ;;  %v1567_v53 = vadd.f32 %v1566_v23, %v1548_v56  ;;  %v1671_v2 = vmax.f32 %v1619_v57, %v1670_v50  ;;  %v1648_v23 = vrot.slane %v1647_v15, 2 }
 0x21d   : > { %v1767_v52 = vrot.slane %v1755_v49, 5  ;;  %v1642_v27 = vrot.slane %v1641_v17, 2 }
 0x21e   : > { %v1618_v21 = vmax.f32 %v1567_v53, 0.0  ;;  %v1672_v10 = vrot.slane %v1671_v2, 2  ;;  %v1649_v35 = vmax.f32 %v1647_v15, %v1648_v23 }
 0x21f   : > { %v1769_v43 = vsel %vm1768_vm5, %v1767_v52, %v1766_v54  ;;  %v1643_v41 = vmax.f32 %v1641_v17, %v1642_v27 }
 0x220   : > { %v1771_v47 = vsel %vm1770_vm6, %v1767_v52, %v1769_v43  ;;  %v1664_v0 = vrot.slane %v1618_v21, 4  ;;  %v1673_v18 = vmax.f32 %v1671_v2, %v1672_v10  ;;  %v1650_v52 = vrot.slane %v1649_v35, 1 }
 0x221   : > { %1783 = vst [vmem:[%s3767_s30] sm:$0xff] %v1771_v47  ;;  %v1550_v13 = vpop.f32.mrf.mxu2  ;;  %v1644_v56 = vrot.slane %v1643_v41, 1 }
 0x222   : > { %v1551_v63 = vadd.f32 %v1550_v13, %v1134_v51  ;;  %v1665_v8 = vmax.f32 %v1618_v21, %v1664_v0  ;;  %v1674_v5 = vrot.slane %v1673_v18, 1  ;;  %v1651_v53 = vmax.f32 %v1649_v35, %v1650_v52 }
 0x223   : > { %v1571_v33 = vpop.f32.mrf.mxu3 }
 0x224   : > { %v1570_v60 = vadd.f32 %v1569_v32, %v1551_v63  ;;  %v1666_v44 = vrot.slane %v1665_v8, 2  ;;  %v1675_v45 = vmax.f32 %v1673_v18, %v1674_v5  ;;  %v1645_v63 = vmax.f32 %v1643_v41, %v1644_v56 }
 0x226   : > { %v1622_v3 = vmax.f32 %v1570_v60, 0.0  ;;  %v1667_v24 = vmax.f32 %v1665_v8, %v1666_v44  ;;  %v1743_v43 = vrot.slane %v1675_v45, 4  ;;  %v1741_v60 = vrot.slane %v1651_v53, 4 }
 0x228   : > { %v1688_v36 = vrot.slane %v1622_v3, 4  ;;  %v1668_v37 = vrot.slane %v1667_v24, 1  ;;  %v1750_v0 = vsel %vm1748_vm0, %v1645_v63, %v1741_v60 }
 0x229   : > { %v1552_v61 = vpop.f32.mrf.mxu2 }
 0x22a   : > { %v1553_v4 = vadd.f32 %v1552_v61, %v1134_v51  ;;  %v1689_v19 = vmax.f32 %v1622_v3, %v1688_v36  ;;  %v1669_v32 = vmax.f32 %v1667_v24, %v1668_v37 }
 0x22b   : > { %v1607_v12 = vpop.f32.mrf.mxu3 }
 0x22c   : > { %v1572_v11 = vadd.f32 %v1571_v33, %v1553_v4  ;;  %v1690_v29 = vrot.slane %v1689_v19, 2 }
 0x22e   : > { %v1626_v20 = vmax.f32 %v1572_v11, 0.0  ;;  %v1691_v48 = vmax.f32 %v1689_v19, %v1690_v29 }
 0x230   : > { %v1712_v30 = vrot.slane %v1626_v20, 4  ;;  %v1692_v58 = vrot.slane %v1691_v48, 1 }
 0x231   : > { %v1588_v14 = vpop.f32.mrf.mxu2 }
 0x232   : > { %v1589_v16 = vadd.f32 %v1588_v14, %v3755_v39  ;;  %v1713_v42 = vmax.f32 %v1626_v20, %v1712_v30  ;;  %v1693_v6 = vmax.f32 %v1691_v48, %v1692_v58 }
 0x233   : > { %v1609_v46 = vpop.f32.mrf.mxu3 }
 0x234   : > { %v1608_v22 = vadd.f32 %v1607_v12, %v1589_v16  ;;  %v1714_v47 = vrot.slane %v1713_v42, 2 }
 0x236   : > { %v1623_v26 = vmax.f32 %v1608_v22, 0.0  ;;  %v1715_v21 = vmax.f32 %v1713_v42, %v1714_v47 }
 0x238   : > { %v1694_v31 = vrot.slane %v1623_v26, 4  ;;  %v1716_v1 = vrot.slane %v1715_v21, 1 }
 0x239   : > { %v1590_v34 = vpop.f32.mrf.mxu2 }
 0x23a   : > { %v1695_v38 = vmax.f32 %v1623_v26, %v1694_v31  ;;  %v1591_v40 = vadd.f32 %v1590_v34, %v3755_v39  ;;  %v1752_v39 = vsel %vm1748_vm0, %v1669_v32, %v1743_v43  ;;  %v1717_v9 = vmax.f32 %v1715_v21, %v1716_v1 }
 0x23b   : > { %v1772_v33 = vrot.slane %v1752_v39, 7 }
 0x23c   : > { %v1696_v49 = vrot.slane %v1695_v38, 2  ;;  %v1610_v51 = vadd.f32 %v1609_v46, %v1591_v40 }
 0x23d   : > { %v1773_v3 = vsel %vm1758_vm1, %v1772_v33, %v1750_v0 }
 0x23e   : > { %v1697_v54 = vmax.f32 %v1695_v38, %v1696_v49  ;;  %v1627_v55 = vmax.f32 %v1610_v51, 0.0  ;;  %v1774_v8 = vsel %vm1760_vm2, %v1772_v33, %v1773_v3 }
 0x240   : > { %v1698_v13 = vrot.slane %v1697_v54, 1  ;;  %v1718_v59 = vrot.slane %v1627_v55, 4 }
 0x242   : > { %v1699_v25 = vmax.f32 %v1697_v54, %v1698_v13  ;;  %v1719_v57 = vmax.f32 %v1627_v55, %v1718_v59 }
 0x244   : > { %v1745_v28 = vrot.slane %v1699_v25, 4  ;;  %v1720_v50 = vrot.slane %v1719_v57, 2 }
 0x246   : > { %v1754_v61 = vsel %vm1748_vm0, %v1693_v6, %v1745_v28  ;;  %v1721_v62 = vmax.f32 %v1719_v57, %v1720_v50 }
 0x247   : > { %v1775_v4 = vrot.slane %v1754_v61, 6 }
 0x248   : > { %v1722_v2 = vrot.slane %v1721_v62, 1 }
 0x249   : > { %v1776_v36 = vsel %vm1763_vm3, %v1775_v4, %v1774_v8 }
 0x24a   : > { %v1723_v7 = vmax.f32 %v1721_v62, %v1722_v2  ;;  %v1777_v14 = vsel %vm1765_vm4, %v1775_v4, %v1776_v36 }
 0x24c   : > { %v1747_v10 = vrot.slane %v1723_v7, 4 }
 0x24e   : > { %v1756_v11 = vsel %vm1748_vm0, %v1717_v9, %v1747_v10 }
 0x24f   : > { %v1778_v12 = vrot.slane %v1756_v11, 5 }
 0x251   : > { %v1779_v15 = vsel %vm1768_vm5, %v1778_v12, %v1777_v14 }
 0x252   : > { %v1780_v44 = vsel %vm1770_vm6, %v1778_v12, %v1779_v15 }
 0x253   : > { %1784 = vst [vmem:[%s3767_s30 + $0x8] sm:$0xff] %v1780_v44 }
 0x254 PF: > { %s17_s26 = sadd.s32 1, %s2701_s26   ;;  %s3804_s24 = smov %s2697_s25 }
 0x255   : > { %p14_p5 = scmp.ge.s32.totalorder %s17_s26, 4   ;;  %s3805_s25 = smov %s3807_s27 }
 0x257   :  { %16 = sbr.rel (!%p14_p5) target bundleno = 2 (0x2), region = 78 }

// kernel: pointnet2_forward.7
= control target key start
LH: loop header
LB: loop body
LE: loop exit
PB: predicated region body
PF: predicated region fallthrough
CT: control target
= control target key end

     0   :  { %s17697_s0 = inlined_call_operand.vmem [shape: bf16[2,4,640], index: 0, kind: input, shape index: {}]   ;;  %s17698_s1 = inlined_call_operand.vmem [shape: bf16[640,512], index: 1, kind: input, shape index: {}]   ;;  %s17699_s2 = inlined_call_operand.vmem [shape: f32[1,512], index: 2, kind: input, shape index: {}]   ;;  %s17700_s3 = inlined_call_operand.vmem [shape: bf16[512,512], index: 3, kind: input, shape index: {}]   ;;  %s17701_s4 = inlined_call_operand.vmem [shape: f32[1,512], index: 4, kind: input, shape index: {}]   ;;  %s17702_s5 = inlined_call_operand.vmem [shape: bf16[512,1024], index: 5, kind: input, shape index: {}]   ;;  %s17703_s6 = inlined_call_operand.vmem [shape: f32[1,1024], index: 6, kind: input, shape index: {}]   ;;  %s17704_s7 = inlined_call_operand.vmem [shape: bf16[1024,512], index: 7, kind: input, shape index: {}]   ;;  %s17705_s8 = inlined_call_operand.vmem [shape: f32[1,512], index: 8, kind: input, shape index: {}]   ;;  %s17706_s9 = inlined_call_operand.vmem [shape: bf16[512,256], index: 9, kind: input, shape index: {}]   ;;  %s17707_s10 = inlined_call_operand.vmem [shape: f32[1,256], index: 10, kind: input, shape index: {}]   ;;  %s17708_s11 = inlined_call_operand.vmem [shape: bf16[256,128], index: 11, kind: input, shape index: {}]   ;;  %s17709_s12 = inlined_call_operand.vmem [shape: f32[1,128], index: 12, kind: input, shape index: {}]   ;;  %s17710_s13 = inlined_call_operand.hbm [shape: f32[2,1,128], index: 13, kind: output, shape index: {}]  }
   0x1   :  { %17715 = sst [smem:[#allocation9_spill]] %s17697_s0 }
   0x2   :  { %18 = vsyncpa [#allocation3], 0 }
   0x3   :  { %20 = vsyncpa [#allocation3 + $0x1], 0  ;;  %s12005_s25 = smov 0   ;;  %s12007_s26 = smov 0  }
   0x4   :  { %s12009_s27 = smov 0   ;;  %s12011_s28 = smov 0  }
   0x5 LB: > { %17716 = sst [smem:[#allocation5_spill]] %s11929_s27  ;;  %s12026_s29 = sadd.s32 4294967295, %s11933_s28   ;;  %s11933_s28 = sphi %s12011_s28, %s17724_s28   ;;  %s11929_s27 = sphi %s12009_s27, %s17726_s27   ;;  %s11925_s26 = sphi %s12007_s26, %s17728_s26   ;;  %s11921_s25 = sphi %s12005_s25, %s17727_s25  }
   0x6   : > { %s7422_s30 = sadd.s32 4294967294, %s11933_s28   ;;  %s12030_s14 = sadd.s32 1, %s11933_s28  }
   0x7   : > { %17717 = sst [smem:[#allocation6_spill]] %s12030_s14  ;;  %s311_s15 = sadd.s32 1, %s11929_s27 }
   0x8   : > { %s308_s16 = ssub.s32 %s11933_s28, %s12030_s14  ;;  %p321_p0 = scmp.ne.s32.totalorder %s11929_s27, %s11925_s26 }
   0x9   : > { %p309_p1 = scmp.eq.s32.totalorder %s308_s16, 0  ;;  %p322_p2 = scmp.eq.s32.totalorder %s12026_s29, 1 }
   0xa   : > { %p327_p3 = scmp.ne.s32.totalorder %s11925_s26, %s11921_s25  ;;  %p328_p4 = scmp.eq.s32.totalorder %s7422_s30, 1 }
   0xb   : > { %s12041_s17 = scalar_select %p309_p1, %s11929_s27, %s311_s15  }
   0xc   : > { %p12043_p5 = por %p322_p2, %p321_p0  ;;  %p12047_p6 = por %p328_p4, %p327_p3 }
   0xd   : > { %17718 = sst [smem:[#allocation7_spill]] %s12041_s17  ;;  %p7425_p7 = scmp.ge.s32.totalorder %s11933_s28, 1 }
   0xe   : > { %s17720_s19 = scalar_select %p12047_p6, 1, 0 }
   0xf   : > { %p390_p8 = scmp.lt.s32.totalorder %s11933_s28, 3 }
  0x10   : > { %17721 = sst [smem:[#allocation8_spill]] %s17720_s19 }
  0x11   : > { %p391_p9 = pnand %p7425_p7, %p390_p8 }
  0x12   : > { %p433_p10 = scmp.lt.s32.totalorder (!%p391_p9), %s12026_s29, 1  ;;  %s17722_s0 = sld [smem:[#allocation9_spill]] (!%p391_p9) }
  0x13   : > { %394 = sbr.rel (%p391_p9) target bundleno = 1459 (0x5b3), region = 72  ;;  %s7363_s15 = scalar_lea.hbm (!%p391_p9), %s17710_s13, %s12026_s29 }
  0x14   : > { %s7367_s20 = sshll.u32 (!%p391_p9), %s7363_s15, 4  ;;  %s7368_s20 = int_to_ptr.hbm [resolvable:$true] %s7367_s20 }
  0x15   : > { %s11885_s22 = sshra.s32 (!%p391_p9), %s7368_s20, 4  ;;  %s11886_s22 = int_to_ptr.hbm [resolvable:$true] %s11885_s22 }
  0x16   : > { %s11887_s23 = scalar_lea.hbm (!%p391_p9), %s11886_s22, 1  ;;  %p11892_p0 = scmp.lt.s32.totalorder (!%p391_p9), %s11886_s22, %s17710_s13 }
  0x17   : > { %p11888_p11 = scmp.ne.s32.totalorder (!%p391_p9), %s11886_s22, %s11887_s23 }
  0x18   : > { %v7541_v0 = vld [vmem:[%s17698_s1 + $0xe0] sm:$0xf]  ;;  %v10979_v1 = vld [vmem:[%s17698_s1 + $0xec] sm:$0xf0]  ;;  %s434_s17 = scalar_select %p433_p10, %s12026_s29, 1  ;;  %vm4665_vm0 = vcmask 1043456  }
  0x19   : > { %v7669_v2 = vld [vmem:[%s17698_s1 + $0x1e0] sm:$0xf]  ;;  %v7542_v3 = vor.u32 %v10979_v1, %v7541_v0  ;;  %v11011_v4 = vld [vmem:[%s17698_s1 + $0x1ec] sm:$0xf0]  ;;  %p11889_p12 = pnand %p11888_p11, %p12043_p5 }
  0x1a   : > { %v7797_v5 = vld [vmem:[%s17698_s1 + $0x2e0] sm:$0xf]  ;;  %v11043_v6 = vld [vmem:[%s17698_s1 + $0x2ec] sm:$0xf0]  ;;  %v7670_v7 = vor.u32 %v11011_v4, %v7669_v2  ;;  %s11829_s27 = smul.u32 10, %s434_s17  ;;  %s431_s17 = sand.u32 1, %s11925_s26  }
  0x1b   : > { %v7798_v8 = vor.u32 %v11043_v6, %v7797_v5  ;;  %v7925_v9 = vld [vmem:[%s17698_s1 + $0x3e0] sm:$0xf]  ;;  %v11075_v10 = vld [vmem:[%s17698_s1 + $0x3ec] sm:$0xf0]  ;;  %1425 = vmatpush.bf16.msra.mxu0 %v7542_v3  ;;  %s7355_s21 = scalar_lea.sflag [#allocation3], %s431_s17  ;;  %p11890_p13 = pneg %p11889_p12 }
  0x1c   : > { %v7525_v11 = vld [vmem:[%s17698_s1 + $0xc0] sm:$0xf]  ;;  %v7926_v12 = vor.u32 %v11075_v10, %v7925_v9  ;;  %v10975_v13 = vld [vmem:[%s17698_s1 + $0xcc] sm:$0xf0]  ;;  %1438 = vmatpush.bf16.msra.mxu1 %v7670_v7  ;;  %s12334_s19 = scalar_lea.vmem %s17722_s0, %s11829_s27  ;;  %s11891_s27 = scalar_lea.hbm %s17710_s13, 2 }
  0x1d   : > { %v7653_v14 = vld [vmem:[%s17698_s1 + $0x1c0] sm:$0xf]  ;;  %v11007_v15 = vld [vmem:[%s17698_s1 + $0x1cc] sm:$0xf0]  ;;  %1451 = vmatpush.bf16.msra.mxu2 %v7798_v8  ;;  %v7526_v16 = vor.u32 %v10975_v13, %v7525_v11  ;;  %p11893_p1 = scmp.lt.s32.totalorder %s11891_s27, %s11887_s23 }
  0x1e   : > { %v7654_v17 = vor.u32 %v11007_v15, %v7653_v14  ;;  %v7781_v18 = vld [vmem:[%s17698_s1 + $0x2c0] sm:$0xf]  ;;  %v11039_v19 = vld [vmem:[%s17698_s1 + $0x2cc] sm:$0xf0]  ;;  %1464 = vmatpush.bf16.msra.mxu3 %v7926_v12 }
  0x1f   : > { %v7909_v20 = vld [vmem:[%s17698_s1 + $0x3c0] sm:$0xf]  ;;  %v7782_v21 = vor.u32 %v11039_v19, %v7781_v18  ;;  %v11071_v22 = vld [vmem:[%s17698_s1 + $0x3cc] sm:$0xf0]  ;;  %1426 = vmatpush.bf16.msra.mxu0 %v7526_v16  ;;  %p11894_p2 = por %p11893_p1, %p11892_p0 }
  0x20   : > { %v7509_v23 = vld [vmem:[%s17698_s1 + $0xa0] sm:$0xf]  ;;  %v10971_v24 = vld [vmem:[%s17698_s1 + $0xac] sm:$0xf0]  ;;  %v7910_v25 = vor.u32 %v11071_v22, %v7909_v20  ;;  %1439 = vmatpush.bf16.msra.mxu1 %v7654_v17 }
  0x21   : > { %v7637_v26 = vld [vmem:[%s17698_s1 + $0x1a0] sm:$0xf]  ;;  %v11003_v27 = vld [vmem:[%s17698_s1 + $0x1ac] sm:$0xf0]  ;;  %v7510_v29 = vor.u32 %v10971_v24, %v7509_v23  ;;  %1452 = vmatpush.bf16.msra.mxu2 %v7782_v21  ;;  %p11895_p3 = pnand %p11894_p2, %p11890_p13 }
  0x22   : > { %v7765_v28 = vld [vmem:[%s17698_s1 + $0x2a0] sm:$0xf]  ;;  %v11035_v30 = vld [vmem:[%s17698_s1 + $0x2ac] sm:$0xf0]  ;;  %v7638_v33 = vor.u32 %v11003_v27, %v7637_v26  ;;  %1465 = vmatpush.bf16.msra.mxu3 %v7910_v25 }
  0x23   : > { %v7893_v31 = vld [vmem:[%s17698_s1 + $0x3a0] sm:$0xf]  ;;  %v11067_v32 = vld [vmem:[%s17698_s1 + $0x3ac] sm:$0xf0]  ;;  %v7766_v34 = vor.u32 %v11035_v30, %v7765_v28  ;;  %1427 = vmatpush.bf16.msra.mxu0 %v7510_v29  ;;  %v10977_v30 = vld [vmem:[%s17698_s1 + $0xe4] sm:$0xf] }
  0x24   : > { %v7493_v35 = vld [vmem:[%s17698_s1 + $0x80] sm:$0xf]  ;;  %v10967_v36 = vld [vmem:[%s17698_s1 + $0x8c] sm:$0xf0]  ;;  %v7894_v38 = vor.u32 %v11067_v32, %v7893_v31  ;;  %1440 = vmatpush.bf16.msra.mxu1 %v7638_v33  ;;  %v7543_v32 = vld [vmem:[%s17698_s1 + $0xf0] sm:$0xf0] }
  0x25   : > { %v7621_v37 = vld [vmem:[%s17698_s1 + $0x180] sm:$0xf]  ;;  %v10999_v39 = vld [vmem:[%s17698_s1 + $0x18c] sm:$0xf0]  ;;  %v7494_v44 = vor.u32 %v10967_v36, %v7493_v35  ;;  %1453 = vmatpush.bf16.msra.mxu2 %v7766_v34  ;;  %v11009_v33 = vld [vmem:[%s17698_s1 + $0x1e4] sm:$0xf] }
  0x26   : > { %v7749_v40 = vld [vmem:[%s17698_s1 + $0x280] sm:$0xf]  ;;  %v11031_v41 = vld [vmem:[%s17698_s1 + $0x28c] sm:$0xf0]  ;;  %v7622_v45 = vor.u32 %v10999_v39, %v7621_v37  ;;  %1466 = vmatpush.bf16.msra.mxu3 %v7894_v38  ;;  %v7671_v34 = vld [vmem:[%s17698_s1 + $0x1f0] sm:$0xf0] }
  0x27   : > { %v7877_v42 = vld [vmem:[%s17698_s1 + $0x380] sm:$0xf]  ;;  %v11063_v43 = vld [vmem:[%s17698_s1 + $0x38c] sm:$0xf0]  ;;  %v7750_v46 = vor.u32 %v11031_v41, %v7749_v40  ;;  %1428 = vmatpush.bf16.msra.mxu0 %v7494_v44  ;;  %v11041_v37 = vld [vmem:[%s17698_s1 + $0x2e4] sm:$0xf]  ;;  %v7546_v41 = vor.u32 %v10977_v30, %v7543_v32 }
  0x28   : > { %v7477_v47 = vld [vmem:[%s17698_s1 + $0x60] sm:$0xf]  ;;  %v10963_v48 = vld [vmem:[%s17698_s1 + $0x6c] sm:$0xf0]  ;;  %v7878_v50 = vor.u32 %v11063_v43, %v7877_v42  ;;  %1441 = vmatpush.bf16.msra.mxu1 %v7622_v45  ;;  %v7799_v38 = vld [vmem:[%s17698_s1 + $0x2f0] sm:$0xf0]  ;;  %v7674_v42 = vor.u32 %v11009_v33, %v7671_v34 }
  0x29   : > { %v7605_v49 = vld [vmem:[%s17698_s1 + $0x160] sm:$0xf]  ;;  %v10995_v51 = vld [vmem:[%s17698_s1 + $0x16c] sm:$0xf0]  ;;  %v7478_v56 = vor.u32 %v10963_v48, %v7477_v47  ;;  %1454 = vmatpush.bf16.msra.mxu2 %v7750_v46  ;;  %v10973_v45 = vld [vmem:[%s17698_s1 + $0xc4] sm:$0xf]  ;;  %v7802_v46 = vor.u32 %v11041_v37, %v7799_v38 }
  0x2a   : > { %v7733_v52 = vld [vmem:[%s17698_s1 + $0x260] sm:$0xf]  ;;  %v11027_v53 = vld [vmem:[%s17698_s1 + $0x26c] sm:$0xf0]  ;;  %v7606_v57 = vor.u32 %v10995_v51, %v7605_v49  ;;  %1467 = vmatpush.bf16.msra.mxu3 %v7878_v50  ;;  %v7527_v47 = vld [vmem:[%s17698_s1 + $0xd0] sm:$0xf0] }
  0x2b   : > { %v7861_v54 = vld [vmem:[%s17698_s1 + $0x360] sm:$0xf]  ;;  %v11059_v55 = vld [vmem:[%s17698_s1 + $0x36c] sm:$0xf0]  ;;  %v7734_v58 = vor.u32 %v11027_v53, %v7733_v52  ;;  %1429 = vmatpush.bf16.msra.mxu0 %v7478_v56  ;;  %v11005_v48 = vld [vmem:[%s17698_s1 + $0x1c4] sm:$0xf] }
  0x2c   : > { %v7461_v59 = vld [vmem:[%s17698_s1 + $0x40] sm:$0xf]  ;;  %v10959_v60 = vld [vmem:[%s17698_s1 + $0x4c] sm:$0xf0]  ;;  %v7862_v62 = vor.u32 %v11059_v55, %v7861_v54  ;;  %1442 = vmatpush.bf16.msra.mxu1 %v7606_v57  ;;  %v7655_v49 = vld [vmem:[%s17698_s1 + $0x1d0] sm:$0xf0]  ;;  %v7530_v54 = vor.u32 %v10973_v45, %v7527_v47 }
  0x2d   : > { %v7589_v61 = vld [vmem:[%s17698_s1 + $0x140] sm:$0xf]  ;;  %v10991_v63 = vld [vmem:[%s17698_s1 + $0x14c] sm:$0xf0]  ;;  %v7462_v4 = vor.u32 %v10959_v60, %v7461_v59  ;;  %1455 = vmatpush.bf16.msra.mxu2 %v7734_v58  ;;  %v11037_v50 = vld [vmem:[%s17698_s1 + $0x2c4] sm:$0xf]  ;;  %v7658_v55 = vor.u32 %v11005_v48, %v7655_v49 }
  0x2e   : > { %v7717_v0 = vld [vmem:[%s17698_s1 + $0x240] sm:$0xf]  ;;  %v11023_v1 = vld [vmem:[%s17698_s1 + $0x24c] sm:$0xf0]  ;;  %v7590_v5 = vor.u32 %v10991_v63, %v7589_v61  ;;  %1468 = vmatpush.bf16.msra.mxu3 %v7862_v62  ;;  %v7783_v51 = vld [vmem:[%s17698_s1 + $0x2d0] sm:$0xf0] }
  0x2f   : > { %v7845_v2 = vld [vmem:[%s17698_s1 + $0x340] sm:$0xf]  ;;  %v11055_v3 = vld [vmem:[%s17698_s1 + $0x34c] sm:$0xf0]  ;;  %v7718_v6 = vor.u32 %v11023_v1, %v7717_v0  ;;  %1430 = vmatpush.bf16.msra.mxu0 %v7462_v4  ;;  %v10969_v57 = vld [vmem:[%s17698_s1 + $0xa4] sm:$0xf]  ;;  %v7786_v58 = vor.u32 %v11037_v50, %v7783_v51 }
  0x30   : > { %v7445_v7 = vld [vmem:[%s17698_s1 + $0x20] sm:$0xf]  ;;  %v10955_v8 = vld [vmem:[%s17698_s1 + $0x2c] sm:$0xf0]  ;;  %v7846_v10 = vor.u32 %v11055_v3, %v7845_v2  ;;  %1443 = vmatpush.bf16.msra.mxu1 %v7590_v5  ;;  %v7511_v59 = vld [vmem:[%s17698_s1 + $0xb0] sm:$0xf0] }
  0x31   : > { %v7573_v9 = vld [vmem:[%s17698_s1 + $0x120] sm:$0xf]  ;;  %v10987_v11 = vld [vmem:[%s17698_s1 + $0x12c] sm:$0xf0]  ;;  %v7446_v16 = vor.u32 %v10955_v8, %v7445_v7  ;;  %1456 = vmatpush.bf16.msra.mxu2 %v7718_v6  ;;  %v11001_v60 = vld [vmem:[%s17698_s1 + $0x1a4] sm:$0xf]  ;;  %v7514_v2 = vor.u32 %v10969_v57, %v7511_v59 }
  0x32   : > { %v7701_v12 = vld [vmem:[%s17698_s1 + $0x220] sm:$0xf]  ;;  %v11019_v13 = vld [vmem:[%s17698_s1 + $0x22c] sm:$0xf0]  ;;  %v7574_v19 = vor.u32 %v10987_v11, %v7573_v9  ;;  %1469 = vmatpush.bf16.msra.mxu3 %v7846_v10  ;;  %v7639_v61 = vld [vmem:[%s17698_s1 + $0x1b0] sm:$0xf0] }
  0x33   : > { %v7829_v14 = vld [vmem:[%s17698_s1 + $0x320] sm:$0xf]  ;;  %v11051_v15 = vld [vmem:[%s17698_s1 + $0x32c] sm:$0xf0]  ;;  %v7702_v20 = vor.u32 %v11019_v13, %v7701_v12  ;;  %1431 = vmatpush.bf16.msra.mxu0 %v7446_v16  ;;  %v11033_v62 = vld [vmem:[%s17698_s1 + $0x2a4] sm:$0xf]  ;;  %v7642_v3 = vor.u32 %v11001_v60, %v7639_v61 }
  0x34   : > { %v7429_v17 = vld [vmem:[%s17698_s1] sm:$0xf]  ;;  %v10951_v18 = vld [vmem:[%s17698_s1 + $0xc] sm:$0xf0]  ;;  %v7830_v24 = vor.u32 %v11051_v15, %v7829_v14  ;;  %1444 = vmatpush.bf16.msra.mxu1 %v7574_v19  ;;  %v7767_v63 = vld [vmem:[%s17698_s1 + $0x2b0] sm:$0xf0] }
  0x35   : > { %v7557_v21 = vld [vmem:[%s17698_s1 + $0x100] sm:$0xf]  ;;  %v10983_v22 = vld [vmem:[%s17698_s1 + $0x10c] sm:$0xf0]  ;;  %v7430_v31 = vor.u32 %v10951_v18, %v7429_v17  ;;  %1457 = vmatpush.bf16.msra.mxu2 %v7702_v20  ;;  %v10965_v5 = vld [vmem:[%s17698_s1 + $0x84] sm:$0xf]  ;;  %v7770_v7 = vor.u32 %v11033_v62, %v7767_v63 }
  0x36   : > { %v7685_v23 = vld [vmem:[%s17698_s1 + $0x200] sm:$0xf]  ;;  %v11015_v25 = vld [vmem:[%s17698_s1 + $0x20c] sm:$0xf0]  ;;  %v7558_v35 = vor.u32 %v10983_v22, %v7557_v21  ;;  %1470 = vmatpush.bf16.msra.mxu3 %v7830_v24  ;;  %v7495_v6 = vld [vmem:[%s17698_s1 + $0x90] sm:$0xf0] }
  0x37   : > { %v7813_v26 = vld [vmem:[%s17698_s1 + $0x300] sm:$0xf]  ;;  %v11047_v27 = vld [vmem:[%s17698_s1 + $0x30c] sm:$0xf0]  ;;  %v7686_v36 = vor.u32 %v11015_v25, %v7685_v23  ;;  %1432 = vmatpush.bf16.msra.mxu0 %v7430_v31  ;;  %v10997_v8 = vld [vmem:[%s17698_s1 + $0x184] sm:$0xf]  ;;  %v7498_v15 = vor.u32 %v10965_v5, %v7495_v6 }
  0x38   : > { %v8053_v28 = vld [vmem:[%s17698_s1 + $0x4e0] sm:$0xf]  ;;  %v11107_v29 = vld [vmem:[%s17698_s1 + $0x4ec] sm:$0xf0]  ;;  %v7814_v39 = vor.u32 %v11047_v27, %v7813_v26  ;;  %1445 = vmatpush.bf16.msra.mxu1 %v7558_v35  ;;  %v7623_v9 = vld [vmem:[%s17698_s1 + $0x190] sm:$0xf0] }
  0x39   : > { %v8054_v40 = vor.u32 %v11107_v29, %v8053_v28  ;;  %v8037_v43 = vld [vmem:[%s17698_s1 + $0x4c0] sm:$0xf]  ;;  %v11103_v44 = vld [vmem:[%s17698_s1 + $0x4cc] sm:$0xf0]  ;;  %1458 = vmatpush.bf16.msra.mxu2 %v7686_v36  ;;  %v11029_v11 = vld [vmem:[%s17698_s1 + $0x284] sm:$0xf]  ;;  %v7626_v16 = vor.u32 %v10997_v8, %v7623_v9 }
  0x3a   : > { %1471 = vmatpush.bf16.msra.mxu3 %v7814_v39  ;;  %v8038_v52 = vor.u32 %v11103_v44, %v8037_v43  ;;  %v8021_v53 = vld [vmem:[%s17698_s1 + $0x4a0] sm:$0xf]  ;;  %v11099_v56 = vld [vmem:[%s17698_s1 + $0x4ac] sm:$0xf0]  ;;  %v7751_v12 = vld [vmem:[%s17698_s1 + $0x290] sm:$0xf0] }
  0x3b   : > { %1477 = vmatpush.bf16.msrb.mxu0 %v8054_v40  ;;  %v8022_v0 = vor.u32 %v11099_v56, %v8021_v53  ;;  %v8005_v1 = vld [vmem:[%s17698_s1 + $0x480] sm:$0xf]  ;;  %v11095_v4 = vld [vmem:[%s17698_s1 + $0x48c] sm:$0xf0]  ;;  %v10961_v18 = vld [vmem:[%s17698_s1 + $0x64] sm:$0xf]  ;;  %v7754_v20 = vor.u32 %v11029_v11, %v7751_v12 }
  0x3c   : > { %1490 = vmatpush.bf16.msrb.mxu1 %v7546_v41  ;;  %v438_v10 = vld [vmem:[%s12334_s19] sm:$0xff]  ;;  %v8006_v13 = vor.u32 %v11095_v4, %v8005_v1  ;;  %v11091_v17 = vld [vmem:[%s17698_s1 + $0x46c] sm:$0xf0]  ;;  %v7479_v19 = vld [vmem:[%s17698_s1 + $0x70] sm:$0xf0] }
  0x3d   : > { %1503 = vmatpush.bf16.msrb.mxu2 %v7674_v42  ;;  %611 = vst [vmem:[#allocation1] ss:$4 sm:$0xff] %v438_v10  ;;  %v7989_v14 = vld [vmem:[%s17698_s1 + $0x460] sm:$0xf]  ;;  %v10993_v21 = vld [vmem:[%s17698_s1 + $0x164] sm:$0xf]  ;;  %v7482_v31 = vor.u32 %v10961_v18, %v7479_v19 }
  0x3e   : > { %1516 = vmatpush.bf16.msrb.mxu3 %v7802_v46  ;;  %v7607_v22 = vld [vmem:[%s17698_s1 + $0x170] sm:$0xf0]  ;;  %v11025_v23 = vld [vmem:[%s17698_s1 + $0x264] sm:$0xf]  ;;  %v7973_v25 = vld [vmem:[%s17698_s1 + $0x440] sm:$0xf]  ;;  %v7990_v27 = vor.u32 %v11091_v17, %v7989_v14 }
  0x3f   : > { %1478 = vmatpush.bf16.msrb.mxu0 %v8038_v52  ;;  %v7735_v24 = vld [vmem:[%s17698_s1 + $0x270] sm:$0xf0]  ;;  %v11087_v26 = vld [vmem:[%s17698_s1 + $0x44c] sm:$0xf0]  ;;  %v10957_v28 = vld [vmem:[%s17698_s1 + $0x44] sm:$0xf]  ;;  %v7610_v32 = vor.u32 %v10993_v21, %v7607_v22 }
  0x40   : > { %1491 = vmatpush.bf16.msrb.mxu1 %v7530_v54  ;;  %v7463_v29 = vld [vmem:[%s17698_s1 + $0x50] sm:$0xf0]  ;;  %v10989_v30 = vld [vmem:[%s17698_s1 + $0x144] sm:$0xf]  ;;  %v7738_v37 = vor.u32 %v11025_v23, %v7735_v24  ;;  %v7974_v41 = vor.u32 %v11087_v26, %v7973_v25  ;;  %v7957_v42 = vld [vmem:[%s17698_s1 + $0x420] sm:$0xf] }
  0x41   : > { %1504 = vmatpush.bf16.msrb.mxu2 %v7658_v55  ;;  %v7591_v33 = vld [vmem:[%s17698_s1 + $0x150] sm:$0xf0]  ;;  %v11021_v34 = vld [vmem:[%s17698_s1 + $0x244] sm:$0xf]  ;;  %v439_v43 = vld [vmem:[%s12334_s19 + $0x8] sm:$0x3]  ;;  %v7466_v44 = vor.u32 %v10957_v28, %v7463_v29 }
  0x42   : > { %1517 = vmatpush.bf16.msrb.mxu3 %v7786_v58  ;;  %v7719_v35 = vld [vmem:[%s17698_s1 + $0x250] sm:$0xf0]  ;;  %v7594_v45 = vor.u32 %v10989_v30, %v7591_v33  ;;  %v11083_v46 = vld [vmem:[%s17698_s1 + $0x42c] sm:$0xf0]  ;;  %v10953_v47 = vld [vmem:[%s17698_s1 + $0x24] sm:$0xf] }
  0x43   : > { %1479 = vmatpush.bf16.msrb.mxu0 %v8022_v0  ;;  %614 = vst [vmem:[#allocation1 + $0x20] ss:$4 sm:$0xff] %v439_v43  ;;  %v7722_v48 = vor.u32 %v11021_v34, %v7719_v35  ;;  %v7447_v49 = vld [vmem:[%s17698_s1 + $0x30] sm:$0xf0]  ;;  %v10985_v50 = vld [vmem:[%s17698_s1 + $0x124] sm:$0xf]  ;;  %v7958_v54 = vor.u32 %v11083_v46, %v7957_v42 }
  0x44   : > { %1492 = vmatpush.bf16.msrb.mxu1 %v7514_v2  ;;  %v12397_v36 = vld.sshfl [vmem:[#allocation1] sm:$0xff pattern:$0x73625140]  ;;  %v12399_v38 = vld.sshfl [vmem:[#allocation1 + $0x10] sm:$0xff pattern:$0x73625140]  ;;  %v7450_v57 = vor.u32 %v10953_v47, %v7447_v49 }
  0x45   : > { %1505 = vmatpush.bf16.msrb.mxu2 %v7642_v3  ;;  %1433 = vmatmul.bf16.vlgmr.msra.gmra.mxu0 %v12397_v36  ;;  %v12403_v39 = vld.sshfl [vmem:[#allocation1 + $0x18] sm:$0xff pattern:$0x73625140]  ;;  %v12405_v40 = vld.sshfl [vmem:[#allocation1 + $0x8] sm:$0xff pattern:$0x73625140] }
  0x46   : > { %1518 = vmatpush.bf16.msrb.mxu3 %v7770_v7  ;;  %1459 = vmatmul.bf16.vlgmr.msra.gmra.mxu2 %v12399_v38  ;;  %v7575_v51 = vld [vmem:[%s17698_s1 + $0x130] sm:$0xf0]  ;;  %v11017_v52 = vld [vmem:[%s17698_s1 + $0x224] sm:$0xf]  ;;  %v7941_v55 = vld [vmem:[%s17698_s1 + $0x400] sm:$0xf] }
  0x47   : > { %1480 = vmatpush.bf16.msrb.mxu0 %v8006_v13  ;;  %1472 = vmatmul.bf16.vlgmr.msra.gmra.mxu3 %v12403_v39  ;;  %v7703_v53 = vld [vmem:[%s17698_s1 + $0x230] sm:$0xf0]  ;;  %v11079_v56 = vld [vmem:[%s17698_s1 + $0x40c] sm:$0xf0]  ;;  %v7578_v58 = vor.u32 %v10985_v50, %v7575_v51  ;;  %v10949_v59 = vld [vmem:[%s17698_s1 + $0x4] sm:$0xf] }
  0x48   : > { %1493 = vmatpush.bf16.msrb.mxu1 %v7498_v15  ;;  %v7431_v60 = vld [vmem:[%s17698_s1 + $0x10] sm:$0xf0]  ;;  %v10981_v61 = vld [vmem:[%s17698_s1 + $0x104] sm:$0xf]  ;;  %v7706_v62 = vor.u32 %v11017_v52, %v7703_v53  ;;  %v7942_v5 = vor.u32 %v11079_v56, %v7941_v55  ;;  %v7549_v7 = vld [vmem:[%s17698_s1 + $0xe8] sm:$0xf] }
  0x49   : > { %1506 = vmatpush.bf16.msrb.mxu2 %v7626_v16  ;;  %1446 = vmatmul.bf16.vlgmr.msra.gmra.mxu1 %v12405_v40  ;;  %v7559_v63 = vld [vmem:[%s17698_s1 + $0x110] sm:$0xf0]  ;;  %v11013_v0 = vld [vmem:[%s17698_s1 + $0x204] sm:$0xf]  ;;  %v10980_v8 = vld [vmem:[%s17698_s1 + $0xf4] sm:$0xf0]  ;;  %v7434_v9 = vor.u32 %v10949_v59, %v7431_v60 }
  0x4a   : > { %1519 = vmatpush.bf16.msrb.mxu3 %v7754_v20  ;;  %v7687_v1 = vld [vmem:[%s17698_s1 + $0x210] sm:$0xf0]  ;;  %v11073_v2 = vld [vmem:[%s17698_s1 + $0x3e4] sm:$0xf]  ;;  %v7562_v10 = vor.u32 %v10981_v61, %v7559_v63  ;;  %v7677_v11 = vld [vmem:[%s17698_s1 + $0x1e8] sm:$0xf]  ;;  %v7550_v17 = vor.u32 %v10980_v8, %v7549_v7 }
  0x4b   : > { %1481 = vmatpush.bf16.msrb.mxu0 %v7990_v27  ;;  %v7927_v3 = vld [vmem:[%s17698_s1 + $0x3f0] sm:$0xf0]  ;;  %v11105_v4 = vld [vmem:[%s17698_s1 + $0x4e4] sm:$0xf]  ;;  %v11012_v12 = vld [vmem:[%s17698_s1 + $0x1f4] sm:$0xf0]  ;;  %v7690_v13 = vor.u32 %v11013_v0, %v7687_v1 }
  0x4c   : > { %1494 = vmatpush.bf16.msrb.mxu1 %v7482_v31  ;;  %v8055_v6 = vld [vmem:[%s17698_s1 + $0x4f0] sm:$0xf0]  ;;  %v7930_v14 = vor.u32 %v11073_v2, %v7927_v3  ;;  %v11069_v15 = vld [vmem:[%s17698_s1 + $0x3c4] sm:$0xf]  ;;  %v7678_v21 = vor.u32 %v11012_v12, %v7677_v11  ;;  %v7533_v22 = vld [vmem:[%s17698_s1 + $0xc8] sm:$0xf] }
  0x4d   : > { %1507 = vmatpush.bf16.msrb.mxu2 %v7610_v32  ;;  %v8058_v16 = vor.u32 %v11105_v4, %v8055_v6  ;;  %v7911_v18 = vld [vmem:[%s17698_s1 + $0x3d0] sm:$0xf0]  ;;  %v11101_v19 = vld [vmem:[%s17698_s1 + $0x4c4] sm:$0xf]  ;;  %v10976_v23 = vld [vmem:[%s17698_s1 + $0xd4] sm:$0xf0] }
  0x4e   : > { %1520 = vmatpush.bf16.msrb.mxu3 %v7738_v37  ;;  %v8039_v20 = vld [vmem:[%s17698_s1 + $0x4d0] sm:$0xf0]  ;;  %v7661_v24 = vld [vmem:[%s17698_s1 + $0x1c8] sm:$0xf]  ;;  %v11008_v26 = vld [vmem:[%s17698_s1 + $0x1d4] sm:$0xf0]  ;;  %v7914_v27 = vor.u32 %v11069_v15, %v7911_v18  ;;  %v7534_v29 = vor.u32 %v10976_v23, %v7533_v22 }
  0x4f   : > { %1482 = vmatpush.bf16.msrb.mxu0 %v7974_v41  ;;  %v12503_v25 = vld.sshfl [vmem:[#allocation1 + $0x20] sm:$0xff pattern:$0x73625140]  ;;  %v8042_v28 = vor.u32 %v11101_v19, %v8039_v20  ;;  %v7895_v31 = vld [vmem:[%s17698_s1 + $0x3b0] sm:$0xf0]  ;;  %v7662_v33 = vor.u32 %v11008_v26, %v7661_v24  ;;  %s432_s19 = scalar_lea.vmem [#allocation2], %s431_s17 }
  0x50   : > { %1495 = vmatpush.bf16.msrb.mxu1 %v7466_v44  ;;  %v11065_v30 = vld [vmem:[%s17698_s1 + $0x3a4] sm:$0xf]  ;;  %v8023_v34 = vld [vmem:[%s17698_s1 + $0x4b0] sm:$0xf0]  ;;  %v7517_v35 = vld [vmem:[%s17698_s1 + $0xa8] sm:$0xf] }
  0x51   : > { %1508 = vmatpush.bf16.msrb.mxu2 %v7594_v45  ;;  %v11097_v32 = vld [vmem:[%s17698_s1 + $0x4a4] sm:$0xf]  ;;  %v10972_v37 = vld [vmem:[%s17698_s1 + $0xb4] sm:$0xf0]  ;;  %v7645_v41 = vld [vmem:[%s17698_s1 + $0x1a8] sm:$0xf]  ;;  %v7898_v43 = vor.u32 %v11065_v30, %v7895_v31 }
  0x52   : > { %1521 = vmatpush.bf16.msrb.mxu3 %v7722_v48  ;;  %v11004_v42 = vld [vmem:[%s17698_s1 + $0x1b4] sm:$0xf0]  ;;  %v8026_v44 = vor.u32 %v11097_v32, %v8023_v34  ;;  %v7518_v45 = vor.u32 %v10972_v37, %v7517_v35  ;;  %v11061_v46 = vld [vmem:[%s17698_s1 + $0x384] sm:$0xf]  ;;  %v7879_v47 = vld [vmem:[%s17698_s1 + $0x390] sm:$0xf0] }
  0x53   : > { %1483 = vmatpush.bf16.msrb.mxu0 %v7958_v54  ;;  %v11093_v48 = vld [vmem:[%s17698_s1 + $0x484] sm:$0xf]  ;;  %v7646_v49 = vor.u32 %v11004_v42, %v7645_v41  ;;  %v8007_v50 = vld [vmem:[%s17698_s1 + $0x490] sm:$0xf0]  ;;  %v7501_v51 = vld [vmem:[%s17698_s1 + $0x88] sm:$0xf]  ;;  %v7882_v55 = vor.u32 %v11061_v46, %v7879_v47 }
  0x54   : > { %1496 = vmatpush.bf16.msrb.mxu1 %v7450_v57  ;;  %v10968_v52 = vld [vmem:[%s17698_s1 + $0x94] sm:$0xf0]  ;;  %v7629_v53 = vld [vmem:[%s17698_s1 + $0x188] sm:$0xf]  ;;  %v8010_v56 = vor.u32 %v11093_v48, %v8007_v50  ;;  %v7863_v59 = vld [vmem:[%s17698_s1 + $0x370] sm:$0xf0] }
  0x55   : > { %1509 = vmatpush.bf16.msrb.mxu2 %v7578_v58  ;;  %v11000_v54 = vld [vmem:[%s17698_s1 + $0x194] sm:$0xf0]  ;;  %v7502_v57 = vor.u32 %v10968_v52, %v7501_v51  ;;  %v11057_v58 = vld [vmem:[%s17698_s1 + $0x364] sm:$0xf]  ;;  %v7485_v63 = vld [vmem:[%s17698_s1 + $0x68] sm:$0xf] }
  0x56   : > { %1522 = vmatpush.bf16.msrb.mxu3 %v7706_v62  ;;  %v11089_v60 = vld [vmem:[%s17698_s1 + $0x464] sm:$0xf]  ;;  %v7630_v61 = vor.u32 %v11000_v54, %v7629_v53  ;;  %v7991_v62 = vld [vmem:[%s17698_s1 + $0x470] sm:$0xf0]  ;;  %v10964_v0 = vld [vmem:[%s17698_s1 + $0x74] sm:$0xf0]  ;;  %v7866_v3 = vor.u32 %v11057_v58, %v7863_v59 }
  0x57   : > { %1484 = vmatpush.bf16.msrb.mxu0 %v7942_v5  ;;  %v7613_v1 = vld [vmem:[%s17698_s1 + $0x168] sm:$0xf]  ;;  %v10996_v2 = vld [vmem:[%s17698_s1 + $0x174] sm:$0xf0]  ;;  %v7994_v4 = vor.u32 %v11089_v60, %v7991_v62  ;;  %v7486_v5 = vor.u32 %v10964_v0, %v7485_v63  ;;  %v11053_v6 = vld [vmem:[%s17698_s1 + $0x344] sm:$0xf] }
  0x58   : > { %1497 = vmatpush.bf16.msrb.mxu1 %v7434_v9  ;;  %v7847_v7 = vld [vmem:[%s17698_s1 + $0x350] sm:$0xf0]  ;;  %v11085_v8 = vld [vmem:[%s17698_s1 + $0x444] sm:$0xf]  ;;  %v7614_v9 = vor.u32 %v10996_v2, %v7613_v1  ;;  %v7469_v11 = vld [vmem:[%s17698_s1 + $0x48] sm:$0xf] }
  0x59   : > { %1510 = vmatpush.bf16.msrb.mxu2 %v7562_v10  ;;  %v7975_v10 = vld [vmem:[%s17698_s1 + $0x450] sm:$0xf0]  ;;  %v10960_v12 = vld [vmem:[%s17698_s1 + $0x54] sm:$0xf0]  ;;  %v7850_v15 = vor.u32 %v11053_v6, %v7847_v7  ;;  %v11049_v18 = vld [vmem:[%s17698_s1 + $0x324] sm:$0xf] }
  0x5a   : > { %1523 = vmatpush.bf16.msrb.mxu3 %v7690_v13  ;;  %1485 = vmatmul.bf16.vlgmr.msrb.gmra.mxu0 %v12503_v25  ;;  %v7597_v13 = vld [vmem:[%s17698_s1 + $0x148] sm:$0xf]  ;;  %v7831_v19 = vld [vmem:[%s17698_s1 + $0x330] sm:$0xf0]  ;;  %v11081_v20 = vld [vmem:[%s17698_s1 + $0x424] sm:$0xf] }
  0x5b   : > { %1529 = vmatpush.bf16.msra.mxu0 %v7930_v14  ;;  %1498 = vmatmul.bf16.vlgmr.msrb.gmra.mxu1 %v12397_v36  ;;  %v10992_v14 = vld [vmem:[%s17698_s1 + $0x154] sm:$0xf0]  ;;  %v7959_v22 = vld [vmem:[%s17698_s1 + $0x430] sm:$0xf0]  ;;  %v7453_v23 = vld [vmem:[%s17698_s1 + $0x28] sm:$0xf] }
  0x5c   : > { %1542 = vmatpush.bf16.msra.mxu1 %v8058_v16  ;;  %1511 = vmatmul.bf16.vlgmr.msrb.gmra.mxu2 %v12405_v40  ;;  %v7978_v16 = vor.u32 %v11085_v8, %v7975_v10  ;;  %v10956_v24 = vld [vmem:[%s17698_s1 + $0x34] sm:$0xf0]  ;;  %v7581_v26 = vld [vmem:[%s17698_s1 + $0x128] sm:$0xf]  ;;  %v7815_v30 = vld [vmem:[%s17698_s1 + $0x310] sm:$0xf0]  ;;  %v7962_v31 = vor.u32 %v11081_v20, %v7959_v22 }
  0x5d   : > { %1555 = vmatpush.bf16.msra.mxu2 %v7550_v17  ;;  %1524 = vmatmul.bf16.vlgmr.msrb.gmra.mxu3 %v12399_v38  ;;  %v7470_v17 = vor.u32 %v10960_v12, %v7469_v11  ;;  %v7454_v32 = vor.u32 %v10956_v24, %v7453_v23  ;;  %v7943_v34 = vld [vmem:[%s17698_s1 + $0x410] sm:$0xf0]  ;;  %v7437_v35 = vld [vmem:[%s17698_s1 + $0x8] sm:$0xf]  ;;  %v10952_v41 = vld [vmem:[%s17698_s1 + $0x14] sm:$0xf0] }
  0x5e   : > { %1568 = vmatpush.bf16.msra.mxu3 %v7678_v21  ;;  %v7598_v21 = vor.u32 %v10992_v14, %v7597_v13  ;;  %v7565_v42 = vld [vmem:[%s17698_s1 + $0x108] sm:$0xf]  ;;  %v11076_v48 = vld [vmem:[%s17698_s1 + $0x3f4] sm:$0xf0]  ;;  %v7438_v52 = vor.u32 %v10952_v41, %v7437_v35  ;;  %v10978_v53 = vld [vmem:[%s17698_s1 + $0xec] sm:$0xf] }
  0x5f   : > { %1530 = vmatpush.bf16.msra.mxu0 %v7914_v27  ;;  %v10988_v27 = vld [vmem:[%s17698_s1 + $0x134] sm:$0xf0]  ;;  %v7933_v46 = vld [vmem:[%s17698_s1 + $0x3e8] sm:$0xf]  ;;  %v7551_v54 = vld [vmem:[%s17698_s1 + $0xf8] sm:$0xf0] }
  0x60   : > { %1543 = vmatpush.bf16.msra.mxu1 %v8042_v28  ;;  %v7834_v28 = vor.u32 %v11049_v18, %v7831_v19  ;;  %v7582_v37 = vor.u32 %v10988_v27, %v7581_v26  ;;  %v11108_v50 = vld [vmem:[%s17698_s1 + $0x4f4] sm:$0xf0]  ;;  %v7789_v59 = vld [vmem:[%s17698_s1 + $0x2c8] sm:$0xf]  ;;  %v7554_v62 = vor.u32 %v10978_v53, %v7551_v54  ;;  %v10974_v2 = vld [vmem:[%s17698_s1 + $0xcc] sm:$0xf] }
  0x61   : > { %1556 = vmatpush.bf16.msra.mxu2 %v7534_v29  ;;  %v11045_v29 = vld [vmem:[%s17698_s1 + $0x304] sm:$0xf]  ;;  %v11040_v60 = vld [vmem:[%s17698_s1 + $0x2d4] sm:$0xf0]  ;;  %v8045_v0 = vld [vmem:[%s17698_s1 + $0x4c8] sm:$0xf] }
  0x62   : > { %1569 = vmatpush.bf16.msra.mxu3 %v7662_v33  ;;  %v11077_v33 = vld [vmem:[%s17698_s1 + $0x404] sm:$0xf]  ;;  %v7818_v47 = vor.u32 %v11045_v29, %v7815_v30  ;;  %v11072_v63 = vld [vmem:[%s17698_s1 + $0x3d4] sm:$0xf0]  ;;  %v7773_v7 = vld [vmem:[%s17698_s1 + $0x2a8] sm:$0xf] }
  0x63   : > { %1531 = vmatpush.bf16.msra.mxu0 %v7898_v43  ;;  %v10984_v43 = vld [vmem:[%s17698_s1 + $0x114] sm:$0xf0]  ;;  %v7946_v51 = vor.u32 %v11077_v33, %v7943_v34  ;;  %v8029_v12 = vld [vmem:[%s17698_s1 + $0x4a8] sm:$0xf]  ;;  %v10970_v14 = vld [vmem:[%s17698_s1 + $0xac] sm:$0xf] }
  0x64   : > { %1544 = vmatpush.bf16.msra.mxu1 %v8026_v44  ;;  %v7805_v44 = vld [vmem:[%s17698_s1 + $0x2e8] sm:$0xf]  ;;  %v11104_v1 = vld [vmem:[%s17698_s1 + $0x4d4] sm:$0xf0]  ;;  %v10966_v27 = vld [vmem:[%s17698_s1 + $0x8c] sm:$0xf] }
  0x65   : > { %1557 = vmatpush.bf16.msra.mxu2 %v7518_v45  ;;  %v11044_v45 = vld [vmem:[%s17698_s1 + $0x2f4] sm:$0xf0]  ;;  %v8046_v6 = vor.u32 %v11104_v1, %v8045_v0  ;;  %v7757_v19 = vld [vmem:[%s17698_s1 + $0x288] sm:$0xf]  ;;  %s7365_s16 = sshll.u32 %s432_s19, 4  ;;  %s7366_s16 = int_to_ptr.vmem [resolvable:$true] %s7365_s16 }
  0x66   : > { %1570 = vmatpush.bf16.msra.mxu3 %v7646_v49  ;;  %v8061_v49 = vld [vmem:[%s17698_s1 + $0x4e8] sm:$0xf]  ;;  %v11036_v8 = vld [vmem:[%s17698_s1 + $0x2b4] sm:$0xf0] }
  0x67   : > { %1532 = vmatpush.bf16.msra.mxu0 %v7882_v55  ;;  %v7566_v55 = vor.u32 %v10984_v43, %v7565_v42  ;;  %v8062_v58 = vor.u32 %v11108_v50, %v8061_v49  ;;  %v11068_v11 = vld [vmem:[%s17698_s1 + $0x3b4] sm:$0xf0]  ;;  %v8013_v24 = vld [vmem:[%s17698_s1 + $0x488] sm:$0xf]  ;;  %v10962_v43 = vld [vmem:[%s17698_s1 + $0x6c] sm:$0xf] }
  0x68   : > { %1545 = vmatpush.bf16.msra.mxu1 %v8010_v56  ;;  %v7806_v56 = vor.u32 %v11044_v45, %v7805_v44  ;;  %v11100_v13 = vld [vmem:[%s17698_s1 + $0x4b4] sm:$0xf0]  ;;  %v7869_v34 = vld [vmem:[%s17698_s1 + $0x368] sm:$0xf]  ;;  %v7487_v44 = vld [vmem:[%s17698_s1 + $0x78] sm:$0xf0] }
  0x69   : > { %1558 = vmatpush.bf16.msra.mxu2 %v7502_v57  ;;  %v7934_v57 = vor.u32 %v11076_v48, %v7933_v46  ;;  %v8030_v18 = vor.u32 %v11100_v13, %v8029_v12  ;;  %v11032_v20 = vld [vmem:[%s17698_s1 + $0x294] sm:$0xf0]  ;;  %v7997_v41 = vld [vmem:[%s17698_s1 + $0x468] sm:$0xf] }
  0x6a   : > { %1571 = vmatpush.bf16.msra.mxu3 %v7630_v61  ;;  %v7917_v61 = vld [vmem:[%s17698_s1 + $0x3c8] sm:$0xf]  ;;  %v11064_v23 = vld [vmem:[%s17698_s1 + $0x394] sm:$0xf0]  ;;  %v7758_v29 = vor.u32 %v11032_v20, %v7757_v19  ;;  %v11042_v19 = vld [vmem:[%s17698_s1 + $0x2ec] sm:$0xf] }
  0x6b   : > { %1533 = vmatpush.bf16.msra.mxu0 %v7866_v3  ;;  %v7535_v3 = vld [vmem:[%s17698_s1 + $0xd8] sm:$0xf0]  ;;  %v11096_v26 = vld [vmem:[%s17698_s1 + $0x494] sm:$0xf0]  ;;  %v7725_v48 = vld [vmem:[%s17698_s1 + $0x248] sm:$0xf] }
  0x6c   : > { %1546 = vmatpush.bf16.msra.mxu1 %v7994_v4  ;;  %v7790_v4 = vor.u32 %v11040_v60, %v7789_v59  ;;  %v7538_v10 = vor.u32 %v10974_v2, %v7535_v3  ;;  %v11028_v33 = vld [vmem:[%s17698_s1 + $0x274] sm:$0xf0]  ;;  %v7853_v50 = vld [vmem:[%s17698_s1 + $0x348] sm:$0xf]  ;;  %v10954_v3 = vld [vmem:[%s17698_s1 + $0x2c] sm:$0xf] }
  0x6d   : > { %1559 = vmatpush.bf16.msra.mxu2 %v7486_v5  ;;  %v7918_v5 = vor.u32 %v11072_v63, %v7917_v61  ;;  %v11092_v42 = vld [vmem:[%s17698_s1 + $0x474] sm:$0xf0]  ;;  %v7981_v53 = vld [vmem:[%s17698_s1 + $0x448] sm:$0xf] }
  0x6e   : > { %1572 = vmatpush.bf16.msra.mxu3 %v7614_v9  ;;  %v7901_v9 = vld [vmem:[%s17698_s1 + $0x3a8] sm:$0xf]  ;;  %v11024_v49 = vld [vmem:[%s17698_s1 + $0x254] sm:$0xf0] }
  0x6f   : > { %1534 = vmatpush.bf16.msra.mxu0 %v7850_v15  ;;  %v7519_v15 = vld [vmem:[%s17698_s1 + $0xb8] sm:$0xf0]  ;;  %v11088_v54 = vld [vmem:[%s17698_s1 + $0x454] sm:$0xf0]  ;;  %v7709_v60 = vld [vmem:[%s17698_s1 + $0x228] sm:$0xf] }
  0x70   : > { %1547 = vmatpush.bf16.msra.mxu1 %v7978_v16  ;;  %v7774_v16 = vor.u32 %v11036_v8, %v7773_v7  ;;  %v7522_v22 = vor.u32 %v10970_v14, %v7519_v15  ;;  %v7982_v59 = vor.u32 %v11088_v54, %v7981_v53  ;;  %v11020_v61 = vld [vmem:[%s17698_s1 + $0x234] sm:$0xf0]  ;;  %v7965_v1 = vld [vmem:[%s17698_s1 + $0x428] sm:$0xf]  ;;  %v10950_v15 = vld [vmem:[%s17698_s1 + $0xc] sm:$0xf] }
  0x71   : > { %1560 = vmatpush.bf16.msra.mxu2 %v7470_v17  ;;  %v7902_v17 = vor.u32 %v11068_v11, %v7901_v9  ;;  %v11052_v0 = vld [vmem:[%s17698_s1 + $0x334] sm:$0xf0]  ;;  %v7949_v12 = vld [vmem:[%s17698_s1 + $0x408] sm:$0xf]  ;;  %v7775_v53 = vld [vmem:[%s17698_s1 + $0x2b8] sm:$0xf0] }
  0x72   : > { %1573 = vmatpush.bf16.msra.mxu3 %v7598_v21  ;;  %v7885_v21 = vld [vmem:[%s17698_s1 + $0x388] sm:$0xf]  ;;  %v11084_v2 = vld [vmem:[%s17698_s1 + $0x434] sm:$0xf0]  ;;  %v11066_v54 = vld [vmem:[%s17698_s1 + $0x3ac] sm:$0xf] }
  0x73   : > { %1535 = vmatpush.bf16.msra.mxu0 %v7834_v28  ;;  %v7503_v28 = vld [vmem:[%s17698_s1 + $0x98] sm:$0xf0]  ;;  %v7886_v30 = vor.u32 %v11064_v23, %v7885_v21  ;;  %v11016_v7 = vld [vmem:[%s17698_s1 + $0x214] sm:$0xf0]  ;;  %v7966_v9 = vor.u32 %v11084_v2, %v7965_v1  ;;  %v11062_v1 = vld [vmem:[%s17698_s1 + $0x38c] sm:$0xf] }
  0x74   : > { %1548 = vmatpush.bf16.msra.mxu1 %v7962_v31  ;;  %v8014_v31 = vor.u32 %v11096_v26, %v8013_v24  ;;  %v7506_v35 = vor.u32 %v10966_v27, %v7503_v28  ;;  %v11048_v11 = vld [vmem:[%s17698_s1 + $0x314] sm:$0xf0]  ;;  %v7807_v21 = vld [vmem:[%s17698_s1 + $0x2f8] sm:$0xf0]  ;;  %v11106_v27 = vld [vmem:[%s17698_s1 + $0x4ec] sm:$0xf] }
  0x75   : > { %1561 = vmatpush.bf16.msra.mxu2 %v7454_v32  ;;  %v7741_v32 = vld [vmem:[%s17698_s1 + $0x268] sm:$0xf]  ;;  %v11080_v14 = vld [vmem:[%s17698_s1 + $0x414] sm:$0xf0]  ;;  %v7935_v23 = vld [vmem:[%s17698_s1 + $0x3f8] sm:$0xf0] }
  0x76   : > { %1574 = vmatpush.bf16.msra.mxu3 %v7582_v37  ;;  %v11060_v37 = vld [vmem:[%s17698_s1 + $0x374] sm:$0xf0]  ;;  %v7742_v45 = vor.u32 %v11028_v33, %v7741_v32  ;;  %v7950_v26 = vor.u32 %v11080_v14, %v7949_v12  ;;  %v8063_v28 = vld [vmem:[%s17698_s1 + $0x4f8] sm:$0xf0]  ;;  %v11006_v33 = vld [vmem:[%s17698_s1 + $0x1cc] sm:$0xf] }
  0x77   : > { %1536 = vmatpush.bf16.msra.mxu0 %v7818_v47  ;;  %v7870_v46 = vor.u32 %v11060_v37, %v7869_v34  ;;  %v7998_v47 = vor.u32 %v11092_v42, %v7997_v41  ;;  %v7663_v34 = vld [vmem:[%s17698_s1 + $0x1d8] sm:$0xf0]  ;;  %v8066_v37 = vor.u32 %v11106_v27, %v8063_v28  ;;  %v11070_v42 = vld [vmem:[%s17698_s1 + $0x3cc] sm:$0xf] }
  0x78   : > { %1549 = vmatpush.bf16.msra.mxu1 %v7946_v51  ;;  %v7490_v51 = vor.u32 %v10962_v43, %v7487_v44  ;;  %v7791_v41 = vld [vmem:[%s17698_s1 + $0x2d8] sm:$0xf0]  ;;  %v11102_v44 = vld [vmem:[%s17698_s1 + $0x4cc] sm:$0xf] }
  0x79   : > { %1562 = vmatpush.bf16.msra.mxu2 %v7438_v52  ;;  %v11056_v52 = vld [vmem:[%s17698_s1 + $0x354] sm:$0xf0]  ;;  %v7919_v43 = vld [vmem:[%s17698_s1 + $0x3d8] sm:$0xf0]  ;;  %v11086_v28 = vld [vmem:[%s17698_s1 + $0x44c] sm:$0xf] }
  0x7a   : > { %1575 = vmatpush.bf16.msra.mxu3 %v7566_v55  ;;  %1537 = vmatmul.bf16.vlgmr.msra.gmra.mxu0 %v12403_v39  ;;  %v10958_v55 = vld [vmem:[%s17698_s1 + $0x4c] sm:$0xf]  ;;  %v7887_v2 = vld [vmem:[%s17698_s1 + $0x398] sm:$0xf0] }
  0x7b   : > { %1581 = vmatpush.bf16.msrb.mxu0 %v7806_v56  ;;  %1550 = vmatmul.bf16.vlgmr.msra.gmra.mxu1 %v12503_v25  ;;  %v7471_v56 = vld [vmem:[%s17698_s1 + $0x58] sm:$0xf0] }
  0x7c   : > { %1594 = vmatpush.bf16.msrb.mxu1 %v7934_v57  ;;  %1563 = vmatmul.bf16.vlgmr.msra.gmra.mxu2 %v12397_v36  ;;  %v7726_v57 = vor.u32 %v11024_v49, %v7725_v48  ;;  %v7474_v63 = vor.u32 %v10958_v55, %v7471_v56  ;;  %v7922_v48 = vor.u32 %v11070_v42, %v7919_v43  ;;  %v11002_v49 = vld [vmem:[%s17698_s1 + $0x1ac] sm:$0xf]  ;;  %v7903_v55 = vld [vmem:[%s17698_s1 + $0x3b8] sm:$0xf0] }
  0x7d   : > { %1607 = vmatpush.bf16.msrb.mxu2 %v8062_v58  ;;  %1576 = vmatmul.bf16.vlgmr.msra.gmra.mxu3 %v12405_v40  ;;  %v7854_v58 = vor.u32 %v11056_v52, %v7853_v50  ;;  %v7647_v50 = vld [vmem:[%s17698_s1 + $0x1b8] sm:$0xf0]  ;;  %v11098_v56 = vld [vmem:[%s17698_s1 + $0x4ac] sm:$0xf] }
  0x7e   : > { %1620 = vmatpush.bf16.msrb.mxu3 %v7554_v62  ;;  %v7837_v62 = vld [vmem:[%s17698_s1 + $0x328] sm:$0xf]  ;;  %v7743_v12 = vld [vmem:[%s17698_s1 + $0x278] sm:$0xf0]  ;;  %v11050_v42 = vld [vmem:[%s17698_s1 + $0x32c] sm:$0xf] }
  0x7f   : > { %1582 = vmatpush.bf16.msrb.mxu0 %v7790_v4  ;;  %v7455_v4 = vld [vmem:[%s17698_s1 + $0x38] sm:$0xf0]  ;;  %v7838_v8 = vor.u32 %v11052_v0, %v7837_v62 }
  0x80   : > { %1595 = vmatpush.bf16.msrb.mxu1 %v7918_v5  ;;  %v7710_v5 = vor.u32 %v11020_v61, %v7709_v60  ;;  %v7458_v13 = vor.u32 %v10954_v3, %v7455_v4  ;;  %v7906_v60 = vor.u32 %v11066_v54, %v7903_v55  ;;  %v10998_v61 = vld [vmem:[%s17698_s1 + $0x18c] sm:$0xf]  ;;  %v7631_v62 = vld [vmem:[%s17698_s1 + $0x198] sm:$0xf0] }
  0x81   : > { %1608 = vmatpush.bf16.msrb.mxu2 %v8046_v6  ;;  %v7693_v6 = vld [vmem:[%s17698_s1 + $0x208] sm:$0xf]  ;;  %v11094_v3 = vld [vmem:[%s17698_s1 + $0x48c] sm:$0xf]  ;;  %v8015_v4 = vld [vmem:[%s17698_s1 + $0x498] sm:$0xf0] }
  0x82   : > { %1621 = vmatpush.bf16.msrb.mxu3 %v7538_v10  ;;  %v7821_v10 = vld [vmem:[%s17698_s1 + $0x308] sm:$0xf]  ;;  %v7694_v20 = vor.u32 %v11016_v7, %v7693_v6  ;;  %v7890_v7 = vor.u32 %v11062_v1, %v7887_v2  ;;  %v7871_v14 = vld [vmem:[%s17698_s1 + $0x378] sm:$0xf0]  ;;  %v11046_v54 = vld [vmem:[%s17698_s1 + $0x30c] sm:$0xf] }
  0x83   : > { %1583 = vmatpush.bf16.msrb.mxu0 %v7774_v16  ;;  %v7439_v16 = vld [vmem:[%s17698_s1 + $0x18] sm:$0xf0]  ;;  %v7822_v24 = vor.u32 %v11048_v11, %v7821_v10  ;;  %v11026_v10 = vld [vmem:[%s17698_s1 + $0x26c] sm:$0xf]  ;;  %v8018_v11 = vor.u32 %v11094_v3, %v8015_v4  ;;  %v8165_v2 = vld [vmem:[%s17700_s3 + $0xc0] sm:$0xf] }
  0x84   : > { %1596 = vmatpush.bf16.msrb.mxu1 %v7902_v17  ;;  %v11010_v17 = vld [vmem:[%s17698_s1 + $0x1ec] sm:$0xf]  ;;  %v7855_v27 = vld [vmem:[%s17698_s1 + $0x358] sm:$0xf0]  ;;  %v11135_v3 = vld [vmem:[%s17700_s3 + $0xcc] sm:$0xf0] }
  0x85   : > { %1609 = vmatpush.bf16.msrb.mxu2 %v8030_v18  ;;  %v7679_v18 = vld [vmem:[%s17698_s1 + $0x1f8] sm:$0xf0] }
  0x86   : > { %1622 = vmatpush.bf16.msrb.mxu3 %v7522_v22  ;;  %v11074_v22 = vld [vmem:[%s17698_s1 + $0x3ec] sm:$0xf]  ;;  %v7839_v43 = vld [vmem:[%s17698_s1 + $0x338] sm:$0xf0] }
  0x87   : > { %1584 = vmatpush.bf16.msrb.mxu0 %v7758_v29  ;;  %v7442_v29 = vor.u32 %v10950_v15, %v7439_v16  ;;  %v7938_v32 = vor.u32 %v11074_v22, %v7935_v23  ;;  %v11090_v15 = vld [vmem:[%s17698_s1 + $0x46c] sm:$0xf]  ;;  %v7999_v16 = vld [vmem:[%s17698_s1 + $0x478] sm:$0xf0] }
  0x88   : > { %1597 = vmatpush.bf16.msrb.mxu1 %v7886_v30  ;;  %v7682_v30 = vor.u32 %v11010_v17, %v7679_v18  ;;  %v7746_v18 = vor.u32 %v11026_v10, %v7743_v12  ;;  %v11022_v22 = vld [vmem:[%s17698_s1 + $0x24c] sm:$0xf]  ;;  %v8002_v23 = vor.u32 %v11090_v15, %v7999_v16  ;;  %v7823_v55 = vld [vmem:[%s17698_s1 + $0x318] sm:$0xf0]  ;;  %v8117_v16 = vld [vmem:[%s17700_s3 + $0x60] sm:$0xf] }
  0x89   : > { %1610 = vmatpush.bf16.msrb.mxu2 %v8014_v31  ;;  %v7810_v31 = vor.u32 %v11042_v19, %v7807_v21  ;;  %v7599_v21 = vld [vmem:[%s17698_s1 + $0x158] sm:$0xf0] }
  0x8a   : > { %1623 = vmatpush.bf16.msrb.mxu3 %v7506_v35  ;;  %v11038_v35 = vld [vmem:[%s17698_s1 + $0x2cc] sm:$0xf] }
  0x8b   : > { %1585 = vmatpush.bf16.msrb.mxu0 %v7742_v45  ;;  %v8047_v45 = vld [vmem:[%s17698_s1 + $0x4d8] sm:$0xf0] }
  0x8c   : > { %1598 = vmatpush.bf16.msrb.mxu1 %v7870_v46  ;;  %v7666_v46 = vor.u32 %v11006_v33, %v7663_v34  ;;  %v8050_v52 = vor.u32 %v11102_v44, %v8047_v45  ;;  %v10986_v33 = vld [vmem:[%s17698_s1 + $0x12c] sm:$0xf]  ;;  %v7583_v34 = vld [vmem:[%s17698_s1 + $0x138] sm:$0xf0] }
  0x8d   : > { %1611 = vmatpush.bf16.msrb.mxu2 %v7998_v47  ;;  %v7794_v47 = vor.u32 %v11038_v35, %v7791_v41  ;;  %v11018_v35 = vld [vmem:[%s17698_s1 + $0x22c] sm:$0xf]  ;;  %v7711_v41 = vld [vmem:[%s17698_s1 + $0x238] sm:$0xf0] }
  0x8e   : > { %1624 = vmatpush.bf16.msrb.mxu3 %v7490_v51  ;;  %v11034_v51 = vld [vmem:[%s17698_s1 + $0x2ac] sm:$0xf]  ;;  %v7967_v45 = vld [vmem:[%s17698_s1 + $0x438] sm:$0xf0] }
  0x8f   : > { %1586 = vmatpush.bf16.msrb.mxu0 %v7726_v57  ;;  %v8031_v57 = vld [vmem:[%s17698_s1 + $0x4b8] sm:$0xf0]  ;;  %v11082_v44 = vld [vmem:[%s17698_s1 + $0x42c] sm:$0xf] }
  0x90   : > { %1599 = vmatpush.bf16.msrb.mxu1 %v7854_v58  ;;  %v7650_v58 = vor.u32 %v11002_v49, %v7647_v50  ;;  %v8034_v0 = vor.u32 %v11098_v56, %v8031_v57  ;;  %v7842_v49 = vor.u32 %v11050_v42, %v7839_v43  ;;  %v7567_v50 = vld [vmem:[%s17698_s1 + $0x118] sm:$0xf0]  ;;  %v11078_v56 = vld [vmem:[%s17698_s1 + $0x40c] sm:$0xf] }
  0x91   : > { %1612 = vmatpush.bf16.msrb.mxu2 %v7982_v59  ;;  %v7778_v59 = vor.u32 %v11034_v51, %v7775_v53  ;;  %v11014_v51 = vld [vmem:[%s17698_s1 + $0x20c] sm:$0xf]  ;;  %v7970_v53 = vor.u32 %v11082_v44, %v7967_v45  ;;  %v7951_v57 = vld [vmem:[%s17698_s1 + $0x418] sm:$0xf0]  ;;  %v8069_v45 = vld [vmem:[%s17700_s3] sm:$0xf] }
  0x92   : > { %1625 = vmatpush.bf16.msrb.mxu3 %v7474_v63  ;;  %v11030_v63 = vld [vmem:[%s17698_s1 + $0x28c] sm:$0xf] }
  0x93   : > { %1587 = vmatpush.bf16.msrb.mxu0 %v7710_v5  ;;  %v7634_v5 = vor.u32 %v10998_v61, %v7631_v62  ;;  %v8309_v61 = vld [vmem:[%s17700_s3 + $0x1e0] sm:$0xf]  ;;  %v11171_v62 = vld [vmem:[%s17700_s3 + $0x1ec] sm:$0xf0] }
  0x94   : > { %1600 = vmatpush.bf16.msrb.mxu1 %v7838_v8  ;;  %v10994_v8 = vld [vmem:[%s17698_s1 + $0x16c] sm:$0xf]  ;;  %v8310_v4 = vor.u32 %v11171_v62, %v8309_v61  ;;  %v11133_v61 = vld [vmem:[%s17700_s3 + $0xc4] sm:$0xf] }
  0x95   : > { %1613 = vmatpush.bf16.msrb.mxu2 %v7966_v9  ;;  %v7615_v9 = vld [vmem:[%s17698_s1 + $0x178] sm:$0xf0] }
  0x96   : > { %1626 = vmatpush.bf16.msrb.mxu3 %v7458_v13  ;;  %v11058_v13 = vld [vmem:[%s17698_s1 + $0x36c] sm:$0xf]  ;;  %v7618_v17 = vor.u32 %v10994_v8, %v7615_v9  ;;  %v8149_v8 = vld [vmem:[%s17700_s3 + $0xa0] sm:$0xf]  ;;  %v11131_v9 = vld [vmem:[%s17700_s3 + $0xac] sm:$0xf0] }
  0x97   : > { %1588 = vmatpush.bf16.msrb.mxu0 %v7694_v20  ;;  %v7874_v19 = vor.u32 %v11058_v13, %v7871_v14  ;;  %v10990_v20 = vld [vmem:[%s17698_s1 + $0x14c] sm:$0xf]  ;;  %v8150_v12 = vor.u32 %v11131_v9, %v8149_v8  ;;  %v8133_v13 = vld [vmem:[%s17700_s3 + $0x80] sm:$0xf] }
  0x98   : > { %1601 = vmatpush.bf16.msrb.mxu1 %v7822_v24  ;;  %v7727_v24 = vld [vmem:[%s17698_s1 + $0x258] sm:$0xf0]  ;;  %v8261_v14 = vld [vmem:[%s17700_s3 + $0x180] sm:$0xf] }
  0x99   : > { %1614 = vmatpush.bf16.msrb.mxu2 %v7950_v26  ;;  %v11054_v26 = vld [vmem:[%s17698_s1 + $0x34c] sm:$0xf] }
  0x9a   : > { %1627 = vmatpush.bf16.msrb.mxu3 %v7442_v29  ;;  %1589 = vmatmul.bf16.vlgmr.msrb.gmra.mxu0 %v12399_v38  ;;  %v7983_v29 = vld [vmem:[%s17698_s1 + $0x458] sm:$0xf0] }
  0x9b   : > { %1633 = vmatpush.bf16.msra.mxu0 %v7682_v30  ;;  %1602 = vmatmul.bf16.vlgmr.msrb.gmra.mxu1 %v12403_v39  ;;  %v7602_v30 = vor.u32 %v10990_v20, %v7599_v21  ;;  %v11155_v20 = vld [vmem:[%s17700_s3 + $0x16c] sm:$0xf0] }
  0x9c   : > { %1646 = vmatpush.bf16.msra.mxu1 %v7810_v31  ;;  %1615 = vmatmul.bf16.vlgmr.msrb.gmra.mxu2 %v12503_v25  ;;  %v7730_v31 = vor.u32 %v11022_v22, %v7727_v24  ;;  %v8101_v22 = vld [vmem:[%s17700_s3 + $0x40] sm:$0xf] }
  0x9d   : > { %1659 = vmatpush.bf16.msra.mxu2 %v7938_v32  ;;  %1628 = vmatmul.bf16.vlgmr.msrb.gmra.mxu3 %v12397_v36  ;;  %v7759_v36 = vld [vmem:[%s17698_s1 + $0x298] sm:$0xf0]  ;;  %v7858_v32 = vor.u32 %v11054_v26, %v7855_v27  ;;  %v8229_v26 = vld [vmem:[%s17700_s3 + $0x140] sm:$0xf]  ;;  %v11151_v27 = vld [vmem:[%s17700_s3 + $0x14c] sm:$0xf0] }
  0x9e   : > { %1672 = vmatpush.bf16.msra.mxu3 %v8066_v37  ;;  %v7762_v6 = vor.u32 %v11030_v63, %v7759_v36  ;;  %v7986_v37 = vor.u32 %v11086_v28, %v7983_v29  ;;  %v7954_v36 = vor.u32 %v11078_v56, %v7951_v57  ;;  %v13127_v28 = vld [vmem:[%s17699_s2] sm:$0xf]  ;;  %v11169_v57 = vld [vmem:[%s17700_s3 + $0x1e4] sm:$0xf] }
  0x9f   : > { %1634 = vmatpush.bf16.msra.mxu0 %v7666_v46  ;;  %v7586_v46 = vor.u32 %v10986_v33, %v7583_v34  ;;  %v8437_v33 = vld [vmem:[%s17700_s3 + $0x2e0] sm:$0xf]  ;;  %v11203_v34 = vld [vmem:[%s17700_s3 + $0x2ec] sm:$0xf0] }
  0xa0   : > { %1647 = vmatpush.bf16.msra.mxu1 %v7794_v47  ;;  %v10982_v47 = vld [vmem:[%s17698_s1 + $0x10c] sm:$0xf]  ;;  %v8438_v42 = vor.u32 %v11203_v34, %v8437_v33  ;;  %v11121_v33 = vld [vmem:[%s17700_s3 + $0x64] sm:$0xf]  ;;  %v8119_v34 = vld [vmem:[%s17700_s3 + $0x70] sm:$0xf0] }
  0xa1   : > { %1660 = vmatpush.bf16.msra.mxu2 %v7922_v48  ;;  %v7714_v48 = vor.u32 %v11018_v35, %v7711_v41  ;;  %v602_v35 = vperm.slane %v13127_v28, 0  ;;  %v11147_v41 = vld [vmem:[%s17700_s3 + $0x12c] sm:$0xf0] }
  0xa2   : > { %1673 = vmatpush.bf16.msra.mxu3 %v8050_v52  ;;  %v7695_v52 = vld [vmem:[%s17698_s1 + $0x218] sm:$0xf0] }
  0xa3   : > { %1635 = vmatpush.bf16.msra.mxu0 %v7650_v58  ;;  %v8181_v58 = vld [vmem:[%s17700_s3 + $0xe0] sm:$0xf]  ;;  %v7698_v63 = vor.u32 %v11014_v51, %v7695_v52  ;;  %v8183_v52 = vld [vmem:[%s17700_s3 + $0xf0] sm:$0xf0] }
  0xa4   : > { %1648 = vmatpush.bf16.msra.mxu1 %v7778_v59  ;;  %v11139_v59 = vld [vmem:[%s17700_s3 + $0xec] sm:$0xf0] }
  0xa5   : > { %1661 = vmatpush.bf16.msra.mxu2 %v7906_v60  ;;  %v7570_v60 = vor.u32 %v10982_v47, %v7567_v50  ;;  %v8182_v1 = vor.u32 %v11139_v59, %v8181_v58  ;;  %v11137_v47 = vld [vmem:[%s17700_s3 + $0xe4] sm:$0xf]  ;;  %v11199_v50 = vld [vmem:[%s17700_s3 + $0x2cc] sm:$0xf0]  ;;  %v8311_v58 = vld [vmem:[%s17700_s3 + $0x1f0] sm:$0xf0] }
  0xa6   : > { %1674 = vmatpush.bf16.msra.mxu3 %v8034_v0  ;;  %v7826_v0 = vor.u32 %v11046_v54, %v7823_v55  ;;  %v11143_v54 = vld [vmem:[%s17700_s3 + $0x10c] sm:$0xf0] }
  0xa7   : > { %1636 = vmatpush.bf16.msra.mxu0 %v7634_v5  ;;  %v8293_v5 = vld [vmem:[%s17700_s3 + $0x1c0] sm:$0xf] }
  0xa8   : > { %1649 = vmatpush.bf16.msra.mxu1 %v7762_v6  ;;  %v11167_v6 = vld [vmem:[%s17700_s3 + $0x1cc] sm:$0xf0] }
  0xa9   : > { %1662 = vmatpush.bf16.msra.mxu2 %v7890_v7  ;;  %v8166_v7 = vor.u32 %v11135_v3, %v8165_v2  ;;  %v8294_v10 = vor.u32 %v11167_v6, %v8293_v5  ;;  %v8405_v2 = vld [vmem:[%s17700_s3 + $0x2a0] sm:$0xf]  ;;  %v11195_v3 = vld [vmem:[%s17700_s3 + $0x2ac] sm:$0xf0]  ;;  %v11165_v5 = vld [vmem:[%s17700_s3 + $0x1c4] sm:$0xf] }
  0xaa   : > { %1675 = vmatpush.bf16.msra.mxu3 %v8018_v11  ;;  %v8277_v11 = vld [vmem:[%s17700_s3 + $0x1a0] sm:$0xf]  ;;  %v8295_v6 = vld [vmem:[%s17700_s3 + $0x1d0] sm:$0xf0] }
  0xab   : > { %1637 = vmatpush.bf16.msra.mxu0 %v7618_v17  ;;  %v11123_v17 = vld [vmem:[%s17700_s3 + $0x6c] sm:$0xf0] }
  0xac   : > { %1650 = vmatpush.bf16.msra.mxu1 %v7746_v18  ;;  %v8118_v21 = vor.u32 %v11123_v17, %v8117_v16 }
  0xad   : > { %1663 = vmatpush.bf16.msra.mxu2 %v7874_v19  ;;  %v8245_v19 = vld [vmem:[%s17700_s3 + $0x160] sm:$0xf] }
  0xae   : > { %1676 = vmatpush.bf16.msra.mxu3 %v8002_v23  ;;  %v11119_v23 = vld [vmem:[%s17700_s3 + $0x4c] sm:$0xf0]  ;;  %v8246_v24 = vor.u32 %v11155_v20, %v8245_v19  ;;  %v8135_v19 = vld [vmem:[%s17700_s3 + $0x90] sm:$0xf0] }
  0xaf   : > { %1638 = vmatpush.bf16.msra.mxu0 %v7602_v30  ;;  %v8102_v29 = vor.u32 %v11119_v23, %v8101_v22  ;;  %v8085_v30 = vld [vmem:[%s17700_s3 + $0x20] sm:$0xf]  ;;  %v11157_v22 = vld [vmem:[%s17700_s3 + $0x184] sm:$0xf] }
  0xb0   : > { %1651 = vmatpush.bf16.msra.mxu1 %v7730_v31  ;;  %v11115_v31 = vld [vmem:[%s17700_s3 + $0x2c] sm:$0xf0] }
  0xb1   : > { %1664 = vmatpush.bf16.msra.mxu2 %v7858_v32  ;;  %v8230_v32 = vor.u32 %v11151_v27, %v8229_v26  ;;  %v8086_v44 = vor.u32 %v11115_v31, %v8085_v30  ;;  %v8373_v26 = vld [vmem:[%s17700_s3 + $0x260] sm:$0xf]  ;;  %v11187_v27 = vld [vmem:[%s17700_s3 + $0x26c] sm:$0xf0] }
  0xb2   : > { %1677 = vmatpush.bf16.msra.mxu3 %v7986_v37  ;;  %v8213_v37 = vld [vmem:[%s17700_s3 + $0x120] sm:$0xf] }
  0xb3   : > { %1639 = vmatpush.bf16.msra.mxu0 %v7586_v46  ;;  %v11111_v46 = vld [vmem:[%s17700_s3 + $0xc] sm:$0xf0] }
  0xb4   : > { %1652 = vmatpush.bf16.msra.mxu1 %v7714_v48  ;;  %v8214_v48 = vor.u32 %v11147_v41, %v8213_v37  ;;  %v8070_v59 = vor.u32 %v11111_v46, %v8069_v45  ;;  %v11153_v37 = vld [vmem:[%s17700_s3 + $0x164] sm:$0xf] }
  0xb5   : > { %1665 = vmatpush.bf16.msra.mxu2 %v7842_v49  ;;  %v8421_v49 = vld [vmem:[%s17700_s3 + $0x2c0] sm:$0xf] }
  0xb6   : > { %1678 = vmatpush.bf16.msra.mxu3 %v7970_v53  ;;  %v8197_v53 = vld [vmem:[%s17700_s3 + $0x100] sm:$0xf]  ;;  %v8422_v55 = vor.u32 %v11199_v50, %v8421_v49  ;;  %v8103_v50 = vld [vmem:[%s17700_s3 + $0x50] sm:$0xf0] }
  0xb7   : > { %1640 = vmatpush.bf16.msra.mxu0 %v7570_v60  ;;  %v8186_v60 = vor.u32 %v11137_v47, %v8183_v52  ;;  %v8198_v62 = vor.u32 %v11143_v54, %v8197_v53  ;;  %v8122_v47 = vor.u32 %v11121_v33, %v8119_v34  ;;  %v8341_v52 = vld [vmem:[%s17700_s3 + $0x220] sm:$0xf]  ;;  %v11179_v53 = vld [vmem:[%s17700_s3 + $0x22c] sm:$0xf0]  ;;  %v11149_v54 = vld [vmem:[%s17700_s3 + $0x144] sm:$0xf] }
  0xb8   : > { %1653 = vmatpush.bf16.msra.mxu1 %v7698_v63  ;;  %v8167_v63 = vld [vmem:[%s17700_s3 + $0xd0] sm:$0xf0] }
  0xb9   : > { %1666 = vmatpush.bf16.msra.mxu2 %v7826_v0  ;;  %v8170_v9 = vor.u32 %v11133_v61, %v8167_v63  ;;  %v8087_v61 = vld [vmem:[%s17700_s3 + $0x30] sm:$0xf0] }
  0xba   : > { %1679 = vmatpush.bf16.msra.mxu3 %v7954_v36  ;;  %1641 = vmatmul.bf16.vlgmr.msra.gmra.mxu0 %v12405_v40  ;;  %v11163_v40 = vld [vmem:[%s17700_s3 + $0x1ac] sm:$0xf0]  ;;  %v8407_v33 = vld [vmem:[%s17700_s3 + $0x2b0] sm:$0xf0] }
  0xbb   : > { %2471 = vmatpush.bf16.msrb.mxu0 %v8182_v1  ;;  %1654 = vmatmul.bf16.vlgmr.msra.gmra.mxu1 %v12399_v38  ;;  %v11127_v38 = vld [vmem:[%s17700_s3 + $0x8c] sm:$0xf0]  ;;  %v8314_v1 = vor.u32 %v11169_v57, %v8311_v58 }
  0xbc   : > { %2484 = vmatpush.bf16.msrb.mxu1 %v8310_v4  ;;  %1667 = vmatmul.bf16.vlgmr.msra.gmra.mxu2 %v12403_v39  ;;  %v8278_v39 = vor.u32 %v11163_v40, %v8277_v11  ;;  %v8134_v15 = vor.u32 %v11127_v38, %v8133_v13  ;;  %v8151_v40 = vld [vmem:[%s17700_s3 + $0xb0] sm:$0xf0]  ;;  %v8389_v13 = vld [vmem:[%s17700_s3 + $0x280] sm:$0xf]  ;;  %v11191_v38 = vld [vmem:[%s17700_s3 + $0x28c] sm:$0xf0] }
  0xbd   : > { %1680 = vmatmul.bf16.vlgmr.msra.gmra.mxu3 %v12503_v25  ;;  %v11159_v25 = vld [vmem:[%s17700_s3 + $0x18c] sm:$0xf0]  ;;  %2497 = vmatpush.bf16.msrb.mxu2 %v8438_v42  ;;  %v8247_v42 = vld [vmem:[%s17700_s3 + $0x170] sm:$0xf0] }
  0xbe   : > { %v8262_v18 = vor.u32 %v11159_v25, %v8261_v14  ;;  %v11161_v14 = vld [vmem:[%s17700_s3 + $0x1a4] sm:$0xf]  ;;  %v8279_v25 = vld [vmem:[%s17700_s3 + $0x1b0] sm:$0xf0] }
  0xbf   : > { %2472 = vmatpush.bf16.msrb.mxu0 %v8166_v7  ;;  %v8406_v7 = vor.u32 %v11195_v3, %v8405_v2  ;;  %v11145_v3 = vld [vmem:[%s17700_s3 + $0x124] sm:$0xf] }
  0xc0   : > { %2485 = vmatpush.bf16.msrb.mxu1 %v8294_v10  ;;  %v11129_v10 = vld [vmem:[%s17700_s3 + $0xa4] sm:$0xf] }
  0xc1   : > { %2498 = vmatpush.bf16.msrb.mxu2 %v8422_v55  ;;  %v8154_v16 = vor.u32 %v11129_v10, %v8151_v40  ;;  %v8231_v55 = vld [vmem:[%s17700_s3 + $0x150] sm:$0xf0]  ;;  %v11140_v40 = vld [vmem:[%s17700_s3 + $0xf4] sm:$0xf0] }
  0xc2   : > { %v1434_v43 = vpop.f32.mrf.mxu0  ;;  %v8234_v63 = vor.u32 %v11149_v54, %v8231_v55  ;;  %v8071_v10 = vld [vmem:[%s17700_s3 + $0x10] sm:$0xf0]  ;;  %v11128_v54 = vld [vmem:[%s17700_s3 + $0x94] sm:$0xf0] }
  0xc3   : > { %2473 = vmatpush.bf16.msrb.mxu0 %v8150_v12  ;;  %v1435_v51 = vadd.f32 %v1434_v43, %v602_v35  ;;  %v8298_v12 = vor.u32 %v11165_v5, %v8295_v6  ;;  %v8357_v43 = vld [vmem:[%s17700_s3 + $0x240] sm:$0xf]  ;;  %v8439_v6 = vld [vmem:[%s17700_s3 + $0x2f0] sm:$0xf0] }
  0xc4   : > { %2486 = vmatpush.bf16.msrb.mxu1 %v8278_v39 }
  0xc5   : > { %2499 = vmatpush.bf16.msrb.mxu2 %v8406_v7  ;;  %v11109_v7 = vld [vmem:[%s17700_s3 + $0x4] sm:$0xf] }
  0xc6   : > { %v1447_v56 = vpop.f32.mrf.mxu1 }
  0xc7   : > { %2474 = vmatpush.bf16.msrb.mxu0 %v8134_v15  ;;  %v1448_v0 = vadd.f32 %v1447_v56, %v1435_v51  ;;  %v8390_v15 = vor.u32 %v11191_v38, %v8389_v13  ;;  %v8250_v51 = vor.u32 %v11153_v37, %v8247_v42  ;;  %v8342_v56 = vor.u32 %v11179_v53, %v8341_v52  ;;  %v8565_v13 = vld [vmem:[%s17700_s3 + $0x3e0] sm:$0xf]  ;;  %v11235_v38 = vld [vmem:[%s17700_s3 + $0x3ec] sm:$0xf0]  ;;  %v8157_v42 = vld [vmem:[%s17700_s3 + $0xa8] sm:$0xf] }
  0xc8   : > { %2487 = vmatpush.bf16.msrb.mxu1 %v8262_v18  ;;  %v11125_v18 = vld [vmem:[%s17700_s3 + $0x84] sm:$0xf]  ;;  %v8533_v37 = vld [vmem:[%s17700_s3 + $0x3a0] sm:$0xf]  ;;  %v11223_v53 = vld [vmem:[%s17700_s3 + $0x38c] sm:$0xf0] }
  0xc9   : > { %v1460_v36 = vpop.f32.mrf.mxu2  ;;  %2500 = vmatpush.bf16.msrb.mxu2 %v8390_v15  ;;  %v8138_v31 = vor.u32 %v11125_v18, %v8135_v19  ;;  %v8566_v15 = vor.u32 %v11235_v38, %v8565_v13  ;;  %v8517_v52 = vld [vmem:[%s17700_s3 + $0x380] sm:$0xf]  ;;  %v11120_v13 = vld [vmem:[%s17700_s3 + $0x54] sm:$0xf0] }
  0xca   : > { %v1473_v4 = vpop.f32.mrf.mxu3  ;;  %v1436_v8 = vpop.f32.mrf.mxu0  ;;  %v1461_v11 = vadd.f32 %v1460_v36, %v1448_v0  ;;  %v8325_v0 = vld [vmem:[%s17700_s3 + $0x200] sm:$0xf]  ;;  %v11175_v36 = vld [vmem:[%s17700_s3 + $0x20c] sm:$0xf0]  ;;  %v8518_v55 = vor.u32 %v11223_v53, %v8517_v52  ;;  %v8567_v52 = vld [vmem:[%s17700_s3 + $0x3f0] sm:$0xf0] }
  0xcb   : > { %2475 = vmatpush.bf16.msrb.mxu0 %v8118_v21  ;;  %v8282_v21 = vor.u32 %v11161_v14, %v8279_v25  ;;  %v8326_v5 = vor.u32 %v11175_v36, %v8325_v0  ;;  %v11141_v14 = vld [vmem:[%s17700_s3 + $0x104] sm:$0xf]  ;;  %v8199_v25 = vld [vmem:[%s17700_s3 + $0x110] sm:$0xf0]  ;;  %2510 = vmatpush.bf16.msrb.mxu3 %v8566_v15  ;;  %v8125_v36 = vld [vmem:[%s17700_s3 + $0x68] sm:$0xf] }
  0xcc   : > { %2488 = vmatpush.bf16.msrb.mxu1 %v8246_v24  ;;  %v1474_v17 = vadd.f32 %v1473_v4, %v1461_v11  ;;  %v8263_v24 = vld [vmem:[%s17700_s3 + $0x190] sm:$0xf0]  ;;  %v8189_v11 = vld [vmem:[%s17700_s3 + $0xe8] sm:$0xf] }
  0xcd   : > { %v8266_v35 = vor.u32 %v11157_v22, %v8263_v24  ;;  %v8215_v4 = vld [vmem:[%s17700_s3 + $0x130] sm:$0xf0]  ;;  %v8190_v22 = vor.u32 %v11140_v40, %v8189_v11  ;;  %v8549_v24 = vld [vmem:[%s17700_s3 + $0x3c0] sm:$0xf]  ;;  %v11215_v40 = vld [vmem:[%s17700_s3 + $0x34c] sm:$0xf0] }
  0xce   : > { %v1449_v39 = vpop.f32.mrf.mxu1  ;;  %v8485_v11 = vld [vmem:[%s17700_s3 + $0x340] sm:$0xf] }
  0xcf   : > { %2476 = vmatpush.bf16.msrb.mxu0 %v8102_v29  ;;  %v8374_v29 = vor.u32 %v11187_v27, %v8373_v26  ;;  %v11197_v39 = vld [vmem:[%s17700_s3 + $0x2c4] sm:$0xf]  ;;  %v11231_v26 = vld [vmem:[%s17700_s3 + $0x3cc] sm:$0xf0]  ;;  %v8173_v27 = vld [vmem:[%s17700_s3 + $0xc8] sm:$0xf]  ;;  %v8486_v38 = vor.u32 %v11215_v40, %v8485_v11 }
  0xd0   : > { %2489 = vmatpush.bf16.msrb.mxu1 %v8230_v32  ;;  %v8237_v40 = vld [vmem:[%s17700_s3 + $0x148] sm:$0xf] }
  0xd1   : > { %v1462_v20 = vpop.f32.mrf.mxu2  ;;  %2501 = vmatpush.bf16.msrb.mxu2 %v8374_v29  ;;  %v11136_v29 = vld [vmem:[%s17700_s3 + $0xd4] sm:$0xf0] }
  0xd2   : > { %v1475_v23 = vpop.f32.mrf.mxu3 }
  0xd3   : > { %2477 = vmatpush.bf16.msrb.mxu0 %v8086_v44  ;;  %v11183_v44 = vld [vmem:[%s17700_s3 + $0x24c] sm:$0xf0]  ;;  %v8202_v23 = vor.u32 %v11141_v14, %v8199_v25  ;;  %v11177_v14 = vld [vmem:[%s17700_s3 + $0x224] sm:$0xf]  ;;  %v8343_v25 = vld [vmem:[%s17700_s3 + $0x230] sm:$0xf0] }
  0xd4   : > { %2490 = vmatpush.bf16.msrb.mxu1 %v8214_v48  ;;  %v8358_v46 = vor.u32 %v11183_v44, %v8357_v43  ;;  %v11117_v48 = vld [vmem:[%s17700_s3 + $0x44] sm:$0xf]  ;;  %v11132_v43 = vld [vmem:[%s17700_s3 + $0xb4] sm:$0xf0] }
  0xd6   : > { %2502 = vmatpush.bf16.msrb.mxu2 %v8358_v46  ;;  %v11189_v46 = vld [vmem:[%s17700_s3 + $0x284] sm:$0xf] }
  0xd7   : > { %2478 = vmatpush.bf16.msrb.mxu0 %v8070_v59  ;;  %v1486_v30 = vpop.f32.mrf.mxu0  ;;  %v8106_v59 = vor.u32 %v11117_v48, %v8103_v50  ;;  %v8158_v50 = vor.u32 %v11132_v43, %v8157_v42  ;;  %v11112_v42 = vld [vmem:[%s17700_s3 + $0x14] sm:$0xf0]  ;;  %v8285_v43 = vld [vmem:[%s17700_s3 + $0x1a8] sm:$0xf] }
  0xd8   : > { %2491 = vmatpush.bf16.msrb.mxu1 %v8198_v62  ;;  %v1487_v32 = vadd.f32 %v1486_v30, %v1474_v17  ;;  %v13241_v41 = vpop.f32.mrf.mxu1  ;;  %v603_v17 = vperm.slane %v13127_v28, 1  ;;  %v8550_v30 = vor.u32 %v11231_v26, %v8549_v24 }
  0xda   : > { %v1685_v45 = vmax.f32 %v1487_v32, 0.0  ;;  %2503 = vmatpush.bf16.msrb.mxu2 %v8342_v56  ;;  %v11193_v32 = vld [vmem:[%s17700_s3 + $0x2a4] sm:$0xf]  ;;  %2511 = vmatpush.bf16.msrb.mxu3 %v8550_v30 }
  0xdb   : > { %2523 = vmatpush.bf16.msra.mxu0 %v8186_v60  ;;  %v11113_v60 = vld [vmem:[%s17700_s3 + $0x24] sm:$0xf]  ;;  %v8410_v34 = vor.u32 %v11193_v32, %v8407_v33  ;;  %v8327_v33 = vld [vmem:[%s17700_s3 + $0x210] sm:$0xf0] }
  0xdc   : > { %2536 = vmatpush.bf16.msra.mxu1 %v8314_v1  ;;  %v13255_v49 = vpack.c.bf16 %v1685_v45, %v1685_v45  ;;  %v11201_v1 = vld [vmem:[%s17700_s3 + $0x2e4] sm:$0xf] }
  0xdd   : > { %v8442_v8 = vor.u32 %v11201_v1, %v8439_v6  ;;  %v11185_v56 = vld [vmem:[%s17700_s3 + $0x264] sm:$0xf]  ;;  %v8317_v6 = vld [vmem:[%s17700_s3 + $0x1e8] sm:$0xf] }
  0xde   : > { %2479 = vmatmul.bf16.vlgmr.msrb.gmra.mxu0 %v13255_v49  ;;  %2504 = vmatpush.bf16.msrb.mxu2 %v8326_v5  ;;  %v8359_v5 = vld [vmem:[%s17700_s3 + $0x250] sm:$0xf0]  ;;  %v11173_v32 = vld [vmem:[%s17700_s3 + $0x204] sm:$0xf] }
  0xdf   : > { %2524 = vmatpush.bf16.msra.mxu0 %v8170_v9  ;;  %v13273_v57 = vpop.f32.mrf.mxu2  ;;  %v1488_v62 = vpop.f32.mrf.mxu0  ;;  %v8090_v9 = vor.u32 %v11113_v60, %v8087_v61 }
  0xe0   : > { %2537 = vmatpush.bf16.msra.mxu1 %v8298_v12  ;;  %v13275_v58 = vpop.f32.mrf.mxu3  ;;  %v1501_v2 = vpop.f32.mrf.mxu1  ;;  %v8218_v12 = vor.u32 %v11145_v3, %v8215_v4  ;;  %v8501_v62 = vld [vmem:[%s17700_s3 + $0x360] sm:$0xf]  ;;  %v11181_v4 = vld [vmem:[%s17700_s3 + $0x244] sm:$0xf] }
  0xe2   : > { %2549 = vmatpush.bf16.msra.mxu2 %v8442_v8 }
  0xe3   : > { %2525 = vmatpush.bf16.msra.mxu0 %v8154_v16  ;;  %v8423_v16 = vld [vmem:[%s17700_s3 + $0x2d0] sm:$0xf0] }
  0xe4   : > { %2538 = vmatpush.bf16.msra.mxu1 %v8282_v21  ;;  %v8426_v20 = vor.u32 %v11197_v39, %v8423_v16  ;;  %v8074_v21 = vor.u32 %v11109_v7, %v8071_v10  ;;  %v8362_v7 = vor.u32 %v11181_v4, %v8359_v5  ;;  %v11172_v10 = vld [vmem:[%s17700_s3 + $0x1f4] sm:$0xf0]  ;;  %v8346_v16 = vor.u32 %v11177_v14, %v8343_v25  ;;  %v8519_v14 = vld [vmem:[%s17700_s3 + $0x390] sm:$0xf0]  ;;  %v11126_v25 = vld [vmem:[%s17700_s3 + $0x8c] sm:$0xf] }
  0xe5   : > { %v8318_v15 = vor.u32 %v11172_v10, %v8317_v6  ;;  %v604_v4 = vperm.slane %v13127_v28, 2  ;;  %v11225_v6 = vld [vmem:[%s17700_s3 + $0x3a4] sm:$0xf] }
  0xe6   : > { %2550 = vmatpush.bf16.msra.mxu2 %v8426_v20  ;;  %v8301_v20 = vld [vmem:[%s17700_s3 + $0x1c8] sm:$0xf] }
  0xe7   : > { %2526 = vmatpush.bf16.msra.mxu0 %v8138_v31  ;;  %v1514_v18 = vpop.f32.mrf.mxu2  ;;  %v1500_v31 = vadd.f32 %v13241_v41, %v603_v17  ;;  %v11227_v41 = vld [vmem:[%s17700_s3 + $0x3ac] sm:$0xf0] }
  0xe8   : > { %2539 = vmatpush.bf16.msra.mxu1 %v8266_v35  ;;  %v1527_v19 = vpop.f32.mrf.mxu3  ;;  %v8174_v35 = vor.u32 %v11136_v29, %v8173_v27  ;;  %v8534_v44 = vor.u32 %v11227_v41, %v8533_v37  ;;  %v8469_v27 = vld [vmem:[%s17700_s3 + $0x320] sm:$0xf]  ;;  %v11211_v29 = vld [vmem:[%s17700_s3 + $0x32c] sm:$0xf0]  ;;  %v8330_v37 = vor.u32 %v11173_v32, %v8327_v33  ;;  %v8205_v33 = vld [vmem:[%s17700_s3 + $0x108] sm:$0xf] }
  0xe9   : > { %v1513_v45 = vadd.f32 %v13273_v57, %v1500_v31  ;;  %v8375_v57 = vld [vmem:[%s17700_s3 + $0x270] sm:$0xf0]  ;;  %v8093_v19 = vld [vmem:[%s17700_s3 + $0x28] sm:$0xf]  ;;  %v8470_v31 = vor.u32 %v11211_v29, %v8469_v27  ;;  %v11122_v27 = vld [vmem:[%s17700_s3 + $0x6c] sm:$0xf] }
  0xea   : > { %2551 = vmatpush.bf16.msra.mxu2 %v8410_v34  ;;  %2512 = vmatpush.bf16.msrb.mxu3 %v8534_v44  ;;  %v8378_v60 = vor.u32 %v11185_v56, %v8375_v57  ;;  %v11164_v44 = vld [vmem:[%s17700_s3 + $0x1b4] sm:$0xf0]  ;;  %v8269_v56 = vld [vmem:[%s17700_s3 + $0x188] sm:$0xf]  ;;  %v8127_v29 = vld [vmem:[%s17700_s3 + $0x78] sm:$0xf0] }
  0xeb   : > { %2527 = vmatpush.bf16.msra.mxu0 %v8122_v47  ;;  %v8391_v47 = vld [vmem:[%s17700_s3 + $0x290] sm:$0xf0]  ;;  %v8286_v53 = vor.u32 %v11164_v44, %v8285_v43  ;;  %v11160_v57 = vld [vmem:[%s17700_s3 + $0x194] sm:$0xf0]  ;;  %v11213_v43 = vld [vmem:[%s17700_s3 + $0x344] sm:$0xf] }
  0xec   : > { %2540 = vmatpush.bf16.msra.mxu1 %v8250_v51  ;;  %v8394_v48 = vor.u32 %v11189_v46, %v8391_v47  ;;  %v8141_v51 = vld [vmem:[%s17700_s3 + $0x88] sm:$0xf]  ;;  %v11207_v46 = vld [vmem:[%s17700_s3 + $0x30c] sm:$0xf0]  ;;  %v11233_v47 = vld [vmem:[%s17700_s3 + $0x3e4] sm:$0xf] }
  0xed   : > { %v8142_v61 = vor.u32 %v11128_v54, %v8141_v51  ;;  %v8570_v54 = vor.u32 %v11233_v47, %v8567_v52  ;;  %v8487_v44 = vld [vmem:[%s17700_s3 + $0x350] sm:$0xf0]  ;;  %v8445_v52 = vld [vmem:[%s17700_s3 + $0x2e8] sm:$0xf] }
  0xee   : > { %2552 = vmatpush.bf16.msra.mxu2 %v8394_v48  ;;  %2513 = vmatpush.bf16.msrb.mxu3 %v8518_v55  ;;  %v11138_v48 = vld [vmem:[%s17700_s3 + $0xec] sm:$0xf]  ;;  %v8490_v47 = vor.u32 %v11213_v43, %v8487_v44  ;;  %v8223_v43 = vld [vmem:[%s17700_s3 + $0x138] sm:$0xf0]  ;;  %v8365_v44 = vld [vmem:[%s17700_s3 + $0x248] sm:$0xf] }
  0xef   : > { %2528 = vmatpush.bf16.msra.mxu0 %v8106_v59  ;;  %v1526_v59 = vadd.f32 %v13275_v58, %v1513_v45  ;;  %v11124_v58 = vld [vmem:[%s17700_s3 + $0x74] sm:$0xf0]  ;;  %v8453_v45 = vld [vmem:[%s17700_s3 + $0x300] sm:$0xf] }
  0xf0   : > { %2541 = vmatpush.bf16.msra.mxu1 %v8234_v63  ;;  %v11219_v63 = vld [vmem:[%s17700_s3 + $0x36c] sm:$0xf0]  ;;  %v8454_v51 = vor.u32 %v11207_v46, %v8453_v45  ;;  %v11118_v45 = vld [vmem:[%s17700_s3 + $0x4c] sm:$0xf]  ;;  %v8111_v46 = vld [vmem:[%s17700_s3 + $0x58] sm:$0xf0] }
  0xf1   : > { %v8502_v1 = vor.u32 %v11219_v63, %v8501_v62  ;;  %v11229_v62 = vld [vmem:[%s17700_s3 + $0x3c4] sm:$0xf]  ;;  %v8551_v63 = vld [vmem:[%s17700_s3 + $0x3d0] sm:$0xf0] }
  0xf2   : > { %2553 = vmatpush.bf16.msra.mxu2 %v8378_v60 }
  0xf3   : > { %2529 = vmatpush.bf16.msra.mxu0 %v8090_v9  ;;  %2514 = vmatpush.bf16.msrb.mxu3 %v8502_v1  ;;  %v8126_v9 = vor.u32 %v11124_v58, %v8125_v36  ;;  %v8175_v36 = vld [vmem:[%s17700_s3 + $0xd8] sm:$0xf0]  ;;  %v8554_v58 = vor.u32 %v11229_v62, %v8551_v63  ;;  %v8270_v1 = vor.u32 %v11160_v57, %v8269_v56  ;;  %v11209_v57 = vld [vmem:[%s17700_s3 + $0x324] sm:$0xf]  ;;  %v11114_v62 = vld [vmem:[%s17700_s3 + $0x2c] sm:$0xf] }
  0xf4   : > { %2542 = vmatpush.bf16.msra.mxu1 %v8218_v12  ;;  %v8109_v12 = vld [vmem:[%s17700_s3 + $0x48] sm:$0xf]  ;;  %v8303_v56 = vld [vmem:[%s17700_s3 + $0x1d8] sm:$0xf0] }
  0xf5   : > { %v8110_v18 = vor.u32 %v11120_v13, %v8109_v12  ;;  %v11152_v12 = vld [vmem:[%s17700_s3 + $0x154] sm:$0xf0]  ;;  %v8095_v63 = vld [vmem:[%s17700_s3 + $0x38] sm:$0xf0] }
  0xf6   : > { %2554 = vmatpush.bf16.msra.mxu2 %v8362_v7  ;;  %v8535_v7 = vld [vmem:[%s17700_s3 + $0x3b0] sm:$0xf0] }
  0xf7   : > { %2530 = vmatpush.bf16.msra.mxu0 %v8074_v21  ;;  %v1538_v0 = vpop.f32.mrf.mxu0  ;;  %2515 = vmatpush.bf16.msrb.mxu3 %v8486_v38  ;;  %v11168_v21 = vld [vmem:[%s17700_s3 + $0x1d4] sm:$0xf0]  ;;  %v8538_v10 = vor.u32 %v11225_v6, %v8535_v7  ;;  %v8098_v7 = vor.u32 %v11114_v62, %v8095_v63  ;;  %v11202_v63 = vld [vmem:[%s17700_s3 + $0x2ec] sm:$0xf] }
  0xf8   : > { %2543 = vmatpush.bf16.msra.mxu1 %v8202_v23  ;;  %v1539_v2 = vadd.f32 %v1538_v0, %v1526_v59  ;;  %v1551_v3 = vpop.f32.mrf.mxu1  ;;  %v11116_v23 = vld [vmem:[%s17700_s3 + $0x34] sm:$0xf0]  ;;  %v8302_v34 = vor.u32 %v11168_v21, %v8301_v20  ;;  %v11134_v0 = vld [vmem:[%s17700_s3 + $0xcc] sm:$0xf] }
  0xf9   : > { %v8094_v41 = vor.u32 %v11116_v23, %v8093_v19  ;;  %v8178_v5 = vor.u32 %v11134_v0, %v8175_v36  ;;  %v8221_v19 = vld [vmem:[%s17700_s3 + $0x128] sm:$0xf]  ;;  %v11148_v20 = vld [vmem:[%s17700_s3 + $0x134] sm:$0xf0]  ;;  %v11217_v23 = vld [vmem:[%s17700_s3 + $0x364] sm:$0xf] }
  0xfa   : > { %2531 = vmatmul.bf16.vlgmr.msra.gmra.mxu0 %v13255_v49  ;;  %v1552_v8 = vadd.f32 %v1551_v3, %v1539_v2  ;;  %2555 = vmatpush.bf16.msra.mxu2 %v8346_v16  ;;  %v8253_v2 = vld [vmem:[%s17700_s3 + $0x168] sm:$0xf]  ;;  %v11156_v3 = vld [vmem:[%s17700_s3 + $0x174] sm:$0xf0] }
  0xfb   : > { %2575 = vmatpush.bf16.msrb.mxu0 %v8190_v22  ;;  %2516 = vmatpush.bf16.msrb.mxu3 %v8470_v31  ;;  %v8254_v11 = vor.u32 %v11156_v3, %v8253_v2 }
  0xfc   : > { %v1686_v39 = vmax.f32 %v1552_v8, 0.0  ;;  %v11130_v8 = vld [vmem:[%s17700_s3 + $0xac] sm:$0xf] }
  0xfe   : > { %v13432_v17 = vpack.c.bf16 %v1686_v39, %v1686_v39  ;;  %2556 = vmatpush.bf16.msra.mxu2 %v8330_v37  ;;  %v11221_v39 = vld [vmem:[%s17700_s3 + $0x384] sm:$0xf] }
  0xff   : > { %2576 = vmatpush.bf16.msrb.mxu0 %v8174_v35  ;;  %v13443_v22 = vpop.f32.mrf.mxu2  ;;  %v1540_v24 = vpop.f32.mrf.mxu0  ;;  %v8077_v35 = vld [vmem:[%s17700_s3 + $0x8] sm:$0xf]  ;;  %2517 = vmatpush.bf16.msrb.mxu3 %v8454_v51  ;;  %v8522_v16 = vor.u32 %v11221_v39, %v8519_v14 }
 0x100   : > { %v13448_v26 = vpop.f32.mrf.mxu3  ;;  %2492 = vmatmul.bf16.vlgmr.msrb.gmra.mxu1 %v13432_v17  ;;  %v1553_v30 = vpop.f32.mrf.mxu1  ;;  %v8078_v55 = vor.u32 %v11112_v42, %v8077_v35  ;;  %v1565_v13 = vadd.f32 %v13443_v22, %v604_v4  ;;  %v8503_v24 = vld [vmem:[%s17700_s3 + $0x370] sm:$0xf0]  ;;  %v11170_v35 = vld [vmem:[%s17700_s3 + $0x1ec] sm:$0xf]  ;;  %v8319_v42 = vld [vmem:[%s17700_s3 + $0x1f8] sm:$0xf0] }
 0x101   : > { %2588 = vmatpush.bf16.msrb.mxu1 %v8318_v15  ;;  %v8143_v15 = vld [vmem:[%s17700_s3 + $0x98] sm:$0xf0]  ;;  %v8222_v30 = vor.u32 %v11148_v20, %v8221_v19  ;;  %v8322_v51 = vor.u32 %v11170_v35, %v8319_v42  ;;  %v8429_v4 = vld [vmem:[%s17700_s3 + $0x2c8] sm:$0xf]  ;;  %v11196_v20 = vld [vmem:[%s17700_s3 + $0x2b4] sm:$0xf0] }
 0x102   : > { %v1578_v21 = vadd.f32 %v13448_v26, %v1565_v13  ;;  %v8146_v22 = vor.u32 %v11126_v25, %v8143_v15  ;;  %v8506_v26 = vor.u32 %v11217_v23, %v8503_v24  ;;  %v8079_v13 = vld [vmem:[%s17700_s3 + $0x18] sm:$0xf0]  ;;  %v8413_v19 = vld [vmem:[%s17700_s3 + $0x2a8] sm:$0xf]  ;;  %v11154_v24 = vld [vmem:[%s17700_s3 + $0x16c] sm:$0xf] }
 0x103   : > { %2577 = vmatpush.bf16.msrb.mxu0 %v8158_v50  ;;  %v8191_v50 = vld [vmem:[%s17700_s3 + $0xf8] sm:$0xf0]  ;;  %2562 = vmatpush.bf16.msra.mxu3 %v8570_v54  ;;  %v8414_v23 = vor.u32 %v11196_v20, %v8413_v19  ;;  %v605_v35 = vperm.slane %v13127_v28, 3  ;;  %v11146_v42 = vld [vmem:[%s17700_s3 + $0x12c] sm:$0xf] }
 0x104   : > { %v8194_v60 = vor.u32 %v11138_v48, %v8191_v50  ;;  %v11184_v28 = vld [vmem:[%s17700_s3 + $0x254] sm:$0xf0]  ;;  %v8541_v19 = vld [vmem:[%s17700_s3 + $0x3a8] sm:$0xf] }
 0x105   : > { %2589 = vmatpush.bf16.msrb.mxu1 %v8302_v34  ;;  %v11144_v34 = vld [vmem:[%s17700_s3 + $0x114] sm:$0xf0] }
 0x106   : > { %v8206_v50 = vor.u32 %v11144_v34, %v8205_v33  ;;  %v8239_v33 = vld [vmem:[%s17700_s3 + $0x158] sm:$0xf0]  ;;  %v8381_v34 = vld [vmem:[%s17700_s3 + $0x268] sm:$0xf]  ;;  %v11228_v20 = vld [vmem:[%s17700_s3 + $0x3b4] sm:$0xf0] }
 0x107   : > { %2578 = vmatpush.bf16.msrb.mxu0 %v8142_v61  ;;  %v1566_v59 = vpop.f32.mrf.mxu2  ;;  %2563 = vmatpush.bf16.msra.mxu3 %v8554_v58 }
 0x108   : > { %v1579_v61 = vpop.f32.mrf.mxu3  ;;  %v8471_v59 = vld [vmem:[%s17700_s3 + $0x330] sm:$0xf0] }
 0x109   : > { %2590 = vmatpush.bf16.msrb.mxu1 %v8286_v53  ;;  %v11166_v53 = vld [vmem:[%s17700_s3 + $0x1cc] sm:$0xf]  ;;  %v11204_v61 = vld [vmem:[%s17700_s3 + $0x2f4] sm:$0xf0]  ;;  %v8474_v0 = vor.u32 %v11209_v57, %v8471_v59 }
 0x10a   : > { %v8446_v6 = vor.u32 %v11204_v61, %v8445_v52  ;;  %v8207_v52 = vld [vmem:[%s17700_s3 + $0x118] sm:$0xf0]  ;;  %v11176_v61 = vld [vmem:[%s17700_s3 + $0x214] sm:$0xf0] }
 0x10b   : > { %2579 = vmatpush.bf16.msrb.mxu0 %v8126_v9  ;;  %v8159_v9 = vld [vmem:[%s17700_s3 + $0xb8] sm:$0xf0]  ;;  %2564 = vmatpush.bf16.msra.mxu3 %v8538_v10  ;;  %v8455_v10 = vld [vmem:[%s17700_s3 + $0x310] sm:$0xf0] }
 0x10c   : > { %v8162_v38 = vor.u32 %v11130_v8, %v8159_v9  ;;  %v8287_v8 = vld [vmem:[%s17700_s3 + $0x1b8] sm:$0xf0]  ;;  %v11205_v9 = vld [vmem:[%s17700_s3 + $0x304] sm:$0xf] }
 0x10d   : > { %2591 = vmatpush.bf16.msrb.mxu1 %v8270_v1  ;;  %v8306_v1 = vor.u32 %v11166_v53, %v8303_v56 }
 0x10f   : > { %2580 = vmatpush.bf16.msrb.mxu0 %v8110_v18  ;;  %v8238_v18 = vor.u32 %v11152_v12, %v8237_v40  ;;  %2565 = vmatpush.bf16.msra.mxu3 %v8522_v16  ;;  %v11200_v40 = vld [vmem:[%s17700_s3 + $0x2d4] sm:$0xf0]  ;;  %v11110_v12 = vld [vmem:[%s17700_s3 + $0xc] sm:$0xf] }
 0x110   : > { %2544 = vmatmul.bf16.vlgmr.msra.gmra.mxu1 %v13432_v17  ;;  %v8430_v14 = vor.u32 %v11200_v40, %v8429_v4  ;;  %v8082_v25 = vor.u32 %v11110_v12, %v8079_v13  ;;  %v11158_v16 = vld [vmem:[%s17700_s3 + $0x18c] sm:$0xf] }
 0x111   : > { %2592 = vmatpush.bf16.msrb.mxu1 %v8254_v11 }
 0x113   : > { %2581 = vmatpush.bf16.msrb.mxu0 %v8094_v41  ;;  %v8130_v41 = vor.u32 %v11122_v27, %v8127_v29  ;;  %2566 = vmatpush.bf16.msra.mxu3 %v8506_v26  ;;  %v8255_v27 = vld [vmem:[%s17700_s3 + $0x178] sm:$0xf0]  ;;  %v8397_v29 = vld [vmem:[%s17700_s3 + $0x288] sm:$0xf]  ;;  %v11192_v26 = vld [vmem:[%s17700_s3 + $0x294] sm:$0xf0] }
 0x115   : > { %2593 = vmatpush.bf16.msrb.mxu1 %v8238_v18  ;;  %v8271_v18 = vld [vmem:[%s17700_s3 + $0x198] sm:$0xf0] }
 0x117   : > { %2582 = vmatpush.bf16.msrb.mxu0 %v8078_v55  ;;  %v1590_v31 = vpop.f32.mrf.mxu0  ;;  %v8114_v55 = vor.u32 %v11118_v45, %v8111_v46  ;;  %2567 = vmatpush.bf16.msra.mxu3 %v8490_v47  ;;  %v8226_v47 = vor.u32 %v11146_v42, %v8223_v43  ;;  %v8493_v42 = vld [vmem:[%s17700_s3 + $0x348] sm:$0xf]  ;;  %v11216_v43 = vld [vmem:[%s17700_s3 + $0x354] sm:$0xf0] }
 0x118   : > { %v1603_v32 = vpop.f32.mrf.mxu1  ;;  %v1591_v37 = vadd.f32 %v1590_v31, %v1578_v21  ;;  %v8398_v31 = vor.u32 %v11192_v26, %v8397_v29  ;;  %v11224_v29 = vld [vmem:[%s17700_s3 + $0x394] sm:$0xf0]  ;;  %v11186_v26 = vld [vmem:[%s17700_s3 + $0x26c] sm:$0xf] }
 0x119   : > { %2594 = vmatpush.bf16.msrb.mxu1 %v8222_v30  ;;  %v8258_v30 = vor.u32 %v11154_v24, %v8255_v27  ;;  %v8525_v27 = vld [vmem:[%s17700_s3 + $0x388] sm:$0xf] }
 0x11a   : > { %2583 = vmatmul.bf16.vlgmr.msrb.gmra.mxu0 %v13255_v49  ;;  %v1604_v48 = vadd.f32 %v1603_v32, %v1591_v37  ;;  %v11150_v32 = vld [vmem:[%s17700_s3 + $0x14c] sm:$0xf] }
 0x11b   : > { %2627 = vmatpush.bf16.msra.mxu0 %v8194_v60  ;;  %2568 = vmatpush.bf16.msra.mxu3 %v8474_v0  ;;  %v8242_v37 = vor.u32 %v11150_v32, %v8239_v33  ;;  %v8447_v0 = vld [vmem:[%s17700_s3 + $0x2f8] sm:$0xf0]  ;;  %v8509_v33 = vld [vmem:[%s17700_s3 + $0x368] sm:$0xf] }
 0x11d   : > { %2595 = vmatpush.bf16.msrb.mxu1 %v8206_v50  ;;  %v8366_v50 = vor.u32 %v11184_v28, %v8365_v44  ;;  %v11178_v44 = vld [vmem:[%s17700_s3 + $0x22c] sm:$0xf]  ;;  %v8351_v28 = vld [vmem:[%s17700_s3 + $0x238] sm:$0xf0] }
 0x11f   : > { %2628 = vmatpush.bf16.msra.mxu0 %v8178_v5  ;;  %v1616_v54 = vpop.f32.mrf.mxu2  ;;  %v1592_v2 = vpop.f32.mrf.mxu0  ;;  %v11162_v5 = vld [vmem:[%s17700_s3 + $0x1ac] sm:$0xf] }
 0x120   : > { %v1617_v60 = vadd.f32 %v1616_v54, %v1604_v48  ;;  %v1629_v36 = vpop.f32.mrf.mxu3  ;;  %v1605_v3 = vpop.f32.mrf.mxu1  ;;  %2596 = vmatmul.bf16.vlgmr.msrb.gmra.mxu1 %v13432_v17  ;;  %v8290_v39 = vor.u32 %v11162_v5, %v8287_v8  ;;  %v8349_v54 = vld [vmem:[%s17700_s3 + $0x228] sm:$0xf]  ;;  %v8450_v5 = vor.u32 %v11202_v63, %v8447_v0  ;;  %v11198_v8 = vld [vmem:[%s17700_s3 + $0x2cc] sm:$0xf]  ;;  %v8559_v63 = vld [vmem:[%s17700_s3 + $0x3d8] sm:$0xf0] }
 0x121   : > { %2640 = vmatpush.bf16.msra.mxu1 %v8322_v51  ;;  %v1630_v45 = vadd.f32 %v1629_v36, %v605_v35  ;;  %v11142_v51 = vld [vmem:[%s17700_s3 + $0x10c] sm:$0xf]  ;;  %v8367_v35 = vld [vmem:[%s17700_s3 + $0x258] sm:$0xf0] }
 0x122   : > { %v1687_v58 = vmax.f32 %v1617_v60, 0.0  ;;  %v8210_v56 = vor.u32 %v11142_v51, %v8207_v52  ;;  %v8333_v60 = vld [vmem:[%s17700_s3 + $0x208] sm:$0xf]  ;;  %v8335_v51 = vld [vmem:[%s17700_s3 + $0x218] sm:$0xf0] }
 0x123   : > { %2629 = vmatpush.bf16.msra.mxu0 %v8162_v38  ;;  %v8458_v38 = vor.u32 %v11205_v9, %v8455_v10  ;;  %v8334_v3 = vor.u32 %v11176_v61, %v8333_v60  ;;  %v8431_v9 = vld [vmem:[%s17700_s3 + $0x2d8] sm:$0xf0] }
 0x124   : > { %v13633_v11 = vpack.c.bf16 %v1687_v58, %v1687_v58  ;;  %v8434_v13 = vor.u32 %v11198_v8, %v8431_v9  ;;  %v11214_v9 = vld [vmem:[%s17700_s3 + $0x34c] sm:$0xf] }
 0x125   : > { %2641 = vmatpush.bf16.msra.mxu1 %v8306_v1  ;;  %2569 = vmatpush.bf16.msra.mxu3 %v8458_v38  ;;  %v8557_v38 = vld [vmem:[%s17700_s3 + $0x3c8] sm:$0xf] }
 0x126   : > { %2505 = vmatmul.bf16.vlgmr.msrb.gmra.mxu2 %v13633_v11 }
 0x127   : > { %2630 = vmatpush.bf16.msra.mxu0 %v8146_v22  ;;  %2601 = vmatpush.bf16.msrb.mxu2 %v8446_v6  ;;  %v1618_v15 = vpop.f32.mrf.mxu2  ;;  %v8274_v22 = vor.u32 %v11158_v16, %v8271_v18  ;;  %v8573_v6 = vld [vmem:[%s17700_s3 + $0x3e8] sm:$0xf] }
 0x128   : > { %v1631_v21 = vpop.f32.mrf.mxu3 }
 0x129   : > { %2642 = vmatpush.bf16.msra.mxu1 %v8290_v39  ;;  %v11190_v21 = vld [vmem:[%s17700_s3 + $0x28c] sm:$0xf] }
 0x12b   : > { %2631 = vmatpush.bf16.msra.mxu0 %v8130_v41  ;;  %2602 = vmatpush.bf16.msrb.mxu2 %v8430_v14  ;;  %v11194_v14 = vld [vmem:[%s17700_s3 + $0x2ac] sm:$0xf] }
 0x12d   : > { %2643 = vmatpush.bf16.msra.mxu1 %v8274_v22  ;;  %v8399_v22 = vld [vmem:[%s17700_s3 + $0x298] sm:$0xf0] }
 0x12e   : > { %v8402_v24 = vor.u32 %v11190_v21, %v8399_v22  ;;  %v8463_v22 = vld [vmem:[%s17700_s3 + $0x318] sm:$0xf0] }
 0x12f   : > { %2632 = vmatpush.bf16.msra.mxu0 %v8114_v55  ;;  %2603 = vmatpush.bf16.msrb.mxu2 %v8414_v23  ;;  %v11180_v55 = vld [vmem:[%s17700_s3 + $0x234] sm:$0xf0]  ;;  %v8542_v23 = vor.u32 %v11228_v20, %v8541_v19  ;;  %v11206_v20 = vld [vmem:[%s17700_s3 + $0x30c] sm:$0xf] }
 0x130   : > { %v8350_v57 = vor.u32 %v11180_v55, %v8349_v54  ;;  %v8461_v54 = vld [vmem:[%s17700_s3 + $0x308] sm:$0xf]  ;;  %v11208_v55 = vld [vmem:[%s17700_s3 + $0x314] sm:$0xf0] }
 0x131   : > { %2644 = vmatpush.bf16.msra.mxu1 %v8258_v30  ;;  %v8383_v30 = vld [vmem:[%s17700_s3 + $0x278] sm:$0xf0] }
 0x132   : > { %v8386_v32 = vor.u32 %v11186_v26, %v8383_v30  ;;  %v8466_v26 = vor.u32 %v11206_v20, %v8463_v22  ;;  %v8709_v30 = vld [vmem:[%s17702_s5 + $0x100] sm:$0xf]  ;;  %v11277_v20 = vld [vmem:[%s17702_s5 + $0x144] sm:$0xf] }
 0x133   : > { %2633 = vmatpush.bf16.msra.mxu0 %v8098_v7  ;;  %2604 = vmatpush.bf16.msrb.mxu2 %v8398_v31  ;;  %v11236_v7 = vld [vmem:[%s17700_s3 + $0x3f4] sm:$0xf0]  ;;  %v8526_v31 = vor.u32 %v11224_v29, %v8525_v27 }
 0x134   : > { %v8574_v40 = vor.u32 %v11236_v7, %v8573_v6  ;;  %v8511_v6 = vld [vmem:[%s17700_s3 + $0x378] sm:$0xf0] }
 0x135   : > { %2645 = vmatpush.bf16.msra.mxu1 %v8242_v37 }
 0x136   : > { %2557 = vmatmul.bf16.vlgmr.msra.gmra.mxu2 %v13633_v11 }
 0x137   : > { %2634 = vmatpush.bf16.msra.mxu0 %v8082_v25  ;;  %v1642_v46 = vpop.f32.mrf.mxu0  ;;  %v8415_v25 = vld [vmem:[%s17700_s3 + $0x2b8] sm:$0xf0] }
 0x138   : > { %v1655_v48 = vpop.f32.mrf.mxu1  ;;  %v1643_v53 = vadd.f32 %v1642_v46, %v1630_v45  ;;  %v8418_v18 = vor.u32 %v11194_v14, %v8415_v25  ;;  %v8494_v45 = vor.u32 %v11216_v43, %v8493_v42  ;;  %v8354_v46 = vor.u32 %v11178_v44, %v8351_v28  ;;  %v8773_v25 = vld [vmem:[%s17702_s5 + $0x180] sm:$0xf] }
 0x139   : > { %2646 = vmatpush.bf16.msra.mxu1 %v8226_v47  ;;  %v8477_v47 = vld [vmem:[%s17700_s3 + $0x328] sm:$0xf]  ;;  %v11361_v43 = vld [vmem:[%s17702_s5 + $0x3dc] sm:$0xf0] }
 0x13a   : > { %2635 = vmatmul.bf16.vlgmr.msra.gmra.mxu0 %v13255_v49  ;;  %v11188_v49 = vld [vmem:[%s17700_s3 + $0x274] sm:$0xf0]  ;;  %v1656_v59 = vadd.f32 %v1655_v48, %v1643_v53  ;;  %v8645_v28 = vld [vmem:[%s17702_s5 + $0x80] sm:$0xf] }
 0x13b   : > { %v8382_v41 = vor.u32 %v11188_v49, %v8381_v34  ;;  %v11220_v34 = vld [vmem:[%s17700_s3 + $0x374] sm:$0xf0]  ;;  %v11182_v49 = vld [vmem:[%s17700_s3 + $0x24c] sm:$0xf] }
 0x13c   : > { %v8510_v37 = vor.u32 %v11220_v34, %v8509_v33  ;;  %v11212_v48 = vld [vmem:[%s17700_s3 + $0x334] sm:$0xf0] }
 0x13d   : > { %2605 = vmatpush.bf16.msrb.mxu2 %v8382_v41  ;;  %2647 = vmatpush.bf16.msra.mxu1 %v8210_v56  ;;  %v8370_v41 = vor.u32 %v11182_v49, %v8367_v35  ;;  %v8478_v52 = vor.u32 %v11212_v48, %v8477_v47  ;;  %v11234_v56 = vld [vmem:[%s17700_s3 + $0x3ec] sm:$0xf]  ;;  %v8677_v35 = vld [vmem:[%s17702_s5 + $0xc0] sm:$0xf] }
 0x13e   : > { %v11353_v48 = vld [vmem:[%s17702_s5 + $0x39c] sm:$0xf0] }
 0x13f   : > { %v1668_v62 = vpop.f32.mrf.mxu2  ;;  %v1644_v1 = vpop.f32.mrf.mxu0 }
 0x140   : > { %v1669_v36 = vadd.f32 %v1668_v62, %v1656_v59  ;;  %v1681_v58 = vpop.f32.mrf.mxu3  ;;  %v1657_v2 = vpop.f32.mrf.mxu1  ;;  %2648 = vmatmul.bf16.vlgmr.msra.gmra.mxu1 %v13432_v17  ;;  %v11232_v17 = vld [vmem:[%s17700_s3 + $0x3d4] sm:$0xf0]  ;;  %v8462_v59 = vor.u32 %v11208_v55, %v8461_v54  ;;  %v11230_v62 = vld [vmem:[%s17700_s3 + $0x3cc] sm:$0xf]  ;;  %v8997_v54 = vld [vmem:[%s17702_s5 + $0x340] sm:$0xf] }
 0x141   : > { %2606 = vmatpush.bf16.msrb.mxu2 %v8366_v50  ;;  %v8558_v16 = vor.u32 %v11232_v17, %v8557_v38  ;;  %v11174_v50 = vld [vmem:[%s17700_s3 + $0x20c] sm:$0xf]  ;;  %v8562_v0 = vor.u32 %v11230_v62, %v8559_v63  ;;  %v11297_v38 = vld [vmem:[%s17702_s5 + $0x1dc] sm:$0xf0] }
 0x142   : > { %v1682_v4 = vadd.f32 %v1681_v58, %v1669_v36  ;;  %v8338_v53 = vor.u32 %v11174_v50, %v8335_v51  ;;  %v11226_v36 = vld [vmem:[%s17700_s3 + $0x3ac] sm:$0xf]  ;;  %v8543_v58 = vld [vmem:[%s17700_s3 + $0x3b8] sm:$0xf0]  ;;  %v11241_v62 = vld [vmem:[%s17702_s5 + $0x1c] sm:$0xf0] }
 0x143   : > { %v8546_v1 = vor.u32 %v11226_v36, %v8543_v58  ;;  %v11210_v17 = vld [vmem:[%s17700_s3 + $0x32c] sm:$0xf]  ;;  %v8965_v63 = vld [vmem:[%s17702_s5 + $0x300] sm:$0xf] }
 0x144   : > { %v1688_v10 = vmax.f32 %v1682_v4, 0.0  ;;  %v11337_v58 = vld [vmem:[%s17702_s5 + $0x31c] sm:$0xf0] }
 0x145   : > { %2607 = vmatpush.bf16.msrb.mxu2 %v8350_v57  ;;  %v8575_v57 = vld [vmem:[%s17700_s3 + $0x3f8] sm:$0xf0] }
 0x146   : > { %v13734_v12 = vpack.c.bf16 %v1688_v10, %v1688_v10  ;;  %v8578_v60 = vor.u32 %v11234_v56, %v8575_v57  ;;  %v8495_v10 = vld [vmem:[%s17700_s3 + $0x358] sm:$0xf0]  ;;  %v11345_v56 = vld [vmem:[%s17702_s5 + $0x35c] sm:$0xf0] }
 0x147   : > { %v1670_v39 = vpop.f32.mrf.mxu2 }
 0x148   : > { %v1683_v15 = vpop.f32.mrf.mxu3  ;;  %2518 = vmatmul.bf16.vlgmr.msrb.gmra.mxu3 %v13734_v12  ;;  %v8479_v39 = vld [vmem:[%s17700_s3 + $0x338] sm:$0xf0] }
 0x149   : > { %2608 = vmatpush.bf16.msrb.mxu2 %v8334_v3  ;;  %2614 = vmatpush.bf16.msrb.mxu3 %v8574_v40  ;;  %v11222_v3 = vld [vmem:[%s17700_s3 + $0x38c] sm:$0xf]  ;;  %v8498_v40 = vor.u32 %v11214_v9, %v8495_v10  ;;  %v11289_v15 = vld [vmem:[%s17702_s5 + $0x19c] sm:$0xf0]  ;;  %v8482_v19 = vor.u32 %v11210_v17, %v8479_v39  ;;  %v11285_v10 = vld [vmem:[%s17702_s5 + $0x184] sm:$0xf] }
 0x14a   : > { %v11425_v9 = vld [vmem:[%s17702_s5 + $0x5dc] sm:$0xf0] }
 0x14b   : > { %v8901_v39 = vld [vmem:[%s17702_s5 + $0x280] sm:$0xf] }
 0x14c   : > { %2609 = vmatmul.bf16.vlgmr.msrb.gmra.mxu2 %v13633_v11 }
 0x14d   : > { %2653 = vmatpush.bf16.msra.mxu2 %v8450_v5  ;;  %2615 = vmatpush.bf16.msrb.mxu3 %v8558_v16  ;;  %v11218_v5 = vld [vmem:[%s17700_s3 + $0x36c] sm:$0xf]  ;;  %v8774_v16 = vor.u32 %v11289_v15, %v8773_v25  ;;  %v9285_v25 = vld [vmem:[%s17702_s5 + $0x580] sm:$0xf] }
 0x14e   : > { %v8514_v7 = vor.u32 %v11218_v5, %v8511_v6  ;;  %v8933_v5 = vld [vmem:[%s17702_s5 + $0x2c0] sm:$0xf] }
 0x14f   : > { %v11329_v6 = vld [vmem:[%s17702_s5 + $0x2dc] sm:$0xf0] }
 0x151   : > { %2654 = vmatpush.bf16.msra.mxu2 %v8434_v13  ;;  %2616 = vmatpush.bf16.msrb.mxu3 %v8542_v23  ;;  %v8805_v13 = vld [vmem:[%s17702_s5 + $0x1c0] sm:$0xf] }
 0x152   : > { %v8806_v14 = vor.u32 %v11297_v38, %v8805_v13  ;;  %v8741_v23 = vld [vmem:[%s17702_s5 + $0x140] sm:$0xf] }
 0x154   : > { %4241 = vmatpush.bf16.msrb.mxu0 %v8806_v14  ;;  %v11321_v14 = vld [vmem:[%s17702_s5 + $0x29c] sm:$0xf0] }
 0x155   : > { %2655 = vmatpush.bf16.msra.mxu2 %v8418_v18  ;;  %2617 = vmatpush.bf16.msrb.mxu3 %v8526_v31  ;;  %v13878_v18 = vld [vmem:[%s17701_s4] sm:$0xf] }
 0x156   : > { %v1823_v29 = vperm.slane %v13878_v18, 0  ;;  %v11273_v31 = vld [vmem:[%s17702_s5 + $0x11c] sm:$0xf0]  ;;  %v1824_v51 = vperm.slane %v13878_v18, 1 }
 0x158   : > { %2570 = vmatmul.bf16.vlgmr.msra.gmra.mxu3 %v13734_v12  ;;  %4242 = vmatpush.bf16.msrb.mxu0 %v8774_v16  ;;  %v8902_v16 = vor.u32 %v11321_v14, %v8901_v39  ;;  %v11333_v39 = vld [vmem:[%s17702_s5 + $0x304] sm:$0xf] }
 0x159   : > { %2656 = vmatpush.bf16.msra.mxu2 %v8402_v24  ;;  %2618 = vmatpush.bf16.msrb.mxu3 %v8510_v37  ;;  %v11281_v24 = vld [vmem:[%s17702_s5 + $0x15c] sm:$0xf0] }
 0x15a   : > { %v8742_v27 = vor.u32 %v11281_v24, %v8741_v23  ;;  %v11265_v37 = vld [vmem:[%s17702_s5 + $0xdc] sm:$0xf0] }
 0x15b   : > { %v2480_v61 = vpop.f32.mrf.mxu0  ;;  %v8678_v42 = vor.u32 %v11265_v37, %v8677_v35  ;;  %v8869_v24 = vld [vmem:[%s17702_s5 + $0x240] sm:$0xf] }
 0x15c   : > { %4243 = vmatpush.bf16.msrb.mxu0 %v8742_v27  ;;  %v2481_v33 = vadd.f32 %v2480_v61, %v1823_v29  ;;  %v8581_v61 = vld [vmem:[%s17702_s5] sm:$0xf] }
 0x15d   : > { %2657 = vmatpush.bf16.msra.mxu2 %v8386_v32  ;;  %2619 = vmatpush.bf16.msrb.mxu3 %v8494_v45  ;;  %v8710_v32 = vor.u32 %v11273_v31, %v8709_v30  ;;  %v11257_v45 = vld [vmem:[%s17702_s5 + $0x9c] sm:$0xf0]  ;;  %v8582_v36 = vor.u32 %v11241_v62, %v8581_v61  ;;  %v1825_v30 = vperm.slane %v13878_v18, 2  ;;  %v9031_v62 = vld [vmem:[%s17702_s5 + $0x3a0] sm:$0xf0] }
 0x15e   : > { %v8646_v47 = vor.u32 %v11257_v45, %v8645_v28  ;;  %v11313_v27 = vld [vmem:[%s17702_s5 + $0x25c] sm:$0xf0] }
 0x15f   : > { %v9253_v29 = vld [vmem:[%s17702_s5 + $0x540] sm:$0xf]  ;;  %v8870_v31 = vor.u32 %v11313_v27, %v8869_v24  ;;  %v11325_v24 = vld [vmem:[%s17702_s5 + $0x2c4] sm:$0xf] }
 0x160   : > { %4244 = vmatpush.bf16.msrb.mxu0 %v8710_v32  ;;  %v11401_v45 = vld [vmem:[%s17702_s5 + $0x51c] sm:$0xf0]  ;;  %v8935_v27 = vld [vmem:[%s17702_s5 + $0x2e0] sm:$0xf0] }
 0x161   : > { %2658 = vmatpush.bf16.msra.mxu2 %v8370_v41  ;;  %2620 = vmatpush.bf16.msrb.mxu3 %v8478_v52  ;;  %v9061_v41 = vld [vmem:[%s17702_s5 + $0x3c0] sm:$0xf] }
 0x162   : > { %v9062_v44 = vor.u32 %v11361_v43, %v9061_v41  ;;  %v8613_v52 = vld [vmem:[%s17702_s5 + $0x40] sm:$0xf] }
 0x163   : > { %v2482_v2 = vpop.f32.mrf.mxu0  ;;  %v8837_v41 = vld [vmem:[%s17702_s5 + $0x200] sm:$0xf] }
 0x164   : > { %4254 = vmatpush.bf16.msrb.mxu1 %v9062_v44  ;;  %4245 = vmatpush.bf16.msrb.mxu0 %v8678_v42  ;;  %v8807_v2 = vld [vmem:[%s17702_s5 + $0x1e0] sm:$0xf0]  ;;  %v11305_v42 = vld [vmem:[%s17702_s5 + $0x21c] sm:$0xf0] }
 0x165   : > { %2659 = vmatpush.bf16.msra.mxu2 %v8354_v46  ;;  %2621 = vmatpush.bf16.msrb.mxu3 %v8462_v59  ;;  %v8998_v59 = vor.u32 %v11345_v56, %v8997_v54  ;;  %v9221_v43 = vld [vmem:[%s17702_s5 + $0x500] sm:$0xf]  ;;  %v8838_v28 = vor.u32 %v11305_v42, %v8837_v41  ;;  %v11317_v41 = vld [vmem:[%s17702_s5 + $0x284] sm:$0xf] }
 0x166   : > { %v8903_v42 = vld [vmem:[%s17702_s5 + $0x2a0] sm:$0xf0] }
 0x168   : > { %2622 = vmatmul.bf16.vlgmr.msrb.gmra.mxu3 %v13734_v12  ;;  %4246 = vmatpush.bf16.msrb.mxu0 %v8646_v47 }
 0x169   : > { %2660 = vmatpush.bf16.msra.mxu2 %v8338_v53  ;;  %2666 = vmatpush.bf16.msra.mxu3 %v8578_v60  ;;  %v11249_v53 = vld [vmem:[%s17702_s5 + $0x5c] sm:$0xf0] }
 0x16a   : > { %v8614_v55 = vor.u32 %v11249_v53, %v8613_v52  ;;  %v9063_v52 = vld [vmem:[%s17702_s5 + $0x3e0] sm:$0xf0]  ;;  %v9189_v53 = vld [vmem:[%s17702_s5 + $0x4c0] sm:$0xf] }
 0x16c   : > { %2661 = vmatmul.bf16.vlgmr.msra.gmra.mxu2 %v13633_v11  ;;  %v8527_v11 = vld [vmem:[%s17700_s3 + $0x398] sm:$0xf0]  ;;  %4247 = vmatpush.bf16.msrb.mxu0 %v8614_v55  ;;  %v11393_v55 = vld [vmem:[%s17702_s5 + $0x4dc] sm:$0xf0] }
 0x16d   : > { %2667 = vmatpush.bf16.msra.mxu3 %v8562_v0  ;;  %v8530_v4 = vor.u32 %v11222_v3, %v8527_v11  ;;  %v8966_v11 = vor.u32 %v11337_v58, %v8965_v63  ;;  %v9190_v56 = vor.u32 %v11393_v55, %v9189_v53  ;;  %v11405_v53 = vld [vmem:[%s17702_s5 + $0x544] sm:$0xf] }
 0x16e   : > { %v9255_v55 = vld [vmem:[%s17702_s5 + $0x560] sm:$0xf0] }
 0x170   : > { %4248 = vmatpush.bf16.msrb.mxu0 %v8582_v36  ;;  %v11385_v36 = vld [vmem:[%s17702_s5 + $0x49c] sm:$0xf0] }
 0x171   : > { %2668 = vmatpush.bf16.msra.mxu3 %v8546_v1  ;;  %v11293_v1 = vld [vmem:[%s17702_s5 + $0x1c4] sm:$0xf] }
 0x175   : > { %2669 = vmatpush.bf16.msra.mxu3 %v8530_v4  ;;  %v8810_v4 = vor.u32 %v11293_v1, %v8807_v2 }
 0x177   : > { %v13849_v8 = vpop.f32.mrf.mxu0  ;;  %4293 = vmatpush.bf16.msra.mxu0 %v8810_v4  ;;  %v8615_v4 = vld [vmem:[%s17702_s5 + $0x60] sm:$0xf0] }
 0x178   : > { %v2533_v60 = vadd.f32 %v13849_v8, %v1824_v51  ;;  %v8934_v8 = vor.u32 %v11329_v6, %v8933_v5  ;;  %v11357_v51 = vld [vmem:[%s17702_s5 + $0x3c4] sm:$0xf] }
 0x179   : > { %2670 = vmatpush.bf16.msra.mxu3 %v8514_v7  ;;  %v9317_v7 = vld [vmem:[%s17702_s5 + $0x5c0] sm:$0xf]  ;;  %v9066_v54 = vor.u32 %v11357_v51, %v9063_v52  ;;  %v11341_v5 = vld [vmem:[%s17702_s5 + $0x344] sm:$0xf] }
 0x17a   : > { %v9318_v13 = vor.u32 %v11425_v9, %v9317_v7  ;;  %v8999_v7 = vld [vmem:[%s17702_s5 + $0x360] sm:$0xf0] }
 0x17b   : > { %v9002_v9 = vor.u32 %v11341_v5, %v8999_v7  ;;  %v11309_v52 = vld [vmem:[%s17702_s5 + $0x244] sm:$0xf]  ;;  %v9445_v5 = vld [vmem:[%s17702_s5 + $0x6c0] sm:$0xf] }
 0x17c   : > { %4267 = vmatpush.bf16.msrb.mxu2 %v9318_v13 }
 0x17d   : > { %2671 = vmatpush.bf16.msra.mxu3 %v8498_v40  ;;  %v2493_v34 = vpop.f32.mrf.mxu1  ;;  %v8775_v40 = vld [vmem:[%s17702_s5 + $0x1a0] sm:$0xf0] }
 0x17e   : > { %v13899_v49 = vadd.f32 %v2493_v34, %v2481_v33  ;;  %v8778_v38 = vor.u32 %v11285_v10, %v8775_v40  ;;  %v11269_v33 = vld [vmem:[%s17702_s5 + $0x104] sm:$0xf]  ;;  %v9125_v10 = vld [vmem:[%s17702_s5 + $0x440] sm:$0xf] }
 0x17f   : > { %v2534_v21 = vpop.f32.mrf.mxu0  ;;  %v8711_v34 = vld [vmem:[%s17702_s5 + $0x120] sm:$0xf0]  ;;  %v11377_v40 = vld [vmem:[%s17702_s5 + $0x45c] sm:$0xf0] }
 0x180   : > { %4294 = vmatpush.bf16.msra.mxu0 %v8778_v38  ;;  %v8743_v21 = vld [vmem:[%s17702_s5 + $0x160] sm:$0xf0]  ;;  %v8714_v35 = vor.u32 %v11269_v33, %v8711_v34  ;;  %v9126_v13 = vor.u32 %v11377_v40, %v9125_v10  ;;  %v9541_v34 = vld [vmem:[%s17702_s5 + $0x780] sm:$0xf] }
 0x181   : > { %2672 = vmatpush.bf16.msra.mxu3 %v8482_v19  ;;  %v11417_v19 = vld [vmem:[%s17702_s5 + $0x59c] sm:$0xf0]  ;;  %v8746_v23 = vor.u32 %v11277_v20, %v8743_v21  ;;  %v11237_v38 = vld [vmem:[%s17702_s5 + $0x4] sm:$0xf] }
 0x182   : > { %v9286_v22 = vor.u32 %v11417_v19, %v9285_v25  ;;  %v8967_v25 = vld [vmem:[%s17702_s5 + $0x320] sm:$0xf0]  ;;  %v11369_v19 = vld [vmem:[%s17702_s5 + $0x41c] sm:$0xf0] }
 0x183   : > { %v9573_v20 = vld [vmem:[%s17702_s5 + $0x7c0] sm:$0xf]  ;;  %v9191_v10 = vld [vmem:[%s17702_s5 + $0x4e0] sm:$0xf0] }
 0x184   : > { %4268 = vmatpush.bf16.msrb.mxu2 %v9286_v22  ;;  %4295 = vmatpush.bf16.msra.mxu0 %v8746_v23  ;;  %v11489_v23 = vld [vmem:[%s17702_s5 + $0x7dc] sm:$0xf0] }
 0x185   : > { %2673 = vmatpush.bf16.msra.mxu3 %v8466_v26  ;;  %v2495_v46 = vpop.f32.mrf.mxu1  ;;  %v11409_v26 = vld [vmem:[%s17702_s5 + $0x55c] sm:$0xf0] }
 0x186   : > { %v9254_v32 = vor.u32 %v11409_v26, %v9253_v29  ;;  %v8679_v46 = vld [vmem:[%s17702_s5 + $0xe0] sm:$0xf0]  ;;  %v9574_v29 = vor.u32 %v11489_v23, %v9573_v20  ;;  %v8938_v26 = vor.u32 %v11325_v24, %v8935_v27  ;;  %v11441_v20 = vld [vmem:[%s17702_s5 + $0x65c] sm:$0xf0]  ;;  %v8813_v27 = vld [vmem:[%s17702_s5 + $0x1c8] sm:$0xf] }
 0x187   : > { %v11373_v24 = vld [vmem:[%s17702_s5 + $0x444] sm:$0xf] }
 0x188   : > { %2674 = vmatmul.bf16.vlgmr.msra.gmra.mxu3 %v13734_v12  ;;  %v9029_v12 = vld [vmem:[%s17702_s5 + $0x380] sm:$0xf]  ;;  %4269 = vmatpush.bf16.msrb.mxu2 %v9254_v32 }
 0x189   : > { %v9030_v50 = vor.u32 %v11353_v48, %v9029_v12  ;;  %4296 = vmatpush.bf16.msra.mxu0 %v8714_v35  ;;  %v11261_v12 = vld [vmem:[%s17702_s5 + $0xc4] sm:$0xf]  ;;  %v9222_v48 = vor.u32 %v11401_v45, %v9221_v43  ;;  %4280 = vmatpush.bf16.msrb.mxu3 %v9574_v29  ;;  %v11481_v35 = vld [vmem:[%s17702_s5 + $0x79c] sm:$0xf0]  ;;  %v11298_v29 = vld [vmem:[%s17702_s5 + $0x1e4] sm:$0xf0] }
 0x18a   : > { %v11413_v43 = vld [vmem:[%s17702_s5 + $0x584] sm:$0xf] }
 0x18b   : > { %4255 = vmatpush.bf16.msrb.mxu1 %v9030_v50  ;;  %v8682_v50 = vor.u32 %v11261_v12, %v8679_v46  ;;  %v1826_v12 = vperm.slane %v13878_v18, 3  ;;  %v9509_v46 = vld [vmem:[%s17702_s5 + $0x740] sm:$0xf]  ;;  %v8871_v18 = vld [vmem:[%s17702_s5 + $0x260] sm:$0xf0] }
 0x18c   : > { %4270 = vmatpush.bf16.msrb.mxu2 %v9222_v48  ;;  %v11473_v48 = vld [vmem:[%s17702_s5 + $0x75c] sm:$0xf0] }
 0x18d   : > { %v2545_v0 = vpop.f32.mrf.mxu1  ;;  %4297 = vmatpush.bf16.msra.mxu0 %v8682_v50  ;;  %v9510_v51 = vor.u32 %v11473_v48, %v9509_v46 }
 0x18e   : > { %v13958_v3 = vadd.f32 %v2545_v0, %v2533_v60  ;;  %v11349_v60 = vld [vmem:[%s17702_s5 + $0x384] sm:$0xf]  ;;  %v9157_v0 = vld [vmem:[%s17702_s5 + $0x480] sm:$0xf] }
 0x18f   : > { %4256 = vmatpush.bf16.msrb.mxu1 %v8998_v59  ;;  %v8647_v59 = vld [vmem:[%s17702_s5 + $0xa0] sm:$0xf0]  ;;  %v9034_v63 = vor.u32 %v11349_v60, %v9031_v62  ;;  %v9158_v2 = vor.u32 %v11385_v36, %v9157_v0 }
 0x190   : > { %4271 = vmatpush.bf16.msrb.mxu2 %v9190_v56  ;;  %v9258_v56 = vor.u32 %v11405_v53, %v9255_v55  ;;  %v11301_v62 = vld [vmem:[%s17702_s5 + $0x204] sm:$0xf] }
 0x191   : > { %v11397_v0 = vld [vmem:[%s17702_s5 + $0x504] sm:$0xf] }
 0x192   : > { %v11477_v53 = vld [vmem:[%s17702_s5 + $0x784] sm:$0xf] }
 0x193   : > { %4257 = vmatpush.bf16.msrb.mxu1 %v8966_v11  ;;  %v11245_v11 = vld [vmem:[%s17702_s5 + $0x44] sm:$0xf] }
 0x194   : > { %v8618_v6 = vor.u32 %v11245_v11, %v8615_v4  ;;  %4272 = vmatpush.bf16.msrb.mxu2 %v9158_v2  ;;  %v9223_v2 = vld [vmem:[%s17702_s5 + $0x520] sm:$0xf0] }
 0x195   : > { %v2547_v15 = vpop.f32.mrf.mxu1  ;;  %v9226_v4 = vor.u32 %v11397_v0, %v9223_v2  ;;  %v11266_v2 = vld [vmem:[%s17702_s5 + $0xe4] sm:$0xf0] }
 0x196   : > { %v8970_v15 = vor.u32 %v11333_v39, %v8967_v25  ;;  %v11381_v39 = vld [vmem:[%s17702_s5 + $0x484] sm:$0xf] }
 0x197   : > { %v2584_v57 = vpop.f32.mrf.mxu0  ;;  %4258 = vmatpush.bf16.msrb.mxu1 %v8934_v8 }
 0x198   : > { %v2585_v37 = vadd.f32 %v2584_v57, %v1825_v30  ;;  %v11253_v57 = vld [vmem:[%s17702_s5 + $0x84] sm:$0xf]  ;;  %4273 = vmatpush.bf16.msrb.mxu2 %v9126_v13  ;;  %v9413_v13 = vld [vmem:[%s17702_s5 + $0x680] sm:$0xf] }
 0x199   : > { %v8650_v61 = vor.u32 %v11253_v57, %v8647_v59  ;;  %v11421_v30 = vld [vmem:[%s17702_s5 + $0x5c4] sm:$0xf]  ;;  %v9477_v57 = vld [vmem:[%s17702_s5 + $0x700] sm:$0xf] }
 0x19a   : > { %v11465_v59 = vld [vmem:[%s17702_s5 + $0x71c] sm:$0xf0] }
 0x19b   : > { %4259 = vmatpush.bf16.msrb.mxu1 %v8902_v16  ;;  %4298 = vmatpush.bf16.msra.mxu0 %v8650_v61  ;;  %v9093_v16 = vld [vmem:[%s17702_s5 + $0x400] sm:$0xf]  ;;  %v9478_v61 = vor.u32 %v11465_v59, %v9477_v57  ;;  %v8717_v57 = vld [vmem:[%s17702_s5 + $0x108] sm:$0xf] }
 0x19c   : > { %v9094_v22 = vor.u32 %v11369_v19, %v9093_v16  ;;  %v9381_v19 = vld [vmem:[%s17702_s5 + $0x640] sm:$0xf]  ;;  %v11274_v59 = vld [vmem:[%s17702_s5 + $0x124] sm:$0xf0] }
 0x19d   : > { %v2597_v44 = vpop.f32.mrf.mxu1  ;;  %v9382_v23 = vor.u32 %v11441_v20, %v9381_v19 }
 0x19e   : > { %v14033_v47 = vadd.f32 %v2597_v44, %v2585_v37  ;;  %4274 = vmatpush.bf16.msrb.mxu2 %v9094_v22  ;;  %v9542_v37 = vor.u32 %v11481_v35, %v9541_v34  ;;  %v8906_v44 = vor.u32 %v11317_v41, %v8903_v42  ;;  %v11365_v35 = vld [vmem:[%s17702_s5 + $0x404] sm:$0xf] }
 0x19f   : > { %v2586_v17 = vpop.f32.mrf.mxu0  ;;  %4260 = vmatpush.bf16.msrb.mxu1 %v8870_v31  ;;  %4299 = vmatpush.bf16.msra.mxu0 %v8618_v6  ;;  %v9319_v31 = vld [vmem:[%s17702_s5 + $0x5e0] sm:$0xf0]  ;;  %v11457_v6 = vld [vmem:[%s17702_s5 + $0x6dc] sm:$0xf0] }
 0x1a0   : > { %v8583_v17 = vld [vmem:[%s17702_s5 + $0x20] sm:$0xf0]  ;;  %v9322_v33 = vor.u32 %v11421_v30, %v9319_v31  ;;  %4281 = vmatpush.bf16.msrb.mxu3 %v9542_v37  ;;  %v9349_v31 = vld [vmem:[%s17702_s5 + $0x600] sm:$0xf] }
 0x1a1   : > { %v8586_v14 = vor.u32 %v11237_v38, %v8583_v17  ;;  %v11449_v38 = vld [vmem:[%s17702_s5 + $0x69c] sm:$0xf0]  ;;  %v9095_v37 = vld [vmem:[%s17702_s5 + $0x420] sm:$0xf0] }
 0x1a2   : > { %4319 = vmatpush.bf16.msra.mxu2 %v9322_v33  ;;  %v9414_v17 = vor.u32 %v11449_v38, %v9413_v13  ;;  %v8814_v33 = vor.u32 %v11298_v29, %v8813_v27  ;;  %v11485_v41 = vld [vmem:[%s17702_s5 + $0x7c4] sm:$0xf]  ;;  %v11258_v13 = vld [vmem:[%s17702_s5 + $0xa4] sm:$0xf0] }
 0x1a3   : > { %4261 = vmatpush.bf16.msrb.mxu1 %v8838_v28  ;;  %4300 = vmatpush.bf16.msra.mxu0 %v8586_v14  ;;  %v9287_v28 = vld [vmem:[%s17702_s5 + $0x5a0] sm:$0xf0]  ;;  %v9037_v38 = vld [vmem:[%s17702_s5 + $0x388] sm:$0xf] }
 0x1a4   : > { %v9290_v45 = vor.u32 %v11413_v43, %v9287_v28  ;;  %4282 = vmatpush.bf16.msrb.mxu3 %v9510_v51  ;;  %v9159_v14 = vld [vmem:[%s17702_s5 + $0x4a0] sm:$0xf0]  ;;  %v8781_v43 = vld [vmem:[%s17702_s5 + $0x188] sm:$0xf]  ;;  %v9098_v28 = vor.u32 %v11365_v35, %v9095_v37 }
 0x1a5   : > { %v2599_v1 = vpop.f32.mrf.mxu1  ;;  %v9415_v27 = vld [vmem:[%s17702_s5 + $0x6a0] sm:$0xf0]  ;;  %v11338_v35 = vld [vmem:[%s17702_s5 + $0x324] sm:$0xf0] }
 0x1a6   : > { %4320 = vmatpush.bf16.msra.mxu2 %v9290_v45  ;;  %v9575_v45 = vld [vmem:[%s17702_s5 + $0x7e0] sm:$0xf0] }
 0x1a7   : > { %4306 = vmatpush.bf16.msra.mxu1 %v9066_v54  ;;  %v8874_v54 = vor.u32 %v11309_v52, %v8871_v18  ;;  %v8749_v52 = vld [vmem:[%s17702_s5 + $0x148] sm:$0xf]  ;;  %v11437_v37 = vld [vmem:[%s17702_s5 + $0x644] sm:$0xf] }
 0x1a8   : > { %4283 = vmatpush.bf16.msrb.mxu3 %v9478_v61  ;;  %v11282_v18 = vld [vmem:[%s17702_s5 + $0x164] sm:$0xf0]  ;;  %v9511_v61 = vld [vmem:[%s17702_s5 + $0x760] sm:$0xf0] }
 0x1a9   : > { %v14065_v58 = vpop.f32.mrf.mxu2 }
 0x1aa   : > { %4321 = vmatpush.bf16.msra.mxu2 %v9258_v56  ;;  %v2507_v16 = vadd.f32 %v14065_v58, %v13899_v49  ;;  %v9127_v49 = vld [vmem:[%s17702_s5 + $0x460] sm:$0xf0]  ;;  %v8750_v56 = vor.u32 %v11282_v18, %v8749_v52  ;;  %v11330_v52 = vld [vmem:[%s17702_s5 + $0x2e4] sm:$0xf0] }
 0x1ab   : > { %4307 = vmatpush.bf16.msra.mxu1 %v9034_v63  ;;  %v8839_v63 = vld [vmem:[%s17702_s5 + $0x220] sm:$0xf0] }
 0x1ac   : > { %v8842_v1 = vor.u32 %v11301_v62, %v8839_v63 }
 0x1ae   : > { %4322 = vmatpush.bf16.msra.mxu2 %v9226_v4  ;;  %v9069_v4 = vld [vmem:[%s17702_s5 + $0x3c8] sm:$0xf] }
 0x1af   : > { %4308 = vmatpush.bf16.msra.mxu1 %v9002_v9  ;;  %v11389_v9 = vld [vmem:[%s17702_s5 + $0x4c4] sm:$0xf] }
 0x1b0   : > { %v9194_v40 = vor.u32 %v11389_v9, %v9191_v10 }
 0x1b1   : > { %v2508_v21 = vpop.f32.mrf.mxu2 }
 0x1b2   : > { %4323 = vmatpush.bf16.msra.mxu2 %v9194_v40  ;;  %v8653_v40 = vld [vmem:[%s17702_s5 + $0x88] sm:$0xf] }
 0x1b3   : > { %4309 = vmatpush.bf16.msra.mxu1 %v8970_v15  ;;  %v9162_v15 = vor.u32 %v11381_v39, %v9159_v14  ;;  %v11354_v39 = vld [vmem:[%s17702_s5 + $0x3a4] sm:$0xf0]  ;;  %v11453_v14 = vld [vmem:[%s17702_s5 + $0x6c4] sm:$0xf]  ;;  %v8654_v19 = vor.u32 %v11258_v13, %v8653_v40 }
 0x1b4   : > { %v9038_v20 = vor.u32 %v11354_v39, %v9037_v38  ;;  %v11314_v40 = vld [vmem:[%s17702_s5 + $0x264] sm:$0xf0]  ;;  %v11270_v39 = vld [vmem:[%s17702_s5 + $0x10c] sm:$0xf] }
 0x1b5   : > { %v9261_v13 = vld [vmem:[%s17702_s5 + $0x548] sm:$0xf] }
 0x1b6   : > { %4324 = vmatpush.bf16.msra.mxu2 %v9162_v15  ;;  %v11410_v38 = vld [vmem:[%s17702_s5 + $0x564] sm:$0xf0] }
 0x1b7   : > { %v2636_v8 = vpop.f32.mrf.mxu0  ;;  %4310 = vmatpush.bf16.msra.mxu1 %v8938_v26  ;;  %v9130_v26 = vor.u32 %v11373_v24, %v9127_v49  ;;  %v9005_v24 = vld [vmem:[%s17702_s5 + $0x348] sm:$0xf] }
 0x1b8   : > { %v2637_v60 = vadd.f32 %v2636_v8, %v1826_v12  ;;  %v9446_v8 = vor.u32 %v11457_v6, %v9445_v5  ;;  %v9578_v12 = vor.u32 %v11485_v41, %v9575_v45  ;;  %v9479_v6 = vld [vmem:[%s17702_s5 + $0x720] sm:$0xf0]  ;;  %v11346_v49 = vld [vmem:[%s17702_s5 + $0x364] sm:$0xf0] }
 0x1b9   : > { %v14146_v50 = vpop.f32.mrf.mxu2  ;;  %v9383_v41 = vld [vmem:[%s17702_s5 + $0x660] sm:$0xf0] }
 0x1ba   : > { %4284 = vmatpush.bf16.msrb.mxu3 %v9446_v8  ;;  %4325 = vmatpush.bf16.msra.mxu2 %v9130_v26  ;;  %v2559_v63 = vadd.f32 %v14146_v50, %v13958_v3  ;;  %v11362_v3 = vld [vmem:[%s17702_s5 + $0x3e4] sm:$0xf0]  ;;  %v11461_v50 = vld [vmem:[%s17702_s5 + $0x704] sm:$0xf] }
 0x1bb   : > { %4311 = vmatpush.bf16.msra.mxu1 %v8906_v44  ;;  %v11290_v44 = vld [vmem:[%s17702_s5 + $0x1a4] sm:$0xf0]  ;;  %v9070_v10 = vor.u32 %v11362_v3, %v9069_v4  ;;  %v11278_v3 = vld [vmem:[%s17702_s5 + $0x14c] sm:$0xf] }
 0x1bc   : > { %v8782_v51 = vor.u32 %v11290_v44, %v8781_v43  ;;  %v11294_v43 = vld [vmem:[%s17702_s5 + $0x1cc] sm:$0xf]  ;;  %v9293_v4 = vld [vmem:[%s17702_s5 + $0x588] sm:$0xf] }
 0x1bd   : > { %v2649_v36 = vpop.f32.mrf.mxu1  ;;  %v8815_v44 = vld [vmem:[%s17702_s5 + $0x1e8] sm:$0xf0] }
 0x1be   : > { %v14178_v11 = vadd.f32 %v2649_v36, %v2637_v60  ;;  %4285 = vmatpush.bf16.msrb.mxu3 %v9414_v17  ;;  %4326 = vmatpush.bf16.msra.mxu2 %v9098_v28  ;;  %v11469_v60 = vld [vmem:[%s17702_s5 + $0x744] sm:$0xf]  ;;  %v8718_v36 = vor.u32 %v11274_v59, %v8717_v57  ;;  %v9386_v28 = vor.u32 %v11437_v37, %v9383_v41  ;;  %v8783_v57 = vld [vmem:[%s17702_s5 + $0x1a8] sm:$0xf0] }
 0x1bf   : > { %v2638_v32 = vpop.f32.mrf.mxu0  ;;  %4312 = vmatpush.bf16.msra.mxu1 %v8874_v54  ;;  %v9543_v54 = vld [vmem:[%s17702_s5 + $0x7a0] sm:$0xf0]  ;;  %v9514_v62 = vor.u32 %v11469_v60, %v9511_v61  ;;  %v8655_v37 = vld [vmem:[%s17702_s5 + $0xa8] sm:$0xf0] }
 0x1c0   : > { %v11433_v32 = vld [vmem:[%s17702_s5 + $0x61c] sm:$0xf0]  ;;  %v9546_v55 = vor.u32 %v11477_v53, %v9543_v54  ;;  %v8818_v53 = vor.u32 %v11294_v43, %v8815_v44  ;;  %v9325_v54 = vld [vmem:[%s17702_s5 + $0x5c8] sm:$0xf]  ;;  %v11350_v41 = vld [vmem:[%s17702_s5 + $0x38c] sm:$0xf] }
 0x1c1   : > { %v2560_v7 = vpop.f32.mrf.mxu2  ;;  %v9350_v34 = vor.u32 %v11433_v32, %v9349_v31  ;;  %v8589_v31 = vld [vmem:[%s17702_s5 + $0x8] sm:$0xf]  ;;  %v9039_v43 = vld [vmem:[%s17702_s5 + $0x3a8] sm:$0xf0] }
 0x1c2   : > { %4286 = vmatpush.bf16.msrb.mxu3 %v9382_v23  ;;  %v9482_v7 = vor.u32 %v11461_v50, %v9479_v6  ;;  %v11250_v23 = vld [vmem:[%s17702_s5 + $0x64] sm:$0xf0]  ;;  %v8751_v50 = vld [vmem:[%s17702_s5 + $0x168] sm:$0xf0] }
 0x1c3   : > { %4313 = vmatpush.bf16.msra.mxu1 %v8842_v1  ;;  %v8685_v1 = vld [vmem:[%s17702_s5 + $0xc8] sm:$0xf] }
 0x1c4   : > { %v8686_v9 = vor.u32 %v11266_v2, %v8685_v1  ;;  %v11242_v32 = vld [vmem:[%s17702_s5 + $0x24] sm:$0xf0] }
 0x1c5   : > { %v2651_v25 = vpop.f32.mrf.mxu1  ;;  %v8909_v1 = vld [vmem:[%s17702_s5 + $0x288] sm:$0xf] }
 0x1c6   : > { %4287 = vmatpush.bf16.msrb.mxu3 %v9350_v34  ;;  %v9447_v25 = vld [vmem:[%s17702_s5 + $0x6e0] sm:$0xf0]  ;;  %v11322_v2 = vld [vmem:[%s17702_s5 + $0x2a4] sm:$0xf0] }
 0x1c7   : > { %v9450_v15 = vor.u32 %v11453_v14, %v9447_v25  ;;  %v8719_v14 = vld [vmem:[%s17702_s5 + $0x128] sm:$0xf0] }
 0x1ca   : > { %4332 = vmatpush.bf16.msra.mxu3 %v9578_v12 }
 0x1cb   : > { %v2519_v21 = vpop.f32.mrf.mxu3 }
 0x1cc   : > { %v2520_v58 = vadd.f32 %v2519_v21, %v2507_v16  ;;  %v8621_v21 = vld [vmem:[%s17702_s5 + $0x48] sm:$0xf] }
 0x1cd   : > { %v8622_v26 = vor.u32 %v11250_v23, %v8621_v21  ;;  %v9229_v21 = vld [vmem:[%s17702_s5 + $0x508] sm:$0xf] }
 0x1ce   : > { %v2679_v30 = vmax.f32 %v2520_v58, 0.0  ;;  %4333 = vmatpush.bf16.msra.mxu3 %v9546_v55  ;;  %v11445_v58 = vld [vmem:[%s17702_s5 + $0x684] sm:$0xf]  ;;  %v11426_v55 = vld [vmem:[%s17702_s5 + $0x5e4] sm:$0xf0] }
 0x1cf   : > { %v14212_v22 = vpop.f32.mrf.mxu2  ;;  %v9418_v29 = vor.u32 %v11445_v58, %v9415_v27  ;;  %v11402_v23 = vld [vmem:[%s17702_s5 + $0x524] sm:$0xf0]  ;;  %v11358_v58 = vld [vmem:[%s17702_s5 + $0x3cc] sm:$0xf] }
 0x1d0   : > { %v14241_v42 = vpack.c.bf16 %v2679_v30, %v2679_v30  ;;  %v9006_v30 = vor.u32 %v11346_v49, %v9005_v24  ;;  %v2611_v45 = vadd.f32 %v14212_v22, %v14033_v47  ;;  %v11429_v47 = vld [vmem:[%s17702_s5 + $0x604] sm:$0xf]  ;;  %v11262_v24 = vld [vmem:[%s17702_s5 + $0xcc] sm:$0xf] }
 0x1d1   : > { %v9351_v22 = vld [vmem:[%s17702_s5 + $0x620] sm:$0xf0]  ;;  %v8687_v49 = vld [vmem:[%s17702_s5 + $0xe8] sm:$0xf0] }
 0x1d2   : > { %4249 = vmatmul.bf16.vlgmr.msrb.gmra.mxu0 %v14241_v42  ;;  %4334 = vmatpush.bf16.msra.mxu3 %v9514_v62  ;;  %v9354_v59 = vor.u32 %v11429_v47, %v9351_v22  ;;  %v9071_v27 = vld [vmem:[%s17702_s5 + $0x3e8] sm:$0xf0]  ;;  %v9133_v47 = vld [vmem:[%s17702_s5 + $0x448] sm:$0xf] }
 0x1d3   : > { %4345 = vmatpush.bf16.msrb.mxu0 %v8814_v33  ;;  %v2521_v46 = vpop.f32.mrf.mxu3  ;;  %v8973_v33 = vld [vmem:[%s17702_s5 + $0x308] sm:$0xf] }
 0x1d4   : > { %v8590_v46 = vor.u32 %v11242_v32, %v8589_v31  ;;  %v9197_v31 = vld [vmem:[%s17702_s5 + $0x4c8] sm:$0xf]  ;;  %v9074_v32 = vor.u32 %v11358_v58, %v9071_v27  ;;  %v9295_v58 = vld [vmem:[%s17702_s5 + $0x5a8] sm:$0xf0]  ;;  %v8757_v27 = vld [vmem:[%s17702_s5 + $0x150] sm:$0xf] }
 0x1d5   : > { %v11378_v22 = vld [vmem:[%s17702_s5 + $0x464] sm:$0xf0] }
 0x1d6   : > { %4335 = vmatpush.bf16.msra.mxu3 %v9482_v7  ;;  %v8910_v7 = vor.u32 %v11322_v2, %v8909_v1  ;;  %v9134_v1 = vor.u32 %v11378_v22, %v9133_v47  ;;  %v11398_v22 = vld [vmem:[%s17702_s5 + $0x50c] sm:$0xf] }
 0x1d7   : > { %v2612_v48 = vpop.f32.mrf.mxu2  ;;  %4346 = vmatpush.bf16.msrb.mxu0 %v8782_v51  ;;  %v8941_v51 = vld [vmem:[%s17702_s5 + $0x2c8] sm:$0xf] }
 0x1d8   : > { %v8974_v48 = vor.u32 %v11338_v35, %v8973_v33  ;;  %v8942_v61 = vor.u32 %v11330_v52, %v8941_v51  ;;  %v11394_v33 = vld [vmem:[%s17702_s5 + $0x4e4] sm:$0xf0]  ;;  %v11254_v35 = vld [vmem:[%s17702_s5 + $0x8c] sm:$0xf] }
 0x1d9   : > { %v9198_v44 = vor.u32 %v11394_v33, %v9197_v31  ;;  %v8623_v51 = vld [vmem:[%s17702_s5 + $0x68] sm:$0xf0]  ;;  %v9517_v33 = vld [vmem:[%s17702_s5 + $0x748] sm:$0xf] }
 0x1da   : > { %4336 = vmatpush.bf16.msra.mxu3 %v9450_v15  ;;  %v9262_v15 = vor.u32 %v11410_v38, %v9261_v13  ;;  %v11342_v52 = vld [vmem:[%s17702_s5 + $0x34c] sm:$0xf]  ;;  %v8789_v13 = vld [vmem:[%s17702_s5 + $0x190] sm:$0xf] }
 0x1db   : > { %4347 = vmatpush.bf16.msrb.mxu0 %v8750_v56  ;;  %v2571_v0 = vpop.f32.mrf.mxu3  ;;  %v11286_v56 = vld [vmem:[%s17702_s5 + $0x18c] sm:$0xf]  ;;  %v11291_v38 = vld [vmem:[%s17702_s5 + $0x1ac] sm:$0xf0] }
 0x1dc   : > { %v2572_v5 = vadd.f32 %v2571_v0, %v2559_v63  ;;  %v9326_v0 = vor.u32 %v11426_v55, %v9325_v54 }
 0x1de   : > { %v2680_v8 = vmax.f32 %v2572_v5, 0.0  ;;  %4337 = vmatpush.bf16.msra.mxu3 %v9418_v29  ;;  %v11418_v5 = vld [vmem:[%s17702_s5 + $0x5a4] sm:$0xf0] }
 0x1df   : > { %4348 = vmatpush.bf16.msrb.mxu0 %v8718_v36  ;;  %v8786_v36 = vor.u32 %v11286_v56, %v8783_v57  ;;  %v11238_v56 = vld [vmem:[%s17702_s5 + $0xc] sm:$0xf] }
 0x1e0   : > { %v14306_v17 = vpack.c.bf16 %v2680_v8, %v2680_v8  ;;  %v9294_v8 = vor.u32 %v11418_v5, %v9293_v4  ;;  %v8591_v57 = vld [vmem:[%s17702_s5 + $0x28] sm:$0xf0]  ;;  %v9101_v4 = vld [vmem:[%s17702_s5 + $0x408] sm:$0xf] }
 0x1e1   : > { %v8594_v2 = vor.u32 %v11238_v56, %v8591_v57  ;;  %v11370_v5 = vld [vmem:[%s17702_s5 + $0x424] sm:$0xf0]  ;;  %v8693_v56 = vld [vmem:[%s17702_s5 + $0xd0] sm:$0xf] }
 0x1e2   : > { %4262 = vmatmul.bf16.vlgmr.msrb.gmra.mxu1 %v14306_v17  ;;  %4301 = vmatmul.bf16.vlgmr.msra.gmra.mxu0 %v14241_v42  ;;  %v11267_v57 = vld [vmem:[%s17702_s5 + $0xec] sm:$0xf0] }
 0x1e3   : > { %4349 = vmatpush.bf16.msrb.mxu0 %v8686_v9  ;;  %4358 = vmatpush.bf16.msrb.mxu1 %v9070_v10  ;;  %v2573_v16 = vpop.f32.mrf.mxu3  ;;  %v8754_v9 = vor.u32 %v11278_v3, %v8751_v50  ;;  %v8877_v10 = vld [vmem:[%s17702_s5 + $0x248] sm:$0xf] }
 0x1e4   : > { %4338 = vmatpush.bf16.msra.mxu3 %v9386_v28  ;;  %v8878_v25 = vor.u32 %v11314_v40, %v8877_v10  ;;  %v8722_v16 = vor.u32 %v11270_v39, %v8719_v14  ;;  %v8658_v28 = vor.u32 %v11254_v35, %v8655_v37  ;;  %v9327_v10 = vld [vmem:[%s17702_s5 + $0x5e8] sm:$0xf0]  ;;  %v9102_v39 = vor.u32 %v11370_v5, %v9101_v4  ;;  %v11474_v35 = vld [vmem:[%s17702_s5 + $0x764] sm:$0xf0] }
 0x1e5   : > { %v11310_v37 = vld [vmem:[%s17702_s5 + $0x24c] sm:$0xf] }
 0x1e6   : > { %v11390_v5 = vld [vmem:[%s17702_s5 + $0x4cc] sm:$0xf] }
 0x1e7   : > { %4350 = vmatpush.bf16.msrb.mxu0 %v8654_v19  ;;  %4359 = vmatpush.bf16.msrb.mxu1 %v9038_v20  ;;  %v8845_v19 = vld [vmem:[%s17702_s5 + $0x208] sm:$0xf] }
 0x1e8   : > { %4339 = vmatpush.bf16.msra.mxu3 %v9354_v59  ;;  %v11306_v20 = vld [vmem:[%s17702_s5 + $0x224] sm:$0xf0]  ;;  %v11334_v59 = vld [vmem:[%s17702_s5 + $0x30c] sm:$0xf] }
 0x1e9   : > { %v8846_v29 = vor.u32 %v11306_v20, %v8845_v19  ;;  %v9549_v19 = vld [vmem:[%s17702_s5 + $0x788] sm:$0xf] }
 0x1ea   : > { %v11482_v20 = vld [vmem:[%s17702_s5 + $0x7a4] sm:$0xf0] }
 0x1eb   : > { %4351 = vmatpush.bf16.msrb.mxu0 %v8622_v26  ;;  %4360 = vmatpush.bf16.msrb.mxu1 %v9006_v30  ;;  %v2623_v12 = vpop.f32.mrf.mxu3  ;;  %v9230_v26 = vor.u32 %v11402_v23, %v9229_v21  ;;  %v8690_v30 = vor.u32 %v11262_v24, %v8687_v49  ;;  %v11318_v21 = vld [vmem:[%s17702_s5 + $0x28c] sm:$0xf]  ;;  %v8790_v23 = vor.u32 %v11291_v38, %v8789_v13 }
 0x1ec   : > { %v2624_v18 = vadd.f32 %v2623_v12, %v2611_v45  ;;  %v9165_v45 = vld [vmem:[%s17702_s5 + $0x488] sm:$0xf]  ;;  %v9042_v12 = vor.u32 %v11350_v41, %v9039_v43  ;;  %v8911_v24 = vld [vmem:[%s17702_s5 + $0x2a8] sm:$0xf0] }
 0x1ed   : > { %v11414_v49 = vld [vmem:[%s17702_s5 + $0x58c] sm:$0xf]  ;;  %v8914_v31 = vor.u32 %v11318_v21, %v8911_v24  ;;  %v11442_v24 = vld [vmem:[%s17702_s5 + $0x664] sm:$0xf0] }
 0x1ee   : > { %v2681_v60 = vmax.f32 %v2624_v18, 0.0  ;;  %v9007_v18 = vld [vmem:[%s17702_s5 + $0x368] sm:$0xf0] }
 0x1ef   : > { %v14346_v34 = vpop.f32.mrf.mxu2  ;;  %4352 = vmatpush.bf16.msrb.mxu0 %v8590_v46  ;;  %4361 = vmatpush.bf16.msrb.mxu1 %v8974_v48  ;;  %v11386_v46 = vld [vmem:[%s17702_s5 + $0x4a4] sm:$0xf0]  ;;  %v11246_v48 = vld [vmem:[%s17702_s5 + $0x4c] sm:$0xf]  ;;  %v9010_v55 = vor.u32 %v11342_v52, %v9007_v18 }
 0x1f0   : > { %v14389_v62 = vpack.c.bf16 %v2681_v60, %v2681_v60  ;;  %v8626_v54 = vor.u32 %v11246_v48, %v8623_v51  ;;  %v8975_v60 = vld [vmem:[%s17702_s5 + $0x328] sm:$0xf0]  ;;  %v9485_v48 = vld [vmem:[%s17702_s5 + $0x708] sm:$0xf] }
 0x1f1   : > { %v8978_v50 = vor.u32 %v11334_v59, %v8975_v60  ;;  %v8879_v43 = vld [vmem:[%s17702_s5 + $0x268] sm:$0xf0]  ;;  %v11466_v18 = vld [vmem:[%s17702_s5 + $0x724] sm:$0xf0]  ;;  %v9077_v59 = vld [vmem:[%s17702_s5 + $0x3d0] sm:$0xf] }
 0x1f2   : > { %4275 = vmatmul.bf16.vlgmr.msrb.gmra.mxu2 %v14389_v62  ;;  %4314 = vmatmul.bf16.vlgmr.msra.gmra.mxu1 %v14306_v17  ;;  %v8882_v51 = vor.u32 %v11310_v37, %v8879_v43  ;;  %v11363_v60 = vld [vmem:[%s17702_s5 + $0x3ec] sm:$0xf0]  ;;  %v11382_v38 = vld [vmem:[%s17702_s5 + $0x48c] sm:$0xf]  ;;  %v8823_v37 = vld [vmem:[%s17702_s5 + $0x1f0] sm:$0xf0] }
 0x1f3   : > { %4397 = vmatpush.bf16.msra.mxu0 %v8818_v53  ;;  %4362 = vmatpush.bf16.msrb.mxu1 %v8942_v61  ;;  %v2625_v6 = vpop.f32.mrf.mxu3  ;;  %v9166_v53 = vor.u32 %v11386_v46, %v9165_v45  ;;  %v8821_v61 = vld [vmem:[%s17702_s5 + $0x1d0] sm:$0xf]  ;;  %v9518_v46 = vor.u32 %v11474_v35, %v9517_v33  ;;  %v9078_v4 = vor.u32 %v11363_v60, %v9077_v59  ;;  %v11295_v35 = vld [vmem:[%s17702_s5 + $0x1d4] sm:$0xf]  ;;  %v9357_v43 = vld [vmem:[%s17702_s5 + $0x608] sm:$0xf] }
 0x1f4   : > { %4353 = vmatmul.bf16.vlgmr.msrb.gmra.mxu0 %v14241_v42  ;;  %4371 = vmatpush.bf16.msrb.mxu2 %v9326_v0  ;;  %v2663_v0 = vadd.f32 %v14346_v34, %v14178_v11  ;;  %v9581_v11 = vld [vmem:[%s17702_s5 + $0x7c8] sm:$0xf]  ;;  %v8725_v45 = vld [vmem:[%s17702_s5 + $0x110] sm:$0xf] }
 0x1f5   : > { %v11490_v34 = vld [vmem:[%s17702_s5 + $0x7e4] sm:$0xf0] }
 0x1f6   : > { %v9582_v14 = vor.u32 %v11490_v34, %v9581_v11  ;;  %v9045_v11 = vld [vmem:[%s17702_s5 + $0x390] sm:$0xf] }
 0x1f7   : > { %v2664_v63 = vpop.f32.mrf.mxu2  ;;  %4398 = vmatpush.bf16.msra.mxu0 %v8786_v36  ;;  %4363 = vmatpush.bf16.msrb.mxu1 %v8910_v7  ;;  %v11326_v7 = vld [vmem:[%s17702_s5 + $0x2cc] sm:$0xf]  ;;  %v11355_v34 = vld [vmem:[%s17702_s5 + $0x3ac] sm:$0xf0] }
 0x1f8   : > { %4372 = vmatpush.bf16.msrb.mxu2 %v9294_v8  ;;  %v11299_v63 = vld [vmem:[%s17702_s5 + $0x1ec] sm:$0xf0]  ;;  %v8943_v8 = vld [vmem:[%s17702_s5 + $0x2e8] sm:$0xf0]  ;;  %v9046_v13 = vor.u32 %v11355_v34, %v9045_v11 }
 0x1f9   : > { %v8822_v6 = vor.u32 %v11299_v63, %v8821_v61  ;;  %v9486_v61 = vor.u32 %v11466_v18, %v9485_v48  ;;  %v11486_v48 = vld [vmem:[%s17702_s5 + $0x7cc] sm:$0xf]  ;;  %v8949_v18 = vld [vmem:[%s17702_s5 + $0x2d0] sm:$0xf] }
 0x1fa   : > { %v11470_v34 = vld [vmem:[%s17702_s5 + $0x74c] sm:$0xf] }
 0x1fb   : > { %4399 = vmatpush.bf16.msra.mxu0 %v8754_v9  ;;  %4364 = vmatpush.bf16.msrb.mxu1 %v8878_v25  ;;  %v11422_v9 = vld [vmem:[%s17702_s5 + $0x5cc] sm:$0xf] }
 0x1fc   : > { %4373 = vmatpush.bf16.msrb.mxu2 %v9262_v15  ;;  %v8946_v15 = vor.u32 %v11326_v7, %v8943_v8 }
 0x1ff   : > { %4400 = vmatpush.bf16.msra.mxu0 %v8722_v16  ;;  %4365 = vmatpush.bf16.msrb.mxu1 %v8846_v29  ;;  %v9330_v16 = vor.u32 %v11422_v9, %v9327_v10  ;;  %v11283_v29 = vld [vmem:[%s17702_s5 + $0x16c] sm:$0xf0]  ;;  %v9421_v9 = vld [vmem:[%s17702_s5 + $0x688] sm:$0xf] }
 0x200   : > { %4374 = vmatpush.bf16.msrb.mxu2 %v9230_v26  ;;  %v8758_v41 = vor.u32 %v11283_v29, %v8757_v27  ;;  %v11450_v10 = vld [vmem:[%s17702_s5 + $0x6a4] sm:$0xf0]  ;;  %v11374_v27 = vld [vmem:[%s17702_s5 + $0x44c] sm:$0xf] }
 0x201   : > { %v9135_v29 = vld [vmem:[%s17702_s5 + $0x468] sm:$0xf0] }
 0x202   : > { %4327 = vmatmul.bf16.vlgmr.msra.gmra.mxu2 %v14389_v62  ;;  %4366 = vmatmul.bf16.vlgmr.msrb.gmra.mxu1 %v14306_v17 }
 0x203   : > { %4401 = vmatpush.bf16.msra.mxu0 %v8690_v30  ;;  %4410 = vmatpush.bf16.msra.mxu1 %v9074_v32  ;;  %v9550_v30 = vor.u32 %v11482_v20, %v9549_v19  ;;  %v9298_v32 = vor.u32 %v11414_v49, %v9295_v58  ;;  %v11347_v19 = vld [vmem:[%s17702_s5 + $0x36c] sm:$0xf0]  ;;  %v9422_v20 = vor.u32 %v11450_v10, %v9421_v9 }
 0x204   : > { %4375 = vmatpush.bf16.msrb.mxu2 %v9198_v44  ;;  %v11406_v44 = vld [vmem:[%s17702_s5 + $0x54c] sm:$0xf]  ;;  %v8885_v10 = vld [vmem:[%s17702_s5 + $0x250] sm:$0xf] }
 0x207   : > { %4402 = vmatpush.bf16.msra.mxu0 %v8658_v28  ;;  %4411 = vmatpush.bf16.msra.mxu1 %v9042_v12  ;;  %v9263_v28 = vld [vmem:[%s17702_s5 + $0x568] sm:$0xf0]  ;;  %v11275_v12 = vld [vmem:[%s17702_s5 + $0x12c] sm:$0xf0] }
 0x208   : > { %4376 = vmatpush.bf16.msrb.mxu2 %v9166_v53  ;;  %v9266_v52 = vor.u32 %v11406_v44, %v9263_v28  ;;  %v11302_v53 = vld [vmem:[%s17702_s5 + $0x20c] sm:$0xf]  ;;  %v8726_v47 = vor.u32 %v11275_v12, %v8725_v45  ;;  %v11434_v44 = vld [vmem:[%s17702_s5 + $0x624] sm:$0xf0] }
 0x209   : > { %v11366_v28 = vld [vmem:[%s17702_s5 + $0x40c] sm:$0xf] }
 0x20b   : > { %v2675_v36 = vpop.f32.mrf.mxu3  ;;  %4403 = vmatpush.bf16.msra.mxu0 %v8626_v54  ;;  %4412 = vmatpush.bf16.msra.mxu1 %v9010_v55  ;;  %v8847_v54 = vld [vmem:[%s17702_s5 + $0x228] sm:$0xf0] }
 0x20c   : > { %v2676_v3 = vadd.f32 %v2675_v36, %v2663_v0  ;;  %4377 = vmatpush.bf16.msrb.mxu2 %v9134_v1  ;;  %v9231_v55 = vld [vmem:[%s17702_s5 + $0x528] sm:$0xf0]  ;;  %v8850_v63 = vor.u32 %v11302_v53, %v8847_v54  ;;  %v9453_v36 = vld [vmem:[%s17702_s5 + $0x6c8] sm:$0xf]  ;;  %v11331_v53 = vld [vmem:[%s17702_s5 + $0x2ec] sm:$0xf0] }
 0x20d   : > { %v9234_v0 = vor.u32 %v11398_v22, %v9231_v55  ;;  %v11458_v1 = vld [vmem:[%s17702_s5 + $0x6e4] sm:$0xf0]  ;;  %v9333_v54 = vld [vmem:[%s17702_s5 + $0x5d0] sm:$0xf]  ;;  %v11287_v55 = vld [vmem:[%s17702_s5 + $0x194] sm:$0xf]  ;;  %v8950_v60 = vor.u32 %v11331_v53, %v8949_v18 }
 0x20e   : > { %v2682_v40 = vmax.f32 %v2676_v3, 0.0  ;;  %v9199_v3 = vld [vmem:[%s17702_s5 + $0x4e8] sm:$0xf0]  ;;  %v9454_v7 = vor.u32 %v11458_v1, %v9453_v36  ;;  %v11427_v22 = vld [vmem:[%s17702_s5 + $0x5ec] sm:$0xf0] }
 0x20f   : > { %4404 = vmatpush.bf16.msra.mxu0 %v8594_v2  ;;  %4413 = vmatpush.bf16.msra.mxu1 %v8978_v50  ;;  %v8694_v2 = vor.u32 %v11267_v57, %v8693_v56  ;;  %v8661_v50 = vld [vmem:[%s17702_s5 + $0x90] sm:$0xf]  ;;  %v9202_v8 = vor.u32 %v11390_v5, %v9199_v3  ;;  %v8791_v56 = vld [vmem:[%s17702_s5 + $0x1b0] sm:$0xf0]  ;;  %v11446_v18 = vld [vmem:[%s17702_s5 + $0x68c] sm:$0xf] }
 0x210   : > { %v14548_v25 = vpack.c.bf16 %v2682_v40, %v2682_v40  ;;  %4378 = vmatpush.bf16.msrb.mxu2 %v9102_v39  ;;  %v9167_v39 = vld [vmem:[%s17702_s5 + $0x4a8] sm:$0xf0]  ;;  %v8794_v36 = vor.u32 %v11287_v55, %v8791_v56  ;;  %v8917_v1 = vld [vmem:[%s17702_s5 + $0x290] sm:$0xf]  ;;  %v11279_v3 = vld [vmem:[%s17702_s5 + $0x154] sm:$0xf] }
 0x211   : > { %v9170_v21 = vor.u32 %v11382_v38, %v9167_v39  ;;  %v11419_v5 = vld [vmem:[%s17702_s5 + $0x5ac] sm:$0xf0]  ;;  %v11271_v39 = vld [vmem:[%s17702_s5 + $0x114] sm:$0xf]  ;;  %v9423_v53 = vld [vmem:[%s17702_s5 + $0x6a8] sm:$0xf0] }
 0x212   : > { %4288 = vmatmul.bf16.vlgmr.msrb.gmra.mxu3 %v14548_v25  ;;  %4405 = vmatmul.bf16.vlgmr.msra.gmra.mxu0 %v14241_v42  ;;  %v11411_v38 = vld [vmem:[%s17702_s5 + $0x56c] sm:$0xf0] }
 0x213   : > { %4449 = vmatpush.bf16.msrb.mxu0 %v8822_v6  ;;  %4384 = vmatpush.bf16.msrb.mxu3 %v9582_v14  ;;  %v2677_v26 = vpop.f32.mrf.mxu3  ;;  %v11259_v6 = vld [vmem:[%s17702_s5 + $0xac] sm:$0xf0] }
 0x214   : > { %4414 = vmatpush.bf16.msra.mxu1 %v8946_v15  ;;  %4423 = vmatpush.bf16.msra.mxu2 %v9330_v16  ;;  %v8662_v40 = vor.u32 %v11259_v6, %v8661_v50  ;;  %v8629_v14 = vld [vmem:[%s17702_s5 + $0x50] sm:$0xf]  ;;  %v8759_v50 = vld [vmem:[%s17702_s5 + $0x170] sm:$0xf0] }
 0x215   : > { %4379 = vmatmul.bf16.vlgmr.msrb.gmra.mxu2 %v14389_v62  ;;  %v11251_v15 = vld [vmem:[%s17702_s5 + $0x6c] sm:$0xf0]  ;;  %v8762_v9 = vor.u32 %v11279_v3, %v8759_v50  ;;  %v11239_v50 = vld [vmem:[%s17702_s5 + $0x14] sm:$0xf] }
 0x216   : > { %v9013_v16 = vld [vmem:[%s17702_s5 + $0x350] sm:$0xf]  ;;  %v8630_v49 = vor.u32 %v11251_v15, %v8629_v14  ;;  %v8727_v14 = vld [vmem:[%s17702_s5 + $0x130] sm:$0xf0] }
 0x217   : > { %4450 = vmatpush.bf16.msrb.mxu0 %v8790_v23  ;;  %4385 = vmatpush.bf16.msrb.mxu3 %v9550_v30  ;;  %v9389_v23 = vld [vmem:[%s17702_s5 + $0x648] sm:$0xf]  ;;  %v9014_v58 = vor.u32 %v11347_v19, %v9013_v16  ;;  %v8597_v26 = vld [vmem:[%s17702_s5 + $0x10] sm:$0xf]  ;;  %v11462_v19 = vld [vmem:[%s17702_s5 + $0x70c] sm:$0xf] }
 0x218   : > { %4415 = vmatpush.bf16.msra.mxu1 %v8914_v31  ;;  %4424 = vmatpush.bf16.msra.mxu2 %v9298_v32  ;;  %v11243_v30 = vld [vmem:[%s17702_s5 + $0x2c] sm:$0xf0]  ;;  %v9390_v33 = vor.u32 %v11442_v24, %v9389_v23  ;;  %v8730_v23 = vor.u32 %v11271_v39, %v8727_v14 }
 0x219   : > { %v8981_v31 = vld [vmem:[%s17702_s5 + $0x310] sm:$0xf]  ;;  %v8598_v45 = vor.u32 %v11243_v30, %v8597_v26  ;;  %v8695_v26 = vld [vmem:[%s17702_s5 + $0xf0] sm:$0xf0] }
 0x21a   : > { %v11339_v32 = vld [vmem:[%s17702_s5 + $0x32c] sm:$0xf0] }
 0x21b   : > { %4451 = vmatpush.bf16.msrb.mxu0 %v8758_v41  ;;  %4386 = vmatpush.bf16.msrb.mxu3 %v9518_v46  ;;  %v9138_v41 = vor.u32 %v11374_v27, %v9135_v29  ;;  %v8982_v12 = vor.u32 %v11339_v32, %v8981_v31  ;;  %v9103_v46 = vld [vmem:[%s17702_s5 + $0x428] sm:$0xf0]  ;;  %v8853_v24 = vld [vmem:[%s17702_s5 + $0x210] sm:$0xf]  ;;  %v11263_v29 = vld [vmem:[%s17702_s5 + $0xd4] sm:$0xf] }
 0x21c   : > { %4416 = vmatpush.bf16.msra.mxu1 %v8882_v51  ;;  %4425 = vmatpush.bf16.msra.mxu2 %v9266_v52  ;;  %v9583_v51 = vld [vmem:[%s17702_s5 + $0x7e8] sm:$0xf0]  ;;  %v8826_v52 = vor.u32 %v11295_v35, %v8823_v37  ;;  %v9106_v57 = vor.u32 %v11366_v28, %v9103_v46  ;;  %v11403_v27 = vld [vmem:[%s17702_s5 + $0x52c] sm:$0xf0]  ;;  %v11359_v31 = vld [vmem:[%s17702_s5 + $0x3d4] sm:$0xf] }
 0x21d   : > { %v9586_v59 = vor.u32 %v11486_v48, %v9583_v51  ;;  %v9079_v32 = vld [vmem:[%s17702_s5 + $0x3f0] sm:$0xf0]  ;;  %v11454_v35 = vld [vmem:[%s17702_s5 + $0x6cc] sm:$0xf]  ;;  %v11387_v56 = vld [vmem:[%s17702_s5 + $0x4ac] sm:$0xf0] }
 0x21e   : > { %v9455_v37 = vld [vmem:[%s17702_s5 + $0x6e8] sm:$0xf0]  ;;  %v9082_v28 = vor.u32 %v11359_v31, %v9079_v32  ;;  %v8663_v46 = vld [vmem:[%s17702_s5 + $0xb0] sm:$0xf0]  ;;  %v9589_v39 = vld [vmem:[%s17702_s5 + $0x7d0] sm:$0xf] }
 0x21f   : > { %4452 = vmatpush.bf16.msrb.mxu0 %v8726_v47  ;;  %4387 = vmatpush.bf16.msrb.mxu3 %v9486_v61  ;;  %v9358_v47 = vor.u32 %v11434_v44, %v9357_v43  ;;  %v11478_v61 = vld [vmem:[%s17702_s5 + $0x78c] sm:$0xf]  ;;  %v8698_v43 = vor.u32 %v11263_v29, %v8695_v26  ;;  %v9205_v44 = vld [vmem:[%s17702_s5 + $0x4d0] sm:$0xf]  ;;  %v9458_v48 = vor.u32 %v11454_v35, %v9455_v37  ;;  %v11351_v51 = vld [vmem:[%s17702_s5 + $0x394] sm:$0xf] }
 0x220   : > { %4417 = vmatpush.bf16.msra.mxu1 %v8850_v63  ;;  %4426 = vmatpush.bf16.msra.mxu2 %v9234_v0  ;;  %v9551_v63 = vld [vmem:[%s17702_s5 + $0x7a8] sm:$0xf0]  ;;  %v9334_v0 = vor.u32 %v11427_v22, %v9333_v54  ;;  %v9173_v22 = vld [vmem:[%s17702_s5 + $0x490] sm:$0xf]  ;;  %v8797_v29 = vld [vmem:[%s17702_s5 + $0x198] sm:$0xf] }
 0x221   : > { %v9554_v6 = vor.u32 %v11478_v61, %v9551_v63  ;;  %v11343_v61 = vld [vmem:[%s17702_s5 + $0x354] sm:$0xf]  ;;  %v11491_v14 = vld [vmem:[%s17702_s5 + $0x7ec] sm:$0xf0]  ;;  %v11292_v26 = vld [vmem:[%s17702_s5 + $0x1b4] sm:$0xf0] }
 0x222   : > { %4340 = vmatmul.bf16.vlgmr.msra.gmra.mxu3 %v14548_v25  ;;  %v9015_v63 = vld [vmem:[%s17702_s5 + $0x370] sm:$0xf0]  ;;  %v9557_v31 = vld [vmem:[%s17702_s5 + $0x790] sm:$0xf] }
 0x223   : > { %4453 = vmatpush.bf16.msrb.mxu0 %v8694_v2  ;;  %4388 = vmatpush.bf16.msrb.mxu3 %v9454_v7  ;;  %v11323_v2 = vld [vmem:[%s17702_s5 + $0x2ac] sm:$0xf0]  ;;  %v9519_v7 = vld [vmem:[%s17702_s5 + $0x768] sm:$0xf0]  ;;  %v9018_v3 = vor.u32 %v11343_v61, %v9015_v63  ;;  %v11319_v37 = vld [vmem:[%s17702_s5 + $0x294] sm:$0xf] }
 0x224   : > { %4462 = vmatpush.bf16.msrb.mxu1 %v9078_v4  ;;  %4427 = vmatpush.bf16.msra.mxu2 %v9202_v8  ;;  %v9301_v4 = vld [vmem:[%s17702_s5 + $0x590] sm:$0xf]  ;;  %v8918_v11 = vor.u32 %v11323_v2, %v8917_v1  ;;  %v9522_v15 = vor.u32 %v11470_v34, %v9519_v7  ;;  %v9174_v1 = vor.u32 %v11387_v56, %v9173_v22  ;;  %v8983_v7 = vld [vmem:[%s17702_s5 + $0x330] sm:$0xf0] }
 0x225   : > { %4418 = vmatmul.bf16.vlgmr.msra.gmra.mxu1 %v14306_v17  ;;  %v9302_v8 = vor.u32 %v11419_v5, %v9301_v4  ;;  %v9141_v4 = vld [vmem:[%s17702_s5 + $0x450] sm:$0xf]  ;;  %v11407_v22 = vld [vmem:[%s17702_s5 + $0x554] sm:$0xf] }
 0x226   : > { %v11379_v5 = vld [vmem:[%s17702_s5 + $0x46c] sm:$0xf0] }
 0x227   : > { %4454 = vmatpush.bf16.msrb.mxu0 %v8662_v40  ;;  %4389 = vmatpush.bf16.msrb.mxu3 %v9422_v20  ;;  %v11315_v40 = vld [vmem:[%s17702_s5 + $0x26c] sm:$0xf0]  ;;  %v9487_v20 = vld [vmem:[%s17702_s5 + $0x728] sm:$0xf0] }
 0x228   : > { %4463 = vmatpush.bf16.msrb.mxu1 %v9046_v13  ;;  %4428 = vmatpush.bf16.msra.mxu2 %v9170_v21  ;;  %v9269_v13 = vld [vmem:[%s17702_s5 + $0x550] sm:$0xf]  ;;  %v8886_v16 = vor.u32 %v11315_v40, %v8885_v10  ;;  %v9490_v30 = vor.u32 %v11462_v19, %v9487_v20  ;;  %v11430_v10 = vld [vmem:[%s17702_s5 + $0x60c] sm:$0xf] }
 0x229   : > { %v9270_v21 = vor.u32 %v11411_v38, %v9269_v13  ;;  %v9359_v40 = vld [vmem:[%s17702_s5 + $0x628] sm:$0xf0]  ;;  %v9142_v13 = vor.u32 %v11379_v5, %v9141_v4  ;;  %v9109_v19 = vld [vmem:[%s17702_s5 + $0x410] sm:$0xf]  ;;  %v11399_v5 = vld [vmem:[%s17702_s5 + $0x514] sm:$0xf] }
 0x22a   : > { %v11371_v20 = vld [vmem:[%s17702_s5 + $0x42c] sm:$0xf0] }
 0x22b   : > { %4455 = vmatpush.bf16.msrb.mxu0 %v8630_v49  ;;  %4390 = vmatpush.bf16.msrb.mxu3 %v9390_v33  ;;  %v11307_v49 = vld [vmem:[%s17702_s5 + $0x22c] sm:$0xf0] }
 0x22c   : > { %4464 = vmatpush.bf16.msrb.mxu1 %v9014_v58  ;;  %4429 = vmatpush.bf16.msra.mxu2 %v9138_v41  ;;  %v9237_v58 = vld [vmem:[%s17702_s5 + $0x510] sm:$0xf]  ;;  %v8854_v33 = vor.u32 %v11307_v49, %v8853_v24  ;;  %v8951_v24 = vld [vmem:[%s17702_s5 + $0x2f0] sm:$0xf0] }
 0x22d   : > { %v9238_v41 = vor.u32 %v11403_v27, %v9237_v58  ;;  %v11423_v49 = vld [vmem:[%s17702_s5 + $0x5d4] sm:$0xf]  ;;  %v9590_v27 = vor.u32 %v11491_v14, %v9589_v39  ;;  %v11483_v32 = vld [vmem:[%s17702_s5 + $0x7ac] sm:$0xf0] }
 0x22e   : > { %v9335_v58 = vld [vmem:[%s17702_s5 + $0x5f0] sm:$0xf0]  ;;  %v9493_v61 = vld [vmem:[%s17702_s5 + $0x710] sm:$0xf] }
 0x22f   : > { %4456 = vmatpush.bf16.msrb.mxu0 %v8598_v45  ;;  %4391 = vmatpush.bf16.msrb.mxu3 %v9358_v47  ;;  %v11395_v45 = vld [vmem:[%s17702_s5 + $0x4ec] sm:$0xf0]  ;;  %v9338_v35 = vor.u32 %v11423_v49, %v9335_v58  ;;  %v11391_v39 = vld [vmem:[%s17702_s5 + $0x4d4] sm:$0xf] }
 0x230   : > { %4465 = vmatpush.bf16.msrb.mxu1 %v8982_v12  ;;  %4430 = vmatpush.bf16.msra.mxu2 %v9106_v57  ;;  %v11255_v12 = vld [vmem:[%s17702_s5 + $0x94] sm:$0xf]  ;;  %v9206_v54 = vor.u32 %v11395_v45, %v9205_v44  ;;  %v9558_v45 = vor.u32 %v11483_v32, %v9557_v31  ;;  %v11467_v63 = vld [vmem:[%s17702_s5 + $0x72c] sm:$0xf0]  ;;  %v8637_v31 = vld [vmem:[%s17702_s5 + $0x58] sm:$0xf] }
 0x231   : > { %v8666_v47 = vor.u32 %v11255_v12, %v8663_v46  ;;  %v11247_v57 = vld [vmem:[%s17702_s5 + $0x54] sm:$0xf]  ;;  %v8765_v12 = vld [vmem:[%s17702_s5 + $0x158] sm:$0xf]  ;;  %v11451_v49 = vld [vmem:[%s17702_s5 + $0x6ac] sm:$0xf0] }
 0x232   : > { %4457 = vmatmul.bf16.vlgmr.msrb.gmra.mxu0 %v14241_v42  ;;  %4392 = vmatmul.bf16.vlgmr.msrb.gmra.mxu3 %v14548_v25  ;;  %v11415_v44 = vld [vmem:[%s17702_s5 + $0x594] sm:$0xf]  ;;  %v11284_v46 = vld [vmem:[%s17702_s5 + $0x174] sm:$0xf0] }
 0x233   : > { %4501 = vmatpush.bf16.msra.mxu0 %v8826_v52  ;;  %4436 = vmatpush.bf16.msra.mxu3 %v9586_v59  ;;  %v9047_v52 = vld [vmem:[%s17702_s5 + $0x3b0] sm:$0xf0] }
 0x234   : > { %4466 = vmatpush.bf16.msrb.mxu1 %v8950_v60  ;;  %4475 = vmatpush.bf16.msrb.mxu2 %v9334_v0  ;;  %v9050_v55 = vor.u32 %v11351_v51, %v9047_v52  ;;  %v8631_v59 = vld [vmem:[%s17702_s5 + $0x70] sm:$0xf0]  ;;  %v9426_v60 = vor.u32 %v11446_v18, %v9423_v53  ;;  %v11438_v0 = vld [vmem:[%s17702_s5 + $0x64c] sm:$0xf]  ;;  %v11475_v51 = vld [vmem:[%s17702_s5 + $0x76c] sm:$0xf0] }
 0x235   : > { %4431 = vmatmul.bf16.vlgmr.msra.gmra.mxu2 %v14389_v62  ;;  %v8634_v2 = vor.u32 %v11247_v57, %v8631_v59  ;;  %v11311_v53 = vld [vmem:[%s17702_s5 + $0x254] sm:$0xf]  ;;  %v8733_v57 = vld [vmem:[%s17702_s5 + $0x118] sm:$0xf] }
 0x236   : > { %v11276_v59 = vld [vmem:[%s17702_s5 + $0x134] sm:$0xf0]  ;;  %v9207_v14 = vld [vmem:[%s17702_s5 + $0x4f0] sm:$0xf0] }
 0x237   : > { %4502 = vmatpush.bf16.msra.mxu0 %v8794_v36  ;;  %4437 = vmatpush.bf16.msra.mxu3 %v9554_v6  ;;  %v9391_v36 = vld [vmem:[%s17702_s5 + $0x668] sm:$0xf0]  ;;  %v8599_v6 = vld [vmem:[%s17702_s5 + $0x30] sm:$0xf0]  ;;  %v8734_v4 = vor.u32 %v11276_v59, %v8733_v57  ;;  %v9210_v58 = vor.u32 %v11391_v39, %v9207_v14  ;;  %v11435_v57 = vld [vmem:[%s17702_s5 + $0x62c] sm:$0xf0] }
 0x238   : > { %4467 = vmatpush.bf16.msrb.mxu1 %v8918_v11  ;;  %4476 = vmatpush.bf16.msrb.mxu2 %v9302_v8  ;;  %v11335_v11 = vld [vmem:[%s17702_s5 + $0x314] sm:$0xf]  ;;  %v9394_v34 = vor.u32 %v11438_v0, %v9391_v36  ;;  %v8829_v8 = vld [vmem:[%s17702_s5 + $0x1d8] sm:$0xf]  ;;  %v8602_v38 = vor.u32 %v11239_v50, %v8599_v6  ;;  %v9494_v6 = vor.u32 %v11467_v63, %v9493_v61 }
 0x239   : > { %v8701_v50 = vld [vmem:[%s17702_s5 + $0xd8] sm:$0xf]  ;;  %v11487_v61 = vld [vmem:[%s17702_s5 + $0x7d4] sm:$0xf] }
 0x23a   : > { %v9591_v63 = vld [vmem:[%s17702_s5 + $0x7f0] sm:$0xf0]  ;;  %v8925_v39 = vld [vmem:[%s17702_s5 + $0x298] sm:$0xf] }
 0x23b   : > { %4503 = vmatpush.bf16.msra.mxu0 %v8762_v9  ;;  %4438 = vmatpush.bf16.msra.mxu3 %v9522_v15  ;;  %v11300_v9 = vld [vmem:[%s17702_s5 + $0x1f4] sm:$0xf0]  ;;  %v8986_v15 = vor.u32 %v11335_v11, %v8983_v7 }
 0x23c   : > { %4468 = vmatpush.bf16.msrb.mxu1 %v8886_v16  ;;  %4477 = vmatpush.bf16.msrb.mxu2 %v9270_v21  ;;  %v8830_v16 = vor.u32 %v11300_v9, %v8829_v8  ;;  %v11327_v21 = vld [vmem:[%s17702_s5 + $0x2d4] sm:$0xf]  ;;  %v11268_v11 = vld [vmem:[%s17702_s5 + $0xf4] sm:$0xf0]  ;;  %v9461_v8 = vld [vmem:[%s17702_s5 + $0x6d0] sm:$0xf] }
 0x23d   : > { %v11364_v7 = vld [vmem:[%s17702_s5 + $0x3f4] sm:$0xf0]  ;;  %v11459_v9 = vld [vmem:[%s17702_s5 + $0x6ec] sm:$0xf0] }
 0x23f   : > { %4504 = vmatpush.bf16.msra.mxu0 %v8730_v23  ;;  %4439 = vmatpush.bf16.msra.mxu3 %v9490_v30  ;;  %v9362_v23 = vor.u32 %v11430_v10, %v9359_v40  ;;  %v9110_v30 = vor.u32 %v11371_v20, %v9109_v19  ;;  %v11260_v19 = vld [vmem:[%s17702_s5 + $0xb4] sm:$0xf0] }
 0x240   : > { %4469 = vmatpush.bf16.msrb.mxu1 %v8854_v33  ;;  %4478 = vmatpush.bf16.msrb.mxu2 %v9238_v41  ;;  %v8954_v33 = vor.u32 %v11327_v21, %v8951_v24  ;;  %v8798_v41 = vor.u32 %v11292_v26, %v8797_v29  ;;  %v9053_v20 = vld [vmem:[%s17702_s5 + $0x398] sm:$0xf]  ;;  %v9429_v24 = vld [vmem:[%s17702_s5 + $0x690] sm:$0xf]  ;;  %v11383_v26 = vld [vmem:[%s17702_s5 + $0x494] sm:$0xf] }
 0x241   : > { %v11356_v21 = vld [vmem:[%s17702_s5 + $0x3b4] sm:$0xf0]  ;;  %v9430_v32 = vor.u32 %v11451_v49, %v9429_v24  ;;  %v11280_v24 = vld [vmem:[%s17702_s5 + $0x15c] sm:$0xf] }
 0x242   : > { %v9054_v29 = vor.u32 %v11356_v21, %v9053_v20  ;;  %v8767_v49 = vld [vmem:[%s17702_s5 + $0x178] sm:$0xf0] }
 0x243   : > { %4505 = vmatpush.bf16.msra.mxu0 %v8698_v43  ;;  %4440 = vmatpush.bf16.msra.mxu3 %v9458_v48  ;;  %v8919_v43 = vld [vmem:[%s17702_s5 + $0x2b0] sm:$0xf0]  ;;  %v9525_v48 = vld [vmem:[%s17702_s5 + $0x750] sm:$0xf] }
 0x244   : > { %4514 = vmatpush.bf16.msra.mxu1 %v9082_v28  ;;  %4479 = vmatpush.bf16.msrb.mxu2 %v9206_v54  ;;  %v9303_v28 = vld [vmem:[%s17702_s5 + $0x5b0] sm:$0xf0]  ;;  %v8922_v52 = vor.u32 %v11319_v37, %v8919_v43  ;;  %v8766_v54 = vor.u32 %v11284_v46, %v8765_v12  ;;  %v9526_v56 = vor.u32 %v11475_v51, %v9525_v48  ;;  %v11348_v37 = vld [vmem:[%s17702_s5 + $0x374] sm:$0xf0]  ;;  %v11443_v43 = vld [vmem:[%s17702_s5 + $0x66c] sm:$0xf0] }
 0x245   : > { %4470 = vmatmul.bf16.vlgmr.msrb.gmra.mxu1 %v14306_v17  ;;  %v9306_v18 = vor.u32 %v11415_v44, %v9303_v28  ;;  %v11375_v28 = vld [vmem:[%s17702_s5 + $0x454] sm:$0xf]  ;;  %v8605_v48 = vld [vmem:[%s17702_s5 + $0x18] sm:$0xf] }
 0x246   : > { %v9143_v46 = vld [vmem:[%s17702_s5 + $0x470] sm:$0xf0]  ;;  %v11244_v51 = vld [vmem:[%s17702_s5 + $0x34] sm:$0xf0] }
 0x247   : > { %4506 = vmatpush.bf16.msra.mxu0 %v8666_v47  ;;  %4441 = vmatpush.bf16.msra.mxu3 %v9426_v60  ;;  %v8887_v47 = vld [vmem:[%s17702_s5 + $0x270] sm:$0xf0]  ;;  %v9146_v59 = vor.u32 %v11375_v28, %v9143_v46  ;;  %v8861_v46 = vld [vmem:[%s17702_s5 + $0x218] sm:$0xf] }
 0x248   : > { %4515 = vmatpush.bf16.msra.mxu1 %v9050_v55  ;;  %4480 = vmatpush.bf16.msrb.mxu2 %v9174_v1  ;;  %v9271_v55 = vld [vmem:[%s17702_s5 + $0x570] sm:$0xf0]  ;;  %v8890_v0 = vor.u32 %v11311_v53, %v8887_v47  ;;  %v11340_v53 = vld [vmem:[%s17702_s5 + $0x334] sm:$0xf0] }
 0x249   : > { %v9274_v36 = vor.u32 %v11407_v22, %v9271_v55  ;;  %v11303_v1 = vld [vmem:[%s17702_s5 + $0x214] sm:$0xf]  ;;  %v8831_v55 = vld [vmem:[%s17702_s5 + $0x1f8] sm:$0xf0] }
 0x24a   : > { %v9495_v28 = vld [vmem:[%s17702_s5 + $0x730] sm:$0xf0] }
 0x24b   : > { %4507 = vmatpush.bf16.msra.mxu0 %v8634_v2  ;;  %4442 = vmatpush.bf16.msra.mxu3 %v9394_v34  ;;  %v8855_v2 = vld [vmem:[%s17702_s5 + $0x230] sm:$0xf0]  ;;  %v9085_v34 = vld [vmem:[%s17702_s5 + $0x3d8] sm:$0xf] }
 0x24c   : > { %4516 = vmatpush.bf16.msra.mxu1 %v9018_v3  ;;  %4481 = vmatpush.bf16.msrb.mxu2 %v9142_v13  ;;  %v9239_v3 = vld [vmem:[%s17702_s5 + $0x530] sm:$0xf0]  ;;  %v8858_v10 = vor.u32 %v11303_v1, %v8855_v2  ;;  %v8702_v13 = vor.u32 %v11268_v11, %v8701_v50  ;;  %v11332_v50 = vld [vmem:[%s17702_s5 + $0x2f4] sm:$0xf0] }
 0x24d   : > { %v9242_v40 = vor.u32 %v11399_v5, %v9239_v3  ;;  %v11367_v1 = vld [vmem:[%s17702_s5 + $0x414] sm:$0xf]  ;;  %v11428_v11 = vld [vmem:[%s17702_s5 + $0x5f4] sm:$0xf0] }
 0x24e   : > { %v9111_v2 = vld [vmem:[%s17702_s5 + $0x430] sm:$0xf0] }
 0x24f   : > { %4508 = vmatpush.bf16.msra.mxu0 %v8602_v38  ;;  %4443 = vmatpush.bf16.msra.mxu3 %v9362_v23  ;;  %v14994_v60 = vpop.f32.mrf.mxu0  ;;  %v9086_v38 = vor.u32 %v11364_v7, %v9085_v34  ;;  %v9594_v34 = vor.u32 %v11487_v61, %v9591_v63  ;;  %v11288_v7 = vld [vmem:[%s17702_s5 + $0x19c] sm:$0xf]  ;;  %v11455_v63 = vld [vmem:[%s17702_s5 + $0x6d4] sm:$0xf] }
 0x250   : > { %4517 = vmatpush.bf16.msra.mxu1 %v8986_v15  ;;  %4482 = vmatpush.bf16.msrb.mxu2 %v9110_v30  ;;  %v8669_v15 = vld [vmem:[%s17702_s5 + $0x98] sm:$0xf]  ;;  %v9175_v30 = vld [vmem:[%s17702_s5 + $0x4b0] sm:$0xf0] }
 0x251   : > { %v9178_v44 = vor.u32 %v11383_v26, %v9175_v30  ;;  %v8893_v30 = vld [vmem:[%s17702_s5 + $0x258] sm:$0xf] }
 0x252   : > { %4509 = vmatmul.bf16.vlgmr.msra.gmra.mxu0 %v14241_v42  ;;  %4444 = vmatmul.bf16.vlgmr.msra.gmra.mxu3 %v14548_v25 }
 0x253   : > { %4553 = vmatpush.bf16.msrb.mxu0 %v8830_v16  ;;  %4488 = vmatpush.bf16.msrb.mxu3 %v9590_v27  ;;  %v9462_v16 = vor.u32 %v11459_v9, %v9461_v8  ;;  %v8670_v27 = vor.u32 %v11260_v19, %v8669_v15  ;;  %v8799_v8 = vld [vmem:[%s17702_s5 + $0x1b8] sm:$0xf0]  ;;  %v9114_v9 = vor.u32 %v11367_v1, %v9111_v2  ;;  %v11324_v15 = vld [vmem:[%s17702_s5 + $0x2b4] sm:$0xf0] }
 0x254   : > { %4518 = vmatpush.bf16.msra.mxu1 %v8954_v33  ;;  %4527 = vmatpush.bf16.msra.mxu2 %v9338_v35  ;;  %v11252_v33 = vld [vmem:[%s17702_s5 + $0x74] sm:$0xf0]  ;;  %v8802_v14 = vor.u32 %v11288_v7, %v8799_v8  ;;  %v9055_v7 = vld [vmem:[%s17702_s5 + $0x3b8] sm:$0xf0]  ;;  %v11447_v8 = vld [vmem:[%s17702_s5 + $0x694] sm:$0xf] }
 0x255   : > { %4483 = vmatmul.bf16.vlgmr.msrb.gmra.mxu2 %v14389_v62  ;;  %v9021_v35 = vld [vmem:[%s17702_s5 + $0x358] sm:$0xf] }
 0x256   : > { %v9022_v12 = vor.u32 %v11348_v37, %v9021_v35  ;;  %v11420_v19 = vld [vmem:[%s17702_s5 + $0x5b4] sm:$0xf0] }
 0x257   : > { %4554 = vmatpush.bf16.msrb.mxu0 %v8798_v41  ;;  %4489 = vmatpush.bf16.msrb.mxu3 %v9558_v45  ;;  %v4252_v23 = vpop.f32.mrf.mxu0  ;;  %v9397_v41 = vld [vmem:[%s17702_s5 + $0x650] sm:$0xf]  ;;  %v8638_v45 = vor.u32 %v11252_v33, %v8637_v31  ;;  %v8770_v31 = vor.u32 %v11280_v24, %v8767_v49  ;;  %v9277_v33 = vld [vmem:[%s17702_s5 + $0x558] sm:$0xf]  ;;  %v11439_v49 = vld [vmem:[%s17702_s5 + $0x654] sm:$0xf] }
 0x258   : > { %4519 = vmatpush.bf16.msra.mxu1 %v8922_v52  ;;  %4528 = vmatpush.bf16.msra.mxu2 %v9306_v18  ;;  %v9398_v52 = vor.u32 %v11443_v43, %v9397_v41  ;;  %v8989_v18 = vld [vmem:[%s17702_s5 + $0x318] sm:$0xf]  ;;  %v11272_v41 = vld [vmem:[%s17702_s5 + $0x11c] sm:$0xf] }
 0x259   : > { %v11412_v35 = vld [vmem:[%s17702_s5 + $0x574] sm:$0xf0]  ;;  %v8735_v43 = vld [vmem:[%s17702_s5 + $0x138] sm:$0xf0] }
 0x25b   : > { %4555 = vmatpush.bf16.msrb.mxu0 %v8766_v54  ;;  %4490 = vmatpush.bf16.msrb.mxu3 %v9526_v56  ;;  %v11296_v54 = vld [vmem:[%s17702_s5 + $0x1dc] sm:$0xf]  ;;  %v9365_v56 = vld [vmem:[%s17702_s5 + $0x610] sm:$0xf] }
 0x25c   : > { %4520 = vmatpush.bf16.msra.mxu1 %v8890_v0  ;;  %4529 = vmatpush.bf16.msra.mxu2 %v9274_v36  ;;  %v8606_v0 = vor.u32 %v11244_v51, %v8605_v48  ;;  %v8990_v36 = vor.u32 %v11340_v53, %v8989_v18  ;;  %v8834_v5 = vor.u32 %v11296_v54, %v8831_v55  ;;  %v11308_v48 = vld [vmem:[%s17702_s5 + $0x234] sm:$0xf0]  ;;  %v11264_v53 = vld [vmem:[%s17702_s5 + $0xdc] sm:$0xf] }
 0x25d   : > { %v9366_v3 = vor.u32 %v11435_v57, %v9365_v56  ;;  %v8738_v51 = vor.u32 %v11272_v41, %v8735_v43  ;;  %v11404_v18 = vld [vmem:[%s17702_s5 + $0x534] sm:$0xf0]  ;;  %v8703_v56 = vld [vmem:[%s17702_s5 + $0xf8] sm:$0xf0]  ;;  %v11431_v43 = vld [vmem:[%s17702_s5 + $0x614] sm:$0xf] }
 0x25e   : > { %v11360_v57 = vld [vmem:[%s17702_s5 + $0x3dc] sm:$0xf]  ;;  %v8706_v2 = vor.u32 %v11264_v53, %v8703_v56  ;;  %v9117_v53 = vld [vmem:[%s17702_s5 + $0x418] sm:$0xf] }
 0x25f   : > { %4556 = vmatpush.bf16.msrb.mxu0 %v8734_v4  ;;  %4491 = vmatpush.bf16.msrb.mxu3 %v9494_v6  ;;  %v15102_v47 = vpop.f32.mrf.mxu1  ;;  %v15104_v22 = vpop.f32.mrf.mxu0  ;;  %v8957_v4 = vld [vmem:[%s17702_s5 + $0x2d8] sm:$0xf]  ;;  %v8991_v41 = vld [vmem:[%s17702_s5 + $0x338] sm:$0xf0] }
 0x260   : > { %4521 = vmatpush.bf16.msra.mxu1 %v8858_v10  ;;  %4530 = vmatpush.bf16.msra.mxu2 %v9242_v40  ;;  %v9341_v6 = vld [vmem:[%s17702_s5 + $0x5d8] sm:$0xf]  ;;  %v11479_v10 = vld [vmem:[%s17702_s5 + $0x794] sm:$0xf]  ;;  %v11328_v56 = vld [vmem:[%s17702_s5 + $0x2dc] sm:$0xf] }
 0x261   : > { %v9559_v40 = vld [vmem:[%s17702_s5 + $0x7b0] sm:$0xf0] }
 0x262   : > { %v9562_v23 = vor.u32 %v11479_v10, %v9559_v40 }
 0x263   : > { %4557 = vmatpush.bf16.msrb.mxu0 %v8702_v13  ;;  %4492 = vmatpush.bf16.msrb.mxu3 %v9462_v16  ;;  %v8958_v13 = vor.u32 %v11332_v50, %v8957_v4  ;;  %v9309_v16 = vld [vmem:[%s17702_s5 + $0x598] sm:$0xf]  ;;  %v11256_v50 = vld [vmem:[%s17702_s5 + $0x9c] sm:$0xf] }
 0x264   : > { %4566 = vmatpush.bf16.msrb.mxu1 %v9086_v38  ;;  %4531 = vmatpush.bf16.msra.mxu2 %v9210_v58  ;;  %v9342_v38 = vor.u32 %v11428_v11, %v9341_v6  ;;  %v11471_v58 = vld [vmem:[%s17702_s5 + $0x754] sm:$0xf]  ;;  %v9310_v26 = vor.u32 %v11420_v19, %v9309_v16  ;;  %v8671_v11 = vld [vmem:[%s17702_s5 + $0xb8] sm:$0xf0] }
 0x265   : > { %4522 = vmatmul.bf16.vlgmr.msra.gmra.mxu1 %v14306_v17 }
 0x267   : > { %4558 = vmatpush.bf16.msrb.mxu0 %v8670_v27  ;;  %4493 = vmatpush.bf16.msrb.mxu3 %v9430_v32  ;;  %v4265_v20 = vpop.f32.mrf.mxu1  ;;  %v4304_v21 = vpop.f32.mrf.mxu0  ;;  %v9527_v27 = vld [vmem:[%s17702_s5 + $0x770] sm:$0xf0]  ;;  %v11316_v32 = vld [vmem:[%s17702_s5 + $0x274] sm:$0xf0] }
 0x268   : > { %4567 = vmatpush.bf16.msrb.mxu1 %v9054_v29  ;;  %4532 = vmatpush.bf16.msra.mxu2 %v9178_v44  ;;  %v8926_v29 = vor.u32 %v11324_v15, %v8925_v39  ;;  %v9530_v37 = vor.u32 %v11471_v58, %v9527_v27  ;;  %v11463_v44 = vld [vmem:[%s17702_s5 + $0x714] sm:$0xf]  ;;  %v9181_v39 = vld [vmem:[%s17702_s5 + $0x498] sm:$0xf]  ;;  %v11248_v15 = vld [vmem:[%s17702_s5 + $0x5c] sm:$0xf] }
 0x269   : > { %v9498_v55 = vor.u32 %v11463_v44, %v9495_v28  ;;  %v8639_v20 = vld [vmem:[%s17702_s5 + $0x78] sm:$0xf0]  ;;  %v9399_v58 = vld [vmem:[%s17702_s5 + $0x670] sm:$0xf0]  ;;  %v9717_v28 = vld [vmem:[%s17704_s7 + $0xe0] sm:$0xf] }
 0x26a   : > { %v11344_v21 = vld [vmem:[%s17702_s5 + $0x35c] sm:$0xf]  ;;  %v9367_v44 = vld [vmem:[%s17702_s5 + $0x630] sm:$0xf0] }
 0x26b   : > { %4559 = vmatpush.bf16.msrb.mxu0 %v8638_v45  ;;  %4494 = vmatpush.bf16.msrb.mxu3 %v9398_v52  ;;  %v8894_v45 = vor.u32 %v11316_v32, %v8893_v30  ;;  %v9245_v52 = vld [vmem:[%s17702_s5 + $0x518] sm:$0xf]  ;;  %v11240_v32 = vld [vmem:[%s17702_s5 + $0x1c] sm:$0xf] }
 0x26c   : > { %4568 = vmatpush.bf16.msrb.mxu1 %v9022_v12  ;;  %4533 = vmatpush.bf16.msra.mxu2 %v9146_v59  ;;  %v9278_v12 = vor.u32 %v11412_v35, %v9277_v33  ;;  %v9087_v59 = vld [vmem:[%s17702_s5 + $0x3f8] sm:$0xf0]  ;;  %v9246_v1 = vor.u32 %v11404_v18, %v9245_v52  ;;  %v9402_v35 = vor.u32 %v11439_v49, %v9399_v58 }
 0x26d   : > { %v9090_v4 = vor.u32 %v11360_v57, %v9087_v59  ;;  %v8607_v33 = vld [vmem:[%s17702_s5 + $0x38] sm:$0xf0]  ;;  %v9370_v59 = vor.u32 %v11431_v43, %v9367_v44 }
 0x26e   : > { %v8610_v52 = vor.u32 %v11240_v32, %v8607_v33  ;;  %v8895_v49 = vld [vmem:[%s17702_s5 + $0x278] sm:$0xf0]  ;;  %v9501_v33 = vld [vmem:[%s17702_s5 + $0x718] sm:$0xf] }
 0x26f   : > { %4560 = vmatpush.bf16.msrb.mxu0 %v8606_v0  ;;  %4495 = vmatpush.bf16.msrb.mxu3 %v9366_v3  ;;  %v15217_v54 = vpop.f32.mrf.mxu1  ;;  %v9463_v0 = vld [vmem:[%s17702_s5 + $0x6f0] sm:$0xf0]  ;;  %v11396_v3 = vld [vmem:[%s17702_s5 + $0x4f4] sm:$0xf0]  ;;  %v11408_v58 = vld [vmem:[%s17702_s5 + $0x55c] sm:$0xf] }
 0x270   : > { %4569 = vmatpush.bf16.msrb.mxu1 %v8990_v36  ;;  %4534 = vmatpush.bf16.msra.mxu2 %v9114_v9  ;;  %v8862_v36 = vor.u32 %v11308_v48, %v8861_v46  ;;  %v9466_v6 = vor.u32 %v11455_v63, %v9463_v0  ;;  %v9431_v9 = vld [vmem:[%s17702_s5 + $0x6b0] sm:$0xf0]  ;;  %v9597_v48 = vld [vmem:[%s17702_s5 + $0x7d8] sm:$0xf]  ;;  %v8959_v63 = vld [vmem:[%s17702_s5 + $0x2f8] sm:$0xf0] }
 0x271   : > { %v15228_v61 = vpop.f32.mrf.mxu0  ;;  %v9434_v19 = vor.u32 %v11447_v8, %v9431_v9  ;;  %v11424_v0 = vld [vmem:[%s17702_s5 + $0x5dc] sm:$0xf] }
 0x272   : > { %4561 = vmatmul.bf16.vlgmr.msrb.gmra.mxu0 %v14241_v42  ;;  %4496 = vmatmul.bf16.vlgmr.msrb.gmra.mxu3 %v14548_v25  ;;  %v8927_v8 = vld [vmem:[%s17702_s5 + $0x2b8] sm:$0xf0] }
 0x273   : > { %4605 = vmatpush.bf16.msra.mxu0 %v8834_v5  ;;  %4540 = vmatpush.bf16.msra.mxu3 %v9594_v34  ;;  %v9213_v5 = vld [vmem:[%s17702_s5 + $0x4d8] sm:$0xf]  ;;  %v11352_v34 = vld [vmem:[%s17702_s5 + $0x39c] sm:$0xf] }
 0x274   : > { %4570 = vmatpush.bf16.msrb.mxu1 %v8958_v13  ;;  %4579 = vmatpush.bf16.msrb.mxu2 %v9342_v38  ;;  %v9214_v40 = vor.u32 %v11396_v3, %v9213_v5  ;;  %v8674_v13 = vor.u32 %v11256_v50, %v8671_v11  ;;  %v9058_v38 = vor.u32 %v11352_v34, %v9055_v7  ;;  %v11519_v5 = vld [vmem:[%s17704_s7 + $0xcc] sm:$0xf0]  ;;  %v9565_v50 = vld [vmem:[%s17702_s5 + $0x798] sm:$0xf]  ;;  %v11320_v7 = vld [vmem:[%s17702_s5 + $0x29c] sm:$0xf] }
 0x275   : > { %4535 = vmatmul.bf16.vlgmr.msra.gmra.mxu2 %v14389_v62  ;;  %v15260_v10 = vpop.f32.mrf.mxu2  ;;  %v8962_v11 = vor.u32 %v11328_v56, %v8959_v63  ;;  %v11416_v9 = vld [vmem:[%s17702_s5 + $0x59c] sm:$0xf]  ;;  %v11460_v63 = vld [vmem:[%s17702_s5 + $0x6f4] sm:$0xf0] }
 0x276   : > { %v11304_v43 = vld [vmem:[%s17702_s5 + $0x21c] sm:$0xf] }
 0x277   : > { %4606 = vmatpush.bf16.msra.mxu0 %v8802_v14  ;;  %4541 = vmatpush.bf16.msra.mxu3 %v9562_v23  ;;  %v11388_v14 = vld [vmem:[%s17702_s5 + $0x4b4] sm:$0xf0]  ;;  %v4317_v16 = vpop.f32.mrf.mxu1  ;;  %v9023_v23 = vld [vmem:[%s17702_s5 + $0x378] sm:$0xf0] }
 0x278   : > { %4571 = vmatpush.bf16.msrb.mxu1 %v8926_v29  ;;  %4580 = vmatpush.bf16.msrb.mxu2 %v9310_v26  ;;  %v9182_v27 = vor.u32 %v11388_v14, %v9181_v39  ;;  %v9149_v29 = vld [vmem:[%s17702_s5 + $0x458] sm:$0xf]  ;;  %v8642_v26 = vor.u32 %v11248_v15, %v8639_v20  ;;  %v9026_v30 = vor.u32 %v11344_v21, %v9023_v23  ;;  %v9685_v39 = vld [vmem:[%s17704_s7 + $0xa0] sm:$0xf]  ;;  %v11515_v14 = vld [vmem:[%s17704_s7 + $0xac] sm:$0xf0] }
 0x279   : > { %v4356_v24 = vpop.f32.mrf.mxu0  ;;  %v9533_v16 = vld [vmem:[%s17702_s5 + $0x758] sm:$0xf]  ;;  %v15385_v20 = vld [vmem:[%s17703_s6] sm:$0xff]  ;;  %v8930_v21 = vor.u32 %v11320_v7, %v8927_v8  ;;  %v8863_v44 = vld [vmem:[%s17702_s5 + $0x238] sm:$0xf0] }
 0x27a   : > { %v2945_v32 = vperm.slane %v15385_v20, 0  ;;  %v9437_v7 = vld [vmem:[%s17702_s5 + $0x698] sm:$0xf] }
 0x27b   : > { %4607 = vmatpush.bf16.msra.mxu0 %v8770_v31  ;;  %4542 = vmatpush.bf16.msra.mxu3 %v9530_v37  ;;  %v11380_v31 = vld [vmem:[%s17702_s5 + $0x474] sm:$0xf0]  ;;  %v11336_v37 = vld [vmem:[%s17702_s5 + $0x31c] sm:$0xf] }
 0x27c   : > { %4572 = vmatpush.bf16.msrb.mxu1 %v8894_v45  ;;  %4581 = vmatpush.bf16.msrb.mxu2 %v9278_v12  ;;  %v11523_v45 = vld [vmem:[%s17704_s7 + $0xec] sm:$0xf0]  ;;  %v9150_v46 = vor.u32 %v11380_v31, %v9149_v29  ;;  %v8994_v18 = vor.u32 %v11336_v37, %v8991_v41  ;;  %v9686_v29 = vor.u32 %v11515_v14, %v9685_v39  ;;  %v11452_v8 = vld [vmem:[%s17702_s5 + $0x6b4] sm:$0xf0] }
 0x27d   : > { %v4278_v12 = vpop.f32.mrf.mxu2  ;;  %v11511_v31 = vld [vmem:[%s17704_s7 + $0x8c] sm:$0xf0] }
 0x27f   : > { %4608 = vmatpush.bf16.msra.mxu0 %v8738_v51  ;;  %4543 = vmatpush.bf16.msra.mxu3 %v9498_v55  ;;  %v11492_v51 = vld [vmem:[%s17702_s5 + $0x7f4] sm:$0xf0]  ;;  %v15332_v57 = vpop.f32.mrf.mxu1 }
 0x280   : > { %4573 = vmatpush.bf16.msrb.mxu1 %v8862_v36  ;;  %4582 = vmatpush.bf16.msrb.mxu2 %v9246_v1  ;;  %v11372_v55 = vld [vmem:[%s17702_s5 + $0x434] sm:$0xf0]  ;;  %v9343_v36 = vld [vmem:[%s17702_s5 + $0x5f8] sm:$0xf0]  ;;  %v9718_v1 = vor.u32 %v11523_v45, %v9717_v28 }
 0x281   : > { %v9118_v3 = vor.u32 %v11372_v55, %v9117_v53  ;;  %v9346_v34 = vor.u32 %v11424_v0, %v9343_v36  ;;  %v11400_v28 = vld [vmem:[%s17702_s5 + $0x51c] sm:$0xf]  ;;  %v11555_v53 = vld [vmem:[%s17704_s7 + $0x1ec] sm:$0xf0]  ;;  %v4251_v55 = vadd.f32 %v14994_v60, %v2945_v32  ;;  %v8866_v0 = vor.u32 %v11304_v43, %v8863_v44  ;;  %v9797_v44 = vld [vmem:[%s17704_s7 + $0x180] sm:$0xf] }
 0x282   : > { %v9247_v45 = vld [vmem:[%s17702_s5 + $0x538] sm:$0xf0] }
 0x283   : > { %4609 = vmatpush.bf16.msra.mxu0 %v8706_v2  ;;  %4544 = vmatpush.bf16.msra.mxu3 %v9466_v6  ;;  %v9598_v2 = vor.u32 %v11492_v51, %v9597_v48  ;;  %v11484_v6 = vld [vmem:[%s17702_s5 + $0x7b4] sm:$0xf0]  ;;  %v9250_v36 = vor.u32 %v11400_v28, %v9247_v45  ;;  %v11392_v60 = vld [vmem:[%s17702_s5 + $0x4dc] sm:$0xf]  ;;  %v11543_v28 = vld [vmem:[%s17704_s7 + $0x18c] sm:$0xf0] }
 0x284   : > { %4618 = vmatpush.bf16.msra.mxu1 %v9090_v4  ;;  %4583 = vmatpush.bf16.msrb.mxu2 %v9214_v40  ;;  %v9701_v4 = vld [vmem:[%s17704_s7 + $0xc0] sm:$0xf]  ;;  %v9311_v40 = vld [vmem:[%s17702_s5 + $0x5b8] sm:$0xf0]  ;;  %v2946_v45 = vperm.slane %v15385_v20, 1 }
 0x285   : > { %4574 = vmatmul.bf16.vlgmr.msrb.gmra.mxu1 %v14306_v17  ;;  %v15374_v15 = vpop.f32.mrf.mxu2  ;;  %v9314_v23 = vor.u32 %v11416_v9, %v9311_v40 }
 0x287   : > { %4610 = vmatpush.bf16.msra.mxu0 %v8674_v13  ;;  %4545 = vmatpush.bf16.msra.mxu3 %v9434_v19  ;;  %v9702_v13 = vor.u32 %v11519_v5, %v9701_v4  ;;  %v11476_v19 = vld [vmem:[%s17702_s5 + $0x774] sm:$0xf0]  ;;  %v4369_v24 = vpop.f32.mrf.mxu1 }
 0x288   : > { %4619 = vmatpush.bf16.msra.mxu1 %v9058_v38  ;;  %4584 = vmatpush.bf16.msrb.mxu2 %v9182_v27  ;;  %v9566_v38 = vor.u32 %v11484_v6, %v9565_v50  ;;  %v9279_v27 = vld [vmem:[%s17702_s5 + $0x578] sm:$0xf0]  ;;  %v9829_v6 = vld [vmem:[%s17704_s7 + $0x1c0] sm:$0xf]  ;;  %v11547_v24 = vld [vmem:[%s17704_s7 + $0x1ac] sm:$0xf0] }
 0x289   : > { %v9282_v41 = vor.u32 %v11408_v58, %v9279_v27  ;;  %v9405_v58 = vld [vmem:[%s17702_s5 + $0x658] sm:$0xf] }
 0x28a   : > { %v11444_v27 = vld [vmem:[%s17702_s5 + $0x674] sm:$0xf0] }
 0x28b   : > { %4611 = vmatpush.bf16.msra.mxu0 %v8642_v26  ;;  %4546 = vmatpush.bf16.msra.mxu3 %v9402_v35  ;;  %v9534_v26 = vor.u32 %v11476_v19, %v9533_v16  ;;  %v11468_v35 = vld [vmem:[%s17702_s5 + $0x734] sm:$0xf0]  ;;  %v9621_v16 = vld [vmem:[%s17704_s7 + $0x20] sm:$0xf]  ;;  %v9406_v43 = vor.u32 %v11444_v27, %v9405_v58 }
 0x28c   : > { %4620 = vmatpush.bf16.msra.mxu1 %v9026_v30  ;;  %4585 = vmatpush.bf16.msrb.mxu2 %v9150_v46  ;;  %v9669_v30 = vld [vmem:[%s17704_s7 + $0x80] sm:$0xf]  ;;  %v9502_v51 = vor.u32 %v11468_v35, %v9501_v33 }
 0x28d   : > { %v9670_v12 = vor.u32 %v11511_v31, %v9669_v30  ;;  %v9653_v46 = vld [vmem:[%s17704_s7 + $0x60] sm:$0xf]  ;;  %v4330_v56 = vpop.f32.mrf.mxu2  ;;  %v11376_v30 = vld [vmem:[%s17702_s5 + $0x45c] sm:$0xf] }
 0x28e   : > { %v9605_v35 = vld [vmem:[%s17704_s7] sm:$0xf]  ;;  %v11368_v56 = vld [vmem:[%s17702_s5 + $0x41c] sm:$0xf] }
 0x28f   : > { %4612 = vmatpush.bf16.msra.mxu0 %v8610_v52  ;;  %4547 = vmatpush.bf16.msra.mxu3 %v9370_v59  ;;  %v15429_v48 = vpop.f32.mrf.mxu0  ;;  %v11507_v52 = vld [vmem:[%s17704_s7 + $0x6c] sm:$0xf0]  ;;  %v9469_v59 = vld [vmem:[%s17702_s5 + $0x6d8] sm:$0xf] }
 0x290   : > { %4621 = vmatpush.bf16.msra.mxu1 %v8994_v18  ;;  %4586 = vmatpush.bf16.msrb.mxu2 %v9118_v3  ;;  %v9845_v18 = vld [vmem:[%s17704_s7 + $0x1e0] sm:$0xf]  ;;  %v9654_v4 = vor.u32 %v11507_v52, %v9653_v46  ;;  %v9470_v50 = vor.u32 %v11460_v63, %v9469_v59  ;;  %v11436_v46 = vld [vmem:[%s17702_s5 + $0x634] sm:$0xf0]  ;;  %v9119_v59 = vld [vmem:[%s17702_s5 + $0x438] sm:$0xf0] }
 0x291   : > { %v9846_v5 = vor.u32 %v11555_v53, %v9845_v18  ;;  %v9637_v3 = vld [vmem:[%s17704_s7 + $0x40] sm:$0xf]  ;;  %v11488_v53 = vld [vmem:[%s17702_s5 + $0x7dc] sm:$0xf] }
 0x292   : > { %4613 = vmatmul.bf16.vlgmr.msra.gmra.mxu0 %v14241_v42  ;;  %v11312_v42 = vld [vmem:[%s17702_s5 + $0x25c] sm:$0xf]  ;;  %4548 = vmatmul.bf16.vlgmr.msra.gmra.mxu3 %v14548_v25 }
 0x293   : > { %6276 = vmatpush.bf16.msrb.mxu0 %v9718_v1  ;;  %4592 = vmatpush.bf16.msrb.mxu3 %v9598_v2  ;;  %v8898_v37 = vor.u32 %v11312_v42, %v8895_v49  ;;  %v4264_v1 = vadd.f32 %v15102_v47, %v4251_v55  ;;  %v9215_v2 = vld [vmem:[%s17702_s5 + $0x4f8] sm:$0xf0]  ;;  %v11503_v47 = vld [vmem:[%s17704_s7 + $0x4c] sm:$0xf0]  ;;  %v9813_v42 = vld [vmem:[%s17704_s7 + $0x1a0] sm:$0xf] }
 0x294   : > { %4622 = vmatpush.bf16.msra.mxu1 %v8962_v11  ;;  %4631 = vmatpush.bf16.msra.mxu2 %v9346_v34  ;;  %v11551_v11 = vld [vmem:[%s17704_s7 + $0x1cc] sm:$0xf0]  ;;  %v9218_v40 = vor.u32 %v11392_v60, %v9215_v2  ;;  %v9638_v39 = vor.u32 %v11503_v47, %v9637_v3  ;;  %v9814_v33 = vor.u32 %v11547_v24, %v9813_v42  ;;  %v9599_v55 = vld [vmem:[%s17702_s5 + $0x7f8] sm:$0xf0]  ;;  %v9781_v60 = vld [vmem:[%s17704_s7 + $0x160] sm:$0xf] }
 0x295   : > { %4587 = vmatmul.bf16.vlgmr.msrb.gmra.mxu2 %v14389_v62  ;;  %v4277_v34 = vadd.f32 %v15260_v10, %v4264_v1  ;;  %v4289_v9 = vpop.f32.mrf.mxu3  ;;  %v11384_v10 = vld [vmem:[%s17702_s5 + $0x49c] sm:$0xf]  ;;  %v9830_v14 = vor.u32 %v11551_v11, %v9829_v6  ;;  %v11539_v2 = vld [vmem:[%s17704_s7 + $0x16c] sm:$0xf0]  ;;  %v9602_v3 = vor.u32 %v11488_v53, %v9599_v55 }
 0x296   : > { %v11587_v47 = vld [vmem:[%s17704_s7 + $0x2ec] sm:$0xf0] }
 0x297   : > { %6277 = vmatpush.bf16.msrb.mxu0 %v9702_v13  ;;  %4593 = vmatpush.bf16.msrb.mxu3 %v9566_v38  ;;  %v4290_v13 = vadd.f32 %v4289_v9, %v4277_v34  ;;  %v9183_v38 = vld [vmem:[%s17702_s5 + $0x4b8] sm:$0xf0]  ;;  %v4408_v19 = vpop.f32.mrf.mxu0  ;;  %v9122_v34 = vor.u32 %v11368_v56, %v9119_v59  ;;  %v9782_v9 = vor.u32 %v11539_v2, %v9781_v60  ;;  %v11647_v53 = vld [vmem:[%s17704_s7 + $0x4cc] sm:$0xf0]  ;;  %v9925_v56 = vld [vmem:[%s17704_s7 + $0x280] sm:$0xf] }
 0x298   : > { %4623 = vmatpush.bf16.msra.mxu1 %v8930_v21  ;;  %4632 = vmatpush.bf16.msra.mxu2 %v9314_v23  ;;  %v9438_v21 = vor.u32 %v11452_v8, %v9437_v7  ;;  %v11499_v23 = vld [vmem:[%s17704_s7 + $0x2c] sm:$0xf0]  ;;  %v11480_v7 = vld [vmem:[%s17702_s5 + $0x79c] sm:$0xf] }
 0x299   : > { %v4657_v49 = vmax.f32 %v4290_v13, 0.0  ;;  %v9622_v32 = vor.u32 %v11499_v23, %v9621_v16  ;;  %v11583_v16 = vld [vmem:[%s17704_s7 + $0x2cc] sm:$0xf0]  ;;  %v11472_v23 = vld [vmem:[%s17702_s5 + $0x75c] sm:$0xf] }
 0x29a   : > { %v11575_v59 = vld [vmem:[%s17704_s7 + $0x28c] sm:$0xf0]  ;;  %v11456_v60 = vld [vmem:[%s17702_s5 + $0x6dc] sm:$0xf] }
 0x29b   : > { %6278 = vmatpush.bf16.msrb.mxu0 %v9686_v29  ;;  %4594 = vmatpush.bf16.msrb.mxu3 %v9534_v26  ;;  %v15498_v29 = vpop.f32.mrf.mxu2  ;;  %v9186_v26 = vor.u32 %v11384_v10, %v9183_v38  ;;  %v4666_v31 = vsel %vm4665_vm0, %v4657_v49, -inf  ;;  %v9765_v10 = vld [vmem:[%s17704_s7 + $0x140] sm:$0xf]  ;;  %v11535_v38 = vld [vmem:[%s17704_s7 + $0x14c] sm:$0xf0] }
 0x29c   : > { %4624 = vmatpush.bf16.msra.mxu1 %v8898_v37  ;;  %4633 = vmatpush.bf16.msra.mxu2 %v9282_v41  ;;  %v11495_v37 = vld [vmem:[%s17704_s7 + $0xc] sm:$0xf0]  ;;  %v4667_v41 = vrot.slane %v4666_v31, 4  ;;  %v9766_v24 = vor.u32 %v11535_v38, %v9765_v10  ;;  %v9749_v49 = vld [vmem:[%s17704_s7 + $0x120] sm:$0xf] }
 0x29d   : > { %v4291_v52 = vpop.f32.mrf.mxu3  ;;  %v9606_v63 = vor.u32 %v11495_v37, %v9605_v35  ;;  %v9941_v35 = vld [vmem:[%s17704_s7 + $0x2a0] sm:$0xf]  ;;  %v11579_v37 = vld [vmem:[%s17704_s7 + $0x2ac] sm:$0xf0]  ;;  %v9471_v2 = vld [vmem:[%s17702_s5 + $0x6f8] sm:$0xf0] }
 0x29e   : > { %v9942_v52 = vor.u32 %v11579_v37, %v9941_v35  ;;  %v11563_v35 = vld [vmem:[%s17704_s7 + $0x22c] sm:$0xf0] }
 0x29f   : > { %6279 = vmatpush.bf16.msrb.mxu0 %v9670_v12  ;;  %4595 = vmatpush.bf16.msrb.mxu3 %v9502_v51  ;;  %v9373_v12 = vld [vmem:[%s17702_s5 + $0x618] sm:$0xf]  ;;  %v4668_v51 = vmax.f32 %v4666_v31, %v4667_v41 }
 0x2a0   : > { %4625 = vmatpush.bf16.msra.mxu1 %v8866_v0  ;;  %4634 = vmatpush.bf16.msra.mxu2 %v9250_v36  ;;  %v9798_v0 = vor.u32 %v11543_v28, %v9797_v44  ;;  %v9374_v1 = vor.u32 %v11436_v46, %v9373_v12  ;;  %v11527_v12 = vld [vmem:[%s17704_s7 + $0x10c] sm:$0xf0]  ;;  %v2947_v46 = vperm.slane %v15385_v20, 2 }
 0x2a1   : > { %v4669_v36 = vrot.slane %v4668_v51, 2 }
 0x2a3   : > { %6280 = vmatpush.bf16.msrb.mxu0 %v9654_v4  ;;  %4596 = vmatpush.bf16.msrb.mxu3 %v9470_v50  ;;  %v4303_v4 = vadd.f32 %v15104_v22, %v2946_v45  ;;  %v9973_v50 = vld [vmem:[%s17704_s7 + $0x2e0] sm:$0xf]  ;;  %v4670_v6 = vmax.f32 %v4668_v51, %v4669_v36  ;;  %v4382_v11 = vpop.f32.mrf.mxu2  ;;  %v9567_v22 = vld [vmem:[%s17702_s5 + $0x7b8] sm:$0xf0] }
 0x2a4   : > { %6289 = vmatpush.bf16.msrb.mxu1 %v9846_v5  ;;  %4635 = vmatpush.bf16.msra.mxu2 %v9218_v40  ;;  %v15545_v5 = vpop.f32.mrf.mxu1  ;;  %v9974_v13 = vor.u32 %v11587_v47, %v9973_v50  ;;  %v9733_v45 = vld [vmem:[%s17704_s7 + $0x100] sm:$0xf]  ;;  %v9926_v11 = vor.u32 %v11575_v59, %v9925_v56 }
 0x2a5   : > { %4626 = vmatmul.bf16.vlgmr.msra.gmra.mxu1 %v14306_v17  ;;  %v9151_v17 = vld [vmem:[%s17702_s5 + $0x478] sm:$0xf0]  ;;  %v4316_v8 = vadd.f32 %v15217_v54, %v4303_v4  ;;  %v4671_v40 = vrot.slane %v4670_v6, 1  ;;  %v9957_v54 = vld [vmem:[%s17704_s7 + $0x2c0] sm:$0xf]  ;;  %v9734_v50 = vor.u32 %v11527_v12, %v9733_v45 }
 0x2a6   : > { %v9154_v18 = vor.u32 %v11376_v30, %v9151_v17  ;;  %v9958_v27 = vor.u32 %v11583_v16, %v9957_v54  ;;  %v10229_v30 = vld [vmem:[%s17704_s7 + $0x4e0] sm:$0xf]  ;;  %v11651_v17 = vld [vmem:[%s17704_s7 + $0x4ec] sm:$0xf0] }
 0x2a7   : > { %6281 = vmatpush.bf16.msrb.mxu0 %v9638_v39  ;;  %4597 = vmatpush.bf16.msrb.mxu3 %v9438_v21  ;;  %v4329_v39 = vadd.f32 %v15374_v15, %v4316_v8  ;;  %v4672_v19 = vmax.f32 %v4670_v6, %v4671_v40  ;;  %v4341_v21 = vpop.f32.mrf.mxu3  ;;  %v9535_v15 = vld [vmem:[%s17702_s5 + $0x778] sm:$0xf0]  ;;  %v10230_v41 = vor.u32 %v11651_v17, %v10229_v30  ;;  %v11643_v4 = vld [vmem:[%s17704_s7 + $0x4ac] sm:$0xf0]  ;;  %v9893_v16 = vld [vmem:[%s17704_s7 + $0x240] sm:$0xf] }
 0x2a8   : > { %6290 = vmatpush.bf16.msrb.mxu1 %v9830_v14  ;;  %4636 = vmatpush.bf16.msra.mxu2 %v9186_v26  ;;  %v9570_v14 = vor.u32 %v11480_v7, %v9567_v22  ;;  %v11531_v26 = vld [vmem:[%s17704_s7 + $0x12c] sm:$0xf0]  ;;  %v9909_v7 = vld [vmem:[%s17704_s7 + $0x260] sm:$0xf]  ;;  %v4355_v8 = vadd.f32 %v15228_v61, %v2947_v46  ;;  %v11448_v40 = vld [vmem:[%s17702_s5 + $0x69c] sm:$0xf] }
 0x2a9   : > { %v4342_v42 = vadd.f32 %v4341_v21, %v4329_v39  ;;  %v15583_v58 = vpack.c.bf16 %v4672_v19, %v4672_v19  ;;  %v9750_v28 = vor.u32 %v11531_v26, %v9749_v49  ;;  %v11571_v22 = vld [vmem:[%s17704_s7 + $0x26c] sm:$0xf0]  ;;  %v10181_v61 = vld [vmem:[%s17704_s7 + $0x480] sm:$0xf] }
 0x2aa   : > { %v4368_v10 = vadd.f32 %v15332_v57, %v4355_v8  ;;  %v9910_v39 = vor.u32 %v11571_v22, %v9909_v7  ;;  %v11567_v57 = vld [vmem:[%s17704_s7 + $0x24c] sm:$0xf0]  ;;  %v10149_v46 = vld [vmem:[%s17704_s7 + $0x440] sm:$0xf] }
 0x2ab   : > { %6282 = vmatpush.bf16.msrb.mxu0 %v9622_v32  ;;  %4598 = vmatpush.bf16.msrb.mxu3 %v9406_v43  ;;  %v4658_v31 = vmax.f32 %v4342_v42, 0.0  ;;  %v11464_v43 = vld [vmem:[%s17702_s5 + $0x71c] sm:$0xf]  ;;  %v9894_v17 = vor.u32 %v11567_v57, %v9893_v16  ;;  %v10069_v22 = vld [vmem:[%s17704_s7 + $0x3a0] sm:$0xf] }
 0x2ac   : > { %6291 = vmatpush.bf16.msrb.mxu1 %v9814_v33  ;;  %4637 = vmatpush.bf16.msra.mxu2 %v9154_v18  ;;  %v4421_v32 = vpop.f32.mrf.mxu1  ;;  %v9538_v33 = vor.u32 %v11472_v23, %v9535_v15  ;;  %v10213_v18 = vld [vmem:[%s17704_s7 + $0x4c0] sm:$0xf]  ;;  %v4381_v21 = vadd.f32 %v15498_v29, %v4368_v10  ;;  %v11440_v15 = vld [vmem:[%s17702_s5 + $0x65c] sm:$0xf]  ;;  %v11611_v8 = vld [vmem:[%s17704_s7 + $0x3ac] sm:$0xf0] }
 0x2ad   : > { %v4673_v44 = vsel %vm4665_vm0, %v4658_v31, -inf  ;;  %v9407_v42 = vld [vmem:[%s17702_s5 + $0x678] sm:$0xf0]  ;;  %v10165_v29 = vld [vmem:[%s17704_s7 + $0x460] sm:$0xf] }
 0x2ae   : > { %v4674_v51 = vrot.slane %v4673_v44, 4  ;;  %v11635_v31 = vld [vmem:[%s17704_s7 + $0x46c] sm:$0xf0]  ;;  %v9410_v32 = vor.u32 %v11440_v15, %v9407_v42  ;;  %v9719_v16 = vld [vmem:[%s17704_s7 + $0xf0] sm:$0xf0]  ;;  %v2948_v15 = vperm.slane %v15385_v20, 3 }
 0x2af   : > { %6283 = vmatpush.bf16.msrb.mxu0 %v9606_v63  ;;  %4599 = vmatpush.bf16.msrb.mxu3 %v9374_v1  ;;  %v10214_v63 = vor.u32 %v11647_v53, %v10213_v18  ;;  %v4343_v1 = vpop.f32.mrf.mxu3  ;;  %v10166_v37 = vor.u32 %v11635_v31, %v10165_v29  ;;  %v9861_v53 = vld [vmem:[%s17704_s7 + $0x200] sm:$0xf] }
 0x2b0   : > { %6292 = vmatpush.bf16.msrb.mxu1 %v9798_v0  ;;  %4638 = vmatpush.bf16.msra.mxu2 %v9122_v34  ;;  %v10197_v0 = vld [vmem:[%s17704_s7 + $0x4a0] sm:$0xf]  ;;  %v4675_v36 = vmax.f32 %v4673_v44, %v4674_v51  ;;  %v9474_v34 = vor.u32 %v11456_v60, %v9471_v2  ;;  %v11631_v51 = vld [vmem:[%s17704_s7 + $0x44c] sm:$0xf0] }
 0x2b1   : > { %v10198_v47 = vor.u32 %v11643_v4, %v10197_v0  ;;  %v10101_v44 = vld [vmem:[%s17704_s7 + $0x3e0] sm:$0xf]  ;;  %v10150_v56 = vor.u32 %v11631_v51, %v10149_v46  ;;  %v11615_v60 = vld [vmem:[%s17704_s7 + $0x3cc] sm:$0xf0]  ;;  %v4407_v46 = vadd.f32 %v15429_v48, %v2948_v15 }
 0x2b2   : > { %4600 = vmatmul.bf16.vlgmr.msrb.gmra.mxu3 %v14548_v25  ;;  %6284 = vmatmul.bf16.vlgmr.msrb.gmra.mxu0 %v15583_v58  ;;  %v4676_v6 = vrot.slane %v4675_v36, 2  ;;  %v10085_v1 = vld [vmem:[%s17704_s7 + $0x3c0] sm:$0xf]  ;;  %v11671_v48 = vld [vmem:[%s17704_s7 + $0x58c] sm:$0xf0] }
 0x2b3   : > { %4644 = vmatpush.bf16.msra.mxu3 %v9602_v3  ;;  %4639 = vmatmul.bf16.vlgmr.msra.gmra.mxu2 %v14389_v62  ;;  %v9503_v62 = vld [vmem:[%s17702_s5 + $0x738] sm:$0xf0]  ;;  %v15640_v3 = vpop.f32.mrf.mxu0  ;;  %v10021_v51 = vld [vmem:[%s17704_s7 + $0x340] sm:$0xf] }
 0x2b4   : > { %6293 = vmatpush.bf16.msrb.mxu1 %v9782_v9  ;;  %6302 = vmatpush.bf16.msrb.mxu2 %v9974_v13  ;;  %v9506_v55 = vor.u32 %v11464_v43, %v9503_v62  ;;  %v4677_v9 = vmax.f32 %v4675_v36, %v4676_v6  ;;  %v9439_v13 = vld [vmem:[%s17702_s5 + $0x6b8] sm:$0xf0] }
 0x2b5   : > { %6328 = vmatpush.bf16.msra.mxu0 %v10230_v41  ;;  %v9442_v54 = vor.u32 %v11448_v40, %v9439_v13  ;;  %v11432_v43 = vld [vmem:[%s17702_s5 + $0x61c] sm:$0xf]  ;;  %v11623_v40 = vld [vmem:[%s17704_s7 + $0x40c] sm:$0xf0] }
 0x2b6   : > { %v4678_v38 = vrot.slane %v4677_v9, 1  ;;  %v9375_v62 = vld [vmem:[%s17702_s5 + $0x638] sm:$0xf0] }
 0x2b7   : > { %4645 = vmatpush.bf16.msra.mxu3 %v9570_v14  ;;  %v11639_v14 = vld [vmem:[%s17704_s7 + $0x48c] sm:$0xf0]  ;;  %v4393_v49 = vpop.f32.mrf.mxu3  ;;  %v9378_v18 = vor.u32 %v11432_v43, %v9375_v62  ;;  %v11513_v62 = vld [vmem:[%s17704_s7 + $0xa4] sm:$0xf] }
 0x2b8   : > { %6294 = vmatpush.bf16.msrb.mxu1 %v9766_v24  ;;  %6303 = vmatpush.bf16.msrb.mxu2 %v9958_v27  ;;  %v10182_v19 = vor.u32 %v11639_v14, %v10181_v61  ;;  %v4679_v23 = vmax.f32 %v4677_v9, %v4678_v38  ;;  %v4394_v26 = vadd.f32 %v4393_v49, %v4381_v21  ;;  %v15677_v30 = vpop.f32.mrf.mxu2  ;;  %v10117_v9 = vld [vmem:[%s17704_s7 + $0x400] sm:$0xf]  ;;  %v11607_v21 = vld [vmem:[%s17704_s7 + $0x38c] sm:$0xf0] }
 0x2b9   : > { %6329 = vmatpush.bf16.msra.mxu0 %v10214_v63  ;;  %v10118_v10 = vor.u32 %v11623_v40, %v10117_v9  ;;  %v10357_v38 = vld [vmem:[%s17704_s7 + $0x5e0] sm:$0xf]  ;;  %v10070_v61 = vor.u32 %v11611_v8, %v10069_v22  ;;  %v9655_v22 = vld [vmem:[%s17704_s7 + $0x70] sm:$0xf0]  ;;  %v11591_v40 = vld [vmem:[%s17704_s7 + $0x30c] sm:$0xf0] }
 0x2ba   : > { %v15675_v27 = vpack.c.bf16 %v4679_v23, %v4679_v23  ;;  %v4659_v41 = vmax.f32 %v4394_v26, 0.0  ;;  %v10341_v49 = vld [vmem:[%s17704_s7 + $0x5c0] sm:$0xf]  ;;  %v11679_v26 = vld [vmem:[%s17704_s7 + $0x5cc] sm:$0xf0] }
 0x2bb   : > { %4646 = vmatpush.bf16.msra.mxu3 %v9538_v33  ;;  %v4460_v24 = vpop.f32.mrf.mxu0  ;;  %v9877_v33 = vld [vmem:[%s17704_s7 + $0x220] sm:$0xf]  ;;  %v10342_v31 = vor.u32 %v11679_v26, %v10341_v49  ;;  %v11659_v49 = vld [vmem:[%s17704_s7 + $0x52c] sm:$0xf0]  ;;  %v11497_v26 = vld [vmem:[%s17704_s7 + $0x24] sm:$0xf] }
 0x2bc   : > { %6295 = vmatpush.bf16.msrb.mxu1 %v9750_v28  ;;  %6304 = vmatpush.bf16.msrb.mxu2 %v9942_v52  ;;  %v11619_v28 = vld [vmem:[%s17704_s7 + $0x3ec] sm:$0xf0]  ;;  %v4680_v45 = vsel %vm4665_vm0, %v4659_v41, -inf  ;;  %v9878_v12 = vor.u32 %v11563_v35, %v9877_v33  ;;  %v10037_v24 = vld [vmem:[%s17704_s7 + $0x360] sm:$0xf] }
 0x2bd   : > { %6330 = vmatpush.bf16.msra.mxu0 %v10198_v47  ;;  %v4681_v52 = vrot.slane %v4680_v45, 4  ;;  %v10102_v63 = vor.u32 %v11619_v28, %v10101_v44  ;;  %v11627_v47 = vld [vmem:[%s17704_s7 + $0x42c] sm:$0xf0]  ;;  %v10325_v33 = vld [vmem:[%s17704_s7 + $0x5a0] sm:$0xf] }
 0x2be   : > { %v11675_v35 = vld [vmem:[%s17704_s7 + $0x5ac] sm:$0xf0]  ;;  %v9687_v44 = vld [vmem:[%s17704_s7 + $0xb0] sm:$0xf0]  ;;  %v9989_v9 = vld [vmem:[%s17704_s7 + $0x300] sm:$0xf] }
 0x2bf   : > { %4647 = vmatpush.bf16.msra.mxu3 %v9506_v55  ;;  %v11559_v55 = vld [vmem:[%s17704_s7 + $0x20c] sm:$0xf0]  ;;  %v4682_v0 = vmax.f32 %v4680_v45, %v4681_v52  ;;  %v4395_v36 = vpop.f32.mrf.mxu3  ;;  %v10326_v28 = vor.u32 %v11675_v35, %v10325_v33  ;;  %v9690_v45 = vor.u32 %v11513_v62, %v9687_v44  ;;  %v10245_v35 = vld [vmem:[%s17704_s7 + $0x500] sm:$0xf] }
 0x2c0   : > { %6296 = vmatpush.bf16.msrb.mxu1 %v9734_v50  ;;  %6305 = vmatpush.bf16.msrb.mxu2 %v9926_v11  ;;  %v4434_v2 = vpop.f32.mrf.mxu2  ;;  %v9862_v4 = vor.u32 %v11559_v55, %v9861_v53  ;;  %v10133_v50 = vld [vmem:[%s17704_s7 + $0x420] sm:$0xf]  ;;  %v11603_v41 = vld [vmem:[%s17704_s7 + $0x36c] sm:$0xf0]  ;;  %v11509_v55 = vld [vmem:[%s17704_s7 + $0x84] sm:$0xf] }
 0x2c1   : > { %6331 = vmatpush.bf16.msra.mxu0 %v10182_v19  ;;  %v4683_v6 = vrot.slane %v4682_v0, 2  ;;  %v10134_v11 = vor.u32 %v11627_v47, %v10133_v50  ;;  %v10053_v19 = vld [vmem:[%s17704_s7 + $0x380] sm:$0xf]  ;;  %v11599_v52 = vld [vmem:[%s17704_s7 + $0x34c] sm:$0xf0] }
 0x2c2   : > { %v15717_v59 = vpop.f32.mrf.mxu1  ;;  %v10054_v29 = vor.u32 %v11607_v21, %v10053_v19  ;;  %v10309_v53 = vld [vmem:[%s17704_s7 + $0x580] sm:$0xf] }
 0x2c3   : > { %4648 = vmatpush.bf16.msra.mxu3 %v9474_v34  ;;  %6297 = vmatmul.bf16.vlgmr.msrb.gmra.mxu1 %v15675_v27  ;;  %v10086_v34 = vor.u32 %v11615_v60, %v10085_v1  ;;  %v4684_v7 = vmax.f32 %v4682_v0, %v4683_v6  ;;  %v10005_v1 = vld [vmem:[%s17704_s7 + $0x320] sm:$0xf]  ;;  %v11595_v60 = vld [vmem:[%s17704_s7 + $0x32c] sm:$0xf0] }
 0x2c4   : > { %6306 = vmatpush.bf16.msrb.mxu2 %v9910_v39  ;;  %v11683_v39 = vld [vmem:[%s17704_s7 + $0x5ec] sm:$0xf0] }
 0x2c5   : > { %6332 = vmatpush.bf16.msra.mxu0 %v10166_v37  ;;  %v4685_v13 = vrot.slane %v4684_v7, 1  ;;  %v10358_v14 = vor.u32 %v11683_v39, %v10357_v38  ;;  %v11667_v6 = vld [vmem:[%s17704_s7 + $0x56c] sm:$0xf0]  ;;  %v10277_v38 = vld [vmem:[%s17704_s7 + $0x540] sm:$0xf] }
 0x2c6   : > { %v11663_v39 = vld [vmem:[%s17704_s7 + $0x54c] sm:$0xf0] }
 0x2c7   : > { %4649 = vmatpush.bf16.msra.mxu3 %v9442_v54  ;;  %v11521_v54 = vld [vmem:[%s17704_s7 + $0xe4] sm:$0xf]  ;;  %v4686_v57 = vmax.f32 %v4684_v7, %v4685_v13  ;;  %6341 = vmatpush.bf16.msra.mxu1 %v10358_v14  ;;  %v10278_v14 = vor.u32 %v11663_v39, %v10277_v38 }
 0x2c8   : > { %6307 = vmatpush.bf16.msrb.mxu2 %v9894_v17  ;;  %v9722_v23 = vor.u32 %v11521_v54, %v9719_v16  ;;  %v11517_v17 = vld [vmem:[%s17704_s7 + $0xc4] sm:$0xf]  ;;  %v9639_v16 = vld [vmem:[%s17704_s7 + $0x50] sm:$0xf0] }
 0x2c9   : > { %6333 = vmatpush.bf16.msra.mxu0 %v10150_v56  ;;  %v15763_v42 = vpack.c.bf16 %v4686_v57, %v4686_v57  ;;  %v10022_v56 = vor.u32 %v11599_v52, %v10021_v51  ;;  %v11501_v54 = vld [vmem:[%s17704_s7 + $0x44] sm:$0xf]  ;;  %v9847_v52 = vld [vmem:[%s17704_s7 + $0x1f0] sm:$0xf0] }
 0x2ca   : > { %v9642_v57 = vor.u32 %v11501_v54, %v9639_v16  ;;  %v11553_v51 = vld [vmem:[%s17704_s7 + $0x1e4] sm:$0xf]  ;;  %v10421_v54 = vld [vmem:[%s17704_s7 + $0x660] sm:$0xf] }
 0x2cb   : > { %4650 = vmatpush.bf16.msra.mxu3 %v9410_v32  ;;  %v9703_v32 = vld [vmem:[%s17704_s7 + $0xd0] sm:$0xf0]  ;;  %6342 = vmatpush.bf16.msra.mxu1 %v10342_v31  ;;  %v11537_v16 = vld [vmem:[%s17704_s7 + $0x164] sm:$0xf] }
 0x2cc   : > { %6308 = vmatpush.bf16.msrb.mxu2 %v9878_v12  ;;  %v9706_v43 = vor.u32 %v11517_v17, %v9703_v32  ;;  %v10038_v12 = vor.u32 %v11603_v41, %v10037_v24  ;;  %v10261_v24 = vld [vmem:[%s17704_s7 + $0x520] sm:$0xf]  ;;  %v9623_v31 = vld [vmem:[%s17704_s7 + $0x30] sm:$0xf0]  ;;  %v11655_v41 = vld [vmem:[%s17704_s7 + $0x50c] sm:$0xf0] }
 0x2cd   : > { %6334 = vmatpush.bf16.msra.mxu0 %v10134_v11  ;;  %v11505_v11 = vld [vmem:[%s17704_s7 + $0x64] sm:$0xf]  ;;  %v9626_v32 = vor.u32 %v11497_v26, %v9623_v31  ;;  %v10246_v44 = vor.u32 %v11655_v41, %v10245_v35  ;;  %v10405_v26 = vld [vmem:[%s17704_s7 + $0x640] sm:$0xf] }
 0x2ce   : > { %v9658_v13 = vor.u32 %v11505_v11, %v9655_v22  ;;  %v11533_v31 = vld [vmem:[%s17704_s7 + $0x144] sm:$0xf] }
 0x2cf   : > { %4651 = vmatpush.bf16.msra.mxu3 %v9378_v18  ;;  %v15786_v37 = vpop.f32.mrf.mxu0  ;;  %6343 = vmatpush.bf16.msra.mxu1 %v10326_v28  ;;  %v4420_v18 = vadd.f32 %v15545_v5, %v4407_v46  ;;  %v9671_v5 = vld [vmem:[%s17704_s7 + $0x90] sm:$0xf0]  ;;  %v11715_v46 = vld [vmem:[%s17704_s7 + $0x6ec] sm:$0xf0] }
 0x2d0   : > { %6309 = vmatpush.bf16.msrb.mxu2 %v9862_v4  ;;  %v9674_v2 = vor.u32 %v11509_v55, %v9671_v5  ;;  %v9607_v28 = vld [vmem:[%s17704_s7 + $0x10] sm:$0xf0]  ;;  %v9850_v55 = vor.u32 %v11553_v51, %v9847_v52  ;;  %v11711_v5 = vld [vmem:[%s17704_s7 + $0x6cc] sm:$0xf0] }
 0x2d1   : > { %6335 = vmatpush.bf16.msra.mxu0 %v10118_v10  ;;  %v4433_v0 = vadd.f32 %v15677_v30, %v4420_v18  ;;  %v10293_v30 = vld [vmem:[%s17704_s7 + $0x560] sm:$0xf]  ;;  %v9751_v51 = vld [vmem:[%s17704_s7 + $0x130] sm:$0xf0] }
 0x2d2   : > { %4652 = vmatmul.bf16.vlgmr.msra.gmra.mxu3 %v14548_v25  ;;  %v4473_v25 = vpop.f32.mrf.mxu1  ;;  %v10294_v7 = vor.u32 %v11667_v6, %v10293_v30  ;;  %v11707_v30 = vld [vmem:[%s17704_s7 + $0x6ac] sm:$0xf0]  ;;  %v11545_v6 = vld [vmem:[%s17704_s7 + $0x1a4] sm:$0xf] }
 0x2d3   : > { %6315 = vmatpush.bf16.msrb.mxu3 %v10102_v63  ;;  %6310 = vmatmul.bf16.vlgmr.msrb.gmra.mxu2 %v15763_v42  ;;  %v10310_v63 = vor.u32 %v11671_v48, %v10309_v53 }
 0x2d5   : > { %6380 = vmatpush.bf16.msrb.mxu0 %v9722_v23  ;;  %v4445_v4 = vpop.f32.mrf.mxu3  ;;  %6344 = vmatpush.bf16.msra.mxu1 %v10310_v63  ;;  %v10469_v63 = vld [vmem:[%s17704_s7 + $0x6c0] sm:$0xf] }
 0x2d6   : > { %v4446_v50 = vadd.f32 %v4445_v4, %v4433_v0  ;;  %v11549_v0 = vld [vmem:[%s17704_s7 + $0x1c4] sm:$0xf] }
 0x2d7   : > { %6316 = vmatpush.bf16.msrb.mxu3 %v10086_v34  ;;  %v4512_v36 = vpop.f32.mrf.mxu0  ;;  %v10006_v34 = vor.u32 %v11595_v60, %v10005_v1  ;;  %v10470_v1 = vor.u32 %v11711_v5, %v10469_v63  ;;  %v9831_v60 = vld [vmem:[%s17704_s7 + $0x1d0] sm:$0xf0]  ;;  %v10373_v63 = vld [vmem:[%s17704_s7 + $0x600] sm:$0xf]  ;;  %v11687_v5 = vld [vmem:[%s17704_s7 + $0x60c] sm:$0xf0] }
 0x2d8   : > { %v15825_v47 = vpop.f32.mrf.mxu2  ;;  %v4660_v8 = vmax.f32 %v4446_v50, 0.0  ;;  %v2949_v36 = vperm.slane %v15385_v20, 4  ;;  %v9834_v4 = vor.u32 %v11549_v0, %v9831_v60  ;;  %v10453_v50 = vld [vmem:[%s17704_s7 + $0x6a0] sm:$0xf]  ;;  %v10374_v0 = vor.u32 %v11687_v5, %v10373_v63  ;;  %v9911_v5 = vld [vmem:[%s17704_s7 + $0x270] sm:$0xf0] }
 0x2d9   : > { %6381 = vmatpush.bf16.msrb.mxu0 %v9706_v43  ;;  %6345 = vmatpush.bf16.msra.mxu1 %v10294_v7  ;;  %v11493_v43 = vld [vmem:[%s17704_s7 + $0x4] sm:$0xf]  ;;  %v10454_v11 = vor.u32 %v11707_v30, %v10453_v50  ;;  %v10613_v30 = vld [vmem:[%s17704_s7 + $0x7e0] sm:$0xf] }
 0x2da   : > { %v4687_v10 = vsel %vm4665_vm0, %v4660_v8, -inf  ;;  %v4459_v7 = vadd.f32 %v15640_v3, %v2949_v36  ;;  %v11525_v36 = vld [vmem:[%s17704_s7 + $0x104] sm:$0xf] }
 0x2db   : > { %6317 = vmatpush.bf16.msrb.mxu3 %v10070_v61  ;;  %v4688_v25 = vrot.slane %v4687_v10, 4  ;;  %v9990_v61 = vor.u32 %v11591_v40, %v9989_v9  ;;  %v10437_v9 = vld [vmem:[%s17704_s7 + $0x680] sm:$0xf]  ;;  %v11703_v40 = vld [vmem:[%s17704_s7 + $0x68c] sm:$0xf0] }
 0x2dc   : > { %v4472_v8 = vadd.f32 %v15717_v59, %v4459_v7  ;;  %v10438_v3 = vor.u32 %v11703_v40, %v10437_v9  ;;  %v9799_v59 = vld [vmem:[%s17704_s7 + $0x190] sm:$0xf0]  ;;  %v11585_v7 = vld [vmem:[%s17704_s7 + $0x2e4] sm:$0xf] }
 0x2dd   : > { %6382 = vmatpush.bf16.msrb.mxu0 %v9690_v45  ;;  %v4689_v19 = vmax.f32 %v4687_v10, %v4688_v25  ;;  %v4447_v21 = vpop.f32.mrf.mxu3  ;;  %6346 = vmatpush.bf16.msra.mxu1 %v10278_v14  ;;  %v10485_v45 = vld [vmem:[%s17704_s7 + $0x6e0] sm:$0xf]  ;;  %v11645_v9 = vld [vmem:[%s17704_s7 + $0x4c4] sm:$0xf]  ;;  %v10215_v40 = vld [vmem:[%s17704_s7 + $0x4d0] sm:$0xf0] }
 0x2de   : > { %v10486_v48 = vor.u32 %v11715_v46, %v10485_v45  ;;  %v4485_v10 = vadd.f32 %v15825_v47, %v4472_v8  ;;  %v11699_v47 = vld [vmem:[%s17704_s7 + $0x66c] sm:$0xf0]  ;;  %v9783_v21 = vld [vmem:[%s17704_s7 + $0x170] sm:$0xf0]  ;;  %v11529_v46 = vld [vmem:[%s17704_s7 + $0x124] sm:$0xf] }
 0x2df   : > { %6318 = vmatpush.bf16.msrb.mxu3 %v10054_v29  ;;  %v4690_v17 = vrot.slane %v4689_v19, 2  ;;  %v10262_v29 = vor.u32 %v11659_v49, %v10261_v24  ;;  %v11691_v45 = vld [vmem:[%s17704_s7 + $0x62c] sm:$0xf0] }
 0x2e0   : > { %v4486_v15 = vpop.f32.mrf.mxu2  ;;  %6354 = vmatpush.bf16.msra.mxu2 %v10486_v48  ;;  %v10231_v48 = vld [vmem:[%s17704_s7 + $0x4f0] sm:$0xf0] }
 0x2e1   : > { %6383 = vmatpush.bf16.msrb.mxu0 %v9674_v2  ;;  %v4691_v33 = vmax.f32 %v4689_v19, %v4690_v17  ;;  %6347 = vmatpush.bf16.msra.mxu1 %v10262_v29  ;;  %v10422_v19 = vor.u32 %v11699_v47, %v10421_v54  ;;  %v9786_v15 = vor.u32 %v11537_v16, %v9783_v21  ;;  %v11695_v17 = vld [vmem:[%s17704_s7 + $0x64c] sm:$0xf0]  ;;  %v11641_v16 = vld [vmem:[%s17704_s7 + $0x4a4] sm:$0xf] }
 0x2e2   : > { %v15858_v23 = vpop.f32.mrf.mxu1  ;;  %v10406_v29 = vor.u32 %v11695_v17, %v10405_v26  ;;  %v10218_v54 = vor.u32 %v11645_v9, %v10215_v40 }
 0x2e3   : > { %6319 = vmatpush.bf16.msrb.mxu3 %v10038_v12  ;;  %v4692_v62 = vrot.slane %v4691_v33, 1  ;;  %v9610_v12 = vor.u32 %v11493_v43, %v9607_v28  ;;  %v10389_v28 = vld [vmem:[%s17704_s7 + $0x620] sm:$0xf] }
 0x2e4   : > { %6355 = vmatpush.bf16.msra.mxu2 %v10470_v1  ;;  %v9735_v1 = vld [vmem:[%s17704_s7 + $0x110] sm:$0xf0] }
 0x2e5   : > { %6384 = vmatpush.bf16.msrb.mxu0 %v9658_v13  ;;  %v4693_v18 = vmax.f32 %v4691_v33, %v4692_v62  ;;  %6348 = vmatpush.bf16.msra.mxu1 %v10246_v44  ;;  %v11541_v13 = vld [vmem:[%s17704_s7 + $0x184] sm:$0xf]  ;;  %v9738_v50 = vor.u32 %v11525_v36, %v9735_v1 }
 0x2e6   : > { %v9802_v25 = vor.u32 %v11541_v13, %v9799_v59  ;;  %v11581_v59 = vld [vmem:[%s17704_s7 + $0x2c4] sm:$0xf] }
 0x2e7   : > { %6320 = vmatpush.bf16.msrb.mxu3 %v10022_v56  ;;  %v15896_v56 = vpack.c.bf16 %v4693_v18, %v4693_v18  ;;  %v9754_v18 = vor.u32 %v11529_v46, %v9751_v51 }
 0x2e8   : > { %6356 = vmatpush.bf16.msra.mxu2 %v10454_v11 }
 0x2e9   : > { %6385 = vmatpush.bf16.msrb.mxu0 %v9642_v57  ;;  %6393 = vmatpush.bf16.msrb.mxu1 %v9850_v55 }
 0x2ea   : > { %v4525_v53 = vpop.f32.mrf.mxu1 }
 0x2eb   : > { %6321 = vmatpush.bf16.msrb.mxu3 %v10006_v34  ;;  %v9815_v34 = vld [vmem:[%s17704_s7 + $0x1b0] sm:$0xf0]  ;;  %v11649_v53 = vld [vmem:[%s17704_s7 + $0x4e4] sm:$0xf] }
 0x2ec   : > { %v9818_v22 = vor.u32 %v11545_v6, %v9815_v34  ;;  %6357 = vmatpush.bf16.msra.mxu2 %v10438_v3  ;;  %v11747_v6 = vld [vmem:[%s17704_s7 + $0x7ec] sm:$0xf0]  ;;  %v10234_v11 = vor.u32 %v11649_v53, %v10231_v48  ;;  %v11569_v48 = vld [vmem:[%s17704_s7 + $0x264] sm:$0xf] }
 0x2ed   : > { %6386 = vmatpush.bf16.msrb.mxu0 %v9626_v32  ;;  %6394 = vmatpush.bf16.msrb.mxu1 %v9834_v4  ;;  %v9767_v32 = vld [vmem:[%s17704_s7 + $0x150] sm:$0xf0]  ;;  %v10614_v34 = vor.u32 %v11747_v6, %v10613_v30  ;;  %v11743_v3 = vld [vmem:[%s17704_s7 + $0x7cc] sm:$0xf0]  ;;  %v9914_v36 = vor.u32 %v11569_v48, %v9911_v5  ;;  %v10533_v30 = vld [vmem:[%s17704_s7 + $0x740] sm:$0xf] }
 0x2ee   : > { %v9770_v43 = vor.u32 %v11533_v31, %v9767_v32  ;;  %v11637_v31 = vld [vmem:[%s17704_s7 + $0x484] sm:$0xf]  ;;  %v10565_v32 = vld [vmem:[%s17704_s7 + $0x780] sm:$0xf]  ;;  %v11731_v53 = vld [vmem:[%s17704_s7 + $0x76c] sm:$0xf0] }
 0x2ef   : > { %6322 = vmatpush.bf16.msrb.mxu3 %v9990_v61  ;;  %v15912_v2 = vpop.f32.mrf.mxu0  ;;  %v11727_v6 = vld [vmem:[%s17704_s7 + $0x74c] sm:$0xf0]  ;;  %v9709_v48 = vld [vmem:[%s17704_s7 + $0xc8] sm:$0xf]  ;;  %v16188_v5 = vld [vmem:[%s17703_s6] sm:$0xff] }
 0x2f0   : > { %6358 = vmatpush.bf16.msra.mxu2 %v10422_v19  ;;  %v11739_v19 = vld [vmem:[%s17704_s7 + $0x7ac] sm:$0xf0] }
 0x2f1   : > { %6387 = vmatpush.bf16.msrb.mxu0 %v9610_v12  ;;  %6395 = vmatpush.bf16.msrb.mxu1 %v9818_v22  ;;  %v10390_v12 = vor.u32 %v11691_v45, %v10389_v28  ;;  %v9975_v22 = vld [vmem:[%s17704_s7 + $0x2f0] sm:$0xf0] }
 0x2f2   : > { %6323 = vmatmul.bf16.vlgmr.msrb.gmra.mxu3 %v15896_v56  ;;  %v9978_v13 = vor.u32 %v11585_v7, %v9975_v22  ;;  %v9895_v7 = vld [vmem:[%s17704_s7 + $0x250] sm:$0xf0] }
 0x2f3   : > { %6367 = vmatpush.bf16.msra.mxu3 %v10614_v34  ;;  %v11565_v34 = vld [vmem:[%s17704_s7 + $0x244] sm:$0xf] }
 0x2f4   : > { %6359 = vmatpush.bf16.msra.mxu2 %v10406_v29 }
 0x2f5   : > { %v4497_v38 = vpop.f32.mrf.mxu3  ;;  %6396 = vmatpush.bf16.msrb.mxu1 %v9802_v25  ;;  %v9959_v25 = vld [vmem:[%s17704_s7 + $0x2d0] sm:$0xf0] }
 0x2f6   : > { %v4498_v61 = vadd.f32 %v4497_v38, %v4485_v10  ;;  %v10597_v10 = vld [vmem:[%s17704_s7 + $0x7c0] sm:$0xf]  ;;  %v2950_v38 = vperm.slane %v15385_v20, 5  ;;  %v9962_v47 = vor.u32 %v11581_v59, %v9959_v25  ;;  %v10199_v20 = vld [vmem:[%s17704_s7 + $0x4b0] sm:$0xf0] }
 0x2f7   : > { %v4564_v39 = vpop.f32.mrf.mxu0  ;;  %v10202_v26 = vor.u32 %v11641_v16, %v10199_v20  ;;  %v11625_v59 = vld [vmem:[%s17704_s7 + $0x424] sm:$0xf]  ;;  %v10517_v25 = vld [vmem:[%s17704_s7 + $0x720] sm:$0xf]  ;;  %v9879_v20 = vld [vmem:[%s17704_s7 + $0x230] sm:$0xf0] }
 0x2f8   : > { %v15941_v14 = vpop.f32.mrf.mxu2  ;;  %v4661_v57 = vmax.f32 %v4498_v61, 0.0  ;;  %6360 = vmatpush.bf16.msra.mxu2 %v10390_v12  ;;  %v10598_v39 = vor.u32 %v11743_v3, %v10597_v10  ;;  %v4511_v21 = vadd.f32 %v15786_v37, %v2950_v38  ;;  %v10183_v37 = vld [vmem:[%s17704_s7 + $0x490] sm:$0xf0]  ;;  %v9898_v10 = vor.u32 %v11565_v34, %v9895_v7  ;;  %v11561_v16 = vld [vmem:[%s17704_s7 + $0x224] sm:$0xf] }
 0x2f9   : > { %6397 = vmatpush.bf16.msrb.mxu1 %v9786_v15  ;;  %v10186_v45 = vor.u32 %v11637_v31, %v10183_v37  ;;  %v10135_v38 = vld [vmem:[%s17704_s7 + $0x430] sm:$0xf0]  ;;  %v10501_v37 = vld [vmem:[%s17704_s7 + $0x700] sm:$0xf] }
 0x2fa   : > { %v4694_v24 = vsel %vm4665_vm0, %v4661_v57, -inf  ;;  %6368 = vmatpush.bf16.msra.mxu3 %v10598_v39  ;;  %v10581_v57 = vld [vmem:[%s17704_s7 + $0x7a0] sm:$0xf]  ;;  %v4524_v29 = vadd.f32 %v15858_v23, %v4511_v21  ;;  %v11573_v23 = vld [vmem:[%s17704_s7 + $0x284] sm:$0xf] }
 0x2fb   : > { %v4695_v49 = vrot.slane %v4694_v24, 4  ;;  %v10582_v15 = vor.u32 %v11739_v19, %v10581_v57  ;;  %v10138_v19 = vor.u32 %v11625_v59, %v10135_v38  ;;  %v11621_v21 = vld [vmem:[%s17704_s7 + $0x404] sm:$0xf]  ;;  %v10311_v38 = vld [vmem:[%s17704_s7 + $0x590] sm:$0xf0] }
 0x2fc   : > { %6361 = vmatpush.bf16.msra.mxu2 %v10374_v0 }
 0x2fd   : > { %v4696_v33 = vmax.f32 %v4694_v24, %v4695_v49  ;;  %v4499_v35 = vpop.f32.mrf.mxu3  ;;  %6398 = vmatpush.bf16.msrb.mxu1 %v9770_v43  ;;  %v11577_v24 = vld [vmem:[%s17704_s7 + $0x2a4] sm:$0xf]  ;;  %v9943_v49 = vld [vmem:[%s17704_s7 + $0x2b0] sm:$0xf0] }
 0x2fe   : > { %v9946_v17 = vor.u32 %v11577_v24, %v9943_v49  ;;  %6369 = vmatpush.bf16.msra.mxu3 %v10582_v15  ;;  %v4537_v35 = vadd.f32 %v15941_v14, %v4524_v29  ;;  %v10167_v14 = vld [vmem:[%s17704_s7 + $0x470] sm:$0xf0]  ;;  %v11681_v24 = vld [vmem:[%s17704_s7 + $0x5e4] sm:$0xf]  ;;  %v9882_v49 = vor.u32 %v11561_v16, %v9879_v20  ;;  %v11524_v29 = vld [vmem:[%s17704_s7 + $0xf4] sm:$0xf0] }
 0x2ff   : > { %v4697_v44 = vrot.slane %v4696_v33, 2  ;;  %v10119_v15 = vld [vmem:[%s17704_s7 + $0x410] sm:$0xf0]  ;;  %v11605_v16 = vld [vmem:[%s17704_s7 + $0x384] sm:$0xf] }
 0x300   : > { %v4538_v62 = vpop.f32.mrf.mxu2  ;;  %6406 = vmatpush.bf16.msrb.mxu2 %v9978_v13  ;;  %v10055_v20 = vld [vmem:[%s17704_s7 + $0x390] sm:$0xf0] }
 0x301   : > { %v4698_v52 = vmax.f32 %v4696_v33, %v4697_v44  ;;  %6399 = vmatpush.bf16.msrb.mxu1 %v9754_v18  ;;  %v11735_v33 = vld [vmem:[%s17704_s7 + $0x78c] sm:$0xf0]  ;;  %v9927_v62 = vld [vmem:[%s17704_s7 + $0x290] sm:$0xf0]  ;;  %v10549_v18 = vld [vmem:[%s17704_s7 + $0x760] sm:$0xf] }
 0x302   : > { %v15968_v41 = vpop.f32.mrf.mxu1  ;;  %v10566_v43 = vor.u32 %v11735_v33, %v10565_v32  ;;  %v9930_v12 = vor.u32 %v11573_v23, %v9927_v62  ;;  %v10550_v63 = vor.u32 %v11731_v53, %v10549_v18  ;;  %v11719_v32 = vld [vmem:[%s17704_s7 + $0x70c] sm:$0xf0]  ;;  %v11557_v23 = vld [vmem:[%s17704_s7 + $0x204] sm:$0xf]  ;;  %v10343_v53 = vld [vmem:[%s17704_s7 + $0x5d0] sm:$0xf0] }
 0x303   : > { %v4699_v55 = vrot.slane %v4698_v52, 1  ;;  %v10502_v33 = vor.u32 %v11719_v32, %v10501_v37  ;;  %v11601_v37 = vld [vmem:[%s17704_s7 + $0x364] sm:$0xf]  ;;  %v10039_v32 = vld [vmem:[%s17704_s7 + $0x370] sm:$0xf0] }
 0x304   : > { %6407 = vmatpush.bf16.msrb.mxu2 %v9962_v47  ;;  %6370 = vmatpush.bf16.msra.mxu3 %v10566_v43 }
 0x305   : > { %v4700_v60 = vmax.f32 %v4698_v52, %v4699_v55  ;;  %6400 = vmatpush.bf16.msrb.mxu1 %v9738_v50  ;;  %v11633_v52 = vld [vmem:[%s17704_s7 + $0x464] sm:$0xf] }
 0x306   : > { %v10170_v0 = vor.u32 %v11633_v52, %v10167_v14  ;;  %v11617_v52 = vld [vmem:[%s17704_s7 + $0x3e4] sm:$0xf]  ;;  %v10103_v14 = vld [vmem:[%s17704_s7 + $0x3f0] sm:$0xf0] }
 0x307   : > { %v16012_v8 = vpack.c.bf16 %v4700_v60, %v4700_v60  ;;  %v11629_v60 = vld [vmem:[%s17704_s7 + $0x444] sm:$0xf] }
 0x308   : > { %6408 = vmatpush.bf16.msrb.mxu2 %v9946_v17  ;;  %6371 = vmatpush.bf16.msra.mxu3 %v10550_v63  ;;  %v9725_v17 = vld [vmem:[%s17704_s7 + $0xe8] sm:$0xf]  ;;  %v10106_v63 = vor.u32 %v11617_v52, %v10103_v14 }
 0x309   : > { %6336 = vmatmul.bf16.vlgmr.msra.gmra.mxu0 %v16012_v8 }
 0x30a   : > { %v4577_v4 = vpop.f32.mrf.mxu1  ;;  %6432 = vmatpush.bf16.msra.mxu0 %v10234_v11  ;;  %v10534_v11 = vor.u32 %v11727_v6, %v10533_v30  ;;  %v10327_v30 = vld [vmem:[%s17704_s7 + $0x5b0] sm:$0xf0]  ;;  %v9693_v6 = vld [vmem:[%s17704_s7 + $0xa8] sm:$0xf] }
 0x30b   : > { %v10151_v4 = vld [vmem:[%s17704_s7 + $0x450] sm:$0xf0] }
 0x30c   : > { %6409 = vmatpush.bf16.msrb.mxu2 %v9930_v12  ;;  %v10154_v13 = vor.u32 %v11629_v60, %v10151_v4  ;;  %6372 = vmatpush.bf16.msra.mxu3 %v10534_v11  ;;  %v9726_v12 = vor.u32 %v11524_v29, %v9725_v17  ;;  %v11516_v11 = vld [vmem:[%s17704_s7 + $0xb4] sm:$0xf0]  ;;  %v10058_v17 = vor.u32 %v11605_v16, %v10055_v20  ;;  %v9853_v16 = vld [vmem:[%s17704_s7 + $0x1e8] sm:$0xf] }
 0x30d   : > { %v9694_v59 = vor.u32 %v11516_v11, %v9693_v6  ;;  %v11556_v20 = vld [vmem:[%s17704_s7 + $0x1f4] sm:$0xf0] }
 0x30e   : > { %6433 = vmatpush.bf16.msra.mxu0 %v10218_v54  ;;  %v11723_v54 = vld [vmem:[%s17704_s7 + $0x72c] sm:$0xf0] }
 0x30f   : > { %v16034_v61 = vpop.f32.mrf.mxu0  ;;  %v10518_v47 = vor.u32 %v11723_v54, %v10517_v25 }
 0x310   : > { %6410 = vmatpush.bf16.msrb.mxu2 %v9914_v36  ;;  %v11613_v36 = vld [vmem:[%s17704_s7 + $0x3c4] sm:$0xf] }
 0x311   : > { %6373 = vmatpush.bf16.msra.mxu3 %v10518_v47 }
 0x312   : > { %6434 = vmatpush.bf16.msra.mxu0 %v10202_v26  ;;  %v10359_v26 = vld [vmem:[%s17704_s7 + $0x5f0] sm:$0xf0] }
 0x314   : > { %6411 = vmatpush.bf16.msrb.mxu2 %v9898_v10 }
 0x315   : > { %v4549_v44 = vpop.f32.mrf.mxu3  ;;  %6374 = vmatpush.bf16.msra.mxu3 %v10502_v33 }
 0x316   : > { %v4550_v46 = vadd.f32 %v4549_v44, %v4537_v35  ;;  %6435 = vmatpush.bf16.msra.mxu0 %v10186_v45  ;;  %v9863_v35 = vld [vmem:[%s17704_s7 + $0x210] sm:$0xf0]  ;;  %v10122_v44 = vor.u32 %v11621_v21, %v10119_v15  ;;  %v10362_v45 = vor.u32 %v11681_v24, %v10359_v26  ;;  %v11665_v15 = vld [vmem:[%s17704_s7 + $0x564] sm:$0xf]  ;;  %v11508_v26 = vld [vmem:[%s17704_s7 + $0x74] sm:$0xf0] }
 0x317   : > { %v4616_v28 = vpop.f32.mrf.mxu0 }
 0x318   : > { %v16075_v51 = vpop.f32.mrf.mxu2  ;;  %v4662_v55 = vmax.f32 %v4550_v46, 0.0  ;;  %6412 = vmatpush.bf16.msrb.mxu2 %v9882_v49  ;;  %v9866_v28 = vor.u32 %v11557_v23, %v9863_v35  ;;  %v11677_v46 = vld [vmem:[%s17704_s7 + $0x5c4] sm:$0xf]  ;;  %v9661_v49 = vld [vmem:[%s17704_s7 + $0x68] sm:$0xf] }
 0x319   : > { %6388 = vmatmul.bf16.vlgmr.msrb.gmra.mxu0 %v15583_v58  ;;  %v10346_v60 = vor.u32 %v11677_v46, %v10343_v53  ;;  %6419 = vmatpush.bf16.msrb.mxu3 %v10106_v63  ;;  %v10042_v46 = vor.u32 %v11601_v37, %v10039_v32  ;;  %v11709_v37 = vld [vmem:[%s17704_s7 + $0x6c4] sm:$0xf] }
 0x31a   : > { %v4701_v1 = vsel %vm4665_vm0, %v4662_v55, -inf  ;;  %6436 = vmatpush.bf16.msra.mxu0 %v10170_v0  ;;  %v11520_v55 = vld [vmem:[%s17704_s7 + $0xd4] sm:$0xf0]  ;;  %v2951_v0 = vperm.slane %v16188_v5, 6 }
 0x31b   : > { %v4702_v50 = vrot.slane %v4701_v1, 4  ;;  %v9710_v4 = vor.u32 %v11520_v55, %v9709_v48  ;;  %v11597_v48 = vld [vmem:[%s17704_s7 + $0x344] sm:$0xf]  ;;  %v10023_v55 = vld [vmem:[%s17704_s7 + $0x350] sm:$0xf0] }
 0x31c   : > { %6413 = vmatpush.bf16.msrb.mxu2 %v9866_v28  ;;  %v4563_v7 = vadd.f32 %v15912_v2, %v2951_v0  ;;  %v11669_v2 = vld [vmem:[%s17704_s7 + $0x584] sm:$0xf]  ;;  %v10026_v6 = vor.u32 %v11597_v48, %v10023_v55  ;;  %v11548_v48 = vld [vmem:[%s17704_s7 + $0x1b4] sm:$0xf0] }
 0x31d   : > { %v4703_v22 = vmax.f32 %v4701_v1, %v4702_v50  ;;  %v4551_v9 = vpop.f32.mrf.mxu3  ;;  %v10087_v1 = vld [vmem:[%s17704_s7 + $0x3d0] sm:$0xf0]  ;;  %v11673_v50 = vld [vmem:[%s17704_s7 + $0x5a4] sm:$0xf] }
 0x31e   : > { %6437 = vmatpush.bf16.msra.mxu0 %v10154_v13  ;;  %v10090_v34 = vor.u32 %v11613_v36, %v10087_v1  ;;  %v10071_v9 = vld [vmem:[%s17704_s7 + $0x3b0] sm:$0xf0]  ;;  %v4576_v13 = vadd.f32 %v15968_v41, %v4563_v7  ;;  %v11512_v41 = vld [vmem:[%s17704_s7 + $0x94] sm:$0xf0]  ;;  %v11657_v36 = vld [vmem:[%s17704_s7 + $0x524] sm:$0xf] }
 0x31f   : > { %v4704_v39 = vrot.slane %v4703_v22, 2  ;;  %v10263_v1 = vld [vmem:[%s17704_s7 + $0x530] sm:$0xf0]  ;;  %v11653_v7 = vld [vmem:[%s17704_s7 + $0x504] sm:$0xf] }
 0x320   : > { %v4590_v3 = vpop.f32.mrf.mxu2  ;;  %6420 = vmatpush.bf16.msrb.mxu3 %v10090_v34  ;;  %v4589_v54 = vadd.f32 %v16075_v51, %v4576_v13  ;;  %v10295_v51 = vld [vmem:[%s17704_s7 + $0x570] sm:$0xf0] }
 0x321   : > { %v4705_v57 = vmax.f32 %v4703_v22, %v4704_v39  ;;  %v11609_v22 = vld [vmem:[%s17704_s7 + $0x3a4] sm:$0xf]  ;;  %v10330_v3 = vor.u32 %v11673_v50, %v10327_v30  ;;  %v9677_v39 = vld [vmem:[%s17704_s7 + $0x88] sm:$0xf]  ;;  %v10298_v35 = vor.u32 %v11665_v15, %v10295_v51  ;;  %v11500_v30 = vld [vmem:[%s17704_s7 + $0x34] sm:$0xf0] }
 0x322   : > { %v16115_v40 = vpop.f32.mrf.mxu1  ;;  %6438 = vmatpush.bf16.msra.mxu0 %v10138_v19  ;;  %v10074_v25 = vor.u32 %v11609_v22, %v10071_v9  ;;  %v10314_v19 = vor.u32 %v11669_v2, %v10311_v38  ;;  %v9678_v21 = vor.u32 %v11512_v41, %v9677_v39  ;;  %v9629_v50 = vld [vmem:[%s17704_s7 + $0x28] sm:$0xf]  ;;  %v11593_v22 = vld [vmem:[%s17704_s7 + $0x324] sm:$0xf]  ;;  %v10007_v9 = vld [vmem:[%s17704_s7 + $0x330] sm:$0xf0] }
 0x323   : > { %v4706_v31 = vrot.slane %v4705_v57, 1  ;;  %v9613_v2 = vld [vmem:[%s17704_s7 + $0x8] sm:$0xf]  ;;  %v11496_v38 = vld [vmem:[%s17704_s7 + $0x14] sm:$0xf0] }
 0x324   : > { %6421 = vmatpush.bf16.msrb.mxu3 %v10074_v25  ;;  %v11713_v25 = vld [vmem:[%s17704_s7 + $0x6e4] sm:$0xf]  ;;  %v9991_v51 = vld [vmem:[%s17704_s7 + $0x310] sm:$0xf0] }
 0x325   : > { %v4707_v43 = vmax.f32 %v4705_v57, %v4706_v31  ;;  %v4986_v31 = vld [vmem:[%s17705_s8] sm:$0xf]  ;;  %v11589_v15 = vld [vmem:[%s17704_s7 + $0x304] sm:$0xf] }
 0x326   : > { %6439 = vmatpush.bf16.msra.mxu0 %v10122_v44  ;;  %v10279_v44 = vld [vmem:[%s17704_s7 + $0x550] sm:$0xf0]  ;;  %v6268_v52 = vperm.slane %v4986_v31, 0  ;;  %v9854_v31 = vor.u32 %v11556_v20, %v9853_v16  ;;  %v11693_v20 = vld [vmem:[%s17704_s7 + $0x644] sm:$0xf] }
 0x327   : > { %v16174_v18 = vpack.c.bf16 %v4707_v43, %v4707_v43  ;;  %v9662_v43 = vor.u32 %v11508_v26, %v9661_v49  ;;  %v9614_v26 = vor.u32 %v11496_v38, %v9613_v2  ;;  %v11540_v2 = vld [vmem:[%s17704_s7 + $0x174] sm:$0xf0] }
 0x328   : > { %6422 = vmatpush.bf16.msrb.mxu3 %v10058_v17 }
 0x329   : > { %6349 = vmatmul.bf16.vlgmr.msra.gmra.mxu1 %v16174_v18  ;;  %6440 = vmatmul.bf16.vlgmr.msra.gmra.mxu0 %v16012_v8 }
 0x32a   : > { %v4629_v62 = vpop.f32.mrf.mxu1  ;;  %6445 = vmatpush.bf16.msra.mxu1 %v10362_v45  ;;  %6484 = vmatpush.bf16.msrb.mxu0 %v9726_v12  ;;  %v9645_v45 = vld [vmem:[%s17704_s7 + $0x48] sm:$0xf]  ;;  %v11504_v12 = vld [vmem:[%s17704_s7 + $0x54] sm:$0xf0] }
 0x32b   : > { %v11661_v62 = vld [vmem:[%s17704_s7 + $0x544] sm:$0xf]  ;;  %v9646_v0 = vor.u32 %v11504_v12, %v9645_v45 }
 0x32c   : > { %v10282_v63 = vor.u32 %v11661_v62, %v10279_v44  ;;  %6423 = vmatpush.bf16.msrb.mxu3 %v10042_v46  ;;  %v2952_v62 = vperm.slane %v16188_v5, 7  ;;  %v10221_v44 = vld [vmem:[%s17704_s7 + $0x4c8] sm:$0xf]  ;;  %v11705_v5 = vld [vmem:[%s17704_s7 + $0x6a4] sm:$0xf] }
 0x32e   : > { %6446 = vmatpush.bf16.msra.mxu1 %v10346_v60  ;;  %6485 = vmatpush.bf16.msrb.mxu0 %v9710_v4  ;;  %v4615_v55 = vadd.f32 %v16034_v61, %v2952_v62  ;;  %v11701_v61 = vld [vmem:[%s17704_s7 + $0x684] sm:$0xf] }
 0x32f   : > { %v6285_v10 = vpop.f32.mrf.mxu0 }
 0x330   : > { %v6286_v11 = vadd.f32 %v6285_v10, %v6268_v52  ;;  %v10247_v10 = vld [vmem:[%s17704_s7 + $0x510] sm:$0xf0]  ;;  %6424 = vmatpush.bf16.msrb.mxu3 %v10026_v6 }
 0x331   : > { %v10250_v49 = vor.u32 %v11653_v7, %v10247_v10  ;;  %v9789_v10 = vld [vmem:[%s17704_s7 + $0x168] sm:$0xf] }
 0x332   : > { %6447 = vmatpush.bf16.msra.mxu1 %v10330_v3  ;;  %6486 = vmatpush.bf16.msrb.mxu0 %v9694_v59  ;;  %v10266_v3 = vor.u32 %v11657_v36, %v10263_v1  ;;  %v9630_v59 = vor.u32 %v11500_v30, %v9629_v50  ;;  %v4628_v36 = vadd.f32 %v16115_v40, %v4615_v55  ;;  %v10439_v50 = vld [vmem:[%s17704_s7 + $0x690] sm:$0xf0]  ;;  %v9805_v30 = vld [vmem:[%s17704_s7 + $0x188] sm:$0xf]  ;;  %v11544_v40 = vld [vmem:[%s17704_s7 + $0x194] sm:$0xf0] }
 0x333   : > { %v9790_v16 = vor.u32 %v11540_v2, %v9789_v10  ;;  %v11528_v55 = vld [vmem:[%s17704_s7 + $0x114] sm:$0xf0]  ;;  %v11741_v2 = vld [vmem:[%s17704_s7 + $0x7c4] sm:$0xf] }
 0x335   : > { %v4601_v47 = vpop.f32.mrf.mxu3 }
 0x336   : > { %v4602_v57 = vadd.f32 %v4601_v47, %v4589_v54  ;;  %v16241_v24 = vpop.f32.mrf.mxu2  ;;  %6448 = vmatpush.bf16.msra.mxu1 %v10314_v19  ;;  %6487 = vmatpush.bf16.msrb.mxu0 %v9678_v21  ;;  %v10487_v54 = vld [vmem:[%s17704_s7 + $0x6f0] sm:$0xf0]  ;;  %v10010_v47 = vor.u32 %v11593_v22, %v10007_v9  ;;  %v11652_v21 = vld [vmem:[%s17704_s7 + $0x4f4] sm:$0xf0]  ;;  %v10442_v9 = vor.u32 %v11701_v61, %v10439_v50  ;;  %v11745_v61 = vld [vmem:[%s17704_s7 + $0x7e4] sm:$0xf] }
 0x337   : > { %v6287_v23 = vpop.f32.mrf.mxu0  ;;  %v4641_v6 = vadd.f32 %v16241_v24, %v4628_v36  ;;  %v10125_v36 = vld [vmem:[%s17704_s7 + $0x408] sm:$0xf] }
 0x338   : > { %v4663_v29 = vmax.f32 %v4602_v57, 0.0  ;;  %v10237_v57 = vld [vmem:[%s17704_s7 + $0x4e8] sm:$0xf]  ;;  %6425 = vmatpush.bf16.msrb.mxu3 %v10010_v47 }
 0x339   : > { %6401 = vmatmul.bf16.vlgmr.msrb.gmra.mxu1 %v15675_v27  ;;  %v10238_v32 = vor.u32 %v11652_v21, %v10237_v57  ;;  %v9837_v23 = vld [vmem:[%s17704_s7 + $0x1c8] sm:$0xf]  ;;  %v10407_v57 = vld [vmem:[%s17704_s7 + $0x650] sm:$0xf0] }
 0x33a   : > { %v4708_v33 = vsel %vm4665_vm0, %v4663_v29, -inf  ;;  %6449 = vmatpush.bf16.msra.mxu1 %v10298_v35  ;;  %6488 = vmatpush.bf16.msrb.mxu0 %v9662_v43  ;;  %v10490_v29 = vor.u32 %v11713_v25, %v10487_v54  ;;  %v11552_v35 = vld [vmem:[%s17704_s7 + $0x1d4] sm:$0xf0]  ;;  %v9994_v43 = vor.u32 %v11589_v15, %v9991_v51  ;;  %v9773_v15 = vld [vmem:[%s17704_s7 + $0x148] sm:$0xf] }
 0x33b   : > { %v4709_v28 = vrot.slane %v4708_v33, 4  ;;  %v9838_v46 = vor.u32 %v11552_v35, %v9837_v23  ;;  %v11636_v25 = vld [vmem:[%s17704_s7 + $0x474] sm:$0xf0]  ;;  %v11689_v35 = vld [vmem:[%s17704_s7 + $0x624] sm:$0xf] }
 0x33c   : > { %6426 = vmatpush.bf16.msrb.mxu3 %v9994_v43  ;;  %v11536_v51 = vld [vmem:[%s17704_s7 + $0x154] sm:$0xf0]  ;;  %v10391_v43 = vld [vmem:[%s17704_s7 + $0x630] sm:$0xf0]  ;;  %v9981_v50 = vld [vmem:[%s17704_s7 + $0x2e8] sm:$0xf] }
 0x33d   : > { %v4710_v14 = vmax.f32 %v4708_v33, %v4709_v28  ;;  %v4603_v53 = vpop.f32.mrf.mxu3  ;;  %v10471_v33 = vld [vmem:[%s17704_s7 + $0x6d0] sm:$0xf0]  ;;  %v11648_v28 = vld [vmem:[%s17704_s7 + $0x4d4] sm:$0xf0]  ;;  %v9774_v23 = vor.u32 %v11536_v51, %v9773_v15  ;;  %v11737_v51 = vld [vmem:[%s17704_s7 + $0x7a4] sm:$0xf] }
 0x33e   : > { %v4642_v4 = vpop.f32.mrf.mxu2  ;;  %6450 = vmatpush.bf16.msra.mxu1 %v10282_v63  ;;  %6489 = vmatpush.bf16.msrb.mxu0 %v9646_v0  ;;  %v10474_v12 = vor.u32 %v11709_v37, %v10471_v33  ;;  %v10222_v52 = vor.u32 %v11648_v28, %v10221_v44  ;;  %v9821_v53 = vld [vmem:[%s17704_s7 + $0x1a8] sm:$0xf]  ;;  %v11644_v0 = vld [vmem:[%s17704_s7 + $0x4b4] sm:$0xf0]  ;;  %v10410_v33 = vor.u32 %v11693_v20, %v10407_v57  ;;  %v11518_v20 = vld [vmem:[%s17704_s7 + $0xcc] sm:$0xf] }
 0x33f   : > { %v4711_v60 = vrot.slane %v4710_v14, 2  ;;  %v10205_v63 = vld [vmem:[%s17704_s7 + $0x4a8] sm:$0xf]  ;;  %v11532_v28 = vld [vmem:[%s17704_s7 + $0x134] sm:$0xf0] }
 0x340   : > { %v6298_v13 = vpop.f32.mrf.mxu1  ;;  %v10206_v4 = vor.u32 %v11644_v0, %v10205_v63  ;;  %v9711_v57 = vld [vmem:[%s17704_s7 + $0xd8] sm:$0xf0] }
 0x341   : > { %v4712_v34 = vmax.f32 %v4710_v14, %v4711_v60  ;;  %v16311_v41 = vadd.f32 %v6298_v13, %v6286_v11  ;;  %v10455_v14 = vld [vmem:[%s17704_s7 + $0x6b0] sm:$0xf0]  ;;  %v9822_v60 = vor.u32 %v11548_v48, %v9821_v53  ;;  %v10189_v11 = vld [vmem:[%s17704_s7 + $0x488] sm:$0xf]  ;;  %v9806_v13 = vor.u32 %v11544_v40, %v9805_v30  ;;  %v11588_v40 = vld [vmem:[%s17704_s7 + $0x2f4] sm:$0xf0] }
 0x342   : > { %6451 = vmatpush.bf16.msra.mxu1 %v10266_v3  ;;  %6490 = vmatpush.bf16.msrb.mxu0 %v9630_v59  ;;  %v10458_v1 = vor.u32 %v11705_v5, %v10455_v14  ;;  %v11697_v3 = vld [vmem:[%s17704_s7 + $0x664] sm:$0xf]  ;;  %v10423_v59 = vld [vmem:[%s17704_s7 + $0x670] sm:$0xf0]  ;;  %v9741_v48 = vld [vmem:[%s17704_s7 + $0x108] sm:$0xf] }
 0x343   : > { %v4713_v39 = vrot.slane %v4712_v34, 1  ;;  %v10426_v47 = vor.u32 %v11697_v3, %v10423_v59  ;;  %v11685_v5 = vld [vmem:[%s17704_s7 + $0x604] sm:$0xf]  ;;  %v10375_v53 = vld [vmem:[%s17704_s7 + $0x610] sm:$0xf0]  ;;  %v9982_v59 = vor.u32 %v11588_v40, %v9981_v50 }
 0x344   : > { %v11668_v50 = vld [vmem:[%s17704_s7 + $0x574] sm:$0xf0]  ;;  %v9663_v40 = vld [vmem:[%s17704_s7 + $0x78] sm:$0xf0] }
 0x345   : > { %v4714_v19 = vmax.f32 %v4712_v34, %v4713_v39  ;;  %v11640_v34 = vld [vmem:[%s17704_s7 + $0x494] sm:$0xf0]  ;;  %v10173_v39 = vld [vmem:[%s17704_s7 + $0x468] sm:$0xf] }
 0x346   : > { %6452 = vmatpush.bf16.msra.mxu1 %v10250_v49  ;;  %6491 = vmatpush.bf16.msrb.mxu0 %v9614_v26  ;;  %v10190_v24 = vor.u32 %v11640_v34, %v10189_v11  ;;  %v10174_v21 = vor.u32 %v11636_v25, %v10173_v39  ;;  %v10157_v26 = vld [vmem:[%s17704_s7 + $0x448] sm:$0xf]  ;;  %v11684_v11 = vld [vmem:[%s17704_s7 + $0x5f4] sm:$0xf0]  ;;  %v10378_v34 = vor.u32 %v11685_v5, %v10375_v53  ;;  %v9679_v53 = vld [vmem:[%s17704_s7 + $0x98] sm:$0xf0] }
 0x347   : > { %v16337_v17 = vpack.c.bf16 %v4714_v19, %v4714_v19  ;;  %v9965_v39 = vld [vmem:[%s17704_s7 + $0x2c8] sm:$0xf] }
 0x348   : > { %v6300_v45 = vpop.f32.mrf.mxu1  ;;  %v10317_v5 = vld [vmem:[%s17704_s7 + $0x588] sm:$0xf] }
 0x349   : > { %6362 = vmatmul.bf16.vlgmr.msra.gmra.mxu2 %v16337_v17  ;;  %6492 = vmatmul.bf16.vlgmr.msrb.gmra.mxu0 %v15583_v58  ;;  %v10141_v45 = vld [vmem:[%s17704_s7 + $0x428] sm:$0xf] }
 0x34a   : > { %6458 = vmatpush.bf16.msra.mxu2 %v10490_v29  ;;  %6497 = vmatpush.bf16.msrb.mxu1 %v9854_v31  ;;  %v11632_v29 = vld [vmem:[%s17704_s7 + $0x454] sm:$0xf0] }
 0x34b   : > { %6536 = vmatpush.bf16.msra.mxu0 %v10238_v32  ;;  %6453 = vmatmul.bf16.vlgmr.msra.gmra.mxu1 %v16174_v18  ;;  %v10158_v44 = vor.u32 %v11632_v29, %v10157_v26  ;;  %v9949_v26 = vld [vmem:[%s17704_s7 + $0x2a8] sm:$0xf]  ;;  %v9714_v29 = vor.u32 %v11518_v20, %v9711_v57  ;;  %v11721_v20 = vld [vmem:[%s17704_s7 + $0x724] sm:$0xf] }
 0x34c   : > { %v9885_v57 = vld [vmem:[%s17704_s7 + $0x228] sm:$0xf] }
 0x34e   : > { %6459 = vmatpush.bf16.msra.mxu2 %v10474_v12  ;;  %6498 = vmatpush.bf16.msrb.mxu1 %v9838_v46  ;;  %v11628_v12 = vld [vmem:[%s17704_s7 + $0x434] sm:$0xf0] }
 0x34f   : > { %6537 = vmatpush.bf16.msra.mxu0 %v10222_v52  ;;  %v10394_v52 = vor.u32 %v11689_v35, %v10391_v43  ;;  %v10142_v0 = vor.u32 %v11628_v12, %v10141_v45  ;;  %v9695_v35 = vld [vmem:[%s17704_s7 + $0xb8] sm:$0xf0]  ;;  %v9933_v45 = vld [vmem:[%s17704_s7 + $0x288] sm:$0xf] }
 0x352   : > { %6460 = vmatpush.bf16.msra.mxu2 %v10458_v1  ;;  %6499 = vmatpush.bf16.msrb.mxu1 %v9822_v60  ;;  %v11624_v1 = vld [vmem:[%s17704_s7 + $0x414] sm:$0xf0] }
 0x353   : > { %6538 = vmatpush.bf16.msra.mxu0 %v10206_v4  ;;  %v10615_v4 = vld [vmem:[%s17704_s7 + $0x7f0] sm:$0xf0]  ;;  %v10126_v3 = vor.u32 %v11624_v1, %v10125_v36  ;;  %v9917_v1 = vld [vmem:[%s17704_s7 + $0x268] sm:$0xf] }
 0x354   : > { %v10551_v36 = vld [vmem:[%s17704_s7 + $0x770] sm:$0xf0] }
 0x355   : > { %v4653_v7 = vpop.f32.mrf.mxu3 }
 0x356   : > { %v4654_v22 = vadd.f32 %v4653_v7, %v4641_v6  ;;  %6461 = vmatpush.bf16.msra.mxu2 %v10442_v9  ;;  %6500 = vmatpush.bf16.msrb.mxu1 %v9806_v13  ;;  %v6311_v49 = vpop.f32.mrf.mxu2  ;;  %v10365_v6 = vld [vmem:[%s17704_s7 + $0x5e8] sm:$0xf]  ;;  %v9742_v7 = vor.u32 %v11528_v55, %v9741_v48  ;;  %v9727_v9 = vld [vmem:[%s17704_s7 + $0xf8] sm:$0xf0] }
 0x357   : > { %6539 = vmatpush.bf16.msra.mxu0 %v10190_v24  ;;  %v16439_v37 = vadd.f32 %v6311_v49, %v16311_v41  ;;  %v9757_v41 = vld [vmem:[%s17704_s7 + $0x128] sm:$0xf]  ;;  %v10618_v24 = vor.u32 %v11745_v61, %v10615_v4  ;;  %v10366_v10 = vor.u32 %v11684_v11, %v10365_v6  ;;  %v10583_v49 = vld [vmem:[%s17704_s7 + $0x7b0] sm:$0xf0]  ;;  %v11572_v61 = vld [vmem:[%s17704_s7 + $0x274] sm:$0xf0] }
 0x358   : > { %v4664_v38 = vmax.f32 %v4654_v22, 0.0  ;;  %v9758_v14 = vor.u32 %v11532_v28, %v9757_v41  ;;  %v11522_v22 = vld [vmem:[%s17704_s7 + $0xec] sm:$0xf]  ;;  %v10586_v43 = vor.u32 %v11737_v51, %v10583_v49  ;;  %v11733_v41 = vld [vmem:[%s17704_s7 + $0x784] sm:$0xf]  ;;  %v9918_v11 = vor.u32 %v11572_v61, %v9917_v1 }
 0x359   : > { %6414 = vmatmul.bf16.vlgmr.msrb.gmra.mxu2 %v15763_v42  ;;  %v9730_v25 = vor.u32 %v11522_v22, %v9727_v9  ;;  %v10567_v28 = vld [vmem:[%s17704_s7 + $0x790] sm:$0xf0]  ;;  %v10301_v4 = vld [vmem:[%s17704_s7 + $0x568] sm:$0xf]  ;;  %v11660_v51 = vld [vmem:[%s17704_s7 + $0x534] sm:$0xf0] }
 0x35a   : > { %v4715_v54 = vsel %vm4665_vm0, %v4664_v38, -inf  ;;  %6462 = vmatpush.bf16.msra.mxu2 %v10426_v47  ;;  %6501 = vmatpush.bf16.msrb.mxu1 %v9790_v16  ;;  %v10599_v38 = vld [vmem:[%s17704_s7 + $0x7d0] sm:$0xf0]  ;;  %v10349_v47 = vld [vmem:[%s17704_s7 + $0x5c8] sm:$0xf]  ;;  %v10570_v48 = vor.u32 %v11733_v41, %v10567_v28 }
 0x35b   : > { %v4716_v19 = vrot.slane %v4715_v54, 4  ;;  %6540 = vmatpush.bf16.msra.mxu0 %v10174_v21  ;;  %v11680_v16 = vld [vmem:[%s17704_s7 + $0x5d4] sm:$0xf0]  ;;  %v10535_v22 = vld [vmem:[%s17704_s7 + $0x750] sm:$0xf0] }
 0x35c   : > { %v10350_v15 = vor.u32 %v11680_v16, %v10349_v47  ;;  %v9901_v9 = vld [vmem:[%s17704_s7 + $0x248] sm:$0xf]  ;;  %v11498_v49 = vld [vmem:[%s17704_s7 + $0x2c] sm:$0xf]  ;;  %v11656_v28 = vld [vmem:[%s17704_s7 + $0x514] sm:$0xf0] }
 0x35d   : > { %v4717_v31 = vmax.f32 %v4715_v54, %v4716_v19  ;;  %v4655_v32 = vpop.f32.mrf.mxu3  ;;  %v11584_v54 = vld [vmem:[%s17704_s7 + $0x2d4] sm:$0xf0]  ;;  %v10602_v19 = vor.u32 %v11741_v2, %v10599_v38  ;;  %v10239_v1 = vld [vmem:[%s17704_s7 + $0x4f8] sm:$0xf0] }
 0x35e   : > { %6463 = vmatpush.bf16.msra.mxu2 %v10410_v33  ;;  %6502 = vmatpush.bf16.msrb.mxu1 %v9774_v23  ;;  %v6313_v60 = vpop.f32.mrf.mxu2  ;;  %v9966_v21 = vor.u32 %v11584_v54, %v9965_v39  ;;  %v10333_v32 = vld [vmem:[%s17704_s7 + $0x5a8] sm:$0xf]  ;;  %v11676_v33 = vld [vmem:[%s17704_s7 + $0x5b4] sm:$0xf0]  ;;  %v11514_v23 = vld [vmem:[%s17704_s7 + $0xac] sm:$0xf] }
 0x35f   : > { %v4718_v62 = vrot.slane %v4717_v31, 2  ;;  %6541 = vmatpush.bf16.msra.mxu0 %v10158_v44  ;;  %v10334_v44 = vor.u32 %v11676_v33, %v10333_v32  ;;  %v9698_v12 = vor.u32 %v11514_v23, %v9695_v35  ;;  %v11664_v2 = vld [vmem:[%s17704_s7 + $0x554] sm:$0xf0]  ;;  %v11502_v39 = vld [vmem:[%s17704_s7 + $0x4c] sm:$0xf] }
 0x360   : > { %v10503_v32 = vld [vmem:[%s17704_s7 + $0x710] sm:$0xf0]  ;;  %v9869_v35 = vld [vmem:[%s17704_s7 + $0x208] sm:$0xf] }
 0x361   : > { %v4719_v46 = vmax.f32 %v4717_v31, %v4718_v62  ;;  %v11580_v31 = vld [vmem:[%s17704_s7 + $0x2b4] sm:$0xf0] }
 0x362   : > { %6464 = vmatpush.bf16.msra.mxu2 %v10394_v52  ;;  %6503 = vmatpush.bf16.msrb.mxu1 %v9758_v14  ;;  %v9950_v62 = vor.u32 %v11580_v31, %v9949_v26  ;;  %v11672_v52 = vld [vmem:[%s17704_s7 + $0x594] sm:$0xf0]  ;;  %v11510_v14 = vld [vmem:[%s17704_s7 + $0x8c] sm:$0xf]  ;;  %v9631_v26 = vld [vmem:[%s17704_s7 + $0x38] sm:$0xf0] }
 0x363   : > { %v4720_v63 = vrot.slane %v4719_v46, 1  ;;  %6542 = vmatpush.bf16.msra.mxu0 %v10142_v0  ;;  %v11729_v0 = vld [vmem:[%s17704_s7 + $0x764] sm:$0xf]  ;;  %v9682_v60 = vor.u32 %v11510_v14, %v9679_v53  ;;  %v9634_v41 = vor.u32 %v11498_v49, %v9631_v26  ;;  %v11716_v53 = vld [vmem:[%s17704_s7 + $0x6f4] sm:$0xf0] }
 0x364   : > { %v10554_v6 = vor.u32 %v11729_v0, %v10551_v36  ;;  %v11717_v31 = vld [vmem:[%s17704_s7 + $0x704] sm:$0xf]  ;;  %v11650_v36 = vld [vmem:[%s17704_s7 + $0x4ec] sm:$0xf]  ;;  %v10445_v26 = vld [vmem:[%s17704_s7 + $0x688] sm:$0xf] }
 0x365   : > { %v4721_v30 = vmax.f32 %v4719_v46, %v4720_v63  ;;  %v11576_v46 = vld [vmem:[%s17704_s7 + $0x294] sm:$0xf0]  ;;  %v10318_v63 = vor.u32 %v11672_v52, %v10317_v5  ;;  %v10493_v52 = vld [vmem:[%s17704_s7 + $0x6e8] sm:$0xf]  ;;  %v10506_v14 = vor.u32 %v11717_v31, %v10503_v32  ;;  %v11542_v31 = vld [vmem:[%s17704_s7 + $0x18c] sm:$0xf] }
 0x366   : > { %6465 = vmatpush.bf16.msra.mxu2 %v10378_v34  ;;  %6504 = vmatpush.bf16.msrb.mxu1 %v9742_v7  ;;  %v9934_v55 = vor.u32 %v11576_v46, %v9933_v45  ;;  %v10302_v34 = vor.u32 %v11668_v50, %v10301_v4  ;;  %v11725_v7 = vld [vmem:[%s17704_s7 + $0x744] sm:$0xf]  ;;  %v11494_v45 = vld [vmem:[%s17704_s7 + $0xc] sm:$0xf]  ;;  %v10109_v46 = vld [vmem:[%s17704_s7 + $0x3e8] sm:$0xf]  ;;  %v10494_v4 = vor.u32 %v11716_v53, %v10493_v52 }
 0x367   : > { %v16501_v13 = vpack.c.bf16 %v4721_v30, %v4721_v30  ;;  %6543 = vmatpush.bf16.msra.mxu0 %v10126_v3  ;;  %v11506_v30 = vld [vmem:[%s17704_s7 + $0x6c] sm:$0xf]  ;;  %v10538_v54 = vor.u32 %v11725_v7, %v10535_v22  ;;  %v11620_v5 = vld [vmem:[%s17704_s7 + $0x3f4] sm:$0xf0]  ;;  %v9839_v22 = vld [vmem:[%s17704_s7 + $0x1d8] sm:$0xf0] }
 0x368   : > { %v10110_v61 = vor.u32 %v11620_v5, %v10109_v46  ;;  %v11550_v7 = vld [vmem:[%s17704_s7 + $0x1cc] sm:$0xf]  ;;  %v11700_v46 = vld [vmem:[%s17704_s7 + $0x674] sm:$0xf0]  ;;  %v9791_v52 = vld [vmem:[%s17704_s7 + $0x178] sm:$0xf0] }
 0x369   : > { %6375 = vmatmul.bf16.vlgmr.msra.gmra.mxu3 %v16501_v13  ;;  %6505 = vmatmul.bf16.vlgmr.msrb.gmra.mxu1 %v15675_v27  ;;  %v11538_v5 = vld [vmem:[%s17704_s7 + $0x16c] sm:$0xf]  ;;  %v10175_v53 = vld [vmem:[%s17704_s7 + $0x478] sm:$0xf0] }
 0x36a   : > { %6471 = vmatpush.bf16.msra.mxu3 %v10618_v24  ;;  %6510 = vmatpush.bf16.msrb.mxu2 %v9982_v59  ;;  %v9666_v24 = vor.u32 %v11506_v30, %v9663_v40  ;;  %v11568_v59 = vld [vmem:[%s17704_s7 + $0x254] sm:$0xf0]  ;;  %v10093_v30 = vld [vmem:[%s17704_s7 + $0x3c8] sm:$0xf] }
 0x36b   : > { %6549 = vmatpush.bf16.msra.mxu1 %v10366_v10  ;;  %6588 = vmatpush.bf16.msrb.mxu0 %v9730_v25  ;;  %v10285_v10 = vld [vmem:[%s17704_s7 + $0x548] sm:$0xf]  ;;  %v9647_v25 = vld [vmem:[%s17704_s7 + $0x58] sm:$0xf0]  ;;  %v9902_v47 = vor.u32 %v11568_v59, %v9901_v9  ;;  %v11616_v40 = vld [vmem:[%s17704_s7 + $0x3d4] sm:$0xf0] }
 0x36c   : > { %6544 = vmatmul.bf16.vlgmr.msra.gmra.mxu0 %v16012_v8  ;;  %6466 = vmatmul.bf16.vlgmr.msra.gmra.mxu2 %v16337_v17  ;;  %v10286_v16 = vor.u32 %v11664_v2, %v10285_v10  ;;  %v11646_v9 = vld [vmem:[%s17704_s7 + $0x4cc] sm:$0xf]  ;;  %v10077_v10 = vld [vmem:[%s17704_s7 + $0x3a8] sm:$0xf]  ;;  %v11612_v2 = vld [vmem:[%s17704_s7 + $0x3b4] sm:$0xf0] }
 0x36e   : > { %6472 = vmatpush.bf16.msra.mxu3 %v10602_v19  ;;  %6511 = vmatpush.bf16.msrb.mxu2 %v9966_v21  ;;  %v9650_v19 = vor.u32 %v11502_v39, %v9647_v25  ;;  %v11564_v21 = vld [vmem:[%s17704_s7 + $0x234] sm:$0xf0]  ;;  %v9842_v39 = vor.u32 %v11550_v7, %v9839_v22  ;;  %v10013_v7 = vld [vmem:[%s17704_s7 + $0x328] sm:$0xf] }
 0x36f   : > { %6550 = vmatpush.bf16.msra.mxu1 %v10350_v15  ;;  %6589 = vmatpush.bf16.msrb.mxu0 %v9714_v29  ;;  %v10269_v15 = vld [vmem:[%s17704_s7 + $0x528] sm:$0xf]  ;;  %v9886_v33 = vor.u32 %v11564_v21, %v9885_v57  ;;  %v10207_v57 = vld [vmem:[%s17704_s7 + $0x4b8] sm:$0xf0]  ;;  %v11596_v22 = vld [vmem:[%s17704_s7 + $0x334] sm:$0xf0] }
 0x370   : > { %v10270_v23 = vor.u32 %v11660_v51, %v10269_v15  ;;  %v11608_v15 = vld [vmem:[%s17704_s7 + $0x394] sm:$0xf0] }
 0x372   : > { %6473 = vmatpush.bf16.msra.mxu3 %v10586_v43  ;;  %6512 = vmatpush.bf16.msrb.mxu2 %v9950_v62  ;;  %v11560_v43 = vld [vmem:[%s17704_s7 + $0x214] sm:$0xf0]  ;;  %v10253_v62 = vld [vmem:[%s17704_s7 + $0x508] sm:$0xf] }
 0x373   : > { %6551 = vmatpush.bf16.msra.mxu1 %v10334_v44  ;;  %6590 = vmatpush.bf16.msrb.mxu0 %v9698_v12  ;;  %v9615_v12 = vld [vmem:[%s17704_s7 + $0x18] sm:$0xf0]  ;;  %v10254_v0 = vor.u32 %v11656_v28, %v10253_v62  ;;  %v11604_v28 = vld [vmem:[%s17704_s7 + $0x374] sm:$0xf0] }
 0x375   : > { %v6324_v3 = vpop.f32.mrf.mxu3 }
 0x376   : > { %6474 = vmatpush.bf16.msra.mxu3 %v10570_v48  ;;  %6513 = vmatpush.bf16.msrb.mxu2 %v9934_v55  ;;  %v16623_v38 = vadd.f32 %v6324_v3, %v16439_v37  ;;  %v10519_v37 = vld [vmem:[%s17704_s7 + $0x730] sm:$0xf0]  ;;  %v11554_v48 = vld [vmem:[%s17704_s7 + $0x1ec] sm:$0xf]  ;;  %v9855_v55 = vld [vmem:[%s17704_s7 + $0x1f8] sm:$0xf0] }
 0x377   : > { %6552 = vmatpush.bf16.msra.mxu1 %v10318_v63  ;;  %6591 = vmatpush.bf16.msrb.mxu0 %v9682_v60  ;;  %v10522_v29 = vor.u32 %v11721_v20, %v10519_v37  ;;  %v9870_v63 = vor.u32 %v11560_v43, %v9869_v35  ;;  %v9618_v60 = vor.u32 %v11494_v45, %v9615_v12  ;;  %v10223_v3 = vld [vmem:[%s17704_s7 + $0x4d8] sm:$0xf0]  ;;  %v11642_v37 = vld [vmem:[%s17704_s7 + $0x4ac] sm:$0xf] }
 0x378   : > { %v9858_v50 = vor.u32 %v11554_v48, %v9855_v55  ;;  %v10226_v25 = vor.u32 %v11646_v9, %v10223_v3  ;;  %v9823_v20 = vld [vmem:[%s17704_s7 + $0x1b8] sm:$0xf0]  ;;  %v10210_v49 = vor.u32 %v11642_v37, %v10207_v57  ;;  %v10381_v37 = vld [vmem:[%s17704_s7 + $0x608] sm:$0xf] }
 0x379   : > { %6427 = vmatmul.bf16.vlgmr.msrb.gmra.mxu3 %v15896_v56  ;;  %v10191_v35 = vld [vmem:[%s17704_s7 + $0x498] sm:$0xf0] }
 0x37a   : > { %6475 = vmatpush.bf16.msra.mxu3 %v10554_v6  ;;  %6514 = vmatpush.bf16.msrb.mxu2 %v9918_v11  ;;  %v10242_v6 = vor.u32 %v11650_v36, %v10239_v1  ;;  %v10477_v11 = vld [vmem:[%s17704_s7 + $0x6c8] sm:$0xf]  ;;  %v9794_v36 = vor.u32 %v11538_v5, %v9791_v52  ;;  %v11744_v5 = vld [vmem:[%s17704_s7 + $0x7d4] sm:$0xf0]  ;;  %v11582_v52 = vld [vmem:[%s17704_s7 + $0x2cc] sm:$0xf] }
 0x37b   : > { %6553 = vmatpush.bf16.msra.mxu1 %v10302_v34  ;;  %6592 = vmatpush.bf16.msrb.mxu0 %v9666_v24  ;;  %v11712_v34 = vld [vmem:[%s17704_s7 + $0x6d4] sm:$0xf0]  ;;  %v10094_v24 = vor.u32 %v11616_v40, %v10093_v30  ;;  %v9775_v30 = vld [vmem:[%s17704_s7 + $0x158] sm:$0xf0]  ;;  %v11630_v40 = vld [vmem:[%s17704_s7 + $0x44c] sm:$0xf] }
 0x37c   : > { %v10478_v59 = vor.u32 %v11712_v34, %v10477_v11 }
 0x37d   : > { %v6326_v44 = vpop.f32.mrf.mxu3 }
 0x37e   : > { %6476 = vmatpush.bf16.msra.mxu3 %v10538_v54  ;;  %6515 = vmatpush.bf16.msrb.mxu2 %v9902_v47  ;;  %v10461_v54 = vld [vmem:[%s17704_s7 + $0x6a8] sm:$0xf]  ;;  %v11708_v47 = vld [vmem:[%s17704_s7 + $0x6b4] sm:$0xf0] }
 0x37f   : > { %6554 = vmatpush.bf16.msra.mxu1 %v10286_v16  ;;  %6593 = vmatpush.bf16.msrb.mxu0 %v9650_v19  ;;  %v11546_v16 = vld [vmem:[%s17704_s7 + $0x1ac] sm:$0xf]  ;;  %v10078_v19 = vor.u32 %v11612_v2, %v10077_v10  ;;  %v10462_v21 = vor.u32 %v11708_v47, %v10461_v54  ;;  %v9759_v2 = vld [vmem:[%s17704_s7 + $0x138] sm:$0xf0]  ;;  %v10014_v54 = vor.u32 %v11596_v22, %v10013_v7  ;;  %v11736_v22 = vld [vmem:[%s17704_s7 + $0x794] sm:$0xf0] }
 0x380   : > { %v9826_v51 = vor.u32 %v11546_v16, %v9823_v20  ;;  %v11530_v10 = vld [vmem:[%s17704_s7 + $0x12c] sm:$0xf]  ;;  %v9997_v16 = vld [vmem:[%s17704_s7 + $0x308] sm:$0xf]  ;;  %v11592_v20 = vld [vmem:[%s17704_s7 + $0x314] sm:$0xf0] }
 0x381   : > { %v9762_v57 = vor.u32 %v11530_v10, %v9759_v2  ;;  %v10319_v10 = vld [vmem:[%s17704_s7 + $0x598] sm:$0xf0]  ;;  %v10677_v2 = vld [vmem:[%s17706_s9 + $0x60] sm:$0xf] }
 0x382   : > { %6477 = vmatpush.bf16.msra.mxu3 %v10522_v29  ;;  %6516 = vmatpush.bf16.msrb.mxu2 %v9886_v33  ;;  %v11704_v29 = vld [vmem:[%s17704_s7 + $0x694] sm:$0xf0]  ;;  %v9807_v33 = vld [vmem:[%s17704_s7 + $0x198] sm:$0xf0] }
 0x383   : > { %6555 = vmatpush.bf16.msra.mxu1 %v10270_v23  ;;  %6594 = vmatpush.bf16.msrb.mxu0 %v9634_v41  ;;  %v11638_v23 = vld [vmem:[%s17704_s7 + $0x48c] sm:$0xf]  ;;  %v10446_v44 = vor.u32 %v11704_v29, %v10445_v26  ;;  %v10045_v41 = vld [vmem:[%s17704_s7 + $0x368] sm:$0xf]  ;;  %v9810_v45 = vor.u32 %v11542_v31, %v9807_v33  ;;  %v10127_v26 = vld [vmem:[%s17704_s7 + $0x418] sm:$0xf0] }
 0x384   : > { %v10194_v12 = vor.u32 %v11638_v23, %v10191_v35  ;;  %v10046_v48 = vor.u32 %v11604_v28, %v10045_v41  ;;  %v10621_v29 = vld [vmem:[%s17704_s7 + $0x7e8] sm:$0xf]  ;;  %v11748_v31 = vld [vmem:[%s17704_s7 + $0x7f4] sm:$0xf0]  ;;  %v9983_v33 = vld [vmem:[%s17704_s7 + $0x2f8] sm:$0xf0]  ;;  %v9998_v23 = vor.u32 %v11592_v20, %v9997_v16 }
 0x385   : > { %v10557_v20 = vld [vmem:[%s17704_s7 + $0x768] sm:$0xf] }
 0x386   : > { %6478 = vmatpush.bf16.msra.mxu3 %v10506_v14  ;;  %6517 = vmatpush.bf16.msrb.mxu2 %v9870_v63  ;;  %v6337_v32 = vpop.f32.mrf.mxu0  ;;  %v11634_v14 = vld [vmem:[%s17704_s7 + $0x46c] sm:$0xf]  ;;  %v10029_v63 = vld [vmem:[%s17704_s7 + $0x348] sm:$0xf] }
 0x387   : > { %6556 = vmatpush.bf16.msra.mxu1 %v10254_v0  ;;  %6595 = vmatpush.bf16.msrb.mxu0 %v9618_v60  ;;  %v16780_v43 = vadd.f32 %v6337_v32, %v16623_v38  ;;  %v10429_v38 = vld [vmem:[%s17704_s7 + $0x668] sm:$0xf]  ;;  %v11600_v0 = vld [vmem:[%s17704_s7 + $0x354] sm:$0xf0]  ;;  %v10178_v1 = vor.u32 %v11634_v14, %v10175_v53  ;;  %v11586_v32 = vld [vmem:[%s17704_s7 + $0x2ec] sm:$0xf] }
 0x388   : > { %v10430_v55 = vor.u32 %v11700_v46, %v10429_v38  ;;  %v10413_v60 = vld [vmem:[%s17704_s7 + $0x648] sm:$0xf]  ;;  %v10030_v11 = vor.u32 %v11600_v0, %v10029_v63  ;;  %v9967_v14 = vld [vmem:[%s17704_s7 + $0x2d8] sm:$0xf0]  ;;  %v11678_v53 = vld [vmem:[%s17704_s7 + $0x5cc] sm:$0xf] }
 0x389   : > { %6518 = vmatmul.bf16.vlgmr.msrb.gmra.mxu2 %v15763_v42  ;;  %6479 = vmatmul.bf16.vlgmr.msra.gmra.mxu3 %v16501_v13  ;;  %v10605_v38 = vld [vmem:[%s17704_s7 + $0x7c8] sm:$0xf]  ;;  %v9970_v0 = vor.u32 %v11582_v52, %v9967_v14 }
 0x38a   : > { %6523 = vmatpush.bf16.msrb.mxu3 %v10110_v61  ;;  %6562 = vmatpush.bf16.msra.mxu2 %v10494_v4  ;;  %v11696_v61 = vld [vmem:[%s17704_s7 + $0x654] sm:$0xf0]  ;;  %v11534_v4 = vld [vmem:[%s17704_s7 + $0x14c] sm:$0xf]  ;;  %v10606_v63 = vor.u32 %v11744_v5, %v10605_v38  ;;  %v11758_v38 = vld [vmem:[%s17706_s9 + $0x44] sm:$0xf0] }
 0x38b   : > { %6601 = vmatpush.bf16.msrb.mxu1 %v9858_v50  ;;  %6640 = vmatpush.bf16.msra.mxu0 %v10242_v6  ;;  %v10159_v6 = vld [vmem:[%s17704_s7 + $0x458] sm:$0xf0]  ;;  %v10414_v34 = vor.u32 %v11696_v61, %v10413_v60  ;;  %v9778_v9 = vor.u32 %v11534_v4, %v9775_v30  ;;  %v11578_v61 = vld [vmem:[%s17704_s7 + $0x2ac] sm:$0xf]  ;;  %v17023_v5 = vld [vmem:[%s17705_s8] sm:$0xf] }
 0x38c   : > { %6557 = vmatmul.bf16.vlgmr.msra.gmra.mxu1 %v16174_v18  ;;  %6596 = vmatmul.bf16.vlgmr.msrb.gmra.mxu0 %v15583_v58  ;;  %v10061_v58 = vld [vmem:[%s17704_s7 + $0x388] sm:$0xf]  ;;  %v10162_v3 = vor.u32 %v11630_v40, %v10159_v6  ;;  %v9951_v4 = vld [vmem:[%s17704_s7 + $0x2b8] sm:$0xf0]  ;;  %v10685_v40 = vld [vmem:[%s17706_s9 + $0x70] sm:$0xf] }
 0x38d   : > { %v10062_v62 = vor.u32 %v11608_v15, %v10061_v58  ;;  %v11526_v58 = vld [vmem:[%s17704_s7 + $0x10c] sm:$0xf]  ;;  %v9743_v15 = vld [vmem:[%s17704_s7 + $0x118] sm:$0xf0]  ;;  %v11764_v6 = vld [vmem:[%s17706_s9 + $0x74] sm:$0xf0]  ;;  %v9954_v7 = vor.u32 %v11578_v61, %v9951_v4 }
 0x38e   : > { %6524 = vmatpush.bf16.msrb.mxu3 %v10094_v24  ;;  %6563 = vmatpush.bf16.msra.mxu2 %v10478_v59  ;;  %v6339_v50 = vpop.f32.mrf.mxu0  ;;  %v10397_v24 = vld [vmem:[%s17704_s7 + $0x628] sm:$0xf]  ;;  %v11692_v59 = vld [vmem:[%s17704_s7 + $0x634] sm:$0xf0]  ;;  %v9746_v41 = vor.u32 %v11526_v58, %v9743_v15  ;;  %v10335_v30 = vld [vmem:[%s17704_s7 + $0x5b8] sm:$0xf0] }
 0x38f   : > { %6602 = vmatpush.bf16.msrb.mxu1 %v9842_v39  ;;  %6641 = vmatpush.bf16.msra.mxu0 %v10226_v25  ;;  %v11626_v39 = vld [vmem:[%s17704_s7 + $0x42c] sm:$0xf]  ;;  %v10143_v25 = vld [vmem:[%s17704_s7 + $0x438] sm:$0xf0]  ;;  %v10398_v47 = vor.u32 %v11692_v59, %v10397_v24  ;;  %v6269_v52 = vperm.slane %v17023_v5, 1 }
 0x390   : > { %v11674_v50 = vld [vmem:[%s17704_s7 + $0x5ac] sm:$0xf]  ;;  %v9935_v24 = vld [vmem:[%s17704_s7 + $0x298] sm:$0xf0]  ;;  %v10653_v4 = vld [vmem:[%s17706_s9 + $0x30] sm:$0xf] }
 0x391   : > { %v11670_v59 = vld [vmem:[%s17704_s7 + $0x58c] sm:$0xf]  ;;  %v10303_v15 = vld [vmem:[%s17704_s7 + $0x578] sm:$0xf0] }
 0x392   : > { %6525 = vmatpush.bf16.msrb.mxu3 %v10078_v19  ;;  %6564 = vmatpush.bf16.msra.mxu2 %v10462_v21  ;;  %v10146_v19 = vor.u32 %v11626_v39, %v10143_v25  ;;  %v11688_v21 = vld [vmem:[%s17704_s7 + $0x614] sm:$0xf0]  ;;  %v11762_v39 = vld [vmem:[%s17706_s9 + $0x64] sm:$0xf0]  ;;  %v11666_v58 = vld [vmem:[%s17704_s7 + $0x56c] sm:$0xf] }
 0x393   : > { %6603 = vmatpush.bf16.msrb.mxu1 %v9826_v51  ;;  %6642 = vmatpush.bf16.msra.mxu0 %v10210_v49  ;;  %v11622_v49 = vld [vmem:[%s17704_s7 + $0x40c] sm:$0xf]  ;;  %v10382_v35 = vor.u32 %v11688_v21, %v10381_v37  ;;  %v10678_v25 = vor.u32 %v11762_v39, %v10677_v2  ;;  %v11732_v37 = vld [vmem:[%s17704_s7 + $0x774] sm:$0xf0]  ;;  %v9919_v21 = vld [vmem:[%s17704_s7 + $0x278] sm:$0xf0] }
 0x394   : > { %v10130_v28 = vor.u32 %v11622_v49, %v10127_v26  ;;  %v10669_v49 = vld [vmem:[%s17706_s9 + $0x50] sm:$0xf]  ;;  %v11760_v26 = vld [vmem:[%s17706_s9 + $0x54] sm:$0xf0]  ;;  %v10271_v61 = vld [vmem:[%s17704_s7 + $0x538] sm:$0xf0] }
 0x395   : > { %v10111_v2 = vld [vmem:[%s17704_s7 + $0x3f8] sm:$0xf0]  ;;  %v10645_v39 = vld [vmem:[%s17706_s9 + $0x20] sm:$0xf] }
 0x396   : > { %6526 = vmatpush.bf16.msrb.mxu3 %v10062_v62  ;;  %6565 = vmatpush.bf16.msra.mxu2 %v10446_v44  ;;  %v16872_v51 = vpop.f32.mrf.mxu0  ;;  %v11682_v62 = vld [vmem:[%s17704_s7 + $0x5ec] sm:$0xf]  ;;  %v10367_v44 = vld [vmem:[%s17704_s7 + $0x5f8] sm:$0xf0] }
 0x397   : > { %6604 = vmatpush.bf16.msrb.mxu1 %v9810_v45  ;;  %6643 = vmatpush.bf16.msra.mxu0 %v10194_v12  ;;  %v10622_v45 = vor.u32 %v11748_v31, %v10621_v29  ;;  %v9986_v12 = vor.u32 %v11586_v32, %v9983_v33  ;;  %v10370_v46 = vor.u32 %v11682_v62, %v10367_v44  ;;  %v10541_v33 = vld [vmem:[%s17704_s7 + $0x748] sm:$0xf]  ;;  %v11566_v44 = vld [vmem:[%s17704_s7 + $0x24c] sm:$0xf] }
 0x398   : > { %v10670_v29 = vor.u32 %v11760_v26, %v10669_v49  ;;  %v10558_v31 = vor.u32 %v11732_v37, %v10557_v20  ;;  %v10095_v49 = vld [vmem:[%s17704_s7 + $0x3d8] sm:$0xf0]  ;;  %v10637_v26 = vld [vmem:[%s17706_s9 + $0x10] sm:$0xf] }
 0x39a   : > { %6527 = vmatpush.bf16.msrb.mxu3 %v10046_v48  ;;  %6566 = vmatpush.bf16.msra.mxu2 %v10430_v55  ;;  %v10351_v48 = vld [vmem:[%s17704_s7 + $0x5d8] sm:$0xf0] }
 0x39b   : > { %6605 = vmatpush.bf16.msrb.mxu1 %v9794_v36  ;;  %6644 = vmatpush.bf16.msra.mxu0 %v10178_v1  ;;  %v10589_v36 = vld [vmem:[%s17704_s7 + $0x7a8] sm:$0xf]  ;;  %v11740_v1 = vld [vmem:[%s17704_s7 + $0x7b4] sm:$0xf0]  ;;  %v10354_v60 = vor.u32 %v11678_v53, %v10351_v48 }
 0x39e   : > { %6528 = vmatpush.bf16.msrb.mxu3 %v10030_v11  ;;  %6567 = vmatpush.bf16.msra.mxu2 %v10414_v34  ;;  %v6391_v55 = vpop.f32.mrf.mxu0  ;;  %v10686_v11 = vor.u32 %v11764_v6, %v10685_v40  ;;  %v10590_v34 = vor.u32 %v11740_v1, %v10589_v36  ;;  %v11562_v36 = vld [vmem:[%s17704_s7 + $0x22c] sm:$0xf]  ;;  %v9887_v1 = vld [vmem:[%s17704_s7 + $0x238] sm:$0xf0]  ;;  %v6390_v6 = vadd.f32 %v16872_v51, %v6269_v52 }
 0x39f   : > { %6606 = vmatpush.bf16.msrb.mxu1 %v9778_v9  ;;  %6645 = vmatpush.bf16.msra.mxu0 %v10162_v3  ;;  %v10338_v9 = vor.u32 %v11674_v50, %v10335_v30  ;;  %v10525_v55 = vld [vmem:[%s17704_s7 + $0x728] sm:$0xf]  ;;  %v11756_v50 = vld [vmem:[%s17706_s9 + $0x34] sm:$0xf0]  ;;  %v11654_v51 = vld [vmem:[%s17704_s7 + $0x50c] sm:$0xf] }
 0x3a0   : > { %v10509_v30 = vld [vmem:[%s17704_s7 + $0x708] sm:$0xf]  ;;  %v10654_v40 = vor.u32 %v11756_v50, %v10653_v4  ;;  %v10679_v4 = vld [vmem:[%s17706_s9 + $0x68] sm:$0xf0] }
 0x3a2   : > { %6529 = vmatpush.bf16.msrb.mxu3 %v10014_v54  ;;  %6568 = vmatpush.bf16.msra.mxu2 %v10398_v47 }
 0x3a3   : > { %6607 = vmatpush.bf16.msrb.mxu1 %v9762_v57  ;;  %6646 = vmatpush.bf16.msra.mxu0 %v10146_v19  ;;  %v10322_v57 = vor.u32 %v11670_v59, %v10319_v10  ;;  %v11570_v19 = vld [vmem:[%s17704_s7 + $0x26c] sm:$0xf] }
 0x3a4   : > { %v9922_v32 = vor.u32 %v11570_v19, %v9919_v21  ;;  %v11618_v59 = vld [vmem:[%s17704_s7 + $0x3ec] sm:$0xf] }
 0x3a5   : > { %v10114_v21 = vor.u32 %v11618_v59, %v10111_v2  ;;  %v11759_v59 = vld [vmem:[%s17706_s9 + $0x54] sm:$0xf]  ;;  %v10671_v2 = vld [vmem:[%s17706_s9 + $0x58] sm:$0xf0] }
 0x3a6   : > { %6530 = vmatpush.bf16.msrb.mxu3 %v9998_v23  ;;  %6569 = vmatpush.bf16.msra.mxu2 %v10382_v35  ;;  %v16950_v3 = vpop.f32.mrf.mxu1  ;;  %v16970_v54 = vpop.f32.mrf.mxu0  ;;  %v11728_v23 = vld [vmem:[%s17704_s7 + $0x754] sm:$0xf0]  ;;  %v10306_v35 = vor.u32 %v11666_v58, %v10303_v15  ;;  %v11614_v58 = vld [vmem:[%s17704_s7 + $0x3cc] sm:$0xf] }
 0x3a7   : > { %6608 = vmatpush.bf16.msrb.mxu1 %v9746_v41  ;;  %6647 = vmatpush.bf16.msra.mxu0 %v10130_v28  ;;  %v9903_v41 = vld [vmem:[%s17704_s7 + $0x258] sm:$0xf0]  ;;  %v11662_v28 = vld [vmem:[%s17704_s7 + $0x54c] sm:$0xf]  ;;  %v10542_v53 = vor.u32 %v11728_v23, %v10541_v33 }
 0x3a8   : > { %v9906_v48 = vor.u32 %v11566_v44, %v9903_v41  ;;  %v10079_v44 = vld [vmem:[%s17704_s7 + $0x3b8] sm:$0xf0] }
 0x3a9   : > { %6531 = vmatmul.bf16.vlgmr.msrb.gmra.mxu3 %v15896_v56  ;;  %6570 = vmatmul.bf16.vlgmr.msra.gmra.mxu2 %v16337_v17 }
 0x3aa   : > { %6575 = vmatpush.bf16.msra.mxu3 %v10622_v45  ;;  %6614 = vmatpush.bf16.msrb.mxu2 %v9986_v12  ;;  %v10287_v45 = vld [vmem:[%s17704_s7 + $0x558] sm:$0xf0]  ;;  %v10661_v12 = vld [vmem:[%s17706_s9 + $0x40] sm:$0xf] }
 0x3ab   : > { %6653 = vmatpush.bf16.msra.mxu1 %v10370_v46  ;;  %6648 = vmatmul.bf16.vlgmr.msra.gmra.mxu0 %v16012_v8  ;;  %v11574_v8 = vld [vmem:[%s17704_s7 + $0x28c] sm:$0xf]  ;;  %v10662_v46 = vor.u32 %v11758_v38, %v10661_v12  ;;  %v11763_v12 = vld [vmem:[%s17706_s9 + $0x74] sm:$0xf] }
 0x3ac   : > { %6609 = vmatmul.bf16.vlgmr.msrb.gmra.mxu1 %v15675_v27  ;;  %v10573_v27 = vld [vmem:[%s17704_s7 + $0x788] sm:$0xf]  ;;  %7090 = vmatpush.bf16.msrb.mxu0 %v10686_v11  ;;  %v9938_v16 = vor.u32 %v11574_v8, %v9935_v24  ;;  %v10255_v24 = vld [vmem:[%s17704_s7 + $0x518] sm:$0xf0]  ;;  %v11706_v38 = vld [vmem:[%s17704_s7 + $0x6ac] sm:$0xf] }
 0x3ad   : > { %v10574_v47 = vor.u32 %v11736_v22, %v10573_v27  ;;  %v11558_v27 = vld [vmem:[%s17704_s7 + $0x20c] sm:$0xf]  ;;  %v9871_v22 = vld [vmem:[%s17704_s7 + $0x218] sm:$0xf0]  ;;  %v10258_v19 = vor.u32 %v11654_v51, %v10255_v24 }
 0x3ae   : > { %6576 = vmatpush.bf16.msra.mxu3 %v10606_v63  ;;  %6615 = vmatpush.bf16.msrb.mxu2 %v9970_v0  ;;  %v6352_v62 = vpop.f32.mrf.mxu1  ;;  %v6443_v14 = vpop.f32.mrf.mxu0  ;;  %v11724_v63 = vld [vmem:[%s17704_s7 + $0x734] sm:$0xf0]  ;;  %v10290_v0 = vor.u32 %v11662_v28, %v10287_v45  ;;  %v10629_v28 = vld [vmem:[%s17706_s9] sm:$0xf]  ;;  %v11750_v45 = vld [vmem:[%s17706_s9 + $0x4] sm:$0xf0] }
 0x3af   : > { %6654 = vmatpush.bf16.msra.mxu1 %v10354_v60  ;;  %v11658_v60 = vld [vmem:[%s17704_s7 + $0x52c] sm:$0xf]  ;;  %v10526_v11 = vor.u32 %v11724_v63, %v10525_v55  ;;  %v10630_v52 = vor.u32 %v11750_v45, %v10629_v28  ;;  %v10687_v14 = vld [vmem:[%s17706_s9 + $0x78] sm:$0xf0] }
 0x3b0   : > { %7091 = vmatpush.bf16.msrb.mxu0 %v10678_v25  ;;  %v11754_v25 = vld [vmem:[%s17706_s9 + $0x24] sm:$0xf0]  ;;  %v11610_v62 = vld [vmem:[%s17704_s7 + $0x3ac] sm:$0xf]  ;;  %v10063_v55 = vld [vmem:[%s17704_s7 + $0x398] sm:$0xf0] }
 0x3b1   : > { %v10646_v20 = vor.u32 %v11754_v25, %v10645_v39  ;;  %v10431_v51 = vld [vmem:[%s17704_s7 + $0x678] sm:$0xf0]  ;;  %v10674_v39 = vor.u32 %v11759_v59, %v10671_v2  ;;  %v11690_v45 = vld [vmem:[%s17704_s7 + $0x62c] sm:$0xf]  ;;  %v11751_v59 = vld [vmem:[%s17706_s9 + $0x14] sm:$0xf] }
 0x3b2   : > { %6577 = vmatpush.bf16.msra.mxu3 %v10590_v34  ;;  %6616 = vmatpush.bf16.msrb.mxu2 %v9954_v7  ;;  %v9890_v34 = vor.u32 %v11562_v36, %v9887_v1  ;;  %v11720_v7 = vld [vmem:[%s17704_s7 + $0x714] sm:$0xf0]  ;;  %v10447_v1 = vld [vmem:[%s17704_s7 + $0x698] sm:$0xf0] }
 0x3b3   : > { %6655 = vmatpush.bf16.msra.mxu1 %v10338_v9  ;;  %v10274_v9 = vor.u32 %v11658_v60, %v10271_v61  ;;  %v10510_v37 = vor.u32 %v11720_v7, %v10509_v30  ;;  %v11780_v36 = vld [vmem:[%s17706_s9 + $0xf4] sm:$0xf0]  ;;  %v11761_v61 = vld [vmem:[%s17706_s9 + $0x64] sm:$0xf]  ;;  %v10639_v2 = vld [vmem:[%s17706_s9 + $0x18] sm:$0xf0] }
 0x3b4   : > { %7092 = vmatpush.bf16.msrb.mxu0 %v10670_v29  ;;  %v11752_v29 = vld [vmem:[%s17706_s9 + $0x14] sm:$0xf0]  ;;  %v10682_v50 = vor.u32 %v11761_v61, %v10679_v4  ;;  %v10647_v4 = vld [vmem:[%s17706_s9 + $0x28] sm:$0xf0] }
 0x3b5   : > { %v10638_v33 = vor.u32 %v11752_v29, %v10637_v26 }
 0x3b6   : > { %6578 = vmatpush.bf16.msra.mxu3 %v10574_v47  ;;  %6617 = vmatpush.bf16.msrb.mxu2 %v9938_v16  ;;  %v6402_v8 = vpop.f32.mrf.mxu1  ;;  %v11714_v47 = vld [vmem:[%s17704_s7 + $0x6ec] sm:$0xf]  ;;  %v10495_v16 = vld [vmem:[%s17704_s7 + $0x6f8] sm:$0xf0] }
 0x3b7   : > { %6656 = vmatpush.bf16.msra.mxu1 %v10322_v57  ;;  %v17072_v10 = vadd.f32 %v6402_v8, %v6390_v6  ;;  %v9874_v57 = vor.u32 %v11558_v27, %v9871_v22  ;;  %v10498_v15 = vor.u32 %v11714_v47, %v10495_v16  ;;  %v11698_v27 = vld [vmem:[%s17704_s7 + $0x66c] sm:$0xf]  ;;  %v10741_v22 = vld [vmem:[%s17706_s9 + $0xe0] sm:$0xf]  ;;  %v10031_v16 = vld [vmem:[%s17704_s7 + $0x358] sm:$0xf0] }
 0x3b8   : > { %7093 = vmatpush.bf16.msrb.mxu0 %v10662_v46  ;;  %v10463_v46 = vld [vmem:[%s17704_s7 + $0x6b8] sm:$0xf0]  ;;  %v11598_v47 = vld [vmem:[%s17704_s7 + $0x34c] sm:$0xf] }
 0x3b9   : > { %v10466_v63 = vor.u32 %v11706_v38, %v10463_v46  ;;  %v10655_v46 = vld [vmem:[%s17706_s9 + $0x38] sm:$0xf0] }
 0x3ba   : > { %6579 = vmatpush.bf16.msra.mxu3 %v10558_v31  ;;  %6618 = vmatpush.bf16.msrb.mxu2 %v9922_v32  ;;  %v11710_v31 = vld [vmem:[%s17704_s7 + $0x6cc] sm:$0xf]  ;;  %v10479_v32 = vld [vmem:[%s17704_s7 + $0x6d8] sm:$0xf0] }
 0x3bb   : > { %6657 = vmatpush.bf16.msra.mxu1 %v10306_v35  ;;  %v10098_v35 = vor.u32 %v11614_v58, %v10095_v49  ;;  %v10482_v41 = vor.u32 %v11710_v31, %v10479_v32  ;;  %v10663_v49 = vld [vmem:[%s17706_s9 + $0x48] sm:$0xf0]  ;;  %v10034_v32 = vor.u32 %v11598_v47, %v10031_v16  ;;  %v11768_v47 = vld [vmem:[%s17706_s9 + $0x94] sm:$0xf0]  ;;  %v11749_v16 = vld [vmem:[%s17706_s9 + $0x4] sm:$0xf] }
 0x3bc   : > { %7094 = vmatpush.bf16.msrb.mxu0 %v10654_v40 }
 0x3be   : > { %6580 = vmatpush.bf16.msra.mxu3 %v10542_v53  ;;  %6619 = vmatpush.bf16.msrb.mxu2 %v9906_v48  ;;  %v6404_v23 = vpop.f32.mrf.mxu1  ;;  %v10690_v53 = vor.u32 %v11763_v12, %v10687_v14  ;;  %v10082_v48 = vor.u32 %v11610_v62, %v10079_v44  ;;  %v10725_v62 = vld [vmem:[%s17706_s9 + $0xc0] sm:$0xf]  ;;  %v11774_v44 = vld [vmem:[%s17706_s9 + $0xc4] sm:$0xf0]  ;;  %v10399_v12 = vld [vmem:[%s17704_s7 + $0x638] sm:$0xf0] }
 0x3bf   : > { %6658 = vmatpush.bf16.msra.mxu1 %v10290_v0  ;;  %v11702_v0 = vld [vmem:[%s17704_s7 + $0x68c] sm:$0xf]  ;;  %v10015_v23 = vld [vmem:[%s17704_s7 + $0x338] sm:$0xf0]  ;;  %v10726_v38 = vor.u32 %v11774_v44, %v10725_v62  ;;  %v6351_v44 = vadd.f32 %v16950_v3, %v16780_v43 }
 0x3c0   : > { %7095 = vmatpush.bf16.msrb.mxu0 %v10646_v20  ;;  %v10450_v7 = vor.u32 %v11702_v0, %v10447_v1  ;;  %v10434_v20 = vor.u32 %v11698_v27, %v10431_v51  ;;  %v10717_v0 = vld [vmem:[%s17706_s9 + $0xb0] sm:$0xf]  ;;  %v11746_v1 = vld [vmem:[%s17704_s7 + $0x7ec] sm:$0xf]  ;;  %v10709_v27 = vld [vmem:[%s17706_s9 + $0xa0] sm:$0xf] }
 0x3c1   : > { %v10607_v51 = vld [vmem:[%s17704_s7 + $0x7d8] sm:$0xf0]  ;;  %v11730_v3 = vld [vmem:[%s17704_s7 + $0x76c] sm:$0xf] }
 0x3c2   : > { %6581 = vmatpush.bf16.msra.mxu3 %v10526_v11  ;;  %6620 = vmatpush.bf16.msrb.mxu2 %v9890_v34  ;;  %v11602_v11 = vld [vmem:[%s17704_s7 + $0x36c] sm:$0xf]  ;;  %v10047_v34 = vld [vmem:[%s17704_s7 + $0x378] sm:$0xf0] }
 0x3c3   : > { %6659 = vmatpush.bf16.msra.mxu1 %v10274_v9  ;;  %v11778_v9 = vld [vmem:[%s17706_s9 + $0xe4] sm:$0xf0]  ;;  %v10050_v25 = vor.u32 %v11602_v11, %v10047_v34  ;;  %v10575_v62 = vld [vmem:[%s17704_s7 + $0x798] sm:$0xf0] }
 0x3c4   : > { %7096 = vmatpush.bf16.msrb.mxu0 %v10638_v33  ;;  %v10742_v24 = vor.u32 %v11778_v9, %v10741_v22  ;;  %v11594_v33 = vld [vmem:[%s17704_s7 + $0x32c] sm:$0xf]  ;;  %v11770_v22 = vld [vmem:[%s17706_s9 + $0xa4] sm:$0xf0] }
 0x3c6   : > { %6582 = vmatpush.bf16.msra.mxu3 %v10510_v37  ;;  %6621 = vmatpush.bf16.msrb.mxu2 %v9874_v57  ;;  %v17158_v30 = vpop.f32.mrf.mxu0  ;;  %v11694_v37 = vld [vmem:[%s17704_s7 + $0x64c] sm:$0xf]  ;;  %v10733_v57 = vld [vmem:[%s17706_s9 + $0xd0] sm:$0xf] }
 0x3c7   : > { %6660 = vmatpush.bf16.msra.mxu1 %v10258_v19  ;;  %v11776_v19 = vld [vmem:[%s17706_s9 + $0xd4] sm:$0xf0] }
 0x3c8   : > { %7097 = vmatpush.bf16.msrb.mxu0 %v10630_v52  ;;  %v17160_v40 = vpop.f32.mrf.mxu1  ;;  %v10734_v58 = vor.u32 %v11776_v19, %v10733_v57  ;;  %v11590_v52 = vld [vmem:[%s17704_s7 + $0x30c] sm:$0xf]  ;;  %v10693_v19 = vld [vmem:[%s17706_s9 + $0x80] sm:$0xf] }
 0x3c9   : > { %6583 = vmatmul.bf16.vlgmr.msra.gmra.mxu3 %v16501_v13  ;;  %6622 = vmatmul.bf16.vlgmr.msrb.gmra.mxu2 %v15763_v42  ;;  %v11606_v42 = vld [vmem:[%s17704_s7 + $0x38c] sm:$0xf] }
 0x3ca   : > { %6627 = vmatpush.bf16.msrb.mxu3 %v10114_v21  ;;  %6666 = vmatpush.bf16.msra.mxu2 %v10498_v15  ;;  %v10066_v6 = vor.u32 %v11606_v42, %v10063_v55  ;;  %v10415_v21 = vld [vmem:[%s17704_s7 + $0x658] sm:$0xf0]  ;;  %v11757_v15 = vld [vmem:[%s17706_s9 + $0x44] sm:$0xf]  ;;  %v11686_v42 = vld [vmem:[%s17704_s7 + $0x60c] sm:$0xf] }
 0x3cb   : > { %6661 = vmatmul.bf16.vlgmr.msra.gmra.mxu1 %v16174_v18  ;;  %v10749_v18 = vld [vmem:[%s17706_s9 + $0xf0] sm:$0xf]  ;;  %v10666_v26 = vor.u32 %v11757_v15, %v10663_v49  ;;  %v10383_v55 = vld [vmem:[%s17704_s7 + $0x618] sm:$0xf0]  ;;  %v10631_v57 = vld [vmem:[%s17706_s9 + $0x8] sm:$0xf0] }
 0x3cc   : > { %7142 = vmatpush.bf16.msra.mxu0 %v10690_v53  ;;  %v10750_v60 = vor.u32 %v11780_v36, %v10749_v18  ;;  %v17177_v8 = vpop.f32.mrf.mxu2  ;;  %v10018_v53 = vor.u32 %v11594_v33, %v10015_v23  ;;  %v11772_v18 = vld [vmem:[%s17706_s9 + $0xb4] sm:$0xf0]  ;;  %v11753_v36 = vld [vmem:[%s17706_s9 + $0x24] sm:$0xf]  ;;  %v10386_v11 = vor.u32 %v11686_v42, %v10383_v55  ;;  %v10591_v15 = vld [vmem:[%s17704_s7 + $0x7b8] sm:$0xf0]  ;;  %v10634_v49 = vor.u32 %v11749_v16, %v10631_v57 }
 0x3cd   : > { %v10718_v61 = vor.u32 %v11772_v18, %v10717_v0  ;;  %v10543_v42 = vld [vmem:[%s17704_s7 + $0x758] sm:$0xf0] }
 0x3ce   : > { %6628 = vmatpush.bf16.msrb.mxu3 %v10098_v35  ;;  %6667 = vmatpush.bf16.msra.mxu2 %v10482_v41  ;;  %v6495_v29 = vpop.f32.mrf.mxu0  ;;  %v10418_v35 = vor.u32 %v11694_v37, %v10415_v21  ;;  %v11755_v41 = vld [vmem:[%s17706_s9 + $0x34] sm:$0xf]  ;;  %v11766_v21 = vld [vmem:[%s17706_s9 + $0x84] sm:$0xf0]  ;;  %v10735_v0 = vld [vmem:[%s17706_s9 + $0xd8] sm:$0xf0] }
 0x3cf   : > { %7103 = vmatpush.bf16.msrb.mxu1 %v10750_v60  ;;  %v10658_v14 = vor.u32 %v11755_v41, %v10655_v46  ;;  %v10623_v60 = vld [vmem:[%s17704_s7 + $0x7f8] sm:$0xf0] }
 0x3d0   : > { %7143 = vmatpush.bf16.msra.mxu0 %v10682_v50  ;;  %v6456_v31 = vpop.f32.mrf.mxu1  ;;  %v10650_v50 = vor.u32 %v11753_v36, %v10647_v4  ;;  %v10626_v34 = vor.u32 %v11746_v1, %v10623_v60  ;;  %v10751_v29 = vld [vmem:[%s17706_s9 + $0xf8] sm:$0xf0]  ;;  %v11722_v4 = vld [vmem:[%s17704_s7 + $0x72c] sm:$0xf] }
 0x3d1   : > { %v6270_v31 = vperm.slane %v17023_v5, 2 }
 0x3d2   : > { %6629 = vmatpush.bf16.msrb.mxu3 %v10082_v48  ;;  %6668 = vmatpush.bf16.msra.mxu2 %v10466_v63  ;;  %v9999_v48 = vld [vmem:[%s17704_s7 + $0x318] sm:$0xf0]  ;;  %v10402_v63 = vor.u32 %v11690_v45, %v10399_v12  ;;  %v11777_v45 = vld [vmem:[%s17706_s9 + $0xe4] sm:$0xf]  ;;  %v10743_v12 = vld [vmem:[%s17706_s9 + $0xe8] sm:$0xf0] }
 0x3d3   : > { %7104 = vmatpush.bf16.msrb.mxu1 %v10742_v24  ;;  %v10710_v24 = vor.u32 %v11770_v22, %v10709_v27 }
 0x3d4   : > { %7144 = vmatpush.bf16.msra.mxu0 %v10674_v39  ;;  %v6365_v28 = vpop.f32.mrf.mxu2  ;;  %v10642_v39 = vor.u32 %v11751_v59, %v10639_v2  ;;  %v11771_v59 = vld [vmem:[%s17706_s9 + $0xb4] sm:$0xf]  ;;  %v10719_v2 = vld [vmem:[%s17706_s9 + $0xb8] sm:$0xf0] }
 0x3d6   : > { %6630 = vmatpush.bf16.msrb.mxu3 %v10066_v6  ;;  %6669 = vmatpush.bf16.msra.mxu2 %v10450_v7  ;;  %v10002_v6 = vor.u32 %v11590_v52, %v9999_v48  ;;  %v11742_v7 = vld [vmem:[%s17704_s7 + $0x7cc] sm:$0xf]  ;;  %v10746_v52 = vor.u32 %v11777_v45, %v10743_v12 }
 0x3d7   : > { %7105 = vmatpush.bf16.msrb.mxu1 %v10734_v58  ;;  %v11738_v58 = vld [vmem:[%s17704_s7 + $0x7ac] sm:$0xf] }
 0x3d8   : > { %7145 = vmatpush.bf16.msra.mxu0 %v10666_v26  ;;  %v11779_v26 = vld [vmem:[%s17706_s9 + $0xf4] sm:$0xf]  ;;  %v10594_v33 = vor.u32 %v11738_v58, %v10591_v15  ;;  %v10703_v15 = vld [vmem:[%s17706_s9 + $0x98] sm:$0xf0] }
 0x3d9   : > { %v10754_v23 = vor.u32 %v11779_v26, %v10751_v29  ;;  %v11767_v58 = vld [vmem:[%s17706_s9 + $0x94] sm:$0xf]  ;;  %v11765_v29 = vld [vmem:[%s17706_s9 + $0x84] sm:$0xf] }
 0x3da   : > { %6631 = vmatpush.bf16.msrb.mxu3 %v10050_v25  ;;  %6670 = vmatpush.bf16.msra.mxu2 %v10434_v20  ;;  %v10701_v25 = vld [vmem:[%s17706_s9 + $0x90] sm:$0xf]  ;;  %v10610_v20 = vor.u32 %v11742_v7, %v10607_v51  ;;  %v11718_v51 = vld [vmem:[%s17704_s7 + $0x70c] sm:$0xf]  ;;  %v10706_v26 = vor.u32 %v11767_v58, %v10703_v15 }
 0x3db   : > { %7106 = vmatpush.bf16.msrb.mxu1 %v10726_v38  ;;  %v10702_v37 = vor.u32 %v11768_v47, %v10701_v25  ;;  %v6364_v38 = vadd.f32 %v17177_v8, %v6351_v44  ;;  %v11726_v8 = vld [vmem:[%s17704_s7 + $0x74c] sm:$0xf]  ;;  %v11769_v25 = vld [vmem:[%s17706_s9 + $0xa4] sm:$0xf]  ;;  %v11794_v44 = vld [vmem:[%s17706_s9 + $0x164] sm:$0xf0] }
 0x3dc   : > { %7146 = vmatpush.bf16.msra.mxu0 %v10658_v14  ;;  %v17275_v9 = vpop.f32.mrf.mxu2  ;;  %v10711_v47 = vld [vmem:[%s17706_s9 + $0xa8] sm:$0xf0] }
 0x3dd   : > { %v10791_v58 = vld [vmem:[%s17706_s9 + $0x148] sm:$0xf0] }
 0x3de   : > { %6632 = vmatpush.bf16.msrb.mxu3 %v10034_v32  ;;  %6671 = vmatpush.bf16.msra.mxu2 %v10418_v35  ;;  %v10694_v32 = vor.u32 %v11766_v21, %v10693_v19  ;;  %v10714_v19 = vor.u32 %v11769_v25, %v10711_v47 }
 0x3df   : > { %7107 = vmatpush.bf16.msrb.mxu1 %v10718_v61  ;;  %v10546_v61 = vor.u32 %v11726_v8, %v10543_v42  ;;  %v10781_v8 = vld [vmem:[%s17706_s9 + $0x130] sm:$0xf]  ;;  %v11788_v42 = vld [vmem:[%s17706_s9 + $0x134] sm:$0xf0] }
 0x3e0   : > { %7147 = vmatpush.bf16.msra.mxu0 %v10650_v50 }
 0x3e2   : > { %6633 = vmatpush.bf16.msrb.mxu3 %v10018_v53  ;;  %6672 = vmatpush.bf16.msra.mxu2 %v10402_v63  ;;  %v11775_v63 = vld [vmem:[%s17706_s9 + $0xd4] sm:$0xf] }
 0x3e3   : > { %7108 = vmatpush.bf16.msrb.mxu1 %v10710_v24  ;;  %v10738_v18 = vor.u32 %v11775_v63, %v10735_v0  ;;  %v10511_v24 = vld [vmem:[%s17704_s7 + $0x718] sm:$0xf0]  ;;  %v10773_v0 = vld [vmem:[%s17706_s9 + $0x120] sm:$0xf] }
 0x3e4   : > { %7148 = vmatpush.bf16.msra.mxu0 %v10642_v39  ;;  %v6417_v35 = vpop.f32.mrf.mxu2  ;;  %v10722_v39 = vor.u32 %v11771_v59, %v10719_v2  ;;  %v10514_v57 = vor.u32 %v11718_v51, %v10511_v24  ;;  %v6271_v51 = vperm.slane %v17023_v5, 3  ;;  %v11793_v24 = vld [vmem:[%s17706_s9 + $0x164] sm:$0xf]  ;;  %v10807_v59 = vld [vmem:[%s17706_s9 + $0x168] sm:$0xf0] }
 0x3e5   : > { %v10810_v2 = vor.u32 %v11793_v24, %v10807_v59  ;;  %v11791_v5 = vld [vmem:[%s17706_s9 + $0x154] sm:$0xf] }
 0x3e6   : > { %6634 = vmatpush.bf16.msrb.mxu3 %v10002_v6  ;;  %6673 = vmatpush.bf16.msra.mxu2 %v10386_v11  ;;  %v6506_v41 = vpop.f32.mrf.mxu1  ;;  %v10527_v6 = vld [vmem:[%s17704_s7 + $0x738] sm:$0xf0]  ;;  %v11773_v11 = vld [vmem:[%s17706_s9 + $0xc4] sm:$0xf] }
 0x3e7   : > { %7109 = vmatpush.bf16.msrb.mxu1 %v10702_v37  ;;  %v10530_v22 = vor.u32 %v11722_v4, %v10527_v6  ;;  %v11796_v37 = vld [vmem:[%s17706_s9 + $0x174] sm:$0xf0]  ;;  %v10757_v6 = vld [vmem:[%s17706_s9 + $0x100] sm:$0xf] }
 0x3e8   : > { %7149 = vmatpush.bf16.msra.mxu0 %v10634_v49 }
 0x3e9   : > { %6635 = vmatmul.bf16.vlgmr.msrb.gmra.mxu3 %v15896_v56  ;;  %6674 = vmatmul.bf16.vlgmr.msra.gmra.mxu2 %v16337_v17  ;;  %v11734_v56 = vld [vmem:[%s17704_s7 + $0x78c] sm:$0xf]  ;;  %v6494_v17 = vadd.f32 %v17158_v30, %v6270_v31  ;;  %v17337_v43 = vpop.f32.mrf.mxu0  ;;  %v10559_v30 = vld [vmem:[%s17704_s7 + $0x778] sm:$0xf0] }
 0x3ea   : > { %6679 = vmatpush.bf16.msra.mxu3 %v10626_v34  ;;  %v10578_v28 = vor.u32 %v11734_v56, %v10575_v62  ;;  %v10562_v48 = vor.u32 %v11730_v3, %v10559_v30  ;;  %v10727_v34 = vld [vmem:[%s17706_s9 + $0xc8] sm:$0xf0]  ;;  %v10805_v62 = vld [vmem:[%s17706_s9 + $0x160] sm:$0xf] }
 0x3eb   : > { %7110 = vmatpush.bf16.msrb.mxu1 %v10694_v32  ;;  %v17335_v46 = vadd.f32 %v6506_v41, %v6494_v17  ;;  %v10730_v27 = vor.u32 %v11773_v11, %v10727_v34  ;;  %v10695_v31 = vld [vmem:[%s17706_s9 + $0x88] sm:$0xf0]  ;;  %v6416_v32 = vadd.f32 %v17275_v9, %v17072_v10  ;;  %v10806_v17 = vor.u32 %v11794_v44, %v10805_v62  ;;  %v10797_v41 = vld [vmem:[%s17706_s9 + $0x150] sm:$0xf]  ;;  %v11782_v11 = vld [vmem:[%s17706_s9 + $0x104] sm:$0xf0] }
 0x3ec   : > { %v6376_v14 = vpop.f32.mrf.mxu3  ;;  %v11795_v34 = vld [vmem:[%s17706_s9 + $0x174] sm:$0xf] }
 0x3ed   : > { %v6377_v53 = vadd.f32 %v6376_v14, %v6364_v38  ;;  %v10789_v38 = vld [vmem:[%s17706_s9 + $0x140] sm:$0xf]  ;;  %v11783_v62 = vld [vmem:[%s17706_s9 + $0x114] sm:$0xf] }
 0x3ee   : > { %6680 = vmatpush.bf16.msra.mxu3 %v10610_v20  ;;  %v6508_v60 = vpop.f32.mrf.mxu1  ;;  %v10813_v20 = vld [vmem:[%s17706_s9 + $0x170] sm:$0xf] }
 0x3ef   : > { %7155 = vmatpush.bf16.msra.mxu1 %v10754_v23  ;;  %v6692_v55 = vmax.f32 %v6377_v53, 0.0  ;;  %v6467_v1 = vpop.f32.mrf.mxu2  ;;  %v10814_v21 = vor.u32 %v11796_v37, %v10813_v20  ;;  %v10765_v60 = vld [vmem:[%s17706_s9 + $0x110] sm:$0xf]  ;;  %v10799_v20 = vld [vmem:[%s17706_s9 + $0x158] sm:$0xf0] }
 0x3f0   : > { %v10802_v37 = vor.u32 %v11791_v5, %v10799_v20  ;;  %v10879_v5 = vld [vmem:[%s17706_s9 + $0x1f8] sm:$0xf0] }
 0x3f1   : > { %v6696_v36 = vpack.c.bf16 %v6692_v55, %v6692_v55  ;;  %v6547_v50 = vpop.f32.mrf.mxu0  ;;  %7116 = vmatpush.bf16.msrb.mxu2 %v10814_v21  ;;  %v10782_v55 = vor.u32 %v11788_v42, %v10781_v8  ;;  %v11789_v21 = vld [vmem:[%s17706_s9 + $0x144] sm:$0xf] }
 0x3f2   : > { %6681 = vmatpush.bf16.msra.mxu3 %v10594_v33  ;;  %v10698_v33 = vor.u32 %v11765_v29, %v10695_v31 }
 0x3f3   : > { %7156 = vmatpush.bf16.msra.mxu1 %v10746_v52  ;;  %7098 = vmatmul.bf16.vlgmr.msrb.gmra.mxu0 %v6696_v36 }
 0x3f4   : > { %v6378_v7 = vpop.f32.mrf.mxu3 }
 0x3f5   : > { %7117 = vmatpush.bf16.msrb.mxu2 %v10806_v17  ;;  %v10815_v7 = vld [vmem:[%s17706_s9 + $0x178] sm:$0xf0] }
 0x3f6   : > { %6682 = vmatpush.bf16.msra.mxu3 %v10578_v28  ;;  %v10767_v17 = vld [vmem:[%s17706_s9 + $0x118] sm:$0xf0] }
 0x3f7   : > { %7157 = vmatpush.bf16.msra.mxu1 %v10738_v18  ;;  %v6469_v16 = vpop.f32.mrf.mxu2  ;;  %v11786_v18 = vld [vmem:[%s17706_s9 + $0x124] sm:$0xf0] }
 0x3fa   : > { %6683 = vmatpush.bf16.msra.mxu3 %v10562_v48 }
 0x3fb   : > { %7158 = vmatpush.bf16.msra.mxu1 %v10730_v27  ;;  %v10758_v27 = vor.u32 %v11782_v11, %v10757_v6  ;;  %v10837_v11 = vld [vmem:[%s17706_s9 + $0x1a0] sm:$0xf] }
 0x3fc   : > { %v6428_v49 = vpop.f32.mrf.mxu3 }
 0x3fd   : > { %v6429_v23 = vadd.f32 %v6428_v49, %v6416_v32 }
 0x3fe   : > { %6684 = vmatpush.bf16.msra.mxu3 %v10546_v61  ;;  %v11784_v61 = vld [vmem:[%s17706_s9 + $0x114] sm:$0xf0] }
 0x3ff   : > { %7159 = vmatpush.bf16.msra.mxu1 %v10722_v39  ;;  %v6442_v56 = vadd.f32 %v16970_v54, %v6429_v23  ;;  %v11792_v54 = vld [vmem:[%s17706_s9 + $0x154] sm:$0xf0]  ;;  %v10766_v50 = vor.u32 %v11784_v61, %v10765_v60  ;;  %v10845_v61 = vld [vmem:[%s17706_s9 + $0x1b0] sm:$0xf] }
 0x400   : > { %v10798_v28 = vor.u32 %v11792_v54, %v10797_v41 }
 0x401   : > { %v6455_v9 = vadd.f32 %v17160_v40, %v6442_v56  ;;  %v11790_v40 = vld [vmem:[%s17706_s9 + $0x144] sm:$0xf0] }
 0x402   : > { %6685 = vmatpush.bf16.msra.mxu3 %v10530_v22  ;;  %7118 = vmatpush.bf16.msrb.mxu2 %v10798_v28  ;;  %v10790_v30 = vor.u32 %v11790_v40, %v10789_v38  ;;  %v10818_v22 = vor.u32 %v11795_v34, %v10815_v7  ;;  %v10770_v28 = vor.u32 %v11783_v62, %v10767_v17  ;;  %v10869_v40 = vld [vmem:[%s17706_s9 + $0x1e0] sm:$0xf]  ;;  %v11802_v34 = vld [vmem:[%s17706_s9 + $0x1a4] sm:$0xf0]  ;;  %v11801_v62 = vld [vmem:[%s17706_s9 + $0x1a4] sm:$0xf] }
 0x403   : > { %7160 = vmatpush.bf16.msra.mxu1 %v10714_v19  ;;  %7150 = vmatmul.bf16.vlgmr.msra.gmra.mxu0 %v6696_v36  ;;  %v6468_v12 = vadd.f32 %v6467_v1, %v6455_v9  ;;  %v10774_v1 = vor.u32 %v11786_v18, %v10773_v0  ;;  %v11812_v9 = vld [vmem:[%s17706_s9 + $0x1f4] sm:$0xf0]  ;;  %v10838_v7 = vor.u32 %v11802_v34, %v10837_v11 }
 0x404   : > { %v6430_v35 = vpop.f32.mrf.mxu3  ;;  %v11820_v11 = vld [vmem:[%s17708_s11 + $0x38] sm:$0xff] }
 0x405   : > { %v11785_v35 = vld [vmem:[%s17706_s9 + $0x124] sm:$0xf]  ;;  %v11828_v34 = vld [vmem:[%s17708_s11 + $0x78] sm:$0xff]  ;;  %7327 = vmatpush.bf16.msrb.mxu0 %v11820_v11 }
 0x406   : > { %6686 = vmatpush.bf16.msra.mxu3 %v10514_v57  ;;  %7119 = vmatpush.bf16.msrb.mxu2 %v10790_v30 }
 0x407   : > { %7161 = vmatpush.bf16.msra.mxu1 %v10706_v26  ;;  %v10794_v26 = vor.u32 %v11789_v21, %v10791_v58  ;;  %v11807_v58 = vld [vmem:[%s17706_s9 + $0x1d4] sm:$0xf] }
 0x409   : > { %6687 = vmatmul.bf16.vlgmr.msra.gmra.mxu3 %v16501_v13  ;;  %v17415_v10 = vpop.f32.mrf.mxu1  ;;  %v6597_v13 = vpop.f32.mrf.mxu0 }
 0x40a   : > { %7120 = vmatpush.bf16.msrb.mxu2 %v10782_v55  ;;  %v6598_v39 = vadd.f32 %v6597_v13, %v6271_v51  ;;  %v10877_v13 = vld [vmem:[%s17706_s9 + $0x1f0] sm:$0xf]  ;;  %v10853_v55 = vld [vmem:[%s17706_s9 + $0x1c0] sm:$0xf] }
 0x40b   : > { %7162 = vmatpush.bf16.msra.mxu1 %v10698_v33  ;;  %v10783_v33 = vld [vmem:[%s17706_s9 + $0x138] sm:$0xf0]  ;;  %v10878_v54 = vor.u32 %v11812_v9, %v10877_v13 }
 0x40c   : > { %v6519_v45 = vpop.f32.mrf.mxu2  ;;  %v6480_v3 = vpop.f32.mrf.mxu3  ;;  %v10831_v13 = vld [vmem:[%s17706_s9 + $0x198] sm:$0xf0] }
 0x40d   : > { %v6481_v52 = vadd.f32 %v6480_v3, %v6468_v12  ;;  %v6520_v57 = vadd.f32 %v6519_v45, %v17335_v46  ;;  %v11787_v46 = vld [vmem:[%s17706_s9 + $0x134] sm:$0xf]  ;;  %7129 = vmatpush.bf16.msrb.mxu3 %v10878_v54  ;;  %v11781_v45 = vld [vmem:[%s17706_s9 + $0x104] sm:$0xf]  ;;  %v10759_v12 = vld [vmem:[%s17706_s9 + $0x108] sm:$0xf0] }
 0x40e   : > { %7121 = vmatpush.bf16.msrb.mxu2 %v10774_v1  ;;  %v10786_v23 = vor.u32 %v11787_v46, %v10783_v33  ;;  %v10762_v38 = vor.u32 %v11781_v45, %v10759_v12  ;;  %v11810_v3 = vld [vmem:[%s17706_s9 + $0x1e4] sm:$0xf0]  ;;  %v11797_v45 = vld [vmem:[%s17706_s9 + $0x184] sm:$0xf]  ;;  %v10823_v12 = vld [vmem:[%s17706_s9 + $0x188] sm:$0xf0] }
 0x40f   : > { %v6693_v48 = vmax.f32 %v6481_v52, 0.0  ;;  %v10870_v30 = vor.u32 %v11810_v3, %v10869_v40 }
 0x411   : > { %v6560_v14 = vpop.f32.mrf.mxu1  ;;  %v6599_v53 = vpop.f32.mrf.mxu0  ;;  %v6697_v63 = vpack.c.bf16 %v6693_v48, %v6693_v48  ;;  %7130 = vmatpush.bf16.msrb.mxu3 %v10870_v30  ;;  %v11808_v48 = vld [vmem:[%s17706_s9 + $0x1d4] sm:$0xf0] }
 0x412   : > { %7122 = vmatpush.bf16.msrb.mxu2 %v10766_v50  ;;  %v10861_v53 = vld [vmem:[%s17706_s9 + $0x1d0] sm:$0xf] }
 0x413   : > { %7111 = vmatmul.bf16.vlgmr.msrb.gmra.mxu1 %v6697_v63  ;;  %v10862_v8 = vor.u32 %v11808_v48, %v10861_v53 }
 0x414   : > { %v6521_v36 = vpop.f32.mrf.mxu2  ;;  %v6482_v4 = vpop.f32.mrf.mxu3  ;;  %7340 = vmatpush.bf16.msrb.mxu1 %v11828_v34 }
 0x415   : > { %7131 = vmatpush.bf16.msrb.mxu3 %v10862_v8  ;;  %v11804_v4 = vld [vmem:[%s17706_s9 + $0x1b4] sm:$0xf0] }
 0x416   : > { %7123 = vmatpush.bf16.msrb.mxu2 %v10758_v27  ;;  %v10846_v50 = vor.u32 %v11804_v4, %v10845_v61  ;;  %v10829_v27 = vld [vmem:[%s17706_s9 + $0x190] sm:$0xf] }
 0x41a   : > { %7168 = vmatpush.bf16.msra.mxu2 %v10818_v22  ;;  %v11800_v22 = vld [vmem:[%s17706_s9 + $0x194] sm:$0xf0] }
 0x41b   : > { %v10830_v59 = vor.u32 %v11800_v22, %v10829_v27  ;;  %v11827_v27 = vld [vmem:[%s17708_s11 + $0x70] sm:$0xff]  ;;  %v11818_v22 = vld [vmem:[%s17708_s11 + $0x28] sm:$0xff] }
 0x41c   : > { %7341 = vmatpush.bf16.msrb.mxu1 %v11827_v27 }
 0x41e   : > { %7169 = vmatpush.bf16.msra.mxu2 %v10810_v2  ;;  %v10821_v2 = vld [vmem:[%s17706_s9 + $0x180] sm:$0xf] }
 0x422   : > { %7170 = vmatpush.bf16.msra.mxu2 %v10802_v37 }
 0x423   : > { %7163 = vmatmul.bf16.vlgmr.msra.gmra.mxu1 %v6697_v63 }
 0x426   : > { %7171 = vmatpush.bf16.msra.mxu2 %v10794_v26 }
 0x428   : > { %v17469_v16 = vpop.f32.mrf.mxu0 }
 0x429   : > { %v6610_v25 = vpop.f32.mrf.mxu1 }
 0x42a   : > { %v17467_v47 = vadd.f32 %v6610_v25, %v6598_v39  ;;  %7172 = vmatpush.bf16.msra.mxu2 %v10786_v23  ;;  %v11798_v39 = vld [vmem:[%s17706_s9 + $0x184] sm:$0xf0]  ;;  %v11811_v25 = vld [vmem:[%s17706_s9 + $0x1f4] sm:$0xf] }
 0x42b   : > { %v10822_v20 = vor.u32 %v11798_v39, %v10821_v2  ;;  %v10882_v37 = vor.u32 %v11811_v25, %v10879_v5  ;;  %v11815_v39 = vld [vmem:[%s17708_s11 + $0x10] sm:$0xff] }
 0x42c   : > { %v6532_v19 = vpop.f32.mrf.mxu3  ;;  %v6571_v49 = vpop.f32.mrf.mxu2 }
 0x42d   : > { %v6533_v15 = vadd.f32 %v6532_v19, %v6520_v57  ;;  %v11809_v57 = vld [vmem:[%s17706_s9 + $0x1e4] sm:$0xf]  ;;  %v10871_v19 = vld [vmem:[%s17706_s9 + $0x1e8] sm:$0xf0] }
 0x42e   : > { %v10874_v21 = vor.u32 %v11809_v57, %v10871_v19  ;;  %v11813_v57 = vld [vmem:[%s17708_s11] sm:$0xff] }
 0x42f   : > { %v6546_v29 = vadd.f32 %v17337_v43, %v6533_v15  ;;  %v10775_v43 = vld [vmem:[%s17706_s9 + $0x128] sm:$0xf0]  ;;  %v10863_v15 = vld [vmem:[%s17706_s9 + $0x1d8] sm:$0xf0]  ;;  %v11825_v19 = vld [vmem:[%s17708_s11 + $0x60] sm:$0xff] }
 0x430   : > { %v6651_v32 = vpop.f32.mrf.mxu0  ;;  %v10778_v56 = vor.u32 %v11785_v35, %v10775_v43  ;;  %v11803_v43 = vld [vmem:[%s17706_s9 + $0x1b4] sm:$0xf] }
 0x431   : > { %v6612_v31 = vpop.f32.mrf.mxu1  ;;  %v6559_v52 = vadd.f32 %v17415_v10, %v6546_v29  ;;  %v11806_v10 = vld [vmem:[%s17706_s9 + $0x1c4] sm:$0xf0]  ;;  %v11805_v29 = vld [vmem:[%s17706_s9 + $0x1c4] sm:$0xf] }
 0x432   : > { %7173 = vmatpush.bf16.msra.mxu2 %v10778_v56  ;;  %v10854_v18 = vor.u32 %v11806_v10, %v10853_v55  ;;  %v10855_v31 = vld [vmem:[%s17706_s9 + $0x1c8] sm:$0xf0]  ;;  %v6764_v10 = vld [vmem:[%s17707_s10] sm:$0x3] }
 0x433   : > { %v6572_v42 = vadd.f32 %v6571_v49, %v6559_v52  ;;  %v10866_v49 = vor.u32 %v11807_v58, %v10863_v15  ;;  %v10858_v46 = vor.u32 %v11805_v29, %v10855_v31  ;;  %v11823_v58 = vld [vmem:[%s17708_s11 + $0x50] sm:$0xff]  ;;  %v11822_v15 = vld [vmem:[%s17708_s11 + $0x48] sm:$0xff] }
 0x434   : > { %v6534_v44 = vpop.f32.mrf.mxu3  ;;  %v6573_v41 = vpop.f32.mrf.mxu2  ;;  %7132 = vmatpush.bf16.msrb.mxu3 %v10854_v18 }
 0x435   : > { %v10839_v44 = vld [vmem:[%s17706_s9 + $0x1a8] sm:$0xf0] }
 0x436   : > { %7174 = vmatpush.bf16.msra.mxu2 %v10770_v28  ;;  %v10842_v17 = vor.u32 %v11801_v62, %v10839_v44 }
 0x438   : > { %7133 = vmatpush.bf16.msrb.mxu3 %v10846_v50 }
 0x43a   : > { %7175 = vmatpush.bf16.msra.mxu2 %v10762_v38  ;;  %v10826_v38 = vor.u32 %v11797_v45, %v10823_v12 }
 0x43c   : > { %7134 = vmatpush.bf16.msrb.mxu3 %v10838_v7  ;;  %v11819_v7 = vld [vmem:[%s17708_s11 + $0x30] sm:$0xff] }
 0x43d   : > { %7328 = vmatpush.bf16.msrb.mxu0 %v11819_v7 }
 0x440   : > { %7135 = vmatpush.bf16.msrb.mxu3 %v10830_v59  ;;  %v11816_v59 = vld [vmem:[%s17708_s11 + $0x18] sm:$0xff] }
 0x441   : > { %7329 = vmatpush.bf16.msrb.mxu0 %v11818_v22 }
 0x444   : > { %7136 = vmatpush.bf16.msrb.mxu3 %v10822_v20  ;;  %v11814_v20 = vld [vmem:[%s17708_s11 + $0x8] sm:$0xff] }
 0x448   : > { %v17522_v14 = vpop.f32.mrf.mxu1  ;;  %7181 = vmatpush.bf16.msra.mxu3 %v10882_v37  ;;  %v11826_v37 = vld [vmem:[%s17708_s11 + $0x68] sm:$0xff] }
 0x449   : > { %7342 = vmatpush.bf16.msrb.mxu1 %v11826_v37 }
 0x44c   : > { %v6584_v63 = vpop.f32.mrf.mxu3  ;;  %v6623_v0 = vpop.f32.mrf.mxu2  ;;  %7182 = vmatpush.bf16.msra.mxu3 %v10874_v21  ;;  %v11824_v21 = vld [vmem:[%s17708_s11 + $0x58] sm:$0xff] }
 0x44d   : > { %v6585_v36 = vadd.f32 %v6584_v63, %v6572_v42  ;;  %v6624_v26 = vadd.f32 %v6623_v0, %v17467_v47  ;;  %v10847_v47 = vld [vmem:[%s17706_s9 + $0x1b8] sm:$0xf0]  ;;  %v7086_v0 = vperm.slane %v6764_v10, 0  ;;  %7343 = vmatpush.bf16.msrb.mxu1 %v11825_v19 }
 0x44e   : > { %v10850_v56 = vor.u32 %v11803_v43, %v10847_v47 }
 0x44f   : > { %v6694_v1 = vmax.f32 %v6585_v36, 0.0 }
 0x450   : > { %v6664_v60 = vpop.f32.mrf.mxu1  ;;  %7183 = vmatpush.bf16.msra.mxu3 %v10866_v49  ;;  %v11821_v49 = vld [vmem:[%s17708_s11 + $0x40] sm:$0xff] }
 0x451   : > { %v6698_v6 = vpack.c.bf16 %v6694_v1, %v6694_v1  ;;  %7344 = vmatpush.bf16.msrb.mxu1 %v11824_v21 }
 0x453   : > { %7124 = vmatmul.bf16.vlgmr.msrb.gmra.mxu2 %v6698_v6 }
 0x454   : > { %v6586_v51 = vpop.f32.mrf.mxu3  ;;  %v6625_v24 = vpop.f32.mrf.mxu2  ;;  %7184 = vmatpush.bf16.msra.mxu3 %v10858_v46 }
 0x455   : > { %v11817_v24 = vld [vmem:[%s17708_s11 + $0x20] sm:$0xff]  ;;  %7345 = vmatpush.bf16.msrb.mxu1 %v11823_v58 }
 0x456   : > { %7330 = vmatpush.bf16.msrb.mxu0 %v11817_v24 }
 0x458   : > { %7185 = vmatpush.bf16.msra.mxu3 %v10850_v56 }
 0x459   : > { %7346 = vmatpush.bf16.msrb.mxu1 %v11822_v15 }
 0x45a   : > { %7331 = vmatpush.bf16.msrb.mxu0 %v11816_v59 }
 0x45c   : > { %7186 = vmatpush.bf16.msra.mxu3 %v10842_v17 }
 0x45d   : > { %7347 = vmatpush.bf16.msrb.mxu1 %v11821_v49 }
 0x45e   : > { %7332 = vmatpush.bf16.msrb.mxu0 %v11815_v39 }
 0x462   : > { %7333 = vmatpush.bf16.msrb.mxu0 %v11814_v20 }
 0x463   : > { %7176 = vmatmul.bf16.vlgmr.msra.gmra.mxu2 %v6698_v6 }
 0x466   : > { %7334 = vmatpush.bf16.msrb.mxu0 %v11813_v57 }
 0x46c   : > { %v6636_v32 = vpop.f32.mrf.mxu3  ;;  %v6675_v23 = vpop.f32.mrf.mxu2 }
 0x46d   : > { %v6637_v33 = vadd.f32 %v6636_v32, %v6624_v26 }
 0x46f   : > { %v6650_v35 = vadd.f32 %v17469_v16, %v6637_v33  ;;  %v11799_v16 = vld [vmem:[%s17706_s9 + $0x194] sm:$0xf] }
 0x470   : > { %v7099_v54 = vpop.f32.mrf.mxu0  ;;  %v10834_v28 = vor.u32 %v11799_v16, %v10831_v13  ;;  %v7230_v16 = vld [vmem:[%s17709_s12] sm:$0x1] }
 0x471   : > { %v6663_v3 = vadd.f32 %v17522_v14, %v6650_v35  ;;  %v7100_v18 = vadd.f32 %v7099_v54, %v7086_v0  ;;  %v7087_v14 = vperm.slane %v6764_v10, 1 }
 0x472   : > { %7187 = vmatpush.bf16.msra.mxu3 %v10834_v28 }
 0x473   : > { %v6676_v52 = vadd.f32 %v6675_v23, %v6663_v3 }
 0x474   : > { %v6638_v9 = vpop.f32.mrf.mxu3  ;;  %v6677_v41 = vpop.f32.mrf.mxu2 }
 0x476   : > { %7188 = vmatpush.bf16.msra.mxu3 %v10826_v38 }
 0x478   : > { %v7101_v40 = vpop.f32.mrf.mxu0 }
 0x480   : > { %v7151_v30 = vpop.f32.mrf.mxu0 }
 0x481   : > { %v7152_v61 = vadd.f32 %v7151_v30, %v7087_v14 }
 0x488   : > { %v7153_v42 = vpop.f32.mrf.mxu0 }
 0x48c   : > { %v6688_v53 = vpop.f32.mrf.mxu3 }
 0x48d   : > { %v6689_v48 = vadd.f32 %v6688_v53, %v6676_v52 }
 0x48f   : > { %v6695_v8 = vmax.f32 %v6689_v48, 0.0 }
 0x490   : > { %v7112_v36 = vpop.f32.mrf.mxu1 }
 0x491   : > { %v6699_v55 = vpack.c.bf16 %v6695_v8, %v6695_v8  ;;  %v7113_v1 = vadd.f32 %v7112_v36, %v7100_v18 }
 0x493   : > { %7137 = vmatmul.bf16.vlgmr.msrb.gmra.mxu3 %v6699_v55 }
 0x494   : > { %v6690_v63 = vpop.f32.mrf.mxu3 }
 0x498   : > { %v7114_v60 = vpop.f32.mrf.mxu1 }
 0x4a0   : > { %v7164_v4 = vpop.f32.mrf.mxu1 }
 0x4a1   : > { %v7165_v50 = vadd.f32 %v7164_v4, %v7152_v61 }
 0x4a3   : > { %7189 = vmatmul.bf16.vlgmr.msra.gmra.mxu3 %v6699_v55 }
 0x4a8   : > { %v7166_v6 = vpop.f32.mrf.mxu1 }
 0x4d6   : > { %v7125_v51 = vpop.f32.mrf.mxu2 }
 0x4d7   : > { %v7126_v26 = vadd.f32 %v7125_v51, %v7113_v1 }
 0x4de   : > { %v7127_v2 = vpop.f32.mrf.mxu2 }
 0x4e6   : > { %v7177_v25 = vpop.f32.mrf.mxu2 }
 0x4e7   : > { %v7178_v23 = vadd.f32 %v7177_v25, %v7165_v50 }
 0x4ee   : > { %v7179_v5 = vpop.f32.mrf.mxu2 }
 0x516   : > { %v7138_v29 = vpop.f32.mrf.mxu3 }
 0x517   : > { %v7139_v31 = vadd.f32 %v7138_v29, %v7126_v26 }
 0x519   : > { %v7194_v32 = vmax.f32 %v7139_v31, 0.0 }
 0x51b   : > { %v7196_v46 = vpack.c.bf16 %v7194_v32, %v7194_v32 }
 0x51d   : > { %7335 = vmatmul.bf16.vlgmr.msrb.gmra.mxu0 %v7196_v46 }
 0x51e   : > { %v7140_v33 = vpop.f32.mrf.mxu3 }
 0x526   : > { %v7190_v35 = vpop.f32.mrf.mxu3 }
 0x527   : > { %v7191_v43 = vadd.f32 %v7190_v35, %v7178_v23 }
 0x529   : > { %v7195_v47 = vmax.f32 %v7191_v43, 0.0 }
 0x52b   : > { %v7197_v56 = vpack.c.bf16 %v7195_v47, %v7195_v47 }
 0x52d   : > { %7348 = vmatmul.bf16.vlgmr.msrb.gmra.mxu1 %v7197_v56 }
 0x52e   : > { %v7192_v62 = vpop.f32.mrf.mxu3 }
 0x59a   : > { %v7336_v44 = vpop.f32.mrf.mxu0 }
 0x59b   : > { %v7337_v13 = vadd.f32 %v7336_v44, %v7230_v16 }
 0x5a2   : > { %v7338_v17 = vpop.f32.mrf.mxu0 }
 0x5aa   : > { %v7349_v9 = vpop.f32.mrf.mxu1 }
 0x5ab   : > { %v7350_v41 = vadd.f32 %v7349_v9, %v7337_v13 }
 0x5ad   : > { %7353 = vst [vmem:[%s432_s19] sm:$0x1] %v7350_v41 }
 0x5ae   : > { %11898 = shalt.err (!%p11895_p3)
}
 0x5af   : > { %11830 = dma.vmem_to_hbm [thread:$0]  (%p12043_p5), %s7366_s16, 16, %s7368_s20, %s7355_s21  }
 0x5b2   : > { %v7351_v54 = vpop.f32.mrf.mxu1 }
 0x5b3 PF: > { %p11836_p4 = scmp.ge.s32.totalorder %s11933_s28, 2  ;;  %s7379_s0 = sand.u32 1, %s11921_s25  }
 0x5b4   : > { %s7380_s14 = scalar_lea.sflag [#allocation3], %s7379_s0 }
 0x5b5   : > { %p11833_p7 = pnand %p11836_p4, %p12047_p6 }
 0x5b7   : > { %p11834_p8 = pneg %p11833_p7 }
 0x5b9   : > { %11916 = dma.done.wait (%p11834_p8), %s7380_s14, 16  }
 0x5ba   : > { %11918 = vsyncadd (%p11834_p8), %s7380_s14, 4294967280  ;;  %s17724_s28 = sld [smem:[#allocation6_spill]]  ;;  %s17727_s25 = smov %s11925_s26 }
 0x5bb   : > { %s17725_s19 = sld [smem:[#allocation5_spill]] }
 0x5bc   : > { %s17726_s27 = sld [smem:[#allocation7_spill]] }
 0x5c0   : > { %p23_p9 = scmp.ge.s32.totalorder %s17724_s28, 4  }
 0x5c1   : > { %s17728_s26 = smov %s17725_s19 }
 0x5c2   :  { %25 = sbr.rel (!%p23_p9) target bundleno = 5 (0x5), region = 108 }
 0x5c7   :  { %7385 = vsyncpa [#allocation3], 1 }
 0x5c8   :  { %7387 = vsyncpa [#allocation3 + $0x1], 1 }

</bundles_post_ra>
